<compile_context>
chip_gen: v6e
topology: v6e:2x2x1
jax: 0.10.0
libtpu: 0.0.40
codegen_flags: <defaults>
</compile_context>

<pallas_src>
import jax
import jax.numpy as jnp
from jax.experimental import pallas as pl
from jax.experimental.pallas import tpu as pltpu

HIDDEN = 1280           # channels of the last backbone feature map (MobileNetV4 head)
NUM_CLASSES = 1000
PADDED_CLASSES = 1024   # 8 * 128 -> lane-dense classifier output


def _fused_kernel(x_ref, wc_ref, wl_ref, bl_ref, out_ref):
    """1x1 conv -> ReLU -> global average pool -> Linear, fused per batch tile.

    x_ref  : (TB, HW, C)          bf16 activations (channels-last)
    wc_ref : (C, 1280)            bf16 pointwise-conv weight   (resident)
    wl_ref : (1280, 1024)         bf16 classifier weight, padded (resident)
    bl_ref : (1, 1024)            f32  classifier bias, padded   (resident)
    out_ref: (TB, 1024)           f32  padded logits for this batch tile
    """
    TB, HW, C = x_ref.shape

    # Pointwise conv as one GEMM over all TB*HW positions (f32 accumulation).
    x = x_ref[...].reshape(TB * HW, C)
    h = jnp.dot(x, wc_ref[...], preferred_element_type=jnp.float32)   # (TB*HW, 1280)
    h = jnp.maximum(h, 0.0)                                           # ReLU (f32 VPU)

    # Global average pool over the spatial axis -> (TB, 1280) f32.
    pooled = h.reshape(TB, HW, HIDDEN).sum(axis=1) * (1.0 / HW)

    # flatten + Linear(1280, 1000) (padded to 1024 cols), M = TB rows.
    logits = jnp.dot(pooled.astype(jnp.bfloat16), wl_ref[...],
                     preferred_element_type=jnp.float32)              # (TB, 1024)
    out_ref[...] = logits + bl_ref[...]


def prepare_params(w_conv, w_lin, b_lin):
    """One-time weight preparation (hoisted OUT of the per-call forward).

    Returns bf16 conv weight, bf16 zero-padded classifier weight (1280, 1024),
    and f32 zero-padded bias (1, 1024).
    """
    wc = w_conv.astype(jnp.bfloat16)
    wl = jnp.pad(w_lin, ((0, 0), (0, PADDED_CLASSES - NUM_CLASSES))).astype(jnp.bfloat16)
    bl = jnp.pad(b_lin, (0, PADDED_CLASSES - NUM_CLASSES)).reshape(1, PADDED_CLASSES)
    bl = bl.astype(jnp.float32)
    return wc, wl, bl


@jax.jit
def mymodel_forward(x_nchw, wc, wl, bl):
    """x_nchw: (B, C, H, W) float32 -> logits (B, 1000) float32.

    wc / wl / bl must come from prepare_params (pre-cast, pre-padded).
    """
    B, C, H, W = x_nchw.shape
    HW = H * W

    # NCHW -> (B, HW, C) channels-last, cast to bf16 for the MXU.
    # TODO(synk): with a real channels-last backbone this transpose disappears;
    # it only exists because the spec input is NCHW.
    x = jnp.transpose(x_nchw, (0, 2, 3, 1)).reshape(B, HW, C).astype(jnp.bfloat16)

    # Batch tiling: >= 8 rows per grid step when possible so output stores are
    # sublane-aligned; for tiny B the block equals the full batch dim.
    TB = B if B <= 8 else 8
    num_tiles = pl.cdiv(B, TB)
    Bp = num_tiles * TB
    if Bp != B:
        x = jnp.pad(x, ((0, Bp - B), (0, 0), (0, 0)))

    logits_padded = pl.pallas_call(
        _fused_kernel,
        out_shape=jax.ShapeDtypeStruct((Bp, PADDED_CLASSES), jnp.float32),
        grid=(num_tiles,),
        in_specs=[
            pl.BlockSpec((TB, HW, C), lambda b: (b, 0, 0)),
            # Weights / bias: constant index_map -> stay resident in VMEM
            # across all grid steps (loaded once, no re-DMA).
            pl.BlockSpec((C, HIDDEN), lambda b: (0, 0)),
            pl.BlockSpec((HIDDEN, PADDED_CLASSES), lambda b: (0, 0)),
            pl.BlockSpec((1, PADDED_CLASSES), lambda b: (0, 0)),
        ],
        out_specs=pl.BlockSpec((TB, PADDED_CLASSES), lambda b: (b, 0)),
        compiler_params=pltpu.CompilerParams(
            dimension_semantics=("parallel",),   # megacore shards batch tiles
            vmem_limit_bytes=24 << 20,
        ),
    )(x, wc, wl, bl)

    return logits_padded[:B, :NUM_CLASSES]


def _reference(x_nchw, w_conv, w_lin, b_lin):
    """Pure-JAX reference mirroring the bf16 rounding of the matmul operands."""
    B, C, H, W = x_nchw.shape
    x = jnp.transpose(x_nchw, (0, 2, 3, 1)).reshape(B, H * W, C)
    xb = x.astype(jnp.bfloat16).astype(jnp.float32)
    wcb = w_conv.astype(jnp.bfloat16).astype(jnp.float32)
    wlb = w_lin.astype(jnp.bfloat16).astype(jnp.float32)
    h = jnp.maximum(jnp.einsum("bpc,ck->bpk", xb, wcb), 0.0)
    pooled = jnp.mean(h, axis=1)                                      # (B, 1280) f32
    pooled = pooled.astype(jnp.bfloat16).astype(jnp.float32)
    return pooled @ wlb + b_lin[None, :]


if __name__ == "__main__":
    key = jax.random.PRNGKey(0)
    kx, kc, kw, kb = jax.random.split(key, 4)

    B, C, H, W = 2, 4, 16, 16                        # small synthetic shapes
    x = jax.random.normal(kx, (B, C, H, W), dtype=jnp.float32)

    # Deterministic parameter init (synthetic; no checkpoint load).
    w_conv = jax.random.normal(kc, (C, HIDDEN), dtype=jnp.float32) * 0.05
    w_lin = jax.random.normal(kw, (HIDDEN, NUM_CLASSES), dtype=jnp.float32) * 0.02
    b_lin = jax.random.normal(kb, (NUM_CLASSES,), dtype=jnp.float32) * 0.01

    # Weight pad/cast happens ONCE here, not inside the jitted forward.
    wc, wl, bl = prepare_params(w_conv, w_lin, b_lin)
    wc, wl, bl = jax.block_until_ready((wc, wl, bl))

    out = jax.block_until_ready(mymodel_forward(x, wc, wl, bl))
    ref = _reference(x, w_conv, w_lin, b_lin)

    assert out.shape == (B, NUM_CLASSES)
    assert jnp.allclose(out, ref, atol=2e-2, rtol=5e-2), \
        float(jnp.max(jnp.abs(out - ref)))
    print("KERNEL_OK")
</pallas_src>

<mosaic_0001>
module attributes {stable_mosaic.version = 11 : i64} {
  func.func @_fused_kernel(%arg0: i32, %arg1: memref<2x256x4xbf16, #tpu.memory_space<vmem>>, %arg2: memref<4x1280xbf16, #tpu.memory_space<vmem>>, %arg3: memref<1280x1024xbf16, #tpu.memory_space<vmem>>, %arg4: memref<1x1024xf32, #tpu.memory_space<vmem>>, %arg5: memref<2x1024xf32, #tpu.memory_space<vmem>>) attributes {dimension_semantics = [#tpu.dimension_semantics<parallel>], iteration_bounds = array<i64: 1>, scalar_prefetch = 0 : i64, scratch_operands = 0 : i64, tpu.core_type = #tpu.core_type<tc>, window_params = [{transform_indices = @transform_0, window_bounds = array<i64: 2, 256, 4>}, {pipeline_mode = #tpu.pipeline_mode<synchronous>, transform_indices = @transform_1, window_bounds = array<i64: 4, 1280>}, {pipeline_mode = #tpu.pipeline_mode<synchronous>, transform_indices = @transform_2, window_bounds = array<i64: 1280, 1024>}, {pipeline_mode = #tpu.pipeline_mode<synchronous>, transform_indices = @transform_3, window_bounds = array<i64: 1, 1024>}, {transform_indices = @transform_4, window_bounds = array<i64: 2, 1024>}]} {
    %c0 = arith.constant 0 : index
    %c0_0 = arith.constant 0 : index
    %c0_1 = arith.constant 0 : index
    %0 = vector.load %arg1[%c0, %c0_0, %c0_1] : memref<2x256x4xbf16, #tpu.memory_space<vmem>>, vector<2x256x4xbf16>
    %1 = vector.shape_cast %0 : vector<2x256x4xbf16> to vector<512x4xbf16>
    %c0_2 = arith.constant 0 : index
    %c0_3 = arith.constant 0 : index
    %2 = vector.load %arg2[%c0_2, %c0_3] : memref<4x1280xbf16, #tpu.memory_space<vmem>>, vector<4x1280xbf16>
    %cst = arith.constant dense<0.000000e+00> : vector<512x1280xf32>
    %3 = tpu.matmul %1, %2, %cst {dimension_numbers = #tpu.dot_dimension_numbers<[1], [0], [0], [1], [0, 0, 1, 1], [], []>} : vector<512x4xbf16>, vector<4x1280xbf16>, vector<512x1280xf32> -> vector<512x1280xf32>
    %cst_4 = arith.constant 0.000000e+00 : f32
    %4 = vector.broadcast %cst_4 : f32 to vector<512x1280xf32>
    %5 = arith.maximumf %3, %4 : vector<512x1280xf32>
    %6 = vector.shape_cast %5 : vector<512x1280xf32> to vector<2x256x1280xf32>
    %cst_5 = arith.constant dense<0.000000e+00> : vector<2x1280xf32>
    %7 = vector.multi_reduction <add>, %6, %cst_5 [1] : vector<2x256x1280xf32> to vector<2x1280xf32>
    %cst_6 = arith.constant 3.906250e-03 : f32
    %8 = vector.broadcast %cst_6 : f32 to vector<2x1280xf32>
    %9 = arith.mulf %7, %8 : vector<2x1280xf32>
    %10 = arith.truncf %9 : vector<2x1280xf32> to vector<2x1280xbf16>
    %c0_7 = arith.constant 0 : index
    %c0_8 = arith.constant 0 : index
    %11 = vector.load %arg3[%c0_7, %c0_8] : memref<1280x1024xbf16, #tpu.memory_space<vmem>>, vector<1280x1024xbf16>
    %cst_9 = arith.constant dense<0.000000e+00> : vector<2x1024xf32>
    %12 = tpu.matmul %10, %11, %cst_9 {dimension_numbers = #tpu.dot_dimension_numbers<[1], [0], [0], [1], [0, 0, 1, 1], [], []>} : vector<2x1280xbf16>, vector<1280x1024xbf16>, vector<2x1024xf32> -> vector<2x1024xf32>
    %c0_10 = arith.constant 0 : index
    %c0_11 = arith.constant 0 : index
    %13 = vector.load %arg4[%c0_10, %c0_11] : memref<1x1024xf32, #tpu.memory_space<vmem>>, vector<1x1024xf32>
    %14 = vector.broadcast %13 : vector<1x1024xf32> to vector<2x1024xf32>
    %15 = arith.addf %12, %14 : vector<2x1024xf32>
    %c0_12 = arith.constant 0 : index
    %c0_13 = arith.constant 0 : index
    %16 = vector.load %arg5[%c0_12, %c0_13] : memref<2x1024xf32, #tpu.memory_space<vmem>>, vector<2x1024xf32>
    tpu.vector_store %arg5[%c0_12, %c0_13], %15 {strides = array<i32>} : memref<2x1024xf32, #tpu.memory_space<vmem>>, vector<2x1024xf32>,
    return
  }
  func.func @transform_0(%arg0: i32) -> (i32, i32, i32) {
    %c0_i32 = arith.constant 0 : i32
    %c0_i32_0 = arith.constant 0 : i32
    %c0_i32_1 = arith.constant 0 : i32
    return %arg0, %c0_i32, %c0_i32_0 : i32, i32, i32
  }
  func.func @transform_1(%arg0: i32) -> (i32, i32) {
    %c0_i32 = arith.constant 0 : i32
    %c0_i32_0 = arith.constant 0 : i32
    %c0_i32_1 = arith.constant 0 : i32
    return %c0_i32, %c0_i32_0 : i32, i32
  }
  func.func @transform_2(%arg0: i32) -> (i32, i32) {
    %c0_i32 = arith.constant 0 : i32
    %c0_i32_0 = arith.constant 0 : i32
    %c0_i32_1 = arith.constant 0 : i32
    return %c0_i32, %c0_i32_0 : i32, i32
  }
  func.func @transform_3(%arg0: i32) -> (i32, i32) {
    %c0_i32 = arith.constant 0 : i32
    %c0_i32_0 = arith.constant 0 : i32
    %c0_i32_1 = arith.constant 0 : i32
    return %c0_i32, %c0_i32_0 : i32, i32
  }
  func.func @transform_4(%arg0: i32) -> (i32, i32) {
    %c0_i32 = arith.constant 0 : i32
    %c0_i32_0 = arith.constant 0 : i32
    return %arg0, %c0_i32 : i32, i32
  }
}

</mosaic_0001>

<bundles_post_ra>
// kernel: mymodel_forward.1
= control target key start
LH: loop header
LB: loop body
LE: loop exit
PB: predicated region body
PF: predicated region fallthrough
CT: control target
= control target key end

     0   :  { %9 = vsyncpa [#allocation3], 0  ;;  %s10863_s0 = inlined_call_operand.vmem [shape: bf16[2,256,4], index: 0, kind: input, shape index: {}]   ;;  %s10864_s1 = inlined_call_operand.hbm [shape: bf16[4,1280], index: 1, kind: input, shape index: {}]   ;;  %s10865_s2 = inlined_call_operand.hbm [shape: bf16[1280,1024], index: 2, kind: input, shape index: {}]   ;;  %s10866_s3 = inlined_call_operand.hbm [shape: f32[1,1024], index: 3, kind: input, shape index: {}]   ;;  %s10867_s4 = inlined_call_operand.hbm [shape: f32[2,1024], index: 4, kind: output, shape index: {}]  }
   0x1   :  { %10 = vsyncpa [#allocation6], 0 }
   0x2   :  { %11 = vsyncpa [#allocation4], 0  ;;  %s9500_s15 = smov [#allocation5]  }
   0x3   :  { %s29_s16 = sshll.u32 %s9500_s15, 4  ;;  %s30_s16 = int_to_ptr.vmem [resolvable:$true] %s29_s16 }
   0x4   :  { %s9422_s17 = scalar_lea.vmem %s30_s16, 81920  ;;  %p9427_p1 = scmp.lt.s32.totalorder %s30_s16, %s30_s16 }
   0x5   :  { %p9423_p0 = scmp.ne.s32.totalorder %s30_s16, %s9422_s17  ;;  %p9428_p2 = scmp.lt.s32.totalorder %s9422_s17, %s9422_s17 }
   0x7   :  { %p9429_p3 = por %p9428_p2, %p9427_p1 }
   0x9   :  { %p9430_p4 = pnand %p9429_p3, %p9423_p0 }
   0xb   :  { %9433 = shalt.err (!%p9430_p4)
}
   0xc   :  { %s9501_s18 = smov 512   ;;  %s9502_s19 = smov 32  }
   0xd   :  { %35 = dma.hbm_to_vmem [thread:$0]  %s10865_s2, 81920, %s30_s16, [#allocation6], %s9501_s18, %s9501_s18, %s9502_s19  }
   0xe   :  { %s9503_s22 = smov [#allocation2]   ;;  %s9504_s24 = smov [#allocation7]  }
   0xf   :  { %s20_s23 = sshll.u32 %s9503_s22, 4  ;;  %s42_s25 = sshll.u32 %s9504_s24, 4  ;;  %s21_s23 = int_to_ptr.vmem [resolvable:$true] %s20_s23  ;;  %s43_s25 = int_to_ptr.vmem [resolvable:$true] %s42_s25 }
  0x10   :  { %s9442_s26 = scalar_lea.vmem %s21_s23, 320  ;;  %p9447_p6 = scmp.lt.s32.totalorder %s21_s23, %s21_s23 }
  0x11   :  { %p9443_p5 = scmp.ne.s32.totalorder %s21_s23, %s9442_s26  ;;  %p9448_p7 = scmp.lt.s32.totalorder %s9442_s26, %s9442_s26 }
  0x13   :  { %p9449_p8 = por %p9448_p7, %p9447_p6 }
  0x15   :  { %p9450_p9 = pnand %p9449_p8, %p9443_p5 }
  0x17   :  { %9453 = shalt.err (!%p9450_p9)
}
  0x18   :  { %23 = dma.hbm_to_vmem [thread:$0]  %s10864_s1, 320, %s21_s23, [#allocation3]  }
  0x19   :  { %s9462_s29 = scalar_lea.vmem %s43_s25, 128  ;;  %p9467_p11 = scmp.lt.s32.totalorder %s43_s25, %s43_s25 }
  0x1a   :  { %p9463_p10 = scmp.ne.s32.totalorder %s43_s25, %s9462_s29  ;;  %p9468_p12 = scmp.lt.s32.totalorder %s9462_s29, %s9462_s29 }
  0x1c   :  { %p9469_p13 = por %p9468_p12, %p9467_p11 }
  0x1e   :  { %p9470_p0 = pnand %p9469_p13, %p9463_p10 }
  0x20   :  { %9473 = shalt.err (!%p9470_p0)
}
  0x21   :  { %45 = dma.hbm_to_vmem [thread:$0]  %s10866_s3, 128, %s43_s25, [#allocation6]  }
  0x22   :  { %9494 = dma.done.wait [#allocation3], 320  }
  0x23   :  { %9495 = vsyncadd [#allocation3], 4294966976 }
  0x24   :  { %9496 = dma.done.wait [#allocation6], 82048  }
  0x25   :  { %9497 = vsyncadd [#allocation6], 4294885248  ;;  %v290_v0 = vlaneseq  ;;  %v9505_v1 = vmov 1983009808   ;;  %v10868_v3 = vmov 0   ;;  %v120_v7 = vld [vmem:[#allocation2] sm:$0xff] }
  0x26   :  { %v288_v2 = vunpack.c.l.s4 %v9505_v1  ;;  %488 = vmatprep.mubr.bf16.mxu0 %v10868_v3  ;;  %841 = vmatprep.mubr.bf16.mxu1 %v10868_v3  ;;  %vm425_vm0 = vcmask 1041408   ;;  %v286_v9 = vcombine.high %v120_v7, %v120_v7  ;;  %v9550_v10 = vld [vmem:[#allocation2 + $0x8] sm:$0xff]  ;;  %v9561_v18 = vld [vmem:[%s10863_s0] sm:$0xff]   ;;  %vm328_vm1 = vcmask 31744   ;;  %v9585_v21 = vld [vmem:[%s10863_s0 + $0x10] sm:$0xff]  }
  0x27   :  { %v9544_v4 = vshrl.u32 %v290_v0, 7  ;;  %v9575_v20 = vld [vmem:[%s10863_s0 + $0x8] sm:$0xff]   ;;  %v9597_v22 = vld [vmem:[%s10863_s0 + $0x18] sm:$0xff]   ;;  %v9608_v23 = vld [vmem:[%s10863_s0 + $0x20] sm:$0xff]   ;;  %v303_v28 = vcombine.high %v9550_v10, %v9550_v10  ;;  %vm4363_vm2 = vcmask 1041409  }
  0x28   :  { %v289_v5 = vunpack.c.0.s8 %v288_v2  ;;  %v9619_v24 = vld [vmem:[%s10863_s0 + $0x28] sm:$0xff]   ;;  %v9630_v25 = vld [vmem:[%s10863_s0 + $0x30] sm:$0xff]   ;;  %v9330_v26 = vld [vmem:[%s10863_s0 + $0x38] sm:$0xff]  }
  0x29   :  { %10880 = vst [vmem:[#allocation12_spill] sm:$0xff] %v9544_v4  ;;  %v9331_v27 = vld [vmem:[%s10863_s0 + $0x40] sm:$0xff]   ;;  %v9332_v29 = vld [vmem:[%s10863_s0 + $0x48] sm:$0xff]   ;;  %v9333_v33 = vld [vmem:[%s10863_s0 + $0x50] sm:$0xff]  }
  0x2a   :  { %v9547_v6 = vsub.s32 %v289_v5, %v9544_v4  ;;  %v9334_v34 = vld [vmem:[%s10863_s0 + $0x58] sm:$0xff]   ;;  %v9335_v35 = vld [vmem:[%s10863_s0 + $0x60] sm:$0xff]   ;;  %v9336_v36 = vld [vmem:[%s10863_s0 + $0x68] sm:$0xff]  }
  0x2b   :  { %v9337_v37 = vld [vmem:[%s10863_s0 + $0x70] sm:$0xff]   ;;  %v9338_v38 = vld [vmem:[%s10863_s0 + $0x78] sm:$0xff]   ;;  %v9339_v39 = vld [vmem:[%s10863_s0 + $0x80] sm:$0xff]  }
  0x2c   :  { %10881 = vst [vmem:[#allocation13_spill] sm:$0xff] %v9547_v6  ;;  %v293_v8 = vrot.slane %v120_v7, %v9547_v6  ;;  %v310_v11 = vrot.slane %v9550_v10, %v9547_v6  ;;  %v300_v14 = vrot.slane %v286_v9, %v9547_v6  ;;  %v317_v30 = vrot.slane %v303_v28, %v9547_v6  ;;  %v9713_v40 = vld.sshfl [vmem:[#allocation2 + $0x10] sm:$0x33 pattern:$0x76325410]  ;;  %v9340_v41 = vld [vmem:[%s10863_s0 + $0x88] sm:$0xff]  }
  0x2d   :  { %v327_v42 = vcombine.high %v9713_v40, %v9713_v40  ;;  %v9341_v43 = vld [vmem:[%s10863_s0 + $0x90] sm:$0xff]   ;;  %v9342_v44 = vld [vmem:[%s10863_s0 + $0x98] sm:$0xff]   ;;  %v9343_v45 = vld [vmem:[%s10863_s0 + $0xa0] sm:$0xff]  }
  0x2e   :  { %v301_v12 = vcombine.high %v293_v8, %v293_v8  ;;  %v427_v13 = vsel %vm425_vm0, %v293_v8, 0  ;;  %v318_v15 = vcombine.high %v310_v11, %v310_v11  ;;  %v302_v16 = vcombine.high %v300_v14, %v300_v14  ;;  %v9344_v46 = vld [vmem:[%s10863_s0 + $0xa8] sm:$0xff]   ;;  %v9345_v47 = vld [vmem:[%s10863_s0 + $0xb0] sm:$0xff]   ;;  %v9346_v48 = vld [vmem:[%s10863_s0 + $0xb8] sm:$0xff]  }
  0x2f   :  { %v433_v17 = vsel %vm425_vm0, %v300_v14, 0  ;;  %v439_v19 = vsel %vm425_vm0, %v310_v11, 0  ;;  %v319_v31 = vcombine.high %v317_v30, %v317_v30  ;;  %v445_v32 = vsel %vm425_vm0, %v317_v30, 0  ;;  %v9347_v49 = vld [vmem:[%s10863_s0 + $0xc0] sm:$0xff]   ;;  %v9349_v55 = vld [vmem:[%s10863_s0 + $0xc8] sm:$0xff]  }
  0x30   :  { %8509 = vmatprep.subr.msk.bf16.mxu0 %vm425_vm0, %v301_v12  ;;  %8542 = vmatprep.subr.msk.bf16.mxu1 %vm425_vm0, %v302_v16 }
  0x31   :  { %471 = vmatpush1.bf16.msra.mxu0 %v427_v13  ;;  %824 = vmatpush1.bf16.msra.mxu1 %v433_v17 }
  0x32   :  { %8575 = vmatprep.subr.msk.bf16.mxu0 %vm425_vm0, %v318_v15  ;;  %8608 = vmatprep.subr.msk.bf16.mxu1 %vm425_vm0, %v319_v31 }
  0x34   :  { %8510 = vmatmul.mubr.msk.bf16.vlgmr.msra.gmra.mxu0 %vm328_vm1, %v9561_v18  ;;  %8543 = vmatmul.mubr.msk.bf16.vlgmr.msra.gmra.mxu1 %vm328_vm1, %v9561_v18 }
  0x35   :  { %1177 = vmatpush1.bf16.msra.mxu0 %v439_v19  ;;  %498 = vmatprep.mubr.bf16.mxu0 %v10868_v3 }
  0x36   :  { %851 = vmatprep.mubr.bf16.mxu1 %v10868_v3  ;;  %1530 = vmatpush1.bf16.msra.mxu1 %v445_v32 }
  0x37   :  { %8641 = vmatprep.subr.msk.bf16.mxu0 %vm425_vm0, %v327_v42 }
  0x3c   :  { %8511 = vmatmul.mubr.msk.bf16.gmra.mxu0 %vm328_vm1, %v9575_v20  ;;  %8544 = vmatmul.mubr.msk.bf16.gmra.mxu1 %vm328_vm1, %v9575_v20 }
  0x3d   :  { %508 = vmatprep.mubr.bf16.mxu0 %v10868_v3  ;;  %861 = vmatprep.mubr.bf16.mxu1 %v10868_v3 }
  0x44   :  { %8512 = vmatmul.mubr.msk.bf16.gmra.mxu0 %vm328_vm1, %v9585_v21  ;;  %8545 = vmatmul.mubr.msk.bf16.gmra.mxu1 %vm328_vm1, %v9585_v21 }
  0x45   :  { %518 = vmatprep.mubr.bf16.mxu0 %v10868_v3  ;;  %871 = vmatprep.mubr.bf16.mxu1 %v10868_v3 }
  0x4c   :  { %8513 = vmatmul.mubr.msk.bf16.gmra.mxu0 %vm328_vm1, %v9597_v22  ;;  %8546 = vmatmul.mubr.msk.bf16.gmra.mxu1 %vm328_vm1, %v9597_v22 }
  0x4d   :  { %528 = vmatprep.mubr.bf16.mxu0 %v10868_v3  ;;  %881 = vmatprep.mubr.bf16.mxu1 %v10868_v3 }
  0x54   :  { %8514 = vmatmul.mubr.msk.bf16.gmra.mxu0 %vm328_vm1, %v9608_v23  ;;  %8547 = vmatmul.mubr.msk.bf16.gmra.mxu1 %vm328_vm1, %v9608_v23 }
  0x55   :  { %538 = vmatprep.mubr.bf16.mxu0 %v10868_v3  ;;  %891 = vmatprep.mubr.bf16.mxu1 %v10868_v3 }
  0x5c   :  { %8515 = vmatmul.mubr.msk.bf16.gmra.mxu0 %vm328_vm1, %v9619_v24  ;;  %8548 = vmatmul.mubr.msk.bf16.gmra.mxu1 %vm328_vm1, %v9619_v24 }
  0x5d   :  { %548 = vmatprep.mubr.bf16.mxu0 %v10868_v3  ;;  %901 = vmatprep.mubr.bf16.mxu1 %v10868_v3 }
  0x64   :  { %8516 = vmatmul.mubr.msk.bf16.gmra.mxu0 %vm328_vm1, %v9630_v25  ;;  %8549 = vmatmul.mubr.msk.bf16.gmra.mxu1 %vm328_vm1, %v9630_v25 }
  0x65   :  { %558 = vmatprep.mubr.bf16.mxu0 %v10868_v3  ;;  %911 = vmatprep.mubr.bf16.mxu1 %v10868_v3 }
  0x6c   :  { %8517 = vmatmul.mubr.msk.bf16.gmra.mxu0 %vm328_vm1, %v9330_v26  ;;  %8550 = vmatmul.mubr.msk.bf16.gmra.mxu1 %vm328_vm1, %v9330_v26  ;;  %v9350_v26 = vld [vmem:[%s10863_s0 + $0xd0] sm:$0xff]  }
  0x6d   :  { %568 = vmatprep.mubr.bf16.mxu0 %v10868_v3  ;;  %921 = vmatprep.mubr.bf16.mxu1 %v10868_v3 }
  0x74   :  { %8518 = vmatmul.mubr.msk.bf16.gmra.mxu0 %vm328_vm1, %v9331_v27  ;;  %8551 = vmatmul.mubr.msk.bf16.gmra.mxu1 %vm328_vm1, %v9331_v27 }
  0x75   :  { %578 = vmatprep.mubr.bf16.mxu0 %v10868_v3  ;;  %931 = vmatprep.mubr.bf16.mxu1 %v10868_v3 }
  0x7c   :  { %8519 = vmatmul.mubr.msk.bf16.gmra.mxu0 %vm328_vm1, %v9332_v29  ;;  %8552 = vmatmul.mubr.msk.bf16.gmra.mxu1 %vm328_vm1, %v9332_v29 }
  0x7d   :  { %588 = vmatprep.mubr.bf16.mxu0 %v10868_v3  ;;  %941 = vmatprep.mubr.bf16.mxu1 %v10868_v3 }
  0x84   :  { %8520 = vmatmul.mubr.msk.bf16.gmra.mxu0 %vm328_vm1, %v9333_v33  ;;  %8553 = vmatmul.mubr.msk.bf16.gmra.mxu1 %vm328_vm1, %v9333_v33 }
  0x85   :  { %598 = vmatprep.mubr.bf16.mxu0 %v10868_v3  ;;  %951 = vmatprep.mubr.bf16.mxu1 %v10868_v3 }
  0x8c   :  { %8521 = vmatmul.mubr.msk.bf16.gmra.mxu0 %vm328_vm1, %v9334_v34  ;;  %8554 = vmatmul.mubr.msk.bf16.gmra.mxu1 %vm328_vm1, %v9334_v34 }
  0x8d   :  { %608 = vmatprep.mubr.bf16.mxu0 %v10868_v3  ;;  %961 = vmatprep.mubr.bf16.mxu1 %v10868_v3 }
  0x94   :  { %8522 = vmatmul.mubr.msk.bf16.gmra.mxu0 %vm328_vm1, %v9335_v35  ;;  %8555 = vmatmul.mubr.msk.bf16.gmra.mxu1 %vm328_vm1, %v9335_v35 }
  0x95   :  { %618 = vmatprep.mubr.bf16.mxu0 %v10868_v3  ;;  %971 = vmatprep.mubr.bf16.mxu1 %v10868_v3 }
  0x9c   :  { %8523 = vmatmul.mubr.msk.bf16.gmra.mxu0 %vm328_vm1, %v9336_v36  ;;  %8556 = vmatmul.mubr.msk.bf16.gmra.mxu1 %vm328_vm1, %v9336_v36 }
  0x9d   :  { %628 = vmatprep.mubr.bf16.mxu0 %v10868_v3  ;;  %981 = vmatprep.mubr.bf16.mxu1 %v10868_v3 }
  0xa4   :  { %8524 = vmatmul.mubr.msk.bf16.gmra.mxu0 %vm328_vm1, %v9337_v37  ;;  %8557 = vmatmul.mubr.msk.bf16.gmra.mxu1 %vm328_vm1, %v9337_v37 }
  0xa5   :  { %638 = vmatprep.mubr.bf16.mxu0 %v10868_v3  ;;  %991 = vmatprep.mubr.bf16.mxu1 %v10868_v3 }
  0xac   :  { %8525 = vmatmul.mubr.msk.bf16.gmra.mxu0 %vm328_vm1, %v9338_v38  ;;  %8558 = vmatmul.mubr.msk.bf16.gmra.mxu1 %vm328_vm1, %v9338_v38 }
  0xad   :  { %648 = vmatprep.mubr.bf16.mxu0 %v10868_v3  ;;  %1001 = vmatprep.mubr.bf16.mxu1 %v10868_v3 }
  0xb4   :  { %8526 = vmatmul.mubr.msk.bf16.gmra.mxu0 %vm328_vm1, %v9339_v39  ;;  %8559 = vmatmul.mubr.msk.bf16.gmra.mxu1 %vm328_vm1, %v9339_v39 }
  0xb5   :  { %658 = vmatprep.mubr.bf16.mxu0 %v10868_v3  ;;  %1011 = vmatprep.mubr.bf16.mxu1 %v10868_v3 }
  0xbc   :  { %8527 = vmatmul.mubr.msk.bf16.gmra.mxu0 %vm328_vm1, %v9340_v41  ;;  %8560 = vmatmul.mubr.msk.bf16.gmra.mxu1 %vm328_vm1, %v9340_v41 }
  0xbd   :  { %668 = vmatprep.mubr.bf16.mxu0 %v10868_v3  ;;  %1021 = vmatprep.mubr.bf16.mxu1 %v10868_v3 }
  0xc4   :  { %8528 = vmatmul.mubr.msk.bf16.gmra.mxu0 %vm328_vm1, %v9341_v43  ;;  %8561 = vmatmul.mubr.msk.bf16.gmra.mxu1 %vm328_vm1, %v9341_v43 }
  0xc5   :  { %678 = vmatprep.mubr.bf16.mxu0 %v10868_v3  ;;  %1031 = vmatprep.mubr.bf16.mxu1 %v10868_v3 }
  0xcc   :  { %8529 = vmatmul.mubr.msk.bf16.gmra.mxu0 %vm328_vm1, %v9342_v44  ;;  %8562 = vmatmul.mubr.msk.bf16.gmra.mxu1 %vm328_vm1, %v9342_v44 }
  0xcd   :  { %688 = vmatprep.mubr.bf16.mxu0 %v10868_v3  ;;  %1041 = vmatprep.mubr.bf16.mxu1 %v10868_v3 }
  0xd4   :  { %8530 = vmatmul.mubr.msk.bf16.gmra.mxu0 %vm328_vm1, %v9343_v45  ;;  %8563 = vmatmul.mubr.msk.bf16.gmra.mxu1 %vm328_vm1, %v9343_v45 }
  0xd5   :  { %698 = vmatprep.mubr.bf16.mxu0 %v10868_v3  ;;  %1051 = vmatprep.mubr.bf16.mxu1 %v10868_v3 }
  0xdc   :  { %8531 = vmatmul.mubr.msk.bf16.gmra.mxu0 %vm328_vm1, %v9344_v46  ;;  %8564 = vmatmul.mubr.msk.bf16.gmra.mxu1 %vm328_vm1, %v9344_v46 }
  0xdd   :  { %708 = vmatprep.mubr.bf16.mxu0 %v10868_v3  ;;  %1061 = vmatprep.mubr.bf16.mxu1 %v10868_v3 }
  0xe4   :  { %8532 = vmatmul.mubr.msk.bf16.gmra.mxu0 %vm328_vm1, %v9345_v47  ;;  %8565 = vmatmul.mubr.msk.bf16.gmra.mxu1 %vm328_vm1, %v9345_v47 }
  0xe5   :  { %718 = vmatprep.mubr.bf16.mxu0 %v10868_v3  ;;  %1071 = vmatprep.mubr.bf16.mxu1 %v10868_v3 }
  0xec   :  { %8533 = vmatmul.mubr.msk.bf16.gmra.mxu0 %vm328_vm1, %v9346_v48  ;;  %8566 = vmatmul.mubr.msk.bf16.gmra.mxu1 %vm328_vm1, %v9346_v48 }
  0xed   :  { %728 = vmatprep.mubr.bf16.mxu0 %v10868_v3  ;;  %1081 = vmatprep.mubr.bf16.mxu1 %v10868_v3 }
  0xf4   :  { %v490_v50 = vpop.f32.mrf.mxu0  ;;  %8534 = vmatmul.mubr.msk.bf16.gmra.mxu0 %vm328_vm1, %v9347_v49  ;;  %v843_v52 = vpop.f32.mrf.mxu1  ;;  %8567 = vmatmul.mubr.msk.bf16.gmra.mxu1 %vm328_vm1, %v9347_v49 }
  0xf5   :  { %738 = vmatprep.mubr.bf16.mxu0 %v10868_v3  ;;  %1091 = vmatprep.mubr.bf16.mxu1 %v10868_v3  ;;  %v2221_v56 = vmax.f32 %v490_v50, 0.0  ;;  %v2223_v57 = vmax.f32 %v843_v52, 0.0  ;;  %v9351_v52 = vld [vmem:[%s10863_s0 + $0xd8] sm:$0xff]  }
  0xf6   :  { %v492_v51 = vpop.f32.mrf.mxu0  ;;  %v845_v54 = vpop.f32.mrf.mxu1 }
  0xf7   :  { %v2222_v59 = vmax.f32 %v492_v51, 0.0  ;;  %v2224_v63 = vmax.f32 %v845_v54, 0.0 }
  0xf8   :  { %v494_v53 = vpop.f32.mrf.mxu0  ;;  %v847_v61 = vpop.f32.mrf.mxu1 }
  0xf9   :  { %v2231_v58 = vmax.f32 %v494_v53, 0.0  ;;  %v2233_v1 = vmax.f32 %v847_v61, 0.0 }
  0xfa   :  { %v496_v60 = vpop.f32.mrf.mxu0  ;;  %v849_v5 = vpop.f32.mrf.mxu1 }
  0xfb   :  { %v2861_v62 = vadd.f32 %v2231_v58, %v2221_v56  ;;  %v2232_v0 = vmax.f32 %v496_v60, 0.0  ;;  %v2935_v8 = vadd.f32 %v2233_v1, %v2223_v57  ;;  %v2234_v10 = vmax.f32 %v849_v5, 0.0 }
  0xfc   :  { %v500_v2 = vpop.f32.mrf.mxu0  ;;  %8535 = vmatmul.mubr.msk.bf16.gmra.mxu0 %vm328_vm1, %v9349_v55  ;;  %v853_v12 = vpop.f32.mrf.mxu1  ;;  %8568 = vmatmul.mubr.msk.bf16.gmra.mxu1 %vm328_vm1, %v9349_v55 }
  0xfd   :  { %v2898_v7 = vadd.f32 %v2232_v0, %v2222_v59  ;;  %v2241_v9 = vmax.f32 %v500_v2, 0.0  ;;  %748 = vmatprep.mubr.bf16.mxu0 %v10868_v3  ;;  %v2972_v14 = vadd.f32 %v2234_v10, %v2224_v63  ;;  %v2243_v16 = vmax.f32 %v853_v12, 0.0  ;;  %1101 = vmatprep.mubr.bf16.mxu1 %v10868_v3 }
  0xfe   :  { %v502_v11 = vpop.f32.mrf.mxu0  ;;  %v855_v19 = vpop.f32.mrf.mxu1 }
  0xff   :  { %v2862_v13 = vadd.f32 %v2861_v62, %v2241_v9  ;;  %v2242_v15 = vmax.f32 %v502_v11, 0.0  ;;  %v2936_v28 = vadd.f32 %v2935_v8, %v2243_v16  ;;  %v2244_v30 = vmax.f32 %v855_v19, 0.0  ;;  %v9352_v16 = vld [vmem:[%s10863_s0 + $0xe0] sm:$0xff]  }
 0x100   :  { %v504_v17 = vpop.f32.mrf.mxu0  ;;  %v857_v32 = vpop.f32.mrf.mxu1 }
 0x101   :  { %v2899_v27 = vadd.f32 %v2898_v7, %v2242_v15  ;;  %v2251_v29 = vmax.f32 %v504_v17, 0.0  ;;  %v2973_v34 = vadd.f32 %v2972_v14, %v2244_v30  ;;  %v2253_v36 = vmax.f32 %v857_v32, 0.0 }
 0x102   :  { %v506_v31 = vpop.f32.mrf.mxu0  ;;  %v859_v38 = vpop.f32.mrf.mxu1 }
 0x103   :  { %v2863_v33 = vadd.f32 %v2862_v13, %v2251_v29  ;;  %v2252_v35 = vmax.f32 %v506_v31, 0.0  ;;  %v2937_v41 = vadd.f32 %v2936_v28, %v2253_v36  ;;  %v2254_v43 = vmax.f32 %v859_v38, 0.0 }
 0x104   :  { %v510_v37 = vpop.f32.mrf.mxu0  ;;  %8536 = vmatmul.mubr.msk.bf16.gmra.mxu0 %vm328_vm1, %v9350_v26  ;;  %v863_v45 = vpop.f32.mrf.mxu1  ;;  %8569 = vmatmul.mubr.msk.bf16.gmra.mxu1 %vm328_vm1, %v9350_v26 }
 0x105   :  { %v2900_v39 = vadd.f32 %v2899_v27, %v2252_v35  ;;  %v2261_v42 = vmax.f32 %v510_v37, 0.0  ;;  %758 = vmatprep.mubr.bf16.mxu0 %v10868_v3  ;;  %v2974_v47 = vadd.f32 %v2973_v34, %v2254_v43  ;;  %v2263_v49 = vmax.f32 %v863_v45, 0.0  ;;  %1111 = vmatprep.mubr.bf16.mxu1 %v10868_v3 }
 0x106   :  { %v512_v44 = vpop.f32.mrf.mxu0  ;;  %v865_v51 = vpop.f32.mrf.mxu1 }
 0x107   :  { %v2864_v46 = vadd.f32 %v2863_v33, %v2261_v42  ;;  %v2262_v48 = vmax.f32 %v512_v44, 0.0  ;;  %v2938_v54 = vadd.f32 %v2937_v41, %v2263_v49  ;;  %v2264_v56 = vmax.f32 %v865_v51, 0.0  ;;  %v9353_v49 = vld [vmem:[%s10863_s0 + $0xe8] sm:$0xff]  }
 0x108   :  { %v514_v50 = vpop.f32.mrf.mxu0  ;;  %v867_v58 = vpop.f32.mrf.mxu1 }
 0x109   :  { %v2901_v53 = vadd.f32 %v2900_v39, %v2262_v48  ;;  %v2271_v55 = vmax.f32 %v514_v50, 0.0  ;;  %v2975_v60 = vadd.f32 %v2974_v47, %v2264_v56  ;;  %v2273_v62 = vmax.f32 %v867_v58, 0.0 }
 0x10a   :  { %v516_v57 = vpop.f32.mrf.mxu0  ;;  %v869_v0 = vpop.f32.mrf.mxu1 }
 0x10b   :  { %v2865_v59 = vadd.f32 %v2864_v46, %v2271_v55  ;;  %v2272_v61 = vmax.f32 %v516_v57, 0.0  ;;  %v2939_v2 = vadd.f32 %v2938_v54, %v2273_v62  ;;  %v2274_v7 = vmax.f32 %v869_v0, 0.0 }
 0x10c   :  { %v520_v63 = vpop.f32.mrf.mxu0  ;;  %8537 = vmatmul.mubr.msk.bf16.gmra.mxu0 %vm328_vm1, %v9351_v52  ;;  %v873_v9 = vpop.f32.mrf.mxu1  ;;  %8570 = vmatmul.mubr.msk.bf16.gmra.mxu1 %vm328_vm1, %v9351_v52 }
 0x10d   :  { %v2902_v1 = vadd.f32 %v2901_v53, %v2272_v61  ;;  %v2281_v5 = vmax.f32 %v520_v63, 0.0  ;;  %768 = vmatprep.mubr.bf16.mxu0 %v10868_v3  ;;  %v2976_v11 = vadd.f32 %v2975_v60, %v2274_v7  ;;  %v2283_v13 = vmax.f32 %v873_v9, 0.0  ;;  %1121 = vmatprep.mubr.bf16.mxu1 %v10868_v3 }
 0x10e   :  { %v522_v8 = vpop.f32.mrf.mxu0  ;;  %v875_v15 = vpop.f32.mrf.mxu1 }
 0x10f   :  { %v2866_v10 = vadd.f32 %v2865_v59, %v2281_v5  ;;  %v2282_v12 = vmax.f32 %v522_v8, 0.0  ;;  %v2940_v19 = vadd.f32 %v2939_v2, %v2283_v13  ;;  %v2284_v27 = vmax.f32 %v875_v15, 0.0  ;;  %v9354_v13 = vld [vmem:[%s10863_s0 + $0xf0] sm:$0xff]  }
 0x110   :  { %v524_v14 = vpop.f32.mrf.mxu0  ;;  %v877_v29 = vpop.f32.mrf.mxu1 }
 0x111   :  { %v2903_v17 = vadd.f32 %v2902_v1, %v2282_v12  ;;  %v2291_v26 = vmax.f32 %v524_v14, 0.0  ;;  %v2977_v31 = vadd.f32 %v2976_v11, %v2284_v27  ;;  %v2293_v33 = vmax.f32 %v877_v29, 0.0 }
 0x112   :  { %v526_v28 = vpop.f32.mrf.mxu0  ;;  %v879_v35 = vpop.f32.mrf.mxu1 }
 0x113   :  { %v2867_v30 = vadd.f32 %v2866_v10, %v2291_v26  ;;  %v2292_v32 = vmax.f32 %v526_v28, 0.0  ;;  %v2941_v37 = vadd.f32 %v2940_v19, %v2293_v33  ;;  %v2294_v39 = vmax.f32 %v879_v35, 0.0 }
 0x114   :  { %v530_v34 = vpop.f32.mrf.mxu0  ;;  %8538 = vmatmul.mubr.msk.bf16.gmra.mxu0 %vm328_vm1, %v9352_v16  ;;  %v883_v42 = vpop.f32.mrf.mxu1  ;;  %8571 = vmatmul.mubr.msk.bf16.gmra.mxu1 %vm328_vm1, %v9352_v16 }
 0x115   :  { %v2904_v36 = vadd.f32 %v2903_v17, %v2292_v32  ;;  %v2301_v38 = vmax.f32 %v530_v34, 0.0  ;;  %778 = vmatprep.mubr.bf16.mxu0 %v10868_v3  ;;  %v2978_v44 = vadd.f32 %v2977_v31, %v2294_v39  ;;  %v2303_v46 = vmax.f32 %v883_v42, 0.0  ;;  %1131 = vmatprep.mubr.bf16.mxu1 %v10868_v3 }
 0x116   :  { %v532_v41 = vpop.f32.mrf.mxu0  ;;  %v885_v48 = vpop.f32.mrf.mxu1 }
 0x117   :  { %v2868_v43 = vadd.f32 %v2867_v30, %v2301_v38  ;;  %v2302_v45 = vmax.f32 %v532_v41, 0.0  ;;  %v2942_v51 = vadd.f32 %v2941_v37, %v2303_v46  ;;  %v2304_v53 = vmax.f32 %v885_v48, 0.0  ;;  %v9355_v46 = vld [vmem:[%s10863_s0 + $0xf8] sm:$0xff]  }
 0x118   :  { %v534_v47 = vpop.f32.mrf.mxu0  ;;  %v887_v55 = vpop.f32.mrf.mxu1 }
 0x119   :  { %v2905_v50 = vadd.f32 %v2904_v36, %v2302_v45  ;;  %v2311_v52 = vmax.f32 %v534_v47, 0.0  ;;  %v2979_v57 = vadd.f32 %v2978_v44, %v2304_v53  ;;  %v2313_v59 = vmax.f32 %v887_v55, 0.0 }
 0x11a   :  { %v536_v54 = vpop.f32.mrf.mxu0  ;;  %v889_v61 = vpop.f32.mrf.mxu1 }
 0x11b   :  { %v2869_v56 = vadd.f32 %v2868_v43, %v2311_v52  ;;  %v2312_v58 = vmax.f32 %v536_v54, 0.0  ;;  %v2943_v63 = vadd.f32 %v2942_v51, %v2313_v59  ;;  %v2314_v1 = vmax.f32 %v889_v61, 0.0 }
 0x11c   :  { %v540_v60 = vpop.f32.mrf.mxu0  ;;  %8539 = vmatmul.mubr.msk.bf16.gmra.mxu0 %vm328_vm1, %v9353_v49  ;;  %v893_v5 = vpop.f32.mrf.mxu1  ;;  %8572 = vmatmul.mubr.msk.bf16.gmra.mxu1 %vm328_vm1, %v9353_v49 }
 0x11d   :  { %v2906_v62 = vadd.f32 %v2905_v50, %v2312_v58  ;;  %v2321_v0 = vmax.f32 %v540_v60, 0.0  ;;  %788 = vmatprep.mubr.bf16.mxu0 %v10868_v3  ;;  %v2980_v8 = vadd.f32 %v2979_v57, %v2314_v1  ;;  %v2323_v10 = vmax.f32 %v893_v5, 0.0  ;;  %1141 = vmatprep.mubr.bf16.mxu1 %v10868_v3 }
 0x11e   :  { %v542_v2 = vpop.f32.mrf.mxu0  ;;  %v895_v12 = vpop.f32.mrf.mxu1 }
 0x11f   :  { %v2870_v7 = vadd.f32 %v2869_v56, %v2321_v0  ;;  %v2322_v9 = vmax.f32 %v542_v2, 0.0  ;;  %v2944_v15 = vadd.f32 %v2943_v63, %v2323_v10  ;;  %v2324_v17 = vmax.f32 %v895_v12, 0.0 }
 0x120   :  { %v544_v11 = vpop.f32.mrf.mxu0  ;;  %v897_v26 = vpop.f32.mrf.mxu1 }
 0x121   :  { %v2907_v14 = vadd.f32 %v2906_v62, %v2322_v9  ;;  %v2331_v16 = vmax.f32 %v544_v11, 0.0  ;;  %v2981_v28 = vadd.f32 %v2980_v8, %v2324_v17  ;;  %v2333_v30 = vmax.f32 %v897_v26, 0.0 }
 0x122   :  { %v546_v19 = vpop.f32.mrf.mxu0  ;;  %v899_v32 = vpop.f32.mrf.mxu1 }
 0x123   :  { %v2871_v27 = vadd.f32 %v2870_v7, %v2331_v16  ;;  %v2332_v29 = vmax.f32 %v546_v19, 0.0  ;;  %v2945_v34 = vadd.f32 %v2944_v15, %v2333_v30  ;;  %v2334_v36 = vmax.f32 %v899_v32, 0.0 }
 0x124   :  { %v550_v31 = vpop.f32.mrf.mxu0  ;;  %8540 = vmatmul.mubr.msk.bf16.gmra.mxu0 %vm328_vm1, %v9354_v13  ;;  %v903_v38 = vpop.f32.mrf.mxu1  ;;  %8573 = vmatmul.mubr.msk.bf16.gmra.mxu1 %vm328_vm1, %v9354_v13  ;;  %v451_v16 = vsel %vm425_vm0, %v9713_v40, 0 }
 0x125   :  { %v2908_v33 = vadd.f32 %v2907_v14, %v2332_v29  ;;  %v2341_v35 = vmax.f32 %v550_v31, 0.0  ;;  %798 = vmatprep.mubr.bf16.mxu0 %v10868_v3  ;;  %v2982_v41 = vadd.f32 %v2981_v28, %v2334_v36  ;;  %v2343_v43 = vmax.f32 %v903_v38, 0.0  ;;  %1151 = vmatprep.mubr.bf16.mxu1 %v10868_v3 }
 0x126   :  { %v552_v37 = vpop.f32.mrf.mxu0  ;;  %v905_v45 = vpop.f32.mrf.mxu1 }
 0x127   :  { %v2872_v39 = vadd.f32 %v2871_v27, %v2341_v35  ;;  %v2342_v42 = vmax.f32 %v552_v37, 0.0  ;;  %v2946_v48 = vadd.f32 %v2945_v34, %v2343_v43  ;;  %v2344_v50 = vmax.f32 %v905_v45, 0.0 }
 0x128   :  { %v554_v44 = vpop.f32.mrf.mxu0  ;;  %v907_v52 = vpop.f32.mrf.mxu1 }
 0x129   :  { %v2909_v47 = vadd.f32 %v2908_v33, %v2342_v42  ;;  %v2351_v49 = vmax.f32 %v554_v44, 0.0  ;;  %v2983_v54 = vadd.f32 %v2982_v41, %v2344_v50  ;;  %v2353_v56 = vmax.f32 %v907_v52, 0.0 }
 0x12a   :  { %v556_v51 = vpop.f32.mrf.mxu0  ;;  %v909_v58 = vpop.f32.mrf.mxu1 }
 0x12b   :  { %v2873_v53 = vadd.f32 %v2872_v39, %v2351_v49  ;;  %v2352_v55 = vmax.f32 %v556_v51, 0.0  ;;  %v2947_v60 = vadd.f32 %v2946_v48, %v2353_v56  ;;  %v2354_v62 = vmax.f32 %v909_v58, 0.0 }
 0x12c   :  { %v560_v57 = vpop.f32.mrf.mxu0  ;;  %8541 = vmatmul.mubr.msk.bf16.gmra.mxu0 %vm328_vm1, %v9355_v46  ;;  %v913_v0 = vpop.f32.mrf.mxu1  ;;  %8574 = vmatmul.mubr.msk.bf16.gmra.mxu1 %vm328_vm1, %v9355_v46 }
 0x12d   :  { %v2910_v59 = vadd.f32 %v2909_v47, %v2352_v55  ;;  %v2361_v61 = vmax.f32 %v560_v57, 0.0  ;;  %1194 = vmatprep.mubr.bf16.mxu0 %v10868_v3  ;;  %v2984_v2 = vadd.f32 %v2983_v54, %v2354_v62  ;;  %v2363_v7 = vmax.f32 %v913_v0, 0.0  ;;  %1547 = vmatprep.mubr.bf16.mxu1 %v10868_v3 }
 0x12e   :  { %v562_v63 = vpop.f32.mrf.mxu0  ;;  %v915_v9 = vpop.f32.mrf.mxu1 }
 0x12f   :  { %v2874_v1 = vadd.f32 %v2873_v53, %v2361_v61  ;;  %v2362_v5 = vmax.f32 %v562_v63, 0.0  ;;  %v2948_v11 = vadd.f32 %v2947_v60, %v2363_v7  ;;  %v2364_v13 = vmax.f32 %v915_v9, 0.0 }
 0x130   :  { %v564_v8 = vpop.f32.mrf.mxu0  ;;  %v917_v15 = vpop.f32.mrf.mxu1 }
 0x131   :  { %v2911_v10 = vadd.f32 %v2910_v59, %v2362_v5  ;;  %v2371_v12 = vmax.f32 %v564_v8, 0.0  ;;  %v2985_v19 = vadd.f32 %v2984_v2, %v2364_v13  ;;  %v2373_v27 = vmax.f32 %v917_v15, 0.0 }
 0x132   :  { %v566_v14 = vpop.f32.mrf.mxu0  ;;  %v919_v29 = vpop.f32.mrf.mxu1 }
 0x133   :  { %v2875_v17 = vadd.f32 %v2874_v1, %v2371_v12  ;;  %v2372_v26 = vmax.f32 %v566_v14, 0.0  ;;  %v2949_v31 = vadd.f32 %v2948_v11, %v2373_v27  ;;  %v2374_v33 = vmax.f32 %v919_v29, 0.0 }
 0x134   :  { %v570_v28 = vpop.f32.mrf.mxu0  ;;  %8576 = vmatmul.mubr.msk.bf16.vlgmr.msra.gmra.mxu0 %vm328_vm1, %v9561_v18  ;;  %v923_v35 = vpop.f32.mrf.mxu1  ;;  %8609 = vmatmul.mubr.msk.bf16.vlgmr.msra.gmra.mxu1 %vm328_vm1, %v9561_v18 }
 0x135   :  { %v2912_v30 = vadd.f32 %v2911_v10, %v2372_v26  ;;  %v2381_v32 = vmax.f32 %v570_v28, 0.0  ;;  %1883 = vmatpush1.bf16.msra.mxu0 %v451_v16  ;;  %1204 = vmatprep.mubr.bf16.mxu0 %v10868_v3  ;;  %v2986_v36 = vadd.f32 %v2985_v19, %v2374_v33  ;;  %v2383_v38 = vmax.f32 %v923_v35, 0.0 }
 0x136   :  { %v572_v34 = vpop.f32.mrf.mxu0  ;;  %1557 = vmatprep.mubr.bf16.mxu1 %v10868_v3  ;;  %v925_v41 = vpop.f32.mrf.mxu1 }
 0x137   :  { %v2876_v40 = vadd.f32 %v2875_v17, %v2381_v32  ;;  %v2382_v37 = vmax.f32 %v572_v34, 0.0  ;;  %v2950_v43 = vadd.f32 %v2949_v31, %v2383_v38  ;;  %v2384_v45 = vmax.f32 %v925_v41, 0.0 }
 0x138   :  { %v574_v39 = vpop.f32.mrf.mxu0  ;;  %v927_v47 = vpop.f32.mrf.mxu1 }
 0x139   :  { %v2913_v42 = vadd.f32 %v2912_v30, %v2382_v37  ;;  %v2391_v44 = vmax.f32 %v574_v39, 0.0  ;;  %v2987_v49 = vadd.f32 %v2986_v36, %v2384_v45  ;;  %v2393_v51 = vmax.f32 %v927_v47, 0.0 }
 0x13a   :  { %v576_v46 = vpop.f32.mrf.mxu0  ;;  %v929_v18 = vpop.f32.mrf.mxu1 }
 0x13b   :  { %v2877_v48 = vadd.f32 %v2876_v40, %v2391_v44  ;;  %v2392_v50 = vmax.f32 %v576_v46, 0.0  ;;  %v2951_v54 = vadd.f32 %v2950_v43, %v2393_v51  ;;  %v2394_v56 = vmax.f32 %v929_v18, 0.0 }
 0x13c   :  { %v580_v52 = vpop.f32.mrf.mxu0  ;;  %8577 = vmatmul.mubr.msk.bf16.gmra.mxu0 %vm328_vm1, %v9575_v20  ;;  %v933_v58 = vpop.f32.mrf.mxu1  ;;  %8610 = vmatmul.mubr.msk.bf16.gmra.mxu1 %vm328_vm1, %v9575_v20 }
 0x13d   :  { %v2914_v53 = vadd.f32 %v2913_v42, %v2392_v50  ;;  %v2401_v55 = vmax.f32 %v580_v52, 0.0  ;;  %1214 = vmatprep.mubr.bf16.mxu0 %v10868_v3  ;;  %v2988_v60 = vadd.f32 %v2987_v49, %v2394_v56  ;;  %v2403_v62 = vmax.f32 %v933_v58, 0.0  ;;  %1567 = vmatprep.mubr.bf16.mxu1 %v10868_v3 }
 0x13e   :  { %v582_v57 = vpop.f32.mrf.mxu0  ;;  %v935_v0 = vpop.f32.mrf.mxu1 }
 0x13f   :  { %v2878_v59 = vadd.f32 %v2877_v48, %v2401_v55  ;;  %v2402_v61 = vmax.f32 %v582_v57, 0.0  ;;  %v2952_v2 = vadd.f32 %v2951_v54, %v2403_v62  ;;  %v2404_v7 = vmax.f32 %v935_v0, 0.0 }
 0x140   :  { %v584_v63 = vpop.f32.mrf.mxu0  ;;  %v937_v9 = vpop.f32.mrf.mxu1 }
 0x141   :  { %v2915_v1 = vadd.f32 %v2914_v53, %v2402_v61  ;;  %v2411_v5 = vmax.f32 %v584_v63, 0.0  ;;  %v2989_v11 = vadd.f32 %v2988_v60, %v2404_v7  ;;  %v2413_v13 = vmax.f32 %v937_v9, 0.0 }
 0x142   :  { %v586_v8 = vpop.f32.mrf.mxu0  ;;  %v939_v20 = vpop.f32.mrf.mxu1 }
 0x143   :  { %v2879_v10 = vadd.f32 %v2878_v59, %v2411_v5  ;;  %v2412_v12 = vmax.f32 %v586_v8, 0.0  ;;  %v2953_v16 = vadd.f32 %v2952_v2, %v2413_v13  ;;  %v2414_v19 = vmax.f32 %v939_v20, 0.0 }
 0x144   :  { %v590_v14 = vpop.f32.mrf.mxu0  ;;  %8578 = vmatmul.mubr.msk.bf16.gmra.mxu0 %vm328_vm1, %v9585_v21  ;;  %v943_v27 = vpop.f32.mrf.mxu1  ;;  %8611 = vmatmul.mubr.msk.bf16.gmra.mxu1 %vm328_vm1, %v9585_v21 }
 0x145   :  { %v2916_v15 = vadd.f32 %v2915_v1, %v2412_v12  ;;  %v2421_v17 = vmax.f32 %v590_v14, 0.0  ;;  %1224 = vmatprep.mubr.bf16.mxu0 %v10868_v3  ;;  %v2990_v29 = vadd.f32 %v2989_v11, %v2414_v19  ;;  %v2423_v31 = vmax.f32 %v943_v27, 0.0  ;;  %1577 = vmatprep.mubr.bf16.mxu1 %v10868_v3 }
 0x146   :  { %v592_v26 = vpop.f32.mrf.mxu0  ;;  %v945_v33 = vpop.f32.mrf.mxu1 }
 0x147   :  { %v2880_v28 = vadd.f32 %v2879_v10, %v2421_v17  ;;  %v2422_v30 = vmax.f32 %v592_v26, 0.0  ;;  %v2954_v35 = vadd.f32 %v2953_v16, %v2423_v31  ;;  %v2424_v36 = vmax.f32 %v945_v33, 0.0 }
 0x148   :  { %v594_v32 = vpop.f32.mrf.mxu0  ;;  %v947_v38 = vpop.f32.mrf.mxu1 }
 0x149   :  { %v2917_v34 = vadd.f32 %v2916_v15, %v2422_v30  ;;  %v2431_v40 = vmax.f32 %v594_v32, 0.0  ;;  %v2991_v41 = vadd.f32 %v2990_v29, %v2424_v36  ;;  %v2433_v43 = vmax.f32 %v947_v38, 0.0 }
 0x14a   :  { %v596_v37 = vpop.f32.mrf.mxu0  ;;  %v949_v21 = vpop.f32.mrf.mxu1 }
 0x14b   :  { %v2881_v39 = vadd.f32 %v2880_v28, %v2431_v40  ;;  %v2432_v42 = vmax.f32 %v596_v37, 0.0  ;;  %v2955_v46 = vadd.f32 %v2954_v35, %v2433_v43  ;;  %v2434_v48 = vmax.f32 %v949_v21, 0.0 }
 0x14c   :  { %v600_v44 = vpop.f32.mrf.mxu0  ;;  %8579 = vmatmul.mubr.msk.bf16.gmra.mxu0 %vm328_vm1, %v9597_v22  ;;  %v953_v50 = vpop.f32.mrf.mxu1  ;;  %8612 = vmatmul.mubr.msk.bf16.gmra.mxu1 %vm328_vm1, %v9597_v22 }
 0x14d   :  { %v2918_v45 = vadd.f32 %v2917_v34, %v2432_v42  ;;  %v2441_v47 = vmax.f32 %v600_v44, 0.0  ;;  %1234 = vmatprep.mubr.bf16.mxu0 %v10868_v3  ;;  %v2992_v52 = vadd.f32 %v2991_v41, %v2434_v48  ;;  %v2443_v53 = vmax.f32 %v953_v50, 0.0  ;;  %1587 = vmatprep.mubr.bf16.mxu1 %v10868_v3 }
 0x14e   :  { %v602_v49 = vpop.f32.mrf.mxu0  ;;  %v955_v55 = vpop.f32.mrf.mxu1 }
 0x14f   :  { %v2882_v51 = vadd.f32 %v2881_v39, %v2441_v47  ;;  %v2442_v18 = vmax.f32 %v602_v49, 0.0  ;;  %v2956_v57 = vadd.f32 %v2955_v46, %v2443_v53  ;;  %v2444_v59 = vmax.f32 %v955_v55, 0.0 }
 0x150   :  { %v604_v54 = vpop.f32.mrf.mxu0  ;;  %v957_v61 = vpop.f32.mrf.mxu1 }
 0x151   :  { %v2919_v56 = vadd.f32 %v2918_v45, %v2442_v18  ;;  %v2451_v58 = vmax.f32 %v604_v54, 0.0  ;;  %v2993_v63 = vadd.f32 %v2992_v52, %v2444_v59  ;;  %v2453_v1 = vmax.f32 %v957_v61, 0.0 }
 0x152   :  { %v606_v60 = vpop.f32.mrf.mxu0  ;;  %v959_v22 = vpop.f32.mrf.mxu1 }
 0x153   :  { %v2883_v62 = vadd.f32 %v2882_v51, %v2451_v58  ;;  %v2452_v0 = vmax.f32 %v606_v60, 0.0  ;;  %v2957_v7 = vadd.f32 %v2956_v57, %v2453_v1  ;;  %v2454_v9 = vmax.f32 %v959_v22, 0.0 }
 0x154   :  { %v610_v2 = vpop.f32.mrf.mxu0  ;;  %8580 = vmatmul.mubr.msk.bf16.gmra.mxu0 %vm328_vm1, %v9608_v23  ;;  %v963_v11 = vpop.f32.mrf.mxu1  ;;  %8613 = vmatmul.mubr.msk.bf16.gmra.mxu1 %vm328_vm1, %v9608_v23 }
 0x155   :  { %v2920_v5 = vadd.f32 %v2919_v56, %v2452_v0  ;;  %v2461_v8 = vmax.f32 %v610_v2, 0.0  ;;  %1244 = vmatprep.mubr.bf16.mxu0 %v10868_v3  ;;  %v2994_v13 = vadd.f32 %v2993_v63, %v2454_v9  ;;  %v2463_v20 = vmax.f32 %v963_v11, 0.0  ;;  %1597 = vmatprep.mubr.bf16.mxu1 %v10868_v3 }
 0x156   :  { %v612_v10 = vpop.f32.mrf.mxu0  ;;  %v965_v16 = vpop.f32.mrf.mxu1 }
 0x157   :  { %v2884_v12 = vadd.f32 %v2883_v62, %v2461_v8  ;;  %v2462_v14 = vmax.f32 %v612_v10, 0.0  ;;  %v2958_v19 = vadd.f32 %v2957_v7, %v2463_v20  ;;  %v2464_v27 = vmax.f32 %v965_v16, 0.0  ;;  %v9356_v16 = vld [vmem:[%s10863_s0 + $0x38] sm:$0xff]  }
 0x158   :  { %v614_v15 = vpop.f32.mrf.mxu0  ;;  %v967_v29 = vpop.f32.mrf.mxu1 }
 0x159   :  { %v2921_v17 = vadd.f32 %v2920_v5, %v2462_v14  ;;  %v2471_v26 = vmax.f32 %v614_v15, 0.0  ;;  %v2995_v31 = vadd.f32 %v2994_v13, %v2464_v27  ;;  %v2473_v33 = vmax.f32 %v967_v29, 0.0 }
 0x15a   :  { %v616_v28 = vpop.f32.mrf.mxu0  ;;  %v969_v23 = vpop.f32.mrf.mxu1 }
 0x15b   :  { %v2885_v30 = vadd.f32 %v2884_v12, %v2471_v26  ;;  %v2472_v32 = vmax.f32 %v616_v28, 0.0  ;;  %v2959_v40 = vadd.f32 %v2958_v19, %v2473_v33  ;;  %v2474_v37 = vmax.f32 %v969_v23, 0.0 }
 0x15c   :  { %v620_v34 = vpop.f32.mrf.mxu0  ;;  %8581 = vmatmul.mubr.msk.bf16.gmra.mxu0 %vm328_vm1, %v9619_v24  ;;  %v973_v39 = vpop.f32.mrf.mxu1  ;;  %8614 = vmatmul.mubr.msk.bf16.gmra.mxu1 %vm328_vm1, %v9619_v24 }
 0x15d   :  { %v2922_v35 = vadd.f32 %v2921_v17, %v2472_v32  ;;  %v2481_v36 = vmax.f32 %v620_v34, 0.0  ;;  %1254 = vmatprep.mubr.bf16.mxu0 %v10868_v3  ;;  %v2996_v42 = vadd.f32 %v2995_v31, %v2474_v37  ;;  %v2483_v44 = vmax.f32 %v973_v39, 0.0  ;;  %1607 = vmatprep.mubr.bf16.mxu1 %v10868_v3 }
 0x15e   :  { %v622_v38 = vpop.f32.mrf.mxu0  ;;  %v975_v45 = vpop.f32.mrf.mxu1 }
 0x15f   :  { %v2886_v41 = vadd.f32 %v2885_v30, %v2481_v36  ;;  %v2482_v43 = vmax.f32 %v622_v38, 0.0  ;;  %v2960_v47 = vadd.f32 %v2959_v40, %v2483_v44  ;;  %v2484_v49 = vmax.f32 %v975_v45, 0.0  ;;  %v3701_v45 = vld [vmem:[#allocation5 + $0x1e0] sm:$0xff] }
 0x160   :  { %v624_v21 = vpop.f32.mrf.mxu0  ;;  %v977_v51 = vpop.f32.mrf.mxu1 }
 0x161   :  { %v2923_v46 = vadd.f32 %v2922_v35, %v2482_v43  ;;  %v2491_v48 = vmax.f32 %v624_v21, 0.0  ;;  %v2997_v18 = vadd.f32 %v2996_v42, %v2484_v49  ;;  %v2493_v54 = vmax.f32 %v977_v51, 0.0  ;;  %v3697_v21 = vld [vmem:[#allocation5 + $0x1c0] sm:$0xff] }
 0x162   :  { %v626_v50 = vpop.f32.mrf.mxu0  ;;  %v979_v24 = vpop.f32.mrf.mxu1  ;;  %v8731_v49 = vcombine.high %v3697_v21, %v3701_v45 }
 0x163   :  { %v2887_v52 = vadd.f32 %v2886_v41, %v2491_v48  ;;  %v2492_v53 = vmax.f32 %v626_v50, 0.0  ;;  %v2961_v57 = vadd.f32 %v2960_v47, %v2493_v54  ;;  %v2494_v59 = vmax.f32 %v979_v24, 0.0  ;;  %v9357_v48 = vld [vmem:[%s10863_s0 + $0x40] sm:$0xff]   ;;  %v3693_v24 = vld [vmem:[#allocation5 + $0x1a0] sm:$0xff] }
 0x164   :  { %v630_v55 = vpop.f32.mrf.mxu0  ;;  %8582 = vmatmul.mubr.msk.bf16.gmra.mxu0 %vm328_vm1, %v9630_v25  ;;  %v983_v61 = vpop.f32.mrf.mxu1  ;;  %8615 = vmatmul.mubr.msk.bf16.gmra.mxu1 %vm328_vm1, %v9630_v25  ;;  %v8730_v54 = vcombine.low %v3697_v21, %v3701_v45 }
 0x165   :  { %v2924_v56 = vadd.f32 %v2923_v46, %v2492_v53  ;;  %v2501_v58 = vmax.f32 %v630_v55, 0.0  ;;  %1264 = vmatprep.mubr.bf16.mxu0 %v10868_v3  ;;  %v2998_v63 = vadd.f32 %v2997_v18, %v2494_v59  ;;  %v2503_v1 = vmax.f32 %v983_v61, 0.0  ;;  %1617 = vmatprep.mubr.bf16.mxu1 %v10868_v3  ;;  %v3689_v55 = vld [vmem:[#allocation5 + $0x180] sm:$0xff] }
 0x166   :  { %v632_v60 = vpop.f32.mrf.mxu0  ;;  %v985_v22 = vpop.f32.mrf.mxu1  ;;  %7594 = vmatprep.subr.bf16.mxu1 %v8731_v49  ;;  %v8723_v59 = vcombine.high %v3689_v55, %v3693_v24 }
 0x167   :  { %v2888_v62 = vadd.f32 %v2887_v52, %v2501_v58  ;;  %v2502_v0 = vmax.f32 %v632_v60, 0.0  ;;  %v2962_v7 = vadd.f32 %v2961_v57, %v2503_v1  ;;  %v2504_v9 = vmax.f32 %v985_v22, 0.0  ;;  %7595 = vmatpush1.bf16.msra.mxu1 %v8730_v54  ;;  %v3677_v54 = vld [vmem:[#allocation5 + $0x120] sm:$0xff] }
 0x168   :  { %v634_v2 = vpop.f32.mrf.mxu0  ;;  %v987_v11 = vpop.f32.mrf.mxu1  ;;  %v8722_v1 = vcombine.low %v3689_v55, %v3693_v24  ;;  %7596 = vmatprep.subr.bf16.mxu1 %v8723_v59 }
 0x169   :  { %v2925_v5 = vadd.f32 %v2924_v56, %v2502_v0  ;;  %v2511_v8 = vmax.f32 %v634_v2, 0.0  ;;  %v2999_v13 = vadd.f32 %v2998_v63, %v2504_v9  ;;  %v2513_v20 = vmax.f32 %v987_v11, 0.0 }
 0x16a   :  { %v636_v10 = vpop.f32.mrf.mxu0  ;;  %v989_v25 = vpop.f32.mrf.mxu1 }
 0x16b   :  { %v2889_v12 = vadd.f32 %v2888_v62, %v2511_v8  ;;  %v2512_v14 = vmax.f32 %v636_v10, 0.0  ;;  %v2963_v19 = vadd.f32 %v2962_v7, %v2513_v20  ;;  %v2514_v27 = vmax.f32 %v989_v25, 0.0  ;;  %v9891_v7 = vld [vmem:[#allocation5 + $0x160] sm:$0xff]  ;;  %7597 = vmatpush1.bf16.msra.mxu1 %v8722_v1 }
 0x16c   :  { %v640_v15 = vpop.f32.mrf.mxu0  ;;  %8583 = vmatmul.mubr.msk.bf16.gmra.mxu0 %vm328_vm1, %v9356_v16  ;;  %v993_v29 = vpop.f32.mrf.mxu1  ;;  %8616 = vmatmul.mubr.msk.bf16.gmra.mxu1 %vm328_vm1, %v9356_v16 }
 0x16d   :  { %v2926_v17 = vadd.f32 %v2925_v5, %v2512_v14  ;;  %v2521_v26 = vmax.f32 %v640_v15, 0.0  ;;  %1274 = vmatprep.mubr.bf16.mxu0 %v10868_v3  ;;  %v3000_v31 = vadd.f32 %v2999_v13, %v2514_v27  ;;  %v2523_v33 = vmax.f32 %v993_v29, 0.0  ;;  %1627 = vmatprep.mubr.bf16.mxu1 %v10868_v3  ;;  %v9889_v5 = vld [vmem:[#allocation5 + $0x140] sm:$0xff]  ;;  %v9358_v13 = vld [vmem:[%s10863_s0 + $0x48] sm:$0xff]  }
 0x16e   :  { %v642_v28 = vpop.f32.mrf.mxu0  ;;  %v995_v23 = vpop.f32.mrf.mxu1  ;;  %v8715_v14 = vcombine.high %v9889_v5, %v9891_v7 }
 0x16f   :  { %v2890_v30 = vadd.f32 %v2889_v12, %v2521_v26  ;;  %v2522_v32 = vmax.f32 %v642_v28, 0.0  ;;  %v2964_v40 = vadd.f32 %v2963_v19, %v2523_v33  ;;  %v2524_v37 = vmax.f32 %v995_v23, 0.0 }
 0x170   :  { %v644_v34 = vpop.f32.mrf.mxu0  ;;  %v997_v39 = vpop.f32.mrf.mxu1  ;;  %7598 = vmatprep.subr.bf16.mxu1 %v8715_v14 }
 0x171   :  { %v2927_v35 = vadd.f32 %v2926_v17, %v2522_v32  ;;  %v2531_v36 = vmax.f32 %v644_v34, 0.0  ;;  %v3001_v42 = vadd.f32 %v3000_v31, %v2524_v37  ;;  %v2533_v44 = vmax.f32 %v997_v39, 0.0 }
 0x172   :  { %v646_v38 = vpop.f32.mrf.mxu0  ;;  %v999_v47 = vpop.f32.mrf.mxu1 }
 0x173   :  { %v9874_v41 = vadd.f32 %v2890_v30, %v2531_v36  ;;  %v2532_v43 = vmax.f32 %v646_v38, 0.0  ;;  %v9882_v51 = vadd.f32 %v2964_v40, %v2533_v44  ;;  %v2534_v52 = vmax.f32 %v999_v47, 0.0  ;;  %v9359_v44 = vld [vmem:[%s10863_s0 + $0x50] sm:$0xff]  }
 0x174   :  { %v650_v46 = vpop.f32.mrf.mxu0  ;;  %8584 = vmatmul.mubr.msk.bf16.gmra.mxu0 %vm328_vm1, %v9357_v48  ;;  %v1003_v53 = vpop.f32.mrf.mxu1  ;;  %8617 = vmatmul.mubr.msk.bf16.gmra.mxu1 %vm328_vm1, %v9357_v48 }
 0x175   :  { %v9880_v50 = vadd.f32 %v2927_v35, %v2532_v43  ;;  %1284 = vmatprep.mubr.bf16.mxu0 %v10868_v3  ;;  %1637 = vmatprep.mubr.bf16.mxu1 %v10868_v3  ;;  %v9887_v56 = vadd.f32 %v3001_v42, %v2534_v52  ;;  %v2541_v60 = vmax.f32 %v650_v46, 0.0  ;;  %v2543_v62 = vmax.f32 %v1003_v53, 0.0  ;;  %v3673_v53 = vld [vmem:[#allocation5 + $0x100] sm:$0xff] }
 0x176   :  { %v652_v18 = vpop.f32.mrf.mxu0  ;;  %v1005_v58 = vpop.f32.mrf.mxu1 }
 0x177   :  { %v2542_v2 = vmax.f32 %v652_v18, 0.0  ;;  %v2544_v8 = vmax.f32 %v1005_v58, 0.0 }
 0x178   :  { %v654_v57 = vpop.f32.mrf.mxu0  ;;  %v1007_v0 = vpop.f32.mrf.mxu1 }
 0x179   :  { %v2551_v61 = vmax.f32 %v654_v57, 0.0  ;;  %v2553_v10 = vmax.f32 %v1007_v0, 0.0  ;;  %v3669_v0 = vld [vmem:[#allocation5 + $0xe0] sm:$0xff] }
 0x17a   :  { %v656_v63 = vpop.f32.mrf.mxu0  ;;  %v1009_v12 = vpop.f32.mrf.mxu1 }
 0x17b   :  { %v3231_v22 = vadd.f32 %v2551_v61, %v2541_v60  ;;  %v2552_v9 = vmax.f32 %v656_v63, 0.0  ;;  %v3305_v25 = vadd.f32 %v2553_v10, %v2543_v62  ;;  %v2554_v16 = vmax.f32 %v1009_v12, 0.0  ;;  %v3665_v63 = vld [vmem:[#allocation5 + $0xc0] sm:$0xff] }
 0x17c   :  { %v660_v11 = vpop.f32.mrf.mxu0  ;;  %8585 = vmatmul.mubr.msk.bf16.gmra.mxu0 %vm328_vm1, %v9358_v13  ;;  %v1013_v19 = vpop.f32.mrf.mxu1  ;;  %8618 = vmatmul.mubr.msk.bf16.gmra.mxu1 %vm328_vm1, %v9358_v13  ;;  %v8714_v62 = vcombine.low %v9889_v5, %v9891_v7  ;;  %v8699_v5 = vcombine.high %v3665_v63, %v3669_v0 }
 0x17d   :  { %v2561_v20 = vmax.f32 %v660_v11, 0.0  ;;  %1294 = vmatprep.mubr.bf16.mxu0 %v10868_v3  ;;  %v3268_v15 = vadd.f32 %v2552_v9, %v2542_v2  ;;  %1647 = vmatprep.mubr.bf16.mxu1 %v10868_v3  ;;  %v3342_v27 = vadd.f32 %v2554_v16, %v2544_v8  ;;  %v2563_v29 = vmax.f32 %v1013_v19, 0.0  ;;  %v3657_v19 = vld [vmem:[#allocation5 + $0x80] sm:$0xff] }
 0x17e   :  { %v662_v17 = vpop.f32.mrf.mxu0  ;;  %v1015_v31 = vpop.f32.mrf.mxu1  ;;  %v8706_v8 = vcombine.low %v3673_v53, %v3677_v54  ;;  %v8707_v9 = vcombine.high %v3673_v53, %v3677_v54  ;;  %7599 = vmatpush1.bf16.msra.mxu1 %v8714_v62 }
 0x17f   :  { %v3232_v26 = vadd.f32 %v3231_v22, %v2561_v20  ;;  %v2562_v28 = vmax.f32 %v662_v17, 0.0  ;;  %v3306_v34 = vadd.f32 %v3305_v25, %v2563_v29  ;;  %v2564_v23 = vmax.f32 %v1015_v31, 0.0 }
 0x180   :  { %v664_v30 = vpop.f32.mrf.mxu0  ;;  %v1017_v40 = vpop.f32.mrf.mxu1  ;;  %7600 = vmatprep.subr.bf16.mxu1 %v8707_v9  ;;  %v8698_v29 = vcombine.low %v3665_v63, %v3669_v0 }
 0x181   :  { %v2571_v32 = vmax.f32 %v664_v30, 0.0  ;;  %v3269_v33 = vadd.f32 %v3268_v15, %v2562_v28  ;;  %v3343_v37 = vadd.f32 %v3342_v27, %v2564_v23  ;;  %v2573_v39 = vmax.f32 %v1017_v40, 0.0  ;;  %v9360_v15 = vld [vmem:[%s10863_s0 + $0x58] sm:$0xff]  }
 0x182   :  { %v666_v35 = vpop.f32.mrf.mxu0  ;;  %v1019_v43 = vpop.f32.mrf.mxu1  ;;  %7601 = vmatpush1.bf16.msra.mxu1 %v8706_v8 }
 0x183   :  { %v3233_v36 = vadd.f32 %v3232_v26, %v2571_v32  ;;  %v2572_v38 = vmax.f32 %v666_v35, 0.0  ;;  %v3307_v46 = vadd.f32 %v3306_v34, %v2573_v39  ;;  %v2574_v47 = vmax.f32 %v1019_v43, 0.0  ;;  %v3661_v26 = vld [vmem:[#allocation5 + $0xa0] sm:$0xff]  ;;  %7602 = vmatprep.subr.bf16.mxu1 %v8699_v5 }
 0x184   :  { %v670_v42 = vpop.f32.mrf.mxu0  ;;  %8586 = vmatmul.mubr.msk.bf16.gmra.mxu0 %vm328_vm1, %v9359_v44  ;;  %v1023_v49 = vpop.f32.mrf.mxu1  ;;  %8619 = vmatmul.mubr.msk.bf16.gmra.mxu1 %vm328_vm1, %v9359_v44  ;;  %v8691_v35 = vcombine.high %v3657_v19, %v3661_v26  ;;  %v3649_v39 = vld [vmem:[#allocation5 + $0x40] sm:$0xff] }
 0x185   :  { %v2581_v21 = vmax.f32 %v670_v42, 0.0  ;;  %1304 = vmatprep.mubr.bf16.mxu0 %v10868_v3  ;;  %v3270_v45 = vadd.f32 %v3269_v33, %v2572_v38  ;;  %1657 = vmatprep.mubr.bf16.mxu1 %v10868_v3  ;;  %v3344_v55 = vadd.f32 %v3343_v37, %v2574_v47  ;;  %v2583_v24 = vmax.f32 %v1023_v49, 0.0  ;;  %v3653_v42 = vld [vmem:[#allocation5 + $0x60] sm:$0xff] }
 0x186   :  { %v672_v48 = vpop.f32.mrf.mxu0  ;;  %v1025_v58 = vpop.f32.mrf.mxu1  ;;  %7603 = vmatpush1.bf16.msra.mxu1 %v8698_v29  ;;  %v8683_v53 = vcombine.high %v3649_v39, %v3653_v42  ;;  %v8682_v62 = vcombine.low %v3649_v39, %v3653_v42 }
 0x187   :  { %v3234_v52 = vadd.f32 %v3233_v36, %v2581_v21  ;;  %v2582_v18 = vmax.f32 %v672_v48, 0.0  ;;  %v2584_v61 = vmax.f32 %v1025_v58, 0.0  ;;  %v3308_v1 = vadd.f32 %v3307_v46, %v2583_v24  ;;  %7604 = vmatprep.subr.bf16.mxu1 %v8691_v35  ;;  %v3641_v58 = vld [vmem:[#allocation5] sm:$0xff] }
 0x188   :  { %v674_v57 = vpop.f32.mrf.mxu0  ;;  %v1027_v22 = vpop.f32.mrf.mxu1  ;;  %v8690_v21 = vcombine.low %v3657_v19, %v3661_v26 }
 0x189   :  { %v3271_v59 = vadd.f32 %v3270_v45, %v2582_v18  ;;  %v2591_v60 = vmax.f32 %v674_v57, 0.0  ;;  %v3345_v11 = vadd.f32 %v3344_v55, %v2584_v61  ;;  %v2593_v13 = vmax.f32 %v1027_v22, 0.0  ;;  %v9361_v18 = vld [vmem:[%s10863_s0 + $0x60] sm:$0xff]  }
 0x18a   :  { %v676_v2 = vpop.f32.mrf.mxu0  ;;  %v1029_v20 = vpop.f32.mrf.mxu1  ;;  %7605 = vmatpush1.bf16.msra.mxu1 %v8690_v21 }
 0x18b   :  { %v3235_v10 = vadd.f32 %v3234_v52, %v2591_v60  ;;  %v2592_v12 = vmax.f32 %v676_v2, 0.0  ;;  %v3309_v25 = vadd.f32 %v3308_v1, %v2593_v13  ;;  %v2594_v17 = vmax.f32 %v1029_v20, 0.0  ;;  %7606 = vmatprep.subr.bf16.mxu1 %v8683_v53  ;;  %v3765_v20 = vld [vmem:[#allocation5 + $0x3e0] sm:$0xff] }
 0x18c   :  { %v680_v14 = vpop.f32.mrf.mxu0  ;;  %8587 = vmatmul.mubr.msk.bf16.gmra.mxu0 %vm328_vm1, %v9360_v15  ;;  %v1033_v28 = vpop.f32.mrf.mxu1  ;;  %8620 = vmatmul.mubr.msk.bf16.gmra.mxu1 %vm328_vm1, %v9360_v15 }
 0x18d   :  { %v3272_v7 = vadd.f32 %v3271_v59, %v2592_v12  ;;  %v2601_v16 = vmax.f32 %v680_v14, 0.0  ;;  %1314 = vmatprep.mubr.bf16.mxu0 %v10868_v3  ;;  %v3346_v31 = vadd.f32 %v3345_v11, %v2594_v17  ;;  %v2603_v33 = vmax.f32 %v1033_v28, 0.0  ;;  %1667 = vmatprep.mubr.bf16.mxu1 %v10868_v3  ;;  %v3645_v59 = vld [vmem:[#allocation5 + $0x20] sm:$0xff]  ;;  %v9362_v28 = vld [vmem:[%s10863_s0 + $0x68] sm:$0xff]  }
 0x18e   :  { %v682_v27 = vpop.f32.mrf.mxu0  ;;  %v1035_v23 = vpop.f32.mrf.mxu1  ;;  %v8675_v9 = vcombine.high %v3641_v58, %v3645_v59  ;;  %v3761_v14 = vld [vmem:[#allocation5 + $0x3c0] sm:$0xff]  ;;  %7607 = vmatpush1.bf16.msra.mxu1 %v8682_v62 }
 0x18f   :  { %v3236_v30 = vadd.f32 %v3235_v10, %v2601_v16  ;;  %v2602_v32 = vmax.f32 %v682_v27, 0.0  ;;  %v3310_v36 = vadd.f32 %v3309_v25, %v2603_v33  ;;  %v2604_v38 = vmax.f32 %v1035_v23, 0.0  ;;  %v3757_v23 = vld [vmem:[#allocation5 + $0x3a0] sm:$0xff] }
 0x190   :  { %v684_v34 = vpop.f32.mrf.mxu0  ;;  %v1037_v44 = vpop.f32.mrf.mxu1  ;;  %7608 = vmatprep.subr.bf16.mxu1 %v8675_v9  ;;  %v8795_v29 = vcombine.high %v3761_v14, %v3765_v20 }
 0x191   :  { %v3273_v40 = vadd.f32 %v3272_v7, %v2602_v32  ;;  %v2611_v37 = vmax.f32 %v684_v34, 0.0  ;;  %v3347_v46 = vadd.f32 %v3346_v31, %v2604_v38  ;;  %v2613_v48 = vmax.f32 %v1037_v44, 0.0  ;;  %v3753_v34 = vld [vmem:[#allocation5 + $0x380] sm:$0xff] }
 0x192   :  { %v686_v43 = vpop.f32.mrf.mxu0  ;;  %v1039_v52 = vpop.f32.mrf.mxu1  ;;  %v8674_v7 = vcombine.low %v3641_v58, %v3645_v59  ;;  %v8787_v21 = vcombine.high %v3753_v34, %v3757_v23 }
 0x193   :  { %v3237_v45 = vadd.f32 %v3236_v30, %v2611_v37  ;;  %v2612_v47 = vmax.f32 %v686_v43, 0.0  ;;  %v3311_v55 = vadd.f32 %v3310_v36, %v2613_v48  ;;  %v2614_v57 = vmax.f32 %v1039_v52, 0.0  ;;  %v3749_v52 = vld [vmem:[#allocation5 + $0x360] sm:$0xff] }
 0x194   :  { %v690_v49 = vpop.f32.mrf.mxu0  ;;  %8588 = vmatmul.mubr.msk.bf16.gmra.mxu0 %vm328_vm1, %v9361_v18  ;;  %v1043_v61 = vpop.f32.mrf.mxu1  ;;  %8621 = vmatmul.mubr.msk.bf16.gmra.mxu1 %vm328_vm1, %v9361_v18  ;;  %v8794_v36 = vcombine.low %v3761_v14, %v3765_v20 }
 0x195   :  { %v3274_v54 = vadd.f32 %v3273_v40, %v2612_v47  ;;  %v2621_v24 = vmax.f32 %v690_v49, 0.0  ;;  %1324 = vmatprep.mubr.bf16.mxu0 %v10868_v3  ;;  %v3348_v0 = vadd.f32 %v3347_v46, %v2614_v57  ;;  %v2623_v2 = vmax.f32 %v1043_v61, 0.0  ;;  %1677 = vmatprep.mubr.bf16.mxu1 %v10868_v3  ;;  %v3745_v49 = vld [vmem:[#allocation5 + $0x340] sm:$0xff] }
 0x196   :  { %v692_v60 = vpop.f32.mrf.mxu0  ;;  %v1045_v8 = vpop.f32.mrf.mxu1  ;;  %7609 = vmatpush1.bf16.msra.mxu1 %v8674_v7  ;;  %v9363_v61 = vld [vmem:[%s10863_s0 + $0x70] sm:$0xff]   ;;  %v8779_v62 = vcombine.high %v3745_v49, %v3749_v52 }
 0x197   :  { %v3238_v63 = vadd.f32 %v3237_v45, %v2621_v24  ;;  %v2622_v1 = vmax.f32 %v692_v60, 0.0  ;;  %v3312_v11 = vadd.f32 %v3311_v55, %v2623_v2  ;;  %v2624_v13 = vmax.f32 %v1045_v8, 0.0  ;;  %7610 = vmatprep.subr.bf16.mxu1 %v8795_v29  ;;  %v3741_v8 = vld [vmem:[#allocation5 + $0x320] sm:$0xff] }
 0x198   :  { %v694_v22 = vpop.f32.mrf.mxu0  ;;  %v1047_v5 = vpop.f32.mrf.mxu1 }
 0x199   :  { %v3275_v10 = vadd.f32 %v3274_v54, %v2622_v1  ;;  %v2631_v12 = vmax.f32 %v694_v22, 0.0  ;;  %v3349_v16 = vadd.f32 %v3348_v0, %v2624_v13  ;;  %v2633_v19 = vmax.f32 %v1047_v5, 0.0  ;;  %v3737_v22 = vld [vmem:[#allocation5 + $0x300] sm:$0xff] }
 0x19a   :  { %v696_v15 = vpop.f32.mrf.mxu0  ;;  %v1049_v27 = vpop.f32.mrf.mxu1  ;;  %v8786_v54 = vcombine.low %v3753_v34, %v3757_v23  ;;  %7611 = vmatpush2.bf16.msra.mxu1 %v8794_v36  ;;  %v8771_v7 = vcombine.high %v3737_v22, %v3741_v8 }
 0x19b   :  { %v3239_v25 = vadd.f32 %v3238_v63, %v2631_v12  ;;  %v2632_v17 = vmax.f32 %v696_v15, 0.0  ;;  %v3313_v31 = vadd.f32 %v3312_v11, %v2633_v19  ;;  %v2634_v33 = vmax.f32 %v1049_v27, 0.0  ;;  %7612 = vmatprep.subr.bf16.mxu1 %v8787_v21  ;;  %v3733_v27 = vld [vmem:[#allocation5 + $0x2e0] sm:$0xff] }
 0x19c   :  { %v700_v26 = vpop.f32.mrf.mxu0  ;;  %8589 = vmatmul.mubr.msk.bf16.gmra.mxu0 %vm328_vm1, %v9362_v28  ;;  %v1053_v40 = vpop.f32.mrf.mxu1  ;;  %8622 = vmatmul.mubr.msk.bf16.gmra.mxu1 %vm328_vm1, %v9362_v28  ;;  %v8778_v11 = vcombine.low %v3745_v49, %v3749_v52 }
 0x19d   :  { %v3276_v30 = vadd.f32 %v3275_v10, %v2632_v17  ;;  %v2641_v32 = vmax.f32 %v700_v26, 0.0  ;;  %1334 = vmatprep.mubr.bf16.mxu0 %v10868_v3  ;;  %v3350_v38 = vadd.f32 %v3349_v16, %v2634_v33  ;;  %v2643_v42 = vmax.f32 %v1053_v40, 0.0  ;;  %1687 = vmatprep.mubr.bf16.mxu1 %v10868_v3  ;;  %v3729_v26 = vld [vmem:[#allocation5 + $0x2c0] sm:$0xff] }
 0x19e   :  { %v702_v35 = vpop.f32.mrf.mxu0  ;;  %v1055_v44 = vpop.f32.mrf.mxu1  ;;  %7613 = vmatpush2.bf16.msra.mxu1 %v8786_v54  ;;  %v9364_v40 = vld [vmem:[%s10863_s0 + $0x78] sm:$0xff]   ;;  %v8763_v36 = vcombine.high %v3729_v26, %v3733_v27 }
 0x19f   :  { %v3240_v37 = vadd.f32 %v3239_v25, %v2641_v32  ;;  %v2642_v39 = vmax.f32 %v702_v35, 0.0  ;;  %v3314_v46 = vadd.f32 %v3313_v31, %v2643_v42  ;;  %v2644_v48 = vmax.f32 %v1055_v44, 0.0  ;;  %7614 = vmatprep.subr.bf16.mxu1 %v8779_v62  ;;  %v3725_v44 = vld [vmem:[#allocation5 + $0x2a0] sm:$0xff] }
 0x1a0   :  { %v704_v43 = vpop.f32.mrf.mxu0  ;;  %v1057_v53 = vpop.f32.mrf.mxu1 }
 0x1a1   :  { %v3277_v45 = vadd.f32 %v3276_v30, %v2642_v39  ;;  %v2651_v47 = vmax.f32 %v704_v43, 0.0  ;;  %v3351_v24 = vadd.f32 %v3350_v38, %v2644_v48  ;;  %v2653_v58 = vmax.f32 %v1057_v53, 0.0  ;;  %v3721_v43 = vld [vmem:[#allocation5 + $0x280] sm:$0xff] }
 0x1a2   :  { %v706_v18 = vpop.f32.mrf.mxu0  ;;  %v1059_v60 = vpop.f32.mrf.mxu1  ;;  %v8770_v30 = vcombine.low %v3737_v22, %v3741_v8  ;;  %7615 = vmatpush2.bf16.msra.mxu1 %v8778_v11  ;;  %v8755_v54 = vcombine.high %v3721_v43, %v3725_v44 }
 0x1a3   :  { %v3241_v55 = vadd.f32 %v3240_v37, %v2651_v47  ;;  %v2652_v57 = vmax.f32 %v706_v18, 0.0  ;;  %v3315_v0 = vadd.f32 %v3314_v46, %v2653_v58  ;;  %v2654_v2 = vmax.f32 %v1059_v60, 0.0  ;;  %7616 = vmatprep.subr.bf16.mxu1 %v8771_v7  ;;  %v3717_v60 = vld [vmem:[#allocation5 + $0x260] sm:$0xff] }
 0x1a4   :  { %v710_v59 = vpop.f32.mrf.mxu0  ;;  %8590 = vmatmul.mubr.msk.bf16.gmra.mxu0 %vm328_vm1, %v9363_v61  ;;  %v1063_v10 = vpop.f32.mrf.mxu1  ;;  %8623 = vmatmul.mubr.msk.bf16.gmra.mxu1 %vm328_vm1, %v9363_v61  ;;  %v8762_v46 = vcombine.low %v3729_v26, %v3733_v27  ;;  %v3705_v7 = vld [vmem:[#allocation5 + $0x200] sm:$0xff] }
 0x1a5   :  { %v3278_v63 = vadd.f32 %v3277_v45, %v2652_v57  ;;  %v2661_v1 = vmax.f32 %v710_v59, 0.0  ;;  %1344 = vmatprep.mubr.bf16.mxu0 %v10868_v3  ;;  %v3352_v13 = vadd.f32 %v3351_v24, %v2654_v2  ;;  %v2663_v20 = vmax.f32 %v1063_v10, 0.0  ;;  %1697 = vmatprep.mubr.bf16.mxu1 %v10868_v3  ;;  %v3713_v59 = vld [vmem:[#allocation5 + $0x240] sm:$0xff]  ;;  %v9365_v10 = vld [vmem:[%s10863_s0 + $0x80] sm:$0xff]  }
 0x1a6   :  { %v712_v9 = vpop.f32.mrf.mxu0  ;;  %v1065_v5 = vpop.f32.mrf.mxu1  ;;  %7617 = vmatpush2.bf16.msra.mxu1 %v8770_v30  ;;  %v8747_v11 = vcombine.high %v3713_v59, %v3717_v60 }
 0x1a7   :  { %v3242_v12 = vadd.f32 %v3241_v55, %v2661_v1  ;;  %v2662_v14 = vmax.f32 %v712_v9, 0.0  ;;  %v3316_v16 = vadd.f32 %v3315_v0, %v2663_v20  ;;  %v2664_v19 = vmax.f32 %v1065_v5, 0.0  ;;  %7618 = vmatprep.subr.bf16.mxu1 %v8763_v36 }
 0x1a8   :  { %v714_v15 = vpop.f32.mrf.mxu0  ;;  %v1067_v29 = vpop.f32.mrf.mxu1 }
 0x1a9   :  { %v3279_v25 = vadd.f32 %v3278_v63, %v2662_v14  ;;  %v2671_v17 = vmax.f32 %v714_v15, 0.0  ;;  %v3353_v32 = vadd.f32 %v3352_v13, %v2664_v19  ;;  %v2673_v34 = vmax.f32 %v1067_v29, 0.0  ;;  %v9952_v13 = vld [vmem:[#allocation5 + $0x5e0] sm:$0xff] }
 0x1aa   :  { %v716_v28 = vpop.f32.mrf.mxu0  ;;  %v1069_v35 = vpop.f32.mrf.mxu1  ;;  %v8754_v63 = vcombine.low %v3721_v43, %v3725_v44  ;;  %7619 = vmatpush2.bf16.msra.mxu1 %v8762_v46  ;;  %v8746_v19 = vcombine.low %v3713_v59, %v3717_v60 }
 0x1ab   :  { %v3243_v31 = vadd.f32 %v3242_v12, %v2671_v17  ;;  %v2672_v33 = vmax.f32 %v716_v28, 0.0  ;;  %v3317_v38 = vadd.f32 %v3316_v16, %v2673_v34  ;;  %v2674_v42 = vmax.f32 %v1069_v35, 0.0  ;;  %7620 = vmatprep.subr.bf16.mxu1 %v8755_v54  ;;  %v9950_v12 = vld [vmem:[#allocation5 + $0x5c0] sm:$0xff] }
 0x1ac   :  { %v720_v23 = vpop.f32.mrf.mxu0  ;;  %8591 = vmatmul.mubr.msk.bf16.gmra.mxu0 %vm328_vm1, %v9364_v40  ;;  %v1073_v45 = vpop.f32.mrf.mxu1  ;;  %8624 = vmatmul.mubr.msk.bf16.gmra.mxu1 %vm328_vm1, %v9364_v40  ;;  %v8858_v26 = vcombine.low %v9950_v12, %v9952_v13  ;;  %v8859_v46 = vcombine.high %v9950_v12, %v9952_v13 }
 0x1ad   :  { %v3280_v37 = vadd.f32 %v3279_v25, %v2672_v33  ;;  %v2681_v39 = vmax.f32 %v720_v23, 0.0  ;;  %1354 = vmatprep.mubr.bf16.mxu0 %v10868_v3  ;;  %v3354_v48 = vadd.f32 %v3353_v32, %v2674_v42  ;;  %v2683_v52 = vmax.f32 %v1073_v45, 0.0  ;;  %1707 = vmatprep.mubr.bf16.mxu1 %v10868_v3  ;;  %v3709_v25 = vld [vmem:[#allocation5 + $0x220] sm:$0xff]  ;;  %v9366_v45 = vld [vmem:[%s10863_s0 + $0x88] sm:$0xff]  }
 0x1ae   :  { %v722_v21 = vpop.f32.mrf.mxu0  ;;  %v1075_v53 = vpop.f32.mrf.mxu1  ;;  %7621 = vmatpush2.bf16.msra.mxu1 %v8754_v63  ;;  %v8739_v33 = vcombine.high %v3705_v7, %v3709_v25  ;;  %v8738_v43 = vcombine.low %v3705_v7, %v3709_v25 }
 0x1af   :  { %v3244_v47 = vadd.f32 %v3243_v31, %v2681_v39  ;;  %v2682_v49 = vmax.f32 %v722_v21, 0.0  ;;  %v3318_v24 = vadd.f32 %v3317_v38, %v2683_v52  ;;  %v2684_v58 = vmax.f32 %v1075_v53, 0.0  ;;  %7622 = vmatprep.subr.bf16.mxu1 %v8747_v11 }
 0x1b0   :  { %v724_v18 = vpop.f32.mrf.mxu0  ;;  %v1077_v62 = vpop.f32.mrf.mxu1 }
 0x1b1   :  { %v3281_v55 = vadd.f32 %v3280_v37, %v2682_v49  ;;  %v2691_v57 = vmax.f32 %v724_v18, 0.0  ;;  %v3355_v1 = vadd.f32 %v3354_v48, %v2684_v58  ;;  %v2693_v22 = vmax.f32 %v1077_v62, 0.0 }
 0x1b2   :  { %v726_v61 = vpop.f32.mrf.mxu0  ;;  %v1079_v9 = vpop.f32.mrf.mxu1  ;;  %7623 = vmatpush2.bf16.msra.mxu1 %v8746_v19 }
 0x1b3   :  { %v3245_v0 = vadd.f32 %v3244_v47, %v2691_v57  ;;  %v2692_v2 = vmax.f32 %v726_v61, 0.0  ;;  %v3319_v20 = vadd.f32 %v3318_v24, %v2693_v22  ;;  %v2694_v5 = vmax.f32 %v1079_v9, 0.0  ;;  %7624 = vmatprep.subr.bf16.mxu1 %v8739_v33 }
 0x1b4   :  { %v730_v8 = vpop.f32.mrf.mxu0  ;;  %8592 = vmatmul.mubr.msk.bf16.gmra.mxu0 %vm328_vm1, %v9365_v10  ;;  %v1083_v17 = vpop.f32.mrf.mxu1  ;;  %8625 = vmatmul.mubr.msk.bf16.gmra.mxu1 %vm328_vm1, %v9365_v10 }
 0x1b5   :  { %v3282_v14 = vadd.f32 %v3281_v55, %v2692_v2  ;;  %v2701_v15 = vmax.f32 %v730_v8, 0.0  ;;  %1364 = vmatprep.mubr.bf16.mxu0 %v10868_v3  ;;  %v3356_v28 = vadd.f32 %v3355_v1, %v2694_v5  ;;  %v2703_v30 = vmax.f32 %v1083_v17, 0.0  ;;  %1717 = vmatprep.mubr.bf16.mxu1 %v10868_v3  ;;  %v9367_v8 = vld [vmem:[%s10863_s0 + $0x90] sm:$0xff]  }
 0x1b6   :  { %v732_v16 = vpop.f32.mrf.mxu0  ;;  %v1085_v32 = vpop.f32.mrf.mxu1  ;;  %7625 = vmatpush2.bf16.msra.mxu1 %v8738_v43 }
 0x1b7   :  { %v3246_v27 = vadd.f32 %v3245_v0, %v2701_v15  ;;  %v2702_v29 = vmax.f32 %v732_v16, 0.0  ;;  %v3320_v23 = vadd.f32 %v3319_v20, %v2703_v30  ;;  %v2704_v40 = vmax.f32 %v1085_v32, 0.0  ;;  %7635 = vmatprep.subr.bf16.mxu1 %v8859_v46 }
 0x1b8   :  { %v734_v31 = vpop.f32.mrf.mxu0  ;;  %v1087_v37 = vpop.f32.mrf.mxu1 }
 0x1b9   :  { %v9959_v34 = vadd.f32 %v3282_v14, %v2702_v29  ;;  %v2711_v35 = vmax.f32 %v734_v31, 0.0  ;;  %v3357_v39 = vadd.f32 %v3356_v28, %v2704_v40  ;;  %v2713_v42 = vmax.f32 %v1087_v37, 0.0 }
 0x1ba   :  { %v9961_v36 = vpop.f32.mrf.mxu0  ;;  %v1089_v21 = vpop.f32.mrf.mxu1 }
 0x1bb   :  { %v3247_v38 = vadd.f32 %v3246_v27, %v2711_v35  ;;  %v3321_v47 = vadd.f32 %v3320_v23, %v2713_v42  ;;  %v2714_v49 = vmax.f32 %v1089_v21, 0.0  ;;  %v9368_v35 = vld [vmem:[%s10863_s0 + $0x98] sm:$0xff]  }
 0x1bc   :  { %v740_v44 = vpop.f32.mrf.mxu0  ;;  %8593 = vmatmul.mubr.msk.bf16.gmra.mxu0 %vm328_vm1, %v9366_v45  ;;  %v1093_v18 = vpop.f32.mrf.mxu1  ;;  %8626 = vmatmul.mubr.msk.bf16.gmra.mxu1 %vm328_vm1, %v9366_v45 }
 0x1bd   :  { %v2721_v48 = vmax.f32 %v740_v44, 0.0  ;;  %1374 = vmatprep.mubr.bf16.mxu0 %v10868_v3  ;;  %v3358_v54 = vadd.f32 %v3357_v39, %v2714_v49  ;;  %v2723_v55 = vmax.f32 %v1093_v18, 0.0  ;;  %1727 = vmatprep.mubr.bf16.mxu1 %v10868_v3 }
 0x1be   :  { %v9970_v52 = vpop.f32.mrf.mxu0  ;;  %v1095_v57 = vpop.f32.mrf.mxu1 }
 0x1bf   :  { %v3248_v53 = vadd.f32 %v3247_v38, %v2721_v48  ;;  %v3322_v58 = vadd.f32 %v3321_v47, %v2723_v55  ;;  %v2724_v60 = vmax.f32 %v1095_v57, 0.0 }
 0x1c0   :  { %v744_v24 = vpop.f32.mrf.mxu0  ;;  %v1097_v62 = vpop.f32.mrf.mxu1 }
 0x1c1   :  { %v2731_v59 = vmax.f32 %v744_v24, 0.0  ;;  %v3359_v0 = vadd.f32 %v3358_v54, %v2724_v60  ;;  %v2733_v1 = vmax.f32 %v1097_v62, 0.0  ;;  %v9369_v24 = vld [vmem:[%s10863_s0 + $0xa0] sm:$0xff]   ;;  %v2722_v60 = vmax.f32 %v9970_v52, 0.0 }
 0x1c2   :  { %v9974_v61 = vpop.f32.mrf.mxu0  ;;  %v1099_v22 = vpop.f32.mrf.mxu1 }
 0x1c3   :  { %v3249_v63 = vadd.f32 %v3248_v53, %v2731_v59  ;;  %v3323_v9 = vadd.f32 %v3322_v58, %v2733_v1  ;;  %v2734_v11 = vmax.f32 %v1099_v22, 0.0  ;;  %v2712_v53 = vmax.f32 %v9961_v36, 0.0 }
 0x1c4   :  { %v750_v2 = vpop.f32.mrf.mxu0  ;;  %8594 = vmatmul.mubr.msk.bf16.gmra.mxu0 %vm328_vm1, %v9367_v8  ;;  %v1103_v20 = vpop.f32.mrf.mxu1  ;;  %8627 = vmatmul.mubr.msk.bf16.gmra.mxu1 %vm328_vm1, %v9367_v8  ;;  %v2892_v59 = vrot.slane %v9874_v41, 4  ;;  %v2929_v1 = vrot.slane %v9880_v50, 4  ;;  %v2732_v22 = vmax.f32 %v9974_v61, 0.0  ;;  %v3003_v61 = vrot.slane %v9887_v56, 4 }
 0x1c5   :  { %v2741_v10 = vmax.f32 %v750_v2, 0.0  ;;  %1384 = vmatprep.mubr.bf16.mxu0 %v10868_v3  ;;  %v3360_v5 = vadd.f32 %v3359_v0, %v2734_v11  ;;  %v2743_v7 = vmax.f32 %v1103_v20, 0.0  ;;  %1737 = vmatprep.mubr.bf16.mxu1 %v10868_v3  ;;  %v3284_v2 = vadd.f32 %v9959_v34, %v2712_v53 }
 0x1c6   :  { %v9981_v14 = vpop.f32.mrf.mxu0  ;;  %v1105_v16 = vpop.f32.mrf.mxu1  ;;  %v2893_v11 = vadd.f32 %v2892_v59, %v9874_v41  ;;  %v2966_v20 = vrot.slane %v9882_v51, 4  ;;  %v2930_v34 = vadd.f32 %v2929_v1, %v9880_v50 }
 0x1c7   :  { %v3250_v15 = vadd.f32 %v3249_v63, %v2741_v10  ;;  %v3324_v17 = vadd.f32 %v3323_v9, %v2743_v7  ;;  %v2744_v27 = vmax.f32 %v1105_v16, 0.0 }
 0x1c8   :  { %v754_v25 = vpop.f32.mrf.mxu0  ;;  %v1107_v29 = vpop.f32.mrf.mxu1  ;;  %v2894_v50 = vrot.slane %v2893_v11, 2 }
 0x1c9   :  { %v2751_v19 = vmax.f32 %v754_v25, 0.0  ;;  %v3361_v31 = vadd.f32 %v3360_v5, %v2744_v27  ;;  %v2753_v32 = vmax.f32 %v1107_v29, 0.0  ;;  %v2742_v5 = vmax.f32 %v9981_v14, 0.0 }
 0x1ca   :  { %v9985_v28 = vpop.f32.mrf.mxu0  ;;  %v1109_v23 = vpop.f32.mrf.mxu1 }
 0x1cb   :  { %v9987_v30 = vadd.f32 %v3250_v15, %v2751_v19  ;;  %v3325_v40 = vadd.f32 %v3324_v17, %v2753_v32  ;;  %v2754_v37 = vmax.f32 %v1109_v23, 0.0  ;;  %v3285_v15 = vadd.f32 %v3284_v2, %v2722_v60 }
 0x1cc   :  { %v9989_v33 = vpop.f32.mrf.mxu0  ;;  %8595 = vmatmul.mubr.msk.bf16.gmra.mxu0 %vm328_vm1, %v9368_v35  ;;  %v1113_v39 = vpop.f32.mrf.mxu1  ;;  %8628 = vmatmul.mubr.msk.bf16.gmra.mxu1 %vm328_vm1, %v9368_v35  ;;  %v2752_v27 = vmax.f32 %v9985_v28, 0.0  ;;  %v2967_v35 = vadd.f32 %v2966_v20, %v9882_v51 }
 0x1cd   :  { %1394 = vmatprep.mubr.bf16.mxu0 %v10868_v3  ;;  %v3362_v42 = vadd.f32 %v3361_v31, %v2754_v37  ;;  %v2763_v43 = vmax.f32 %v1113_v39, 0.0  ;;  %1747 = vmatprep.mubr.bf16.mxu1 %v10868_v3  ;;  %v3286_v19 = vadd.f32 %v3285_v15, %v2732_v22  ;;  %v9370_v31 = vld [vmem:[%s10863_s0 + $0xa8] sm:$0xff]   ;;  %v2761_v14 = vmax.f32 %v9989_v33, 0.0 }
 0x1ce   :  { %v9996_v38 = vpop.f32.mrf.mxu0  ;;  %v1115_v21 = vpop.f32.mrf.mxu1  ;;  %v2931_v33 = vrot.slane %v2930_v34, 2 }
 0x1cf   :  { %v3326_v45 = vadd.f32 %v3325_v40, %v2763_v43  ;;  %v2764_v46 = vmax.f32 %v1115_v21, 0.0  ;;  %v3287_v40 = vadd.f32 %v3286_v19, %v2742_v5  ;;  %v2762_v28 = vmax.f32 %v9996_v38, 0.0 }
 0x1d0   :  { %v10000_v44 = vpop.f32.mrf.mxu0  ;;  %v1117_v48 = vpop.f32.mrf.mxu1  ;;  %v3252_v38 = vadd.f32 %v9987_v30, %v2761_v14 }
 0x1d1   :  { %v3363_v49 = vadd.f32 %v3362_v42, %v2764_v46  ;;  %v2773_v18 = vmax.f32 %v1117_v48, 0.0  ;;  %v2771_v42 = vmax.f32 %v10000_v44, 0.0  ;;  %v3288_v46 = vadd.f32 %v3287_v40, %v2752_v27 }
 0x1d2   :  { %v10002_v47 = vpop.f32.mrf.mxu0  ;;  %v1119_v55 = vpop.f32.mrf.mxu1  ;;  %v2968_v44 = vrot.slane %v2967_v35, 2 }
 0x1d3   :  { %v3327_v57 = vadd.f32 %v3326_v45, %v2773_v18  ;;  %v2774_v58 = vmax.f32 %v1119_v55, 0.0  ;;  %v3004_v45 = vadd.f32 %v3003_v61, %v9887_v56  ;;  %v2772_v51 = vmax.f32 %v10002_v47, 0.0 }
 0x1d4   :  { %v10005_v54 = vpop.f32.mrf.mxu0  ;;  %8596 = vmatmul.mubr.msk.bf16.gmra.mxu0 %vm328_vm1, %v9369_v24  ;;  %v1123_v36 = vpop.f32.mrf.mxu1  ;;  %8629 = vmatmul.mubr.msk.bf16.gmra.mxu1 %vm328_vm1, %v9369_v24  ;;  %v2895_v24 = vadd.f32 %v2894_v50, %v2893_v11  ;;  %v2969_v20 = vadd.f32 %v2968_v44, %v2967_v35 }
 0x1d5   :  { %1404 = vmatprep.mubr.bf16.mxu0 %v10868_v3  ;;  %v3364_v63 = vadd.f32 %v3363_v49, %v2774_v58  ;;  %v2783_v0 = vmax.f32 %v1123_v36, 0.0  ;;  %1757 = vmatprep.mubr.bf16.mxu1 %v10868_v3  ;;  %v2781_v18 = vmax.f32 %v10005_v54, 0.0  ;;  %v3253_v36 = vadd.f32 %v3252_v38, %v2771_v42 }
 0x1d6   :  { %v10014_v62 = vpop.f32.mrf.mxu0  ;;  %v1125_v9 = vpop.f32.mrf.mxu1  ;;  %v3005_v1 = vrot.slane %v3004_v45, 2  ;;  %v2896_v11 = vrot.slane %v2895_v24, 1 }
 0x1d7   :  { %v3328_v10 = vadd.f32 %v3327_v57, %v2783_v0  ;;  %v2784_v52 = vmax.f32 %v1125_v9, 0.0  ;;  %v3289_v57 = vadd.f32 %v3288_v46, %v2762_v28  ;;  %v2782_v58 = vmax.f32 %v10014_v62, 0.0  ;;  %v9371_v9 = vld [vmem:[%s10863_s0 + $0xb0] sm:$0xff]  }
 0x1d8   :  { %v10021_v8 = vpop.f32.mrf.mxu0  ;;  %v1127_v25 = vpop.f32.mrf.mxu1  ;;  %v2932_v0 = vadd.f32 %v2931_v33, %v2930_v34  ;;  %v3254_v62 = vadd.f32 %v3253_v36, %v2781_v18  ;;  %v3006_v27 = vadd.f32 %v3005_v1, %v3004_v45  ;;  %v2897_v40 = vadd.f32 %v2896_v11, %v2895_v24 }
 0x1d9   :  { %v3365_v16 = vadd.f32 %v3364_v63, %v2784_v52  ;;  %v2793_v17 = vmax.f32 %v1127_v25, 0.0  ;;  %v2791_v56 = vmax.f32 %v10021_v8, 0.0  ;;  %v3290_v2 = vadd.f32 %v3289_v57, %v2772_v51 }
 0x1da   :  { %v10026_v7 = vpop.f32.mrf.mxu0  ;;  %v1129_v41 = vpop.f32.mrf.mxu1  ;;  %v2933_v19 = vrot.slane %v2932_v0, 1  ;;  %v2970_v28 = vrot.slane %v2969_v20, 1  ;;  %v3007_v45 = vrot.slane %v3006_v27, 1 }
 0x1db   :  { %v3329_v32 = vadd.f32 %v3328_v10, %v2793_v17  ;;  %v2794_v23 = vmax.f32 %v1129_v41, 0.0  ;;  %v2792_v30 = vmax.f32 %v10026_v7, 0.0  ;;  %v3291_v15 = vadd.f32 %v3290_v2, %v2782_v58 }
 0x1dc   :  { %v10031_v29 = vpop.f32.mrf.mxu0  ;;  %8597 = vmatmul.mubr.msk.bf16.gmra.mxu0 %vm328_vm1, %v9370_v31  ;;  %v1133_v39 = vpop.f32.mrf.mxu1  ;;  %8630 = vmatmul.mubr.msk.bf16.gmra.mxu1 %vm328_vm1, %v9370_v31 }
 0x1dd   :  { %1414 = vmatprep.mubr.bf16.mxu0 %v10868_v3  ;;  %v3366_v43 = vadd.f32 %v3365_v16, %v2794_v23  ;;  %v2803_v21 = vmax.f32 %v1133_v39, 0.0  ;;  %1767 = vmatprep.mubr.bf16.mxu1 %v10868_v3  ;;  %v2801_v10 = vmax.f32 %v10031_v29, 0.0  ;;  %v3255_v16 = vadd.f32 %v3254_v62, %v2791_v56 }
 0x1de   :  { %v10041_v37 = vpop.f32.mrf.mxu0  ;;  %v1135_v49 = vpop.f32.mrf.mxu1  ;;  %v3292_v29 = vadd.f32 %v3291_v15, %v2792_v30  ;;  %v2971_v30 = vadd.f32 %v2970_v28, %v2969_v20 }
 0x1df   :  { %v3330_v53 = vadd.f32 %v3329_v32, %v2803_v21  ;;  %v2804_v55 = vmax.f32 %v1135_v49, 0.0  ;;  %v2802_v5 = vmax.f32 %v10041_v37, 0.0  ;;  %v3256_v32 = vadd.f32 %v3255_v16, %v2801_v10 }
 0x1e0   :  { %v784_v48 = vpop.f32.mrf.mxu0  ;;  %v1137_v60 = vpop.f32.mrf.mxu1 }
 0x1e1   :  { %v3367_v63 = vadd.f32 %v3366_v43, %v2804_v55  ;;  %v2813_v47 = vmax.f32 %v1137_v60, 0.0  ;;  %v2811_v17 = vmax.f32 %v784_v48, 0.0  ;;  %v3293_v37 = vadd.f32 %v3292_v29, %v2802_v5  ;;  %v9372_v55 = vld [vmem:[%s10863_s0 + $0xb8] sm:$0xff]  }
 0x1e2   :  { %v786_v59 = vpop.f32.mrf.mxu0  ;;  %v1139_v22 = vpop.f32.mrf.mxu1  ;;  %v2934_v48 = vadd.f32 %v2933_v19, %v2932_v0  ;;  %v10069_v29 = vmul.f32 0.00390625, %v2971_v30  ;;  %v9374_v30 = vld [vmem:[%s10863_s0 + $0xc8] sm:$0xff]  }
 0x1e3   :  { %v3331_v52 = vadd.f32 %v3330_v53, %v2813_v47  ;;  %v2814_v8 = vmax.f32 %v1139_v22, 0.0  ;;  %v2812_v41 = vmax.f32 %v786_v59, 0.0  ;;  %v3257_v21 = vadd.f32 %v3256_v32, %v2811_v17 }
 0x1e4   :  { %v790_v54 = vpop.f32.mrf.mxu0  ;;  %8598 = vmatmul.mubr.msk.bf16.gmra.mxu0 %vm328_vm1, %v9371_v9  ;;  %v1143_v25 = vpop.f32.mrf.mxu1  ;;  %8631 = vmatmul.mubr.msk.bf16.gmra.mxu1 %vm328_vm1, %v9371_v9  ;;  %v3601_v59 = vmul.f32 0.00390625, %v2897_v40  ;;  %v3602_v2 = vmul.f32 0.00390625, %v2934_v48 }
 0x1e5   :  { %1424 = vmatprep.mubr.bf16.mxu0 %v10868_v3  ;;  %v3368_v34 = vadd.f32 %v3367_v63, %v2814_v8  ;;  %v2823_v61 = vmax.f32 %v1143_v25, 0.0  ;;  %1777 = vmatprep.mubr.bf16.mxu1 %v10868_v3  ;;  %v2821_v23 = vmax.f32 %v790_v54, 0.0  ;;  %v3294_v49 = vadd.f32 %v3293_v37, %v2812_v41 }
 0x1e6   :  { %v792_v7 = vpop.f32.mrf.mxu0  ;;  %v1145_v14 = vpop.f32.mrf.mxu1  ;;  %v3008_v54 = vadd.f32 %v3007_v45, %v3006_v27  ;;  %v3622_v19 = vpack.c.bf16 %v3602_v2, %v3602_v2 }
 0x1e7   :  { %v3332_v50 = vadd.f32 %v3331_v52, %v2823_v61  ;;  %v2824_v35 = vmax.f32 %v1145_v14, 0.0  ;;  %v2822_v39 = vmax.f32 %v792_v7, 0.0  ;;  %v3258_v24 = vadd.f32 %v3257_v21, %v2821_v23 }
 0x1e8   :  { %v794_v31 = vpop.f32.mrf.mxu0  ;;  %v1147_v43 = vpop.f32.mrf.mxu1  ;;  %v3621_v61 = vpack.c.bf16 %v3601_v59, %v3601_v59  ;;  %v10071_v20 = vmul.f32 0.00390625, %v3008_v54  ;;  %v10082_v21 = vunpack.c.l.b16 %v3622_v19 }
 0x1e9   :  { %v2831_v33 = vmax.f32 %v794_v31, 0.0  ;;  %v3369_v46 = vadd.f32 %v3368_v34, %v2824_v35  ;;  %v2833_v51 = vmax.f32 %v1147_v43, 0.0  ;;  %v3295_v60 = vadd.f32 %v3294_v49, %v2822_v39  ;;  %v9373_v31 = vld [vmem:[%s10863_s0 + $0xc0] sm:$0xff]  }
 0x1ea   :  { %v796_v42 = vpop.f32.mrf.mxu0  ;;  %v1149_v53 = vpop.f32.mrf.mxu1  ;;  %v10080_v43 = vunpack.c.l.b16 %v3621_v61 }
 0x1eb   :  { %v2832_v38 = vmax.f32 %v796_v42, 0.0  ;;  %v3333_v44 = vadd.f32 %v3332_v50, %v2833_v51  ;;  %v2834_v58 = vmax.f32 %v1149_v53, 0.0  ;;  %v3259_v63 = vadd.f32 %v3258_v24, %v2831_v33 }
 0x1ec   :  { %v800_v18 = vpop.f32.mrf.mxu0  ;;  %8599 = vmatmul.mubr.msk.bf16.gmra.mxu0 %vm328_vm1, %v9372_v55  ;;  %v1153_v56 = vpop.f32.mrf.mxu1  ;;  %8632 = vmatmul.mubr.msk.bf16.gmra.mxu1 %vm328_vm1, %v9372_v55  ;;  %v3623_v33 = vpack.c.bf16 %v10069_v29, %v10069_v29 }
 0x1ed   :  { %v2841_v57 = vmax.f32 %v800_v18, 0.0  ;;  %1434 = vmatprep.mubr.bf16.mxu0 %v10868_v3  ;;  %v3370_v47 = vadd.f32 %v3369_v46, %v2834_v58  ;;  %v2843_v1 = vmax.f32 %v1153_v56, 0.0  ;;  %1787 = vmatprep.mubr.bf16.mxu1 %v10868_v3  ;;  %v3296_v22 = vadd.f32 %v3295_v60, %v2832_v38 }
 0x1ee   :  { %v802_v36 = vpop.f32.mrf.mxu0  ;;  %v1155_v62 = vpop.f32.mrf.mxu1  ;;  %v3624_v46 = vpack.c.bf16 %v10071_v20, %v10071_v20  ;;  %v9376_v20 = vld [vmem:[%s10863_s0 + $0xd8] sm:$0xff]  }
 0x1ef   :  { %v2842_v0 = vmax.f32 %v802_v36, 0.0  ;;  %v3260_v10 = vadd.f32 %v3259_v63, %v2841_v57  ;;  %v3334_v52 = vadd.f32 %v3333_v44, %v2843_v1  ;;  %v2844_v11 = vmax.f32 %v1155_v62, 0.0 }
 0x1f0   :  { %v804_v9 = vpop.f32.mrf.mxu0  ;;  %v1157_v7 = vpop.f32.mrf.mxu1 }
 0x1f1   :  { %v2851_v8 = vmax.f32 %v804_v9, 0.0  ;;  %v3297_v15 = vadd.f32 %v3296_v22, %v2842_v0  ;;  %v3371_v16 = vadd.f32 %v3370_v47, %v2844_v11  ;;  %v2853_v34 = vmax.f32 %v1157_v7, 0.0 }
 0x1f2   :  { %v806_v5 = vpop.f32.mrf.mxu0  ;;  %v1159_v27 = vpop.f32.mrf.mxu1 }
 0x1f3   :  { %v3261_v25 = vadd.f32 %v3260_v10, %v2851_v8  ;;  %v2852_v17 = vmax.f32 %v806_v5, 0.0  ;;  %v3335_v23 = vadd.f32 %v3334_v52, %v2853_v34  ;;  %v2854_v50 = vmax.f32 %v1159_v27, 0.0 }
 0x1f4   :  { %v1196_v41 = vpop.f32.mrf.mxu0  ;;  %8600 = vmatmul.mubr.msk.bf16.gmra.mxu0 %vm328_vm1, %v9373_v31  ;;  %v1549_v40 = vpop.f32.mrf.mxu1  ;;  %8633 = vmatmul.mubr.msk.bf16.gmra.mxu1 %vm328_vm1, %v9373_v31 }
 0x1f5   :  { %v3262_v14 = vrot.slane %v3261_v25, 4  ;;  %v3298_v32 = vadd.f32 %v3297_v15, %v2852_v17  ;;  %1444 = vmatprep.mubr.bf16.mxu0 %v10868_v3  ;;  %v3336_v39 = vrot.slane %v3335_v23, 4  ;;  %v3372_v42 = vadd.f32 %v3371_v16, %v2854_v50  ;;  %1797 = vmatprep.mubr.bf16.mxu1 %v10868_v3 }
 0x1f6   :  { %v1198_v35 = vpop.f32.mrf.mxu0  ;;  %v1551_v48 = vpop.f32.mrf.mxu1  ;;  %v2225_v53 = vmax.f32 %v1196_v41, 0.0  ;;  %v2227_v24 = vmax.f32 %v1549_v40, 0.0 }
 0x1f7   :  { %v3263_v28 = vadd.f32 %v3262_v14, %v3261_v25  ;;  %v3299_v37 = vrot.slane %v3298_v32, 4  ;;  %v3337_v38 = vadd.f32 %v3336_v39, %v3335_v23  ;;  %v3373_v18 = vrot.slane %v3372_v42, 4 }
 0x1f8   :  { %v1200_v51 = vpop.f32.mrf.mxu0  ;;  %v2226_v55 = vmax.f32 %v1198_v35, 0.0  ;;  %v1553_v58 = vpop.f32.mrf.mxu1  ;;  %v2228_v47 = vmax.f32 %v1551_v48, 0.0 }
 0x1f9   :  { %v3264_v45 = vrot.slane %v3263_v28, 2  ;;  %v3300_v49 = vadd.f32 %v3299_v37, %v3298_v32  ;;  %v2235_v44 = vmax.f32 %v1200_v51, 0.0  ;;  %v3338_v36 = vrot.slane %v3337_v38, 2 }
 0x1fa   :  { %v1202_v57 = vpop.f32.mrf.mxu0  ;;  %v3374_v56 = vadd.f32 %v3373_v18, %v3372_v42  ;;  %v2237_v1 = vmax.f32 %v1553_v58, 0.0  ;;  %v1555_v54 = vpop.f32.mrf.mxu1 }
 0x1fb   :  { %v3265_v59 = vadd.f32 %v3264_v45, %v3263_v28  ;;  %v3301_v60 = vrot.slane %v3300_v49, 2  ;;  %v3009_v63 = vadd.f32 %v2235_v44, %v2225_v53  ;;  %v2236_v0 = vmax.f32 %v1202_v57, 0.0  ;;  %v9375_v57 = vld [vmem:[%s10863_s0 + $0xd0] sm:$0xff]  }
 0x1fc   :  { %v1206_v2 = vpop.f32.mrf.mxu0  ;;  %8601 = vmatmul.mubr.msk.bf16.gmra.mxu0 %vm328_vm1, %v9374_v30  ;;  %v3339_v62 = vadd.f32 %v3338_v36, %v3337_v38  ;;  %v3375_v10 = vrot.slane %v3374_v56, 2  ;;  %v3083_v8 = vadd.f32 %v2237_v1, %v2227_v24  ;;  %v2238_v15 = vmax.f32 %v1555_v54, 0.0  ;;  %v1559_v7 = vpop.f32.mrf.mxu1  ;;  %8634 = vmatmul.mubr.msk.bf16.gmra.mxu1 %vm328_vm1, %v9374_v30 }
 0x1fd   :  { %v3266_v22 = vrot.slane %v3265_v59, 1  ;;  %v3302_v9 = vadd.f32 %v3301_v60, %v3300_v49  ;;  %1454 = vmatprep.mubr.bf16.mxu0 %v10868_v3  ;;  %v3046_v52 = vadd.f32 %v2236_v0, %v2226_v55  ;;  %v2245_v11 = vmax.f32 %v1206_v2, 0.0  ;;  %1807 = vmatprep.mubr.bf16.mxu1 %v10868_v3 }
 0x1fe   :  { %v1208_v5 = vpop.f32.mrf.mxu0  ;;  %v3340_v17 = vrot.slane %v3339_v62, 1  ;;  %v3376_v34 = vadd.f32 %v3375_v10, %v3374_v56  ;;  %v3120_v19 = vadd.f32 %v2238_v15, %v2228_v47  ;;  %v2247_v41 = vmax.f32 %v1559_v7, 0.0  ;;  %v1561_v14 = vpop.f32.mrf.mxu1 }
 0x1ff   :  { %v3267_v25 = vadd.f32 %v3266_v22, %v3265_v59  ;;  %v3303_v16 = vrot.slane %v3302_v9, 1  ;;  %v3010_v61 = vadd.f32 %v3009_v63, %v2245_v11  ;;  %v2246_v27 = vmax.f32 %v1208_v5, 0.0 }
 0x200   :  { %v1210_v31 = vpop.f32.mrf.mxu0  ;;  %v3341_v50 = vadd.f32 %v3340_v17, %v3339_v62  ;;  %v3377_v35 = vrot.slane %v3376_v34, 1  ;;  %v3084_v28 = vadd.f32 %v3083_v8, %v2247_v41  ;;  %v2248_v39 = vmax.f32 %v1561_v14, 0.0  ;;  %v1563_v51 = vpop.f32.mrf.mxu1 }
 0x201   :  { %v3611_v32 = vmul.f32 0.00390625, %v3267_v25  ;;  %v3304_v23 = vadd.f32 %v3303_v16, %v3302_v9  ;;  %v3047_v40 = vadd.f32 %v3046_v52, %v2246_v27  ;;  %v2255_v37 = vmax.f32 %v1210_v31, 0.0 }
 0x202   :  { %v1212_v42 = vpop.f32.mrf.mxu0  ;;  %v3613_v49 = vmul.f32 0.00390625, %v3341_v50  ;;  %v3378_v38 = vadd.f32 %v3377_v35, %v3376_v34  ;;  %v3121_v53 = vadd.f32 %v3120_v19, %v2248_v39  ;;  %v2257_v24 = vmax.f32 %v1563_v51, 0.0  ;;  %v1565_v58 = vpop.f32.mrf.mxu1 }
 0x203   :  { %v3631_v48 = vpack.c.bf16 %v3611_v32, %v3611_v32  ;;  %v3612_v45 = vmul.f32 0.00390625, %v3304_v23  ;;  %v3011_v18 = vadd.f32 %v3010_v61, %v2255_v37  ;;  %v2256_v55 = vmax.f32 %v1212_v42, 0.0 }
 0x204   :  { %v1216_v44 = vpop.f32.mrf.mxu0  ;;  %8602 = vmatmul.mubr.msk.bf16.gmra.mxu0 %vm328_vm1, %v9375_v57  ;;  %v3633_v36 = vpack.c.bf16 %v3613_v49, %v3613_v49  ;;  %v3614_v56 = vmul.f32 0.00390625, %v3378_v38  ;;  %v3085_v47 = vadd.f32 %v3084_v28, %v2257_v24  ;;  %v2258_v1 = vmax.f32 %v1565_v58, 0.0  ;;  %v1569_v30 = vpop.f32.mrf.mxu1  ;;  %8635 = vmatmul.mubr.msk.bf16.gmra.mxu1 %vm328_vm1, %v9375_v57 }
 0x205   :  { %v4353_v59 = vunpack.c.l.b16 %v3631_v48  ;;  %v3632_v60 = vpack.c.bf16 %v3612_v45, %v3612_v45  ;;  %1464 = vmatprep.mubr.bf16.mxu0 %v10868_v3  ;;  %v3048_v63 = vadd.f32 %v3047_v40, %v2256_v55  ;;  %v2265_v0 = vmax.f32 %v1216_v44, 0.0  ;;  %1817 = vmatprep.mubr.bf16.mxu1 %v10868_v3 }
 0x206   :  { %v1218_v2 = vpop.f32.mrf.mxu0  ;;  %v4355_v9 = vunpack.c.l.b16 %v3633_v36  ;;  %v3634_v62 = vpack.c.bf16 %v3614_v56, %v3614_v56  ;;  %v4345_v10 = vunpack.c.l.b16 %v3623_v33  ;;  %v3122_v8 = vadd.f32 %v3121_v53, %v2258_v1  ;;  %v1571_v5 = vpop.f32.mrf.mxu1 }
 0x207   :  { %v10103_v54 = vsel %vm4363_vm2, %v4353_v59, %v10080_v43  ;;  %v4354_v22 = vunpack.c.l.b16 %v3632_v60  ;;  %v3012_v52 = vadd.f32 %v3011_v18, %v2265_v0  ;;  %v2266_v11 = vmax.f32 %v1218_v2, 0.0 }
 0x208   :  { %v1220_v15 = vpop.f32.mrf.mxu0  ;;  %v4356_v7 = vunpack.c.l.b16 %v3634_v62  ;;  %v2267_v25 = vmax.f32 %v1569_v30, 0.0  ;;  %v2268_v17 = vmax.f32 %v1571_v5, 0.0  ;;  %v4346_v43 = vunpack.c.l.b16 %v3624_v46  ;;  %v1573_v19 = vpop.f32.mrf.mxu1 }
 0x209   :  { %v2275_v16 = vmax.f32 %v1220_v15, 0.0  ;;  %v3049_v34 = vadd.f32 %v3048_v63, %v2266_v11  ;;  %v10114_v29 = vsel %vm4363_vm2, %v4354_v22, %v10082_v21  ;;  %v10117_v33 = vsel %vm4363_vm2, %v4355_v9, %v4345_v10  ;;  %v9377_v63 = vld [vmem:[%s10863_s0 + $0xe0] sm:$0xff]  }
 0x20a   :  { %v1222_v61 = vpop.f32.mrf.mxu0  ;;  %v3086_v27 = vadd.f32 %v3085_v47, %v2267_v25  ;;  %v3123_v31 = vadd.f32 %v3122_v8, %v2268_v17  ;;  %v2277_v32 = vmax.f32 %v1573_v19, 0.0  ;;  %v1575_v46 = vpop.f32.mrf.mxu1  ;;  %v10124_v50 = vsel %vm4363_vm2, %v4356_v7, %v4346_v43 }
 0x20b   :  { %v3013_v41 = vadd.f32 %v3012_v52, %v2275_v16  ;;  %v2276_v14 = vmax.f32 %v1222_v61, 0.0  ;;  %v2278_v40 = vmax.f32 %v1575_v46, 0.0 }
 0x20c   :  { %v1226_v23 = vpop.f32.mrf.mxu0  ;;  %8603 = vmatmul.mubr.msk.bf16.gmra.mxu0 %vm328_vm1, %v9376_v20  ;;  %v3087_v28 = vadd.f32 %v3086_v27, %v2277_v32  ;;  %v1579_v39 = vpop.f32.mrf.mxu1  ;;  %8636 = vmatmul.mubr.msk.bf16.gmra.mxu1 %vm328_vm1, %v9376_v20 }
 0x20d   :  { %v3050_v21 = vadd.f32 %v3049_v34, %v2276_v14  ;;  %v2285_v35 = vmax.f32 %v1226_v23, 0.0  ;;  %1474 = vmatprep.mubr.bf16.mxu0 %v10868_v3  ;;  %v3124_v51 = vadd.f32 %v3123_v31, %v2278_v40  ;;  %v2287_v45 = vmax.f32 %v1579_v39, 0.0  ;;  %1827 = vmatprep.mubr.bf16.mxu1 %v10868_v3  ;;  %v9378_v31 = vld [vmem:[%s10863_s0 + $0xe8] sm:$0xff]  }
 0x20e   :  { %v1228_v37 = vpop.f32.mrf.mxu0  ;;  %v1581_v38 = vpop.f32.mrf.mxu1 }
 0x20f   :  { %v3014_v42 = vadd.f32 %v3013_v41, %v2285_v35  ;;  %v2286_v48 = vmax.f32 %v1228_v37, 0.0  ;;  %v3088_v53 = vadd.f32 %v3087_v28, %v2287_v45  ;;  %v2288_v24 = vmax.f32 %v1581_v38, 0.0 }
 0x210   :  { %v1230_v49 = vpop.f32.mrf.mxu0  ;;  %v1583_v57 = vpop.f32.mrf.mxu1 }
 0x211   :  { %v3051_v18 = vadd.f32 %v3050_v21, %v2286_v48  ;;  %v2295_v55 = vmax.f32 %v1230_v49, 0.0  ;;  %v3125_v59 = vadd.f32 %v3124_v51, %v2288_v24  ;;  %v2297_v36 = vmax.f32 %v1583_v57, 0.0 }
 0x212   :  { %v1232_v44 = vpop.f32.mrf.mxu0  ;;  %v1585_v47 = vpop.f32.mrf.mxu1 }
 0x213   :  { %v3015_v58 = vadd.f32 %v3014_v42, %v2295_v55  ;;  %v2296_v60 = vmax.f32 %v1232_v44, 0.0  ;;  %v3089_v1 = vadd.f32 %v3088_v53, %v2297_v36  ;;  %v2298_v30 = vmax.f32 %v1585_v47, 0.0 }
 0x214   :  { %v1236_v56 = vpop.f32.mrf.mxu0  ;;  %8604 = vmatmul.mubr.msk.bf16.gmra.mxu0 %vm328_vm1, %v9377_v63  ;;  %v1589_v9 = vpop.f32.mrf.mxu1  ;;  %8637 = vmatmul.mubr.msk.bf16.gmra.mxu1 %vm328_vm1, %v9377_v63 }
 0x215   :  { %v3052_v0 = vadd.f32 %v3051_v18, %v2296_v60  ;;  %v2305_v2 = vmax.f32 %v1236_v56, 0.0  ;;  %1484 = vmatprep.mubr.bf16.mxu0 %v10868_v3  ;;  %v3126_v10 = vadd.f32 %v3125_v59, %v2298_v30  ;;  %v2307_v8 = vmax.f32 %v1589_v9, 0.0  ;;  %1837 = vmatprep.mubr.bf16.mxu1 %v10868_v3  ;;  %v9379_v59 = vld [vmem:[%s10863_s0 + $0xf0] sm:$0xff]  }
 0x216   :  { %v1238_v22 = vpop.f32.mrf.mxu0  ;;  %v1591_v15 = vpop.f32.mrf.mxu1 }
 0x217   :  { %v3016_v62 = vadd.f32 %v3015_v58, %v2305_v2  ;;  %v2306_v52 = vmax.f32 %v1238_v22, 0.0  ;;  %v3090_v7 = vadd.f32 %v3089_v1, %v2307_v8  ;;  %v2308_v16 = vmax.f32 %v1591_v15, 0.0 }
 0x218   :  { %v1240_v11 = vpop.f32.mrf.mxu0  ;;  %v1593_v43 = vpop.f32.mrf.mxu1 }
 0x219   :  { %v3053_v5 = vadd.f32 %v3052_v0, %v2306_v52  ;;  %v2315_v25 = vmax.f32 %v1240_v11, 0.0  ;;  %v3127_v61 = vadd.f32 %v3126_v10, %v2308_v16  ;;  %v2317_v27 = vmax.f32 %v1593_v43, 0.0 }
 0x21a   :  { %v1242_v17 = vpop.f32.mrf.mxu0  ;;  %v1595_v14 = vpop.f32.mrf.mxu1 }
 0x21b   :  { %v3017_v34 = vadd.f32 %v3016_v62, %v2315_v25  ;;  %v2316_v19 = vmax.f32 %v1242_v17, 0.0  ;;  %v3091_v23 = vadd.f32 %v3090_v7, %v2317_v27  ;;  %v2318_v46 = vmax.f32 %v1595_v14, 0.0 }
 0x21c   :  { %v1246_v41 = vpop.f32.mrf.mxu0  ;;  %8605 = vmatmul.mubr.msk.bf16.gmra.mxu0 %vm328_vm1, %v9378_v31  ;;  %v1599_v35 = vpop.f32.mrf.mxu1  ;;  %8638 = vmatmul.mubr.msk.bf16.gmra.mxu1 %vm328_vm1, %v9378_v31  ;;  %v10156_v27 = vpack.c.b16 %v10114_v29, %v10114_v29 }
 0x21d   :  { %v3054_v32 = vadd.f32 %v3053_v5, %v2316_v19  ;;  %v2325_v20 = vmax.f32 %v1246_v41, 0.0  ;;  %1494 = vmatprep.mubr.bf16.mxu0 %v10868_v3  ;;  %v3128_v28 = vadd.f32 %v3127_v61, %v2318_v46  ;;  %v2327_v39 = vmax.f32 %v1599_v35, 0.0  ;;  %1847 = vmatprep.mubr.bf16.mxu1 %v10868_v3  ;;  %v9380_v61 = vld [vmem:[%s10863_s0 + $0xf8] sm:$0xff]  }
 0x21e   :  { %v1248_v21 = vpop.f32.mrf.mxu0  ;;  %v1601_v51 = vpop.f32.mrf.mxu1 }
 0x21f   :  { %v3018_v40 = vadd.f32 %v3017_v34, %v2325_v20  ;;  %v2326_v37 = vmax.f32 %v1248_v21, 0.0  ;;  %v3092_v45 = vadd.f32 %v3091_v23, %v2327_v39  ;;  %v2328_v38 = vmax.f32 %v1601_v51, 0.0 }
 0x220   :  { %v1250_v42 = vpop.f32.mrf.mxu0  ;;  %v1603_v53 = vpop.f32.mrf.mxu1 }
 0x221   :  { %v3055_v48 = vadd.f32 %v3054_v32, %v2326_v37  ;;  %v2335_v49 = vmax.f32 %v1250_v42, 0.0  ;;  %v3129_v24 = vadd.f32 %v3128_v28, %v2328_v38  ;;  %v2337_v57 = vmax.f32 %v1603_v53, 0.0 }
 0x222   :  { %v1252_v18 = vpop.f32.mrf.mxu0  ;;  %v1605_v60 = vpop.f32.mrf.mxu1 }
 0x223   :  { %v3019_v55 = vadd.f32 %v3018_v40, %v2335_v49  ;;  %v2336_v44 = vmax.f32 %v1252_v18, 0.0  ;;  %v3093_v56 = vadd.f32 %v3092_v45, %v2337_v57  ;;  %v2338_v47 = vmax.f32 %v1605_v60, 0.0  ;;  %v3821_v45 = vld [vmem:[#allocation5 + $0x5a0] sm:$0xff] }
 0x224   :  { %v1256_v58 = vpop.f32.mrf.mxu0  ;;  %8606 = vmatmul.mubr.msk.bf16.gmra.mxu0 %vm328_vm1, %v9379_v59  ;;  %v1609_v1 = vpop.f32.mrf.mxu1  ;;  %8639 = vmatmul.mubr.msk.bf16.gmra.mxu1 %vm328_vm1, %v9379_v59  ;;  %v9381_v59 = vld [vmem:[%s10863_s0] sm:$0xff]   ;;  %v10171_v60 = vpack.c.b16 %v10124_v50, %v10124_v50 }
 0x225   :  { %v3056_v36 = vadd.f32 %v3055_v48, %v2336_v44  ;;  %v2345_v63 = vmax.f32 %v1256_v58, 0.0  ;;  %1504 = vmatprep.mubr.bf16.mxu0 %v10868_v3  ;;  %v3130_v30 = vadd.f32 %v3129_v24, %v2338_v47  ;;  %v2347_v9 = vmax.f32 %v1609_v1, 0.0  ;;  %1857 = vmatprep.mubr.bf16.mxu1 %v10868_v3  ;;  %v3817_v48 = vld [vmem:[#allocation5 + $0x580] sm:$0xff] }
 0x226   :  { %v1258_v0 = vpop.f32.mrf.mxu0  ;;  %v1611_v10 = vpop.f32.mrf.mxu1  ;;  %v10163_v44 = vpack.c.b16 %v10103_v54, %v10103_v54  ;;  %10882 = vst [vmem:[#allocation14_spill] sm:$0xff] %v10171_v60  ;;  %v3809_v54 = vld [vmem:[#allocation5 + $0x540] sm:$0xff] }
 0x227   :  { %v3020_v2 = vadd.f32 %v3019_v55, %v2345_v63  ;;  %v2346_v22 = vmax.f32 %v1258_v0, 0.0  ;;  %v3094_v8 = vadd.f32 %v3093_v56, %v2347_v9  ;;  %v2348_v15 = vmax.f32 %v1611_v10, 0.0  ;;  %v3813_v1 = vld [vmem:[#allocation5 + $0x560] sm:$0xff] }
 0x228   :  { %v1260_v62 = vpop.f32.mrf.mxu0  ;;  %v1613_v7 = vpop.f32.mrf.mxu1 }
 0x229   :  { %v3057_v52 = vadd.f32 %v3056_v36, %v2346_v22  ;;  %v2355_v11 = vmax.f32 %v1260_v62, 0.0  ;;  %v3131_v16 = vadd.f32 %v3130_v30, %v2348_v15  ;;  %v2357_v43 = vmax.f32 %v1613_v7, 0.0 }
 0x22a   :  { %v1262_v5 = vpop.f32.mrf.mxu0  ;;  %v1615_v19 = vpop.f32.mrf.mxu1  ;;  %v8851_v36 = vcombine.high %v3817_v48, %v3821_v45  ;;  %v8850_v22 = vcombine.low %v3817_v48, %v3821_v45 }
 0x22b   :  { %v3021_v25 = vadd.f32 %v3020_v2, %v2355_v11  ;;  %v2356_v17 = vmax.f32 %v1262_v5, 0.0  ;;  %v3095_v31 = vadd.f32 %v3094_v8, %v2357_v43  ;;  %v2358_v32 = vmax.f32 %v1615_v19, 0.0 }
 0x22c   :  { %v1266_v34 = vpop.f32.mrf.mxu0  ;;  %8607 = vmatmul.mubr.msk.bf16.gmra.mxu0 %vm328_vm1, %v9380_v61  ;;  %v1619_v20 = vpop.f32.mrf.mxu1  ;;  %8640 = vmatmul.mubr.msk.bf16.gmra.mxu1 %vm328_vm1, %v9380_v61  ;;  %v8843_v11 = vcombine.high %v3809_v54, %v3813_v1  ;;  %v8842_v61 = vcombine.low %v3809_v54, %v3813_v1 }
 0x22d   :  { %v3058_v41 = vadd.f32 %v3057_v52, %v2356_v17  ;;  %v2365_v14 = vmax.f32 %v1266_v34, 0.0  ;;  %1900 = vmatprep.mubr.bf16.mxu0 %v10868_v3  ;;  %v3132_v21 = vadd.f32 %v3131_v16, %v2358_v32  ;;  %v2367_v40 = vmax.f32 %v1619_v20, 0.0  ;;  %7626 = vmatprep.mubr.bf16.mxu1 %v10156_v27  ;;  %v3801_v16 = vld [vmem:[#allocation5 + $0x500] sm:$0xff] }
 0x22e   :  { %v1268_v23 = vpop.f32.mrf.mxu0  ;;  %v1621_v37 = vpop.f32.mrf.mxu1  ;;  %v3805_v17 = vld [vmem:[#allocation5 + $0x520] sm:$0xff] }
 0x22f   :  { %v3022_v46 = vadd.f32 %v3021_v25, %v2365_v14  ;;  %v2366_v35 = vmax.f32 %v1268_v23, 0.0  ;;  %v3096_v39 = vadd.f32 %v3095_v31, %v2367_v40  ;;  %v2368_v51 = vmax.f32 %v1621_v37, 0.0  ;;  %v9382_v14 = vld [vmem:[%s10863_s0 + $0x8] sm:$0xff]   ;;  %v3797_v40 = vld [vmem:[#allocation5 + $0x4e0] sm:$0xff] }
 0x230   :  { %v1270_v28 = vpop.f32.mrf.mxu0  ;;  %v1623_v38 = vpop.f32.mrf.mxu1  ;;  %v8835_v32 = vcombine.high %v3801_v16, %v3805_v17 }
 0x231   :  { %v3059_v29 = vadd.f32 %v3058_v41, %v2366_v35  ;;  %v2375_v42 = vmax.f32 %v1270_v28, 0.0  ;;  %v3133_v53 = vadd.f32 %v3132_v21, %v2368_v51  ;;  %v2377_v24 = vmax.f32 %v1623_v38, 0.0  ;;  %v3793_v35 = vld [vmem:[#allocation5 + $0x4c0] sm:$0xff] }
 0x232   :  { %v1272_v49 = vpop.f32.mrf.mxu0  ;;  %v1625_v58 = vpop.f32.mrf.mxu1  ;;  %v8827_v38 = vcombine.high %v3793_v35, %v3797_v40 }
 0x233   :  { %v3023_v18 = vadd.f32 %v3022_v46, %v2375_v42  ;;  %v2376_v55 = vmax.f32 %v1272_v49, 0.0  ;;  %v3097_v63 = vadd.f32 %v3096_v39, %v2377_v24  ;;  %v2378_v0 = vmax.f32 %v1625_v58, 0.0  ;;  %v3789_v58 = vld [vmem:[#allocation5 + $0x4a0] sm:$0xff] }
 0x234   :  { %v1276_v57 = vpop.f32.mrf.mxu0  ;;  %8642 = vmatmul.mubr.msk.bf16.vlgmr.msra.gmra.mxu0 %vm328_vm1, %v9381_v59  ;;  %v1629_v30 = vpop.f32.mrf.mxu1  ;;  %7627 = vmatmul.mubr.bf16.vlgmr.msra.gmra.mxu1 %v10163_v44 }
 0x235   :  { %v3060_v56 = vadd.f32 %v3059_v29, %v2376_v55  ;;  %v2385_v47 = vmax.f32 %v1276_v57, 0.0  ;;  %1910 = vmatprep.mubr.bf16.mxu0 %v10868_v3  ;;  %v3134_v62 = vadd.f32 %v3133_v53, %v2378_v0  ;;  %v2387_v52 = vmax.f32 %v1629_v30, 0.0  ;;  %7636 = vmatpush1.bf16.msra.mxu1 %v8858_v26  ;;  %v3785_v57 = vld [vmem:[#allocation5 + $0x480] sm:$0xff] }
 0x236   :  { %v1278_v2 = vpop.f32.mrf.mxu0  ;;  %7667 = vmatprep.mubr.bf16.mxu1 %v10171_v60  ;;  %v1631_v8 = vpop.f32.mrf.mxu1  ;;  %7637 = vmatprep.subr.bf16.mxu1 %v8851_v36  ;;  %v8834_v29 = vcombine.low %v3801_v16, %v3805_v17  ;;  %v9383_v30 = vld [vmem:[%s10863_s0 + $0x10] sm:$0xff]  }
 0x237   :  { %v3024_v9 = vadd.f32 %v3023_v18, %v2385_v47  ;;  %v2386_v10 = vmax.f32 %v1278_v2, 0.0  ;;  %v3098_v5 = vadd.f32 %v3097_v63, %v2387_v52  ;;  %v2388_v25 = vmax.f32 %v1631_v8, 0.0  ;;  %v3781_v8 = vld [vmem:[#allocation5 + $0x460] sm:$0xff] }
 0x238   :  { %v1280_v50 = vpop.f32.mrf.mxu0  ;;  %v1633_v34 = vpop.f32.mrf.mxu1 }
 0x239   :  { %v3061_v15 = vadd.f32 %v3060_v56, %v2386_v10  ;;  %v2395_v7 = vmax.f32 %v1280_v50, 0.0  ;;  %v3135_v41 = vadd.f32 %v3134_v62, %v2388_v25  ;;  %v2397_v12 = vmax.f32 %v1633_v34, 0.0  ;;  %7638 = vmatpush1.bf16.msra.mxu1 %v8850_v22  ;;  %v3777_v50 = vld [vmem:[#allocation5 + $0x440] sm:$0xff] }
 0x23a   :  { %v1282_v43 = vpop.f32.mrf.mxu0  ;;  %v1635_v26 = vpop.f32.mrf.mxu1  ;;  %7639 = vmatprep.subr.bf16.mxu1 %v8843_v11  ;;  %v8826_v56 = vcombine.low %v3793_v35, %v3797_v40  ;;  %v8819_v22 = vcombine.high %v3785_v57, %v3789_v58 }
 0x23b   :  { %v3025_v19 = vadd.f32 %v3024_v9, %v2395_v7  ;;  %v2396_v31 = vmax.f32 %v1282_v43, 0.0  ;;  %v3099_v20 = vadd.f32 %v3098_v5, %v2397_v12  ;;  %v2398_v21 = vmax.f32 %v1635_v26, 0.0  ;;  %v3773_v26 = vld [vmem:[#allocation5 + $0x420] sm:$0xff] }
 0x23c   :  { %v1286_v13 = vpop.f32.mrf.mxu0  ;;  %8643 = vmatmul.mubr.msk.bf16.gmra.mxu0 %vm328_vm1, %v9382_v14  ;;  %v1639_v37 = vpop.f32.mrf.mxu1  ;;  %v8818_v5 = vcombine.low %v3785_v57, %v3789_v58 }
 0x23d   :  { %v3062_v23 = vadd.f32 %v3061_v15, %v2396_v31  ;;  %v2405_v46 = vmax.f32 %v1286_v13, 0.0  ;;  %1920 = vmatprep.mubr.bf16.mxu0 %v10868_v3  ;;  %v3136_v42 = vadd.f32 %v3135_v41, %v2398_v21  ;;  %v2407_v48 = vmax.f32 %v1639_v37, 0.0  ;;  %7640 = vmatpush1.bf16.msra.mxu1 %v8842_v61  ;;  %v3769_v13 = vld [vmem:[#allocation5 + $0x400] sm:$0xff] }
 0x23e   :  { %v1288_v28 = vpop.f32.mrf.mxu0  ;;  %v1641_v49 = vpop.f32.mrf.mxu1  ;;  %7641 = vmatprep.subr.bf16.mxu1 %v8835_v32  ;;  %v8811_v61 = vcombine.high %v3777_v50, %v3781_v8  ;;  %v9384_v37 = vld [vmem:[%s10863_s0 + $0x18] sm:$0xff]  }
 0x23f   :  { %v3026_v39 = vadd.f32 %v3025_v19, %v2405_v46  ;;  %v2406_v51 = vmax.f32 %v1288_v28, 0.0  ;;  %v3100_v53 = vadd.f32 %v3099_v20, %v2407_v48  ;;  %v2408_v24 = vmax.f32 %v1641_v49, 0.0  ;;  %v3893_v49 = vld [vmem:[#allocation5 + $0x7e0] sm:$0xff] }
 0x240   :  { %v1290_v45 = vpop.f32.mrf.mxu0  ;;  %v1643_v36 = vpop.f32.mrf.mxu1 }
 0x241   :  { %v3063_v18 = vadd.f32 %v3062_v23, %v2406_v51  ;;  %v2415_v55 = vmax.f32 %v1290_v45, 0.0  ;;  %v3137_v47 = vadd.f32 %v3136_v42, %v2408_v24  ;;  %v2417_v54 = vmax.f32 %v1643_v36, 0.0  ;;  %7642 = vmatpush1.bf16.msra.mxu1 %v8834_v29  ;;  %v3889_v45 = vld [vmem:[#allocation5 + $0x7c0] sm:$0xff] }
 0x242   :  { %v1292_v59 = vpop.f32.mrf.mxu0  ;;  %v1645_v2 = vpop.f32.mrf.mxu1  ;;  %7643 = vmatprep.subr.bf16.mxu1 %v8827_v38  ;;  %v8810_v23 = vcombine.low %v3777_v50, %v3781_v8  ;;  %v8803_v29 = vcombine.high %v3769_v13, %v3773_v26 }
 0x243   :  { %v3027_v63 = vadd.f32 %v3026_v39, %v2415_v55  ;;  %v2416_v0 = vmax.f32 %v1292_v59, 0.0  ;;  %v3101_v62 = vadd.f32 %v3100_v53, %v2417_v54  ;;  %v2418_v52 = vmax.f32 %v1645_v2, 0.0  ;;  %v3885_v2 = vld [vmem:[#allocation5 + $0x7a0] sm:$0xff] }
 0x244   :  { %v1296_v1 = vpop.f32.mrf.mxu0  ;;  %8644 = vmatmul.mubr.msk.bf16.gmra.mxu0 %vm328_vm1, %v9383_v30  ;;  %v1649_v15 = vpop.f32.mrf.mxu1  ;;  %v8802_v53 = vcombine.low %v3769_v13, %v3773_v26 }
 0x245   :  { %v3064_v9 = vadd.f32 %v3063_v18, %v2416_v0  ;;  %v2425_v10 = vmax.f32 %v1296_v1, 0.0  ;;  %1930 = vmatprep.mubr.bf16.mxu0 %v10868_v3  ;;  %v3138_v25 = vadd.f32 %v3137_v47, %v2418_v52  ;;  %v2427_v17 = vmax.f32 %v1649_v15, 0.0  ;;  %7644 = vmatpush1.bf16.msra.mxu1 %v8826_v56  ;;  %v3881_v1 = vld [vmem:[#allocation5 + $0x780] sm:$0xff]  ;;  %v9385_v15 = vld [vmem:[%s10863_s0 + $0x20] sm:$0xff]  }
 0x246   :  { %v1298_v11 = vpop.f32.mrf.mxu0  ;;  %v1651_v34 = vpop.f32.mrf.mxu1  ;;  %7645 = vmatprep.subr.bf16.mxu1 %v8819_v22  ;;  %v8923_v56 = vcombine.high %v3889_v45, %v3893_v49 }
 0x247   :  { %v3028_v7 = vadd.f32 %v3027_v63, %v2425_v10  ;;  %v2426_v16 = vmax.f32 %v1298_v11, 0.0  ;;  %v3102_v41 = vadd.f32 %v3101_v62, %v2427_v17  ;;  %v2428_v12 = vmax.f32 %v1651_v34, 0.0  ;;  %v3877_v34 = vld [vmem:[#allocation5 + $0x760] sm:$0xff] }
 0x248   :  { %v1300_v43 = vpop.f32.mrf.mxu0  ;;  %v1653_v32 = vpop.f32.mrf.mxu1 }
 0x249   :  { %v3065_v19 = vadd.f32 %v3064_v9, %v2426_v16  ;;  %v2435_v31 = vmax.f32 %v1300_v43, 0.0  ;;  %v3139_v46 = vadd.f32 %v3138_v25, %v2428_v12  ;;  %v2437_v35 = vmax.f32 %v1653_v32, 0.0  ;;  %7646 = vmatpush1.bf16.msra.mxu1 %v8818_v5  ;;  %v3873_v43 = vld [vmem:[#allocation5 + $0x740] sm:$0xff] }
 0x24a   :  { %v1302_v14 = vpop.f32.mrf.mxu0  ;;  %v1655_v28 = vpop.f32.mrf.mxu1  ;;  %7647 = vmatprep.subr.bf16.mxu1 %v8811_v61  ;;  %v8922_v9 = vcombine.low %v3889_v45, %v3893_v49  ;;  %v8915_v5 = vcombine.high %v3881_v1, %v3885_v2 }
 0x24b   :  { %v3029_v20 = vadd.f32 %v3028_v7, %v2435_v31  ;;  %v2436_v21 = vmax.f32 %v1302_v14, 0.0  ;;  %v3103_v42 = vadd.f32 %v3102_v41, %v2437_v35  ;;  %v2438_v48 = vmax.f32 %v1655_v28, 0.0  ;;  %v3869_v28 = vld [vmem:[#allocation5 + $0x720] sm:$0xff] }
 0x24c   :  { %v1306_v40 = vpop.f32.mrf.mxu0  ;;  %8645 = vmatmul.mubr.msk.bf16.gmra.mxu0 %vm328_vm1, %v9384_v37  ;;  %v1659_v18 = vpop.f32.mrf.mxu1  ;;  %v8914_v41 = vcombine.low %v3881_v1, %v3885_v2 }
 0x24d   :  { %v3066_v39 = vadd.f32 %v3065_v19, %v2436_v21  ;;  %v2445_v51 = vmax.f32 %v1306_v40, 0.0  ;;  %1940 = vmatprep.mubr.bf16.mxu0 %v10868_v3  ;;  %v3140_v24 = vadd.f32 %v3139_v46, %v2438_v48  ;;  %v2447_v58 = vmax.f32 %v1659_v18, 0.0  ;;  %7648 = vmatpush1.bf16.msra.mxu1 %v8810_v23  ;;  %v3865_v40 = vld [vmem:[#allocation5 + $0x700] sm:$0xff]  ;;  %v9386_v18 = vld [vmem:[%s10863_s0 + $0x28] sm:$0xff]  }
 0x24e   :  { %v1308_v38 = vpop.f32.mrf.mxu0  ;;  %v1661_v36 = vpop.f32.mrf.mxu1  ;;  %7649 = vmatprep.subr.bf16.mxu1 %v8803_v29  ;;  %v8907_v23 = vcombine.high %v3873_v43, %v3877_v34 }
 0x24f   :  { %v3030_v55 = vadd.f32 %v3029_v20, %v2445_v51  ;;  %v2446_v57 = vmax.f32 %v1308_v38, 0.0  ;;  %v3104_v47 = vadd.f32 %v3103_v42, %v2447_v58  ;;  %v2448_v54 = vmax.f32 %v1661_v36, 0.0  ;;  %v3861_v36 = vld [vmem:[#allocation5 + $0x6e0] sm:$0xff] }
 0x250   :  { %v1310_v59 = vpop.f32.mrf.mxu0  ;;  %v1663_v22 = vpop.f32.mrf.mxu1 }
 0x251   :  { %v3067_v63 = vadd.f32 %v3066_v39, %v2446_v57  ;;  %v2455_v0 = vmax.f32 %v1310_v59, 0.0  ;;  %v3141_v10 = vadd.f32 %v3140_v24, %v2448_v54  ;;  %v2457_v50 = vmax.f32 %v1663_v22, 0.0  ;;  %7650 = vmatpush1.bf16.msra.mxu1 %v8802_v53  ;;  %v3857_v59 = vld [vmem:[#allocation5 + $0x6c0] sm:$0xff] }
 0x252   :  { %v1312_v30 = vpop.f32.mrf.mxu0  ;;  %v1665_v11 = vpop.f32.mrf.mxu1  ;;  %7651 = vmatprep.subr.bf16.mxu1 %v8923_v56  ;;  %v8906_v39 = vcombine.low %v3873_v43, %v3877_v34  ;;  %v8899_v53 = vcombine.high %v3865_v40, %v3869_v28 }
 0x253   :  { %v3031_v62 = vadd.f32 %v3030_v55, %v2455_v0  ;;  %v2456_v52 = vmax.f32 %v1312_v30, 0.0  ;;  %v3105_v25 = vadd.f32 %v3104_v47, %v2457_v50  ;;  %v2458_v17 = vmax.f32 %v1665_v11, 0.0  ;;  %v3853_v11 = vld [vmem:[#allocation5 + $0x6a0] sm:$0xff] }
 0x254   :  { %v1316_v8 = vpop.f32.mrf.mxu0  ;;  %8646 = vmatmul.mubr.msk.bf16.gmra.mxu0 %vm328_vm1, %v9385_v15  ;;  %v1669_v19 = vpop.f32.mrf.mxu1  ;;  %v8898_v47 = vcombine.low %v3865_v40, %v3869_v28 }
 0x255   :  { %v3068_v7 = vadd.f32 %v3067_v63, %v2456_v52  ;;  %v2465_v16 = vmax.f32 %v1316_v8, 0.0  ;;  %1950 = vmatprep.mubr.bf16.mxu0 %v10868_v3  ;;  %v3142_v12 = vadd.f32 %v3141_v10, %v2458_v17  ;;  %v2467_v26 = vmax.f32 %v1669_v19, 0.0  ;;  %7652 = vmatpush2.bf16.msra.mxu1 %v8922_v9  ;;  %v3849_v8 = vld [vmem:[#allocation5 + $0x680] sm:$0xff] }
 0x256   :  { %v1318_v61 = vpop.f32.mrf.mxu0  ;;  %v1671_v32 = vpop.f32.mrf.mxu1  ;;  %7653 = vmatprep.subr.bf16.mxu1 %v8915_v5  ;;  %v8891_v9 = vcombine.high %v3857_v59, %v3861_v36  ;;  %v9387_v19 = vld [vmem:[%s10863_s0 + $0x30] sm:$0xff]  }
 0x257   :  { %v3032_v31 = vadd.f32 %v3031_v62, %v2465_v16  ;;  %v2466_v13 = vmax.f32 %v1318_v61, 0.0  ;;  %v3106_v46 = vadd.f32 %v3105_v25, %v2467_v26  ;;  %v2468_v35 = vmax.f32 %v1671_v32, 0.0  ;;  %v3845_v32 = vld [vmem:[#allocation5 + $0x660] sm:$0xff] }
 0x258   :  { %v1320_v14 = vpop.f32.mrf.mxu0  ;;  %v1673_v29 = vpop.f32.mrf.mxu1 }
 0x259   :  { %v3069_v20 = vadd.f32 %v3068_v7, %v2466_v13  ;;  %v2475_v21 = vmax.f32 %v1320_v14, 0.0  ;;  %v3143_v51 = vadd.f32 %v3142_v12, %v2468_v35  ;;  %v2477_v45 = vmax.f32 %v1673_v29, 0.0  ;;  %7654 = vmatpush2.bf16.msra.mxu1 %v8914_v41  ;;  %v3841_v14 = vld [vmem:[#allocation5 + $0x640] sm:$0xff] }
 0x25a   :  { %v1322_v37 = vpop.f32.mrf.mxu0  ;;  %v1675_v38 = vpop.f32.mrf.mxu1  ;;  %7655 = vmatprep.subr.bf16.mxu1 %v8907_v23  ;;  %v8890_v7 = vcombine.low %v3857_v59, %v3861_v36  ;;  %v8883_v41 = vcombine.high %v3849_v8, %v3853_v11 }
 0x25b   :  { %v3033_v42 = vadd.f32 %v3032_v31, %v2475_v21  ;;  %v2476_v48 = vmax.f32 %v1322_v37, 0.0  ;;  %v3107_v24 = vadd.f32 %v3106_v46, %v2477_v45  ;;  %v2478_v58 = vmax.f32 %v1675_v38, 0.0  ;;  %v3837_v38 = vld [vmem:[#allocation5 + $0x620] sm:$0xff] }
 0x25c   :  { %v1326_v49 = vpop.f32.mrf.mxu0  ;;  %8647 = vmatmul.mubr.msk.bf16.gmra.mxu0 %vm328_vm1, %v9386_v18  ;;  %v1679_v63 = vpop.f32.mrf.mxu1  ;;  %v8882_v46 = vcombine.low %v3849_v8, %v3853_v11 }
 0x25d   :  { %v3070_v55 = vadd.f32 %v3069_v20, %v2476_v48  ;;  %v2485_v57 = vmax.f32 %v1326_v49, 0.0  ;;  %1960 = vmatprep.mubr.bf16.mxu0 %v10868_v3  ;;  %v3144_v54 = vadd.f32 %v3143_v51, %v2478_v58  ;;  %v2487_v2 = vmax.f32 %v1679_v63, 0.0  ;;  %7656 = vmatpush2.bf16.msra.mxu1 %v8906_v39  ;;  %v3833_v49 = vld [vmem:[#allocation5 + $0x600] sm:$0xff] }
 0x25e   :  { %v1328_v56 = vpop.f32.mrf.mxu0  ;;  %v1681_v22 = vpop.f32.mrf.mxu1  ;;  %7657 = vmatprep.subr.bf16.mxu1 %v8899_v53  ;;  %v8875_v39 = vcombine.high %v3841_v14, %v3845_v32  ;;  %v9388_v63 = vld [vmem:[%s10863_s0 + $0x38] sm:$0xff]  }
 0x25f   :  { %v3034_v0 = vadd.f32 %v3033_v42, %v2485_v57  ;;  %v2486_v1 = vmax.f32 %v1328_v56, 0.0  ;;  %v3108_v10 = vadd.f32 %v3107_v24, %v2487_v2  ;;  %v2488_v50 = vmax.f32 %v1681_v22, 0.0  ;;  %v3957_v22 = vld [vmem:[#allocation5 + $0x9e0] sm:$0xff] }
 0x260   :  { %v1330_v30 = vpop.f32.mrf.mxu0  ;;  %v1683_v5 = vpop.f32.mrf.mxu1 }
 0x261   :  { %v3071_v62 = vadd.f32 %v3070_v55, %v2486_v1  ;;  %v2495_v52 = vmax.f32 %v1330_v30, 0.0  ;;  %v3145_v16 = vadd.f32 %v3144_v54, %v2488_v50  ;;  %v2497_v43 = vmax.f32 %v1683_v5, 0.0  ;;  %7658 = vmatpush2.bf16.msra.mxu1 %v8898_v47  ;;  %v3953_v30 = vld [vmem:[#allocation5 + $0x9c0] sm:$0xff] }
 0x262   :  { %v1332_v15 = vpop.f32.mrf.mxu0  ;;  %v1685_v61 = vpop.f32.mrf.mxu1  ;;  %7659 = vmatprep.subr.bf16.mxu1 %v8891_v9  ;;  %v8874_v55 = vcombine.low %v3841_v14, %v3845_v32  ;;  %v8867_v47 = vcombine.high %v3833_v49, %v3837_v38 }
 0x263   :  { %v3035_v25 = vadd.f32 %v3034_v0, %v2495_v52  ;;  %v2496_v17 = vmax.f32 %v1332_v15, 0.0  ;;  %v3109_v12 = vadd.f32 %v3108_v10, %v2497_v43  ;;  %v2498_v26 = vmax.f32 %v1685_v61, 0.0  ;;  %v3949_v61 = vld [vmem:[#allocation5 + $0x9a0] sm:$0xff] }
 0x264   :  { %v1336_v34 = vpop.f32.mrf.mxu0  ;;  %8648 = vmatmul.mubr.msk.bf16.gmra.mxu0 %vm328_vm1, %v9387_v19  ;;  %v1689_v20 = vpop.f32.mrf.mxu1  ;;  %v8866_v10 = vcombine.low %v3833_v49, %v3837_v38  ;;  %v3933_v49 = vld [vmem:[#allocation5 + $0x920] sm:$0xff] }
 0x265   :  { %v3072_v31 = vadd.f32 %v3071_v62, %v2496_v17  ;;  %v2505_v13 = vmax.f32 %v1336_v34, 0.0  ;;  %1970 = vmatprep.mubr.bf16.mxu0 %v10868_v3  ;;  %v3146_v35 = vadd.f32 %v3145_v16, %v2498_v26  ;;  %v2507_v28 = vmax.f32 %v1689_v20, 0.0  ;;  %7660 = vmatpush2.bf16.msra.mxu1 %v8890_v7  ;;  %v3945_v34 = vld [vmem:[#allocation5 + $0x980] sm:$0xff]  ;;  %v9389_v20 = vld [vmem:[%s10863_s0 + $0x40] sm:$0xff]  }
 0x266   :  { %v1338_v23 = vpop.f32.mrf.mxu0  ;;  %v1691_v29 = vpop.f32.mrf.mxu1  ;;  %7661 = vmatprep.subr.bf16.mxu1 %v8883_v41  ;;  %v8987_v7 = vcombine.high %v3953_v30, %v3957_v22 }
 0x267   :  { %v3036_v21 = vadd.f32 %v3035_v25, %v2505_v13  ;;  %v2506_v40 = vmax.f32 %v1338_v23, 0.0  ;;  %v3110_v51 = vadd.f32 %v3109_v12, %v2507_v28  ;;  %v2508_v45 = vmax.f32 %v1691_v29, 0.0  ;;  %v3937_v28 = vld [vmem:[#allocation5 + $0x940] sm:$0xff] }
 0x268   :  { %v1340_v37 = vpop.f32.mrf.mxu0  ;;  %v1693_v53 = vpop.f32.mrf.mxu1 }
 0x269   :  { %v3073_v42 = vadd.f32 %v3072_v31, %v2506_v40  ;;  %v2515_v48 = vmax.f32 %v1340_v37, 0.0  ;;  %v3147_v57 = vadd.f32 %v3146_v35, %v2508_v45  ;;  %v2517_v59 = vmax.f32 %v1693_v53, 0.0  ;;  %7662 = vmatpush2.bf16.msra.mxu1 %v8882_v46  ;;  %v3941_v37 = vld [vmem:[#allocation5 + $0x960] sm:$0xff] }
 0x26a   :  { %v1342_v18 = vpop.f32.mrf.mxu0  ;;  %v1695_v56 = vpop.f32.mrf.mxu1  ;;  %7663 = vmatprep.subr.bf16.mxu1 %v8875_v39  ;;  %v8986_v31 = vcombine.low %v3953_v30, %v3957_v22  ;;  %v10228_v46 = vpack.c.b16 %v10117_v33, %v10117_v33  ;;  %v3929_v45 = vld [vmem:[#allocation5 + $0x900] sm:$0xff] }
 0x26b   :  { %v3037_v24 = vadd.f32 %v3036_v21, %v2515_v48  ;;  %v2516_v58 = vmax.f32 %v1342_v18, 0.0  ;;  %v3111_v54 = vadd.f32 %v3110_v51, %v2517_v59  ;;  %v2518_v2 = vmax.f32 %v1695_v56, 0.0 }
 0x26c   :  { %v1346_v36 = vpop.f32.mrf.mxu0  ;;  %8649 = vmatmul.mubr.msk.bf16.gmra.mxu0 %vm328_vm1, %v9388_v63  ;;  %v1699_v62 = vpop.f32.mrf.mxu1  ;;  %10883 = vst [vmem:[#allocation15_spill] sm:$0xff] %v10228_v46  ;;  %v8979_v21 = vcombine.high %v3945_v34, %v3949_v61  ;;  %v8971_v48 = vcombine.high %v3937_v28, %v3941_v37  ;;  %v8963_v56 = vcombine.high %v3929_v45, %v3933_v49  ;;  %v3921_v63 = vld [vmem:[#allocation5 + $0x8c0] sm:$0xff] }
 0x26d   :  { %v3074_v0 = vadd.f32 %v3073_v42, %v2516_v58  ;;  %v2525_v1 = vmax.f32 %v1346_v36, 0.0  ;;  %1980 = vmatprep.mubr.bf16.mxu0 %v10868_v3  ;;  %v3148_v50 = vadd.f32 %v3147_v57, %v2518_v2  ;;  %v2527_v11 = vmax.f32 %v1699_v62, 0.0  ;;  %7664 = vmatpush2.bf16.msra.mxu1 %v8874_v55  ;;  %v9390_v36 = vld [vmem:[%s10863_s0 + $0x48] sm:$0xff]  }
 0x26e   :  { %v1348_v9 = vpop.f32.mrf.mxu0  ;;  %v1701_v5 = vpop.f32.mrf.mxu1  ;;  %7665 = vmatprep.subr.bf16.mxu1 %v8867_v47  ;;  %v8978_v42 = vcombine.low %v3945_v34, %v3949_v61  ;;  %v8970_v55 = vcombine.low %v3937_v28, %v3941_v37  ;;  %v3925_v47 = vld [vmem:[#allocation5 + $0x8e0] sm:$0xff]  ;;  %v8962_v30 = vcombine.low %v3929_v45, %v3933_v49 }
 0x26f   :  { %v3038_v52 = vadd.f32 %v3037_v24, %v2525_v1  ;;  %v2526_v8 = vmax.f32 %v1348_v9, 0.0  ;;  %v3112_v16 = vadd.f32 %v3111_v54, %v2527_v11  ;;  %v2528_v43 = vmax.f32 %v1701_v5, 0.0  ;;  %v9391_v61 = vld [vmem:[%s10863_s0 + $0x50] sm:$0xff]  }
 0x270   :  { %v1350_v15 = vpop.f32.mrf.mxu0  ;;  %v1703_v41 = vpop.f32.mrf.mxu1  ;;  %v3897_v49 = vld [vmem:[#allocation5 + $0x800] sm:$0xff] }
 0x271   :  { %v3075_v25 = vadd.f32 %v3074_v0, %v2526_v8  ;;  %v2535_v17 = vmax.f32 %v1350_v15, 0.0  ;;  %v10216_v13 = vadd.f32 %v3148_v50, %v2528_v43  ;;  %v2537_v14 = vmax.f32 %v1703_v41, 0.0  ;;  %7666 = vmatpush2.bf16.msra.mxu1 %v8866_v10  ;;  %v3913_v50 = vld [vmem:[#allocation5 + $0x880] sm:$0xff] }
 0x272   :  { %v1352_v19 = vpop.f32.mrf.mxu0  ;;  %v10220_v23 = vpop.f32.mrf.mxu1  ;;  %7676 = vmatprep.subr.bf16.mxu1 %v8987_v7  ;;  %v3917_v8 = vld [vmem:[#allocation5 + $0x8a0] sm:$0xff] }
 0x273   :  { %v10214_v12 = vadd.f32 %v3038_v52, %v2535_v17  ;;  %v2536_v26 = vmax.f32 %v1352_v19, 0.0  ;;  %v10232_v40 = vadd.f32 %v3112_v16, %v2537_v14  ;;  %v8955_v52 = vcombine.high %v3921_v63, %v3925_v47  ;;  %v3905_v41 = vld [vmem:[#allocation5 + $0x840] sm:$0xff] }
 0x274   :  { %v10218_v32 = vpop.f32.mrf.mxu0  ;;  %8650 = vmatmul.mubr.msk.bf16.gmra.mxu0 %vm328_vm1, %v9389_v20  ;;  %7668 = vmatmul.mubr.bf16.vlgmr.msra.gmra.mxu1 %v10228_v46  ;;  %v1709_v39 = vpop.f32.mrf.mxu1  ;;  %v8947_v19 = vcombine.high %v3913_v50, %v3917_v8  ;;  %v8946_v28 = vcombine.low %v3913_v50, %v3917_v8 }
 0x275   :  { %v10230_v35 = vadd.f32 %v3075_v25, %v2536_v26  ;;  %1990 = vmatprep.mubr.bf16.mxu0 %v10868_v3  ;;  %7677 = vmatpush1.bf16.msra.mxu1 %v8986_v31  ;;  %v2547_v38 = vmax.f32 %v1709_v39, 0.0  ;;  %v8954_v25 = vcombine.low %v3921_v63, %v3925_v47  ;;  %v3909_v31 = vld [vmem:[#allocation5 + $0x860] sm:$0xff] }
 0x276   :  { %v10236_v29 = vpop.f32.mrf.mxu0  ;;  %v1711_v33 = vpop.f32.mrf.mxu1  ;;  %7678 = vmatprep.subr.bf16.mxu1 %v8979_v21  ;;  %v10270_v63 = vld [vmem:[#allocation5 + $0xde0] sm:$0xff] }
 0x277   :  { %v2548_v24 = vmax.f32 %v1711_v33, 0.0 }
 0x278   :  { %v10238_v51 = vpop.f32.mrf.mxu0  ;;  %v1713_v53 = vpop.f32.mrf.mxu1 }
 0x279   :  { %7679 = vmatpush1.bf16.msra.mxu1 %v8978_v42  ;;  %v2557_v57 = vmax.f32 %v1713_v53, 0.0 }
 0x27a   :  { %v10240_v18 = vpop.f32.mrf.mxu0  ;;  %v1715_v59 = vpop.f32.mrf.mxu1  ;;  %7680 = vmatprep.subr.bf16.mxu1 %v8971_v48  ;;  %v8939_v48 = vcombine.high %v3905_v41, %v3909_v31 }
 0x27b   :  { %v3453_v0 = vadd.f32 %v2557_v57, %v2547_v38  ;;  %v2558_v54 = vmax.f32 %v1715_v59, 0.0  ;;  %v3901_v38 = vld [vmem:[#allocation5 + $0x820] sm:$0xff] }
 0x27c   :  { %v10242_v58 = vpop.f32.mrf.mxu0  ;;  %8651 = vmatmul.mubr.msk.bf16.gmra.mxu0 %vm328_vm1, %v9390_v36  ;;  %v1719_v2 = vpop.f32.mrf.mxu1  ;;  %v8938_v36 = vcombine.low %v3905_v41, %v3909_v31 }
 0x27d   :  { %2000 = vmatprep.mubr.bf16.mxu0 %v10868_v3  ;;  %7681 = vmatpush1.bf16.msra.mxu1 %v8970_v55  ;;  %v3490_v22 = vadd.f32 %v2558_v54, %v2548_v24  ;;  %v2567_v9 = vmax.f32 %v1719_v2, 0.0  ;;  %v9392_v54 = vld [vmem:[%s10863_s0 + $0x58] sm:$0xff]   ;;  %v8931_v2 = vcombine.high %v3897_v49, %v3901_v38 }
 0x27e   :  { %v10249_v1 = vpop.f32.mrf.mxu0  ;;  %v1721_v10 = vpop.f32.mrf.mxu1  ;;  %7682 = vmatprep.subr.bf16.mxu1 %v8963_v56  ;;  %v10268_v56 = vld [vmem:[#allocation5 + $0xdc0] sm:$0xff] }
 0x27f   :  { %v3454_v11 = vadd.f32 %v3453_v0, %v2567_v9  ;;  %v2568_v15 = vmax.f32 %v1721_v10, 0.0  ;;  %v4017_v9 = vld [vmem:[#allocation5 + $0xbc0] sm:$0xff] }
 0x280   :  { %v10251_v62 = vpop.f32.mrf.mxu0  ;;  %v1723_v7 = vpop.f32.mrf.mxu1  ;;  %v4021_v10 = vld [vmem:[#allocation5 + $0xbe0] sm:$0xff] }
 0x281   :  { %7683 = vmatpush1.bf16.msra.mxu1 %v8962_v30  ;;  %v3491_v16 = vadd.f32 %v3490_v22, %v2568_v15  ;;  %v2577_v17 = vmax.f32 %v1723_v7, 0.0  ;;  %v8930_v7 = vcombine.low %v3897_v49, %v3901_v38  ;;  %v9393_v38 = vld [vmem:[%s10863_s0 + $0x60] sm:$0xff]  }
 0x282   :  { %v10253_v5 = vpop.f32.mrf.mxu0  ;;  %v1725_v34 = vpop.f32.mrf.mxu1  ;;  %7684 = vmatprep.subr.bf16.mxu1 %v8955_v52 }
 0x283   :  { %v3455_v26 = vadd.f32 %v3454_v11, %v2577_v17  ;;  %v2578_v14 = vmax.f32 %v1725_v34, 0.0 }
 0x284   :  { %v10255_v43 = vpop.f32.mrf.mxu0  ;;  %8652 = vmatmul.mubr.msk.bf16.gmra.mxu0 %vm328_vm1, %v9391_v61  ;;  %v1729_v21 = vpop.f32.mrf.mxu1  ;;  %v9051_v61 = vcombine.high %v4017_v9, %v4021_v10 }
 0x285   :  { %2010 = vmatprep.mubr.bf16.mxu0 %v10868_v3  ;;  %7685 = vmatpush1.bf16.msra.mxu1 %v8954_v25  ;;  %v3492_v37 = vadd.f32 %v3491_v16, %v2578_v14  ;;  %v2587_v39 = vmax.f32 %v1729_v21, 0.0  ;;  %v4209_v25 = vld [vmem:[#allocation5 + $0x11c0] sm:$0xff] }
 0x286   :  { %v10262_v20 = vpop.f32.mrf.mxu0  ;;  %v1731_v33 = vpop.f32.mrf.mxu1  ;;  %7686 = vmatprep.subr.bf16.mxu1 %v8947_v19  ;;  %v4213_v16 = vld [vmem:[#allocation5 + $0x11e0] sm:$0xff] }
 0x287   :  { %v2588_v45 = vmax.f32 %v1731_v33, 0.0  ;;  %v3456_v53 = vadd.f32 %v3455_v26, %v2587_v39  ;;  %v9242_v19 = vcombine.low %v4209_v25, %v4213_v16  ;;  %v9243_v41 = vcombine.high %v4209_v25, %v4213_v16  ;;  %v4009_v14 = vld [vmem:[#allocation5 + $0xb80] sm:$0xff] }
 0x288   :  { %v10264_v42 = vpop.f32.mrf.mxu0  ;;  %v1733_v24 = vpop.f32.mrf.mxu1  ;;  %v4013_v21 = vld [vmem:[#allocation5 + $0xba0] sm:$0xff] }
 0x289   :  { %v3493_v57 = vadd.f32 %v3492_v37, %v2588_v45  ;;  %v2597_v59 = vmax.f32 %v1733_v24, 0.0  ;;  %7687 = vmatpush1.bf16.msra.mxu1 %v8946_v28  ;;  %7758 = vmatprep.subr.bf16.mxu0 %v9243_v41  ;;  %v3997_v25 = vld [vmem:[#allocation5 + $0xb20] sm:$0xff] }
 0x28a   :  { %v10266_v55 = vpop.f32.mrf.mxu0  ;;  %v1735_v0 = vpop.f32.mrf.mxu1  ;;  %7688 = vmatprep.subr.bf16.mxu1 %v8939_v48  ;;  %v9050_v48 = vcombine.low %v4017_v9, %v4021_v10  ;;  %7759 = vmatpush1.bf16.msra.mxu0 %v9242_v19 }
 0x28b   :  { %v3457_v30 = vadd.f32 %v3456_v53, %v2597_v59  ;;  %v2598_v22 = vmax.f32 %v1735_v0, 0.0  ;;  %v9043_v53 = vcombine.high %v4009_v14, %v4013_v21  ;;  %v4001_v59 = vld [vmem:[#allocation5 + $0xb40] sm:$0xff] }
 0x28c   :  { %v10272_v47 = vpop.f32.mrf.mxu0  ;;  %8653 = vmatmul.mubr.msk.bf16.gmra.mxu0 %vm328_vm1, %v9392_v54  ;;  %v1739_v50 = vpop.f32.mrf.mxu1 }
 0x28d   :  { %2020 = vmatprep.mubr.bf16.mxu0 %v10868_v3  ;;  %v3494_v11 = vadd.f32 %v3493_v57, %v2598_v22  ;;  %v2607_v15 = vmax.f32 %v1739_v50, 0.0  ;;  %7689 = vmatpush1.bf16.msra.mxu1 %v8938_v36  ;;  %v4005_v36 = vld [vmem:[#allocation5 + $0xb60] sm:$0xff]  ;;  %v9042_v22 = vcombine.low %v4009_v14, %v4013_v21  ;;  %v9394_v14 = vld [vmem:[%s10863_s0 + $0x68] sm:$0xff]  }
 0x28e   :  { %v10279_v52 = vpop.f32.mrf.mxu0  ;;  %v1741_v34 = vpop.f32.mrf.mxu1  ;;  %7690 = vmatprep.subr.bf16.mxu1 %v8931_v2  ;;  %v9035_v50 = vcombine.high %v4001_v59, %v4005_v36  ;;  %v9034_v41 = vcombine.low %v4001_v59, %v4005_v36  ;;  %v4201_v59 = vld [vmem:[#allocation5 + $0x1180] sm:$0xff] }
 0x28f   :  { %v3458_v31 = vadd.f32 %v3457_v30, %v2607_v15  ;;  %v2608_v26 = vmax.f32 %v1741_v34, 0.0  ;;  %v4205_v36 = vld [vmem:[#allocation5 + $0x11a0] sm:$0xff] }
 0x290   :  { %v10283_v17 = vpop.f32.mrf.mxu0  ;;  %v1743_v37 = vpop.f32.mrf.mxu1 }
 0x291   :  { %v3495_v39 = vadd.f32 %v3494_v11, %v2608_v26  ;;  %v2617_v33 = vmax.f32 %v1743_v37, 0.0  ;;  %7691 = vmatpush1.bf16.msra.mxu1 %v8930_v7  ;;  %v3993_v7 = vld [vmem:[#allocation5 + $0xb00] sm:$0xff] }
 0x292   :  { %v10285_v28 = vpop.f32.mrf.mxu0  ;;  %v1745_v49 = vpop.f32.mrf.mxu1  ;;  %7692 = vmatprep.subr.bf16.mxu1 %v9051_v61  ;;  %v9027_v21 = vcombine.high %v3993_v7, %v3997_v25 }
 0x293   :  { %v3459_v24 = vadd.f32 %v3458_v31, %v2617_v33  ;;  %v2618_v57 = vmax.f32 %v1745_v49, 0.0  ;;  %v3985_v33 = vld [vmem:[#allocation5 + $0xac0] sm:$0xff] }
 0x294   :  { %v10287_v45 = vpop.f32.mrf.mxu0  ;;  %8654 = vmatmul.mubr.msk.bf16.gmra.mxu0 %vm328_vm1, %v9393_v38  ;;  %v1749_v54 = vpop.f32.mrf.mxu1 }
 0x295   :  { %2030 = vmatprep.mubr.bf16.mxu0 %v10868_v3  ;;  %v3496_v2 = vadd.f32 %v3495_v39, %v2618_v57  ;;  %v2627_v30 = vmax.f32 %v1749_v54, 0.0  ;;  %7693 = vmatpush2.bf16.msra.mxu1 %v9050_v48  ;;  %v3989_v48 = vld [vmem:[#allocation5 + $0xae0] sm:$0xff]  ;;  %v9026_v57 = vcombine.low %v3993_v7, %v3997_v25 }
 0x296   :  { %v10294_v0 = vpop.f32.mrf.mxu0  ;;  %v1751_v10 = vpop.f32.mrf.mxu1  ;;  %7694 = vmatprep.subr.bf16.mxu1 %v9043_v53  ;;  %v9018_v7 = vcombine.low %v3985_v33, %v3989_v48 }
 0x297   :  { %v3460_v11 = vadd.f32 %v3459_v24, %v2627_v30  ;;  %v2628_v15 = vmax.f32 %v1751_v10, 0.0  ;;  %v9019_v30 = vcombine.high %v3985_v33, %v3989_v48  ;;  %v9235_v10 = vcombine.high %v4201_v59, %v4205_v36 }
 0x298   :  { %v10296_v9 = vpop.f32.mrf.mxu0  ;;  %v1753_v34 = vpop.f32.mrf.mxu1 }
 0x299   :  { %v3497_v61 = vadd.f32 %v3496_v2, %v2628_v15  ;;  %v2637_v19 = vmax.f32 %v1753_v34, 0.0  ;;  %7695 = vmatpush2.bf16.msra.mxu1 %v9042_v22  ;;  %v9234_v22 = vcombine.low %v4201_v59, %v4205_v36  ;;  %v3977_v15 = vld [vmem:[#allocation5 + $0xa80] sm:$0xff]  ;;  %7760 = vmatprep.subr.bf16.mxu0 %v9235_v10 }
 0x29a   :  { %v10298_v16 = vpop.f32.mrf.mxu0  ;;  %v1755_v26 = vpop.f32.mrf.mxu1  ;;  %7696 = vmatprep.subr.bf16.mxu1 %v9035_v50  ;;  %v3981_v34 = vld [vmem:[#allocation5 + $0xaa0] sm:$0xff] }
 0x29b   :  { %v3461_v37 = vadd.f32 %v3460_v11, %v2637_v19  ;;  %v2638_v39 = vmax.f32 %v1755_v26, 0.0  ;;  %7761 = vmatpush1.bf16.msra.mxu0 %v9234_v22  ;;  %v9010_v36 = vcombine.low %v3977_v15, %v3981_v34 }
 0x29c   :  { %v10300_v31 = vpop.f32.mrf.mxu0  ;;  %8655 = vmatmul.mubr.msk.bf16.gmra.mxu0 %vm328_vm1, %v9394_v14  ;;  %v1759_v38 = vpop.f32.mrf.mxu1 }
 0x29d   :  { %2040 = vmatprep.mubr.bf16.mxu0 %v10868_v3  ;;  %v3498_v53 = vadd.f32 %v3497_v61, %v2638_v39  ;;  %v2647_v24 = vmax.f32 %v1759_v38, 0.0  ;;  %7697 = vmatpush2.bf16.msra.mxu1 %v9034_v41 }
 0x29e   :  { %v10307_v49 = vpop.f32.mrf.mxu0  ;;  %v1761_v2 = vpop.f32.mrf.mxu1  ;;  %7698 = vmatprep.subr.bf16.mxu1 %v9027_v21  ;;  %v9395_v21 = vld [vmem:[%s10863_s0 + $0x70] sm:$0xff]  }
 0x29f   :  { %v3462_v50 = vadd.f32 %v3461_v37, %v2647_v24  ;;  %v2648_v11 = vmax.f32 %v1761_v2, 0.0  ;;  %v9011_v37 = vcombine.high %v3977_v15, %v3981_v34  ;;  %v3973_v24 = vld [vmem:[#allocation5 + $0xa60] sm:$0xff] }
 0x2a0   :  { %v10309_v54 = vpop.f32.mrf.mxu0  ;;  %v1763_v26 = vpop.f32.mrf.mxu1  ;;  %v9396_v15 = vld [vmem:[%s10863_s0 + $0x78] sm:$0xff]  }
 0x2a1   :  { %v3499_v61 = vadd.f32 %v3498_v53, %v2648_v11  ;;  %v2657_v41 = vmax.f32 %v1763_v26, 0.0  ;;  %7699 = vmatpush2.bf16.msra.mxu1 %v9026_v57  ;;  %v3969_v53 = vld [vmem:[#allocation5 + $0xa40] sm:$0xff] }
 0x2a2   :  { %v10311_v19 = vpop.f32.mrf.mxu0  ;;  %v1765_v14 = vpop.f32.mrf.mxu1  ;;  %7700 = vmatprep.subr.bf16.mxu1 %v9019_v30  ;;  %v9003_v10 = vcombine.high %v3969_v53, %v3973_v24  ;;  %v3965_v26 = vld [vmem:[#allocation5 + $0xa20] sm:$0xff] }
 0x2a3   :  { %v3463_v39 = vadd.f32 %v3462_v50, %v2657_v41  ;;  %v2658_v38 = vmax.f32 %v1765_v14, 0.0  ;;  %v3961_v50 = vld [vmem:[#allocation5 + $0xa00] sm:$0xff] }
 0x2a4   :  { %v10313_v25 = vpop.f32.mrf.mxu0  ;;  %8656 = vmatmul.mubr.msk.bf16.gmra.mxu0 %vm328_vm1, %v9395_v21  ;;  %v1769_v33 = vpop.f32.mrf.mxu1  ;;  %v8995_v34 = vcombine.high %v3961_v50, %v3965_v26 }
 0x2a5   :  { %2050 = vmatprep.mubr.bf16.mxu0 %v10868_v3  ;;  %v3500_v48 = vadd.f32 %v3499_v61, %v2658_v38  ;;  %v2667_v59 = vmax.f32 %v1769_v33, 0.0  ;;  %7701 = vmatpush2.bf16.msra.mxu1 %v9018_v7  ;;  %v9002_v3 = vcombine.low %v3969_v53, %v3973_v24  ;;  %v10884_v38 = vmov 0  }
 0x2a6   :  { %v10320_v57 = vpop.f32.mrf.mxu0  ;;  %v1771_v22 = vpop.f32.mrf.mxu1  ;;  %7702 = vmatprep.subr.bf16.mxu1 %v9011_v37  ;;  %v8994_v24 = vcombine.low %v3961_v50, %v3965_v26 }
 0x2a7   :  { %v3464_v30 = vadd.f32 %v3463_v39, %v2667_v59  ;;  %v2668_v11 = vmax.f32 %v1771_v22, 0.0  ;;  %v4197_v22 = vld [vmem:[#allocation5 + $0x1160] sm:$0xff] }
 0x2a8   :  { %v10322_v2 = vpop.f32.mrf.mxu0  ;;  %v1773_v14 = vpop.f32.mrf.mxu1 }
 0x2a9   :  { %v3501_v21 = vadd.f32 %v3500_v48, %v2668_v11  ;;  %v2677_v8 = vmax.f32 %v1773_v14, 0.0  ;;  %7703 = vmatpush2.bf16.msra.mxu1 %v9010_v36  ;;  %v4193_v36 = vld [vmem:[#allocation5 + $0x1140] sm:$0xff] }
 0x2aa   :  { %v10324_v41 = vpop.f32.mrf.mxu0  ;;  %v1775_v7 = vpop.f32.mrf.mxu1  ;;  %7704 = vmatprep.subr.bf16.mxu1 %v9003_v10  ;;  %v9115_v10 = vcombine.high %v10268_v56, %v10270_v63 }
 0x2ab   :  { %v3465_v37 = vadd.f32 %v3464_v30, %v2677_v8  ;;  %v2678_v39 = vmax.f32 %v1775_v7, 0.0  ;;  %v9226_v8 = vcombine.low %v4193_v36, %v4197_v22  ;;  %v9227_v30 = vcombine.high %v4193_v36, %v4197_v22 }
 0x2ac   :  { %v10326_v61 = vpop.f32.mrf.mxu0  ;;  %8657 = vmatmul.mubr.msk.bf16.gmra.mxu0 %vm328_vm1, %v9396_v15  ;;  %v1779_v48 = vpop.f32.mrf.mxu1 }
 0x2ad   :  { %2060 = vmatprep.mubr.bf16.mxu0 %v10884_v38  ;;  %v3502_v59 = vadd.f32 %v3501_v21, %v2678_v39  ;;  %v2687_v53 = vmax.f32 %v1779_v48, 0.0  ;;  %7705 = vmatpush2.bf16.msra.mxu1 %v9002_v3  ;;  %v2555_v3 = vmax.f32 %v10238_v51, 0.0  ;;  %v2556_v21 = vmax.f32 %v10240_v18, 0.0 }
 0x2ae   :  { %v10333_v33 = vpop.f32.mrf.mxu0  ;;  %v1781_v14 = vpop.f32.mrf.mxu1  ;;  %7706 = vmatprep.subr.bf16.mxu1 %v8995_v34  ;;  %7762 = vmatprep.subr.bf16.mxu0 %v9227_v30  ;;  %v2545_v48 = vmax.f32 %v10218_v32, 0.0  ;;  %v2565_v51 = vmax.f32 %v10242_v58, 0.0  ;;  %v2546_v18 = vmax.f32 %v10236_v29, 0.0  ;;  %v2576_v32 = vmax.f32 %v10253_v5, 0.0 }
 0x2af   :  { %v3466_v7 = vadd.f32 %v3465_v37, %v2687_v53  ;;  %v2688_v15 = vmax.f32 %v1781_v14, 0.0  ;;  %7763 = vmatpush1.bf16.msra.mxu0 %v9226_v8  ;;  %v9397_v37 = vld [vmem:[%s10863_s0 + $0x80] sm:$0xff]   ;;  %v2566_v53 = vmax.f32 %v10249_v1, 0.0  ;;  %v2575_v14 = vmax.f32 %v10251_v62, 0.0 }
 0x2b0   :  { %v10335_v11 = vpop.f32.mrf.mxu0  ;;  %v1783_v46 = vpop.f32.mrf.mxu1  ;;  %v3379_v22 = vadd.f32 %v2555_v3, %v2545_v48  ;;  %v3416_v30 = vadd.f32 %v2556_v21, %v2546_v18 }
 0x2b1   :  { %v3503_v50 = vadd.f32 %v3502_v59, %v2688_v15  ;;  %v2697_v26 = vmax.f32 %v1783_v46, 0.0  ;;  %7707 = vmatpush2.bf16.msra.mxu1 %v8994_v24 }
 0x2b2   :  { %v10339_v6 = vpop.f32.mrf.mxu0  ;;  %v1785_v39 = vpop.f32.mrf.mxu1  ;;  %7717 = vmatprep.subr.bf16.mxu1 %v9115_v10  ;;  %v3380_v15 = vadd.f32 %v3379_v22, %v2565_v51  ;;  %v3417_v1 = vadd.f32 %v3416_v30, %v2566_v53  ;;  %v2606_v22 = vmax.f32 %v10279_v52, 0.0  ;;  %v2625_v52 = vmax.f32 %v10287_v45, 0.0 }
 0x2b3   :  { %v3467_v59 = vadd.f32 %v3466_v7, %v2697_v26  ;;  %v2698_v46 = vmax.f32 %v1785_v39, 0.0  ;;  %v2585_v26 = vmax.f32 %v10255_v43, 0.0  ;;  %v9398_v43 = vld [vmem:[%s10863_s0 + $0x88] sm:$0xff]  }
 0x2b4   :  { %v10343_v34 = vpop.f32.mrf.mxu0  ;;  %8658 = vmatmul.mubr.msk.bf16.gmra.mxu0 %vm328_vm1, %v9397_v37  ;;  %v1789_v36 = vpop.f32.mrf.mxu1  ;;  %v2586_v37 = vmax.f32 %v10262_v20, 0.0  ;;  %v3381_v62 = vadd.f32 %v3380_v15, %v2575_v14  ;;  %v3418_v5 = vadd.f32 %v3417_v1, %v2576_v32  ;;  %v4189_v15 = vld [vmem:[#allocation5 + $0x1120] sm:$0xff] }
 0x2b5   :  { %2070 = vmatprep.mubr.bf16.mxu0 %v10884_v38  ;;  %v3504_v8 = vadd.f32 %v3503_v50, %v2698_v46  ;;  %v2707_v10 = vmax.f32 %v1789_v36, 0.0  ;;  %v2595_v50 = vmax.f32 %v10264_v42, 0.0  ;;  %v2596_v46 = vmax.f32 %v10266_v55, 0.0 }
 0x2b6   :  { %v10354_v24 = vpop.f32.mrf.mxu0  ;;  %v1791_v7 = vpop.f32.mrf.mxu1  ;;  %v3382_v20 = vadd.f32 %v3381_v62, %v2585_v26  ;;  %v3419_v42 = vadd.f32 %v3418_v5, %v2586_v37 }
 0x2b7   :  { %v3468_v29 = vadd.f32 %v3467_v59, %v2707_v10  ;;  %v2708_v39 = vmax.f32 %v1791_v7, 0.0  ;;  %v2605_v59 = vmax.f32 %v10272_v47, 0.0  ;;  %v2615_v10 = vmax.f32 %v10283_v17, 0.0  ;;  %v4185_v7 = vld [vmem:[#allocation5 + $0x1100] sm:$0xff] }
 0x2b8   :  { %v10358_v58 = vpop.f32.mrf.mxu0  ;;  %v1793_v3 = vpop.f32.mrf.mxu1  ;;  %v3420_v26 = vadd.f32 %v3419_v42, %v2596_v46  ;;  %v2616_v47 = vmax.f32 %v10285_v28, 0.0  ;;  %v9218_v1 = vcombine.low %v4185_v7, %v4189_v15  ;;  %v9219_v37 = vcombine.high %v4185_v7, %v4189_v15 }
 0x2b9   :  { %v3505_v21 = vadd.f32 %v3504_v8, %v2708_v39  ;;  %v2717_v48 = vmax.f32 %v1793_v3, 0.0  ;;  %v3383_v8 = vadd.f32 %v3382_v20, %v2595_v50  ;;  %v2626_v17 = vmax.f32 %v10294_v0, 0.0  ;;  %v9399_v0 = vld [vmem:[%s10863_s0 + $0x90] sm:$0xff]  }
 0x2ba   :  { %v10362_v60 = vpop.f32.mrf.mxu0  ;;  %v1795_v51 = vpop.f32.mrf.mxu1  ;;  %v3421_v50 = vadd.f32 %v3420_v26, %v2606_v22  ;;  %7764 = vmatprep.subr.bf16.mxu0 %v9219_v37  ;;  %v2635_v28 = vmax.f32 %v10296_v9, 0.0  ;;  %v2645_v42 = vmax.f32 %v10300_v31, 0.0  ;;  %v2665_v37 = vmax.f32 %v10313_v25, 0.0  ;;  %v9400_v25 = vld [vmem:[%s10863_s0 + $0x98] sm:$0xff]  }
 0x2bb   :  { %v3469_v53 = vadd.f32 %v3468_v29, %v2717_v48  ;;  %v2718_v36 = vmax.f32 %v1795_v51, 0.0  ;;  %v3384_v3 = vadd.f32 %v3383_v8, %v2605_v59  ;;  %7765 = vmatpush1.bf16.msra.mxu0 %v9218_v1  ;;  %v2636_v59 = vmax.f32 %v10298_v16, 0.0 }
 0x2bc   :  { %v10366_v18 = vpop.f32.mrf.mxu0  ;;  %8659 = vmatmul.mubr.msk.bf16.gmra.mxu0 %vm328_vm1, %v9398_v43  ;;  %v1799_v14 = vpop.f32.mrf.mxu1  ;;  %v3422_v20 = vadd.f32 %v3421_v50, %v2616_v47  ;;  %v2646_v8 = vmax.f32 %v10307_v49, 0.0  ;;  %v2656_v47 = vmax.f32 %v10311_v19, 0.0 }
 0x2bd   :  { %2080 = vmatprep.mubr.bf16.mxu0 %v10884_v38  ;;  %v3506_v30 = vadd.f32 %v3505_v21, %v2718_v36  ;;  %v2727_v32 = vmax.f32 %v1799_v14, 0.0  ;;  %v3385_v46 = vadd.f32 %v3384_v3, %v2615_v10 }
 0x2be   :  { %v10375_v55 = vpop.f32.mrf.mxu0  ;;  %v1801_v39 = vpop.f32.mrf.mxu1  ;;  %v3423_v14 = vadd.f32 %v3422_v20, %v2626_v17  ;;  %v2675_v17 = vmax.f32 %v10322_v2, 0.0  ;;  %v2685_v20 = vmax.f32 %v10326_v61, 0.0  ;;  %v2696_v61 = vmax.f32 %v10339_v6, 0.0 }
 0x2bf   :  { %v3470_v62 = vadd.f32 %v3469_v53, %v2727_v32  ;;  %v2728_v48 = vmax.f32 %v1801_v39, 0.0  ;;  %v3386_v53 = vadd.f32 %v3385_v46, %v2625_v52  ;;  %v2655_v32 = vmax.f32 %v10309_v54, 0.0 }
 0x2c0   :  { %v10379_v29 = vpop.f32.mrf.mxu0  ;;  %v1803_v5 = vpop.f32.mrf.mxu1  ;;  %v3424_v26 = vadd.f32 %v3423_v14, %v2636_v59  ;;  %v2715_v6 = vmax.f32 %v10358_v58, 0.0 }
 0x2c1   :  { %v3507_v51 = vadd.f32 %v3506_v30, %v2728_v48  ;;  %v2737_v43 = vmax.f32 %v1803_v5, 0.0  ;;  %v3387_v30 = vadd.f32 %v3386_v53, %v2635_v28  ;;  %v2676_v28 = vmax.f32 %v10324_v41, 0.0 }
 0x2c2   :  { %v10383_v21 = vpop.f32.mrf.mxu0  ;;  %v1805_v45 = vpop.f32.mrf.mxu1  ;;  %v3425_v49 = vadd.f32 %v3424_v26, %v2646_v8  ;;  %v4177_v8 = vld [vmem:[#allocation5 + $0x10c0] sm:$0xff] }
 0x2c3   :  { %v3471_v22 = vadd.f32 %v3470_v62, %v2737_v43  ;;  %v2738_v9 = vmax.f32 %v1805_v45, 0.0  ;;  %v3388_v1 = vadd.f32 %v3387_v30, %v2645_v42  ;;  %v2666_v62 = vmax.f32 %v10320_v57, 0.0 }
 0x2c4   :  { %v10387_v36 = vpop.f32.mrf.mxu0  ;;  %8660 = vmatmul.mubr.msk.bf16.gmra.mxu0 %vm328_vm1, %v9399_v0  ;;  %v1809_v10 = vpop.f32.mrf.mxu1  ;;  %v3426_v19 = vadd.f32 %v3425_v49, %v2656_v47  ;;  %v2686_v0 = vmax.f32 %v10333_v33, 0.0  ;;  %v2705_v33 = vmax.f32 %v10343_v34, 0.0 }
 0x2c5   :  { %2090 = vmatprep.mubr.bf16.mxu0 %v10884_v38  ;;  %v3508_v7 = vadd.f32 %v3507_v51, %v2738_v9  ;;  %v2747_v15 = vmax.f32 %v1809_v10, 0.0  ;;  %v3389_v54 = vadd.f32 %v3388_v1, %v2655_v32  ;;  %v4181_v10 = vld [vmem:[#allocation5 + $0x10e0] sm:$0xff] }
 0x2c6   :  { %v10396_v16 = vpop.f32.mrf.mxu0  ;;  %v1811_v31 = vpop.f32.mrf.mxu1  ;;  %v3427_v2 = vadd.f32 %v3426_v19, %v2666_v62  ;;  %v9211_v26 = vcombine.high %v4177_v8, %v4181_v10  ;;  %v2725_v19 = vmax.f32 %v10366_v18, 0.0 }
 0x2c7   :  { %v3472_v3 = vadd.f32 %v3471_v22, %v2747_v15  ;;  %v2748_v52 = vmax.f32 %v1811_v31, 0.0  ;;  %v3390_v57 = vadd.f32 %v3389_v54, %v2665_v37  ;;  %v2695_v22 = vmax.f32 %v10335_v11, 0.0 }
 0x2c8   :  { %v10400_v39 = vpop.f32.mrf.mxu0  ;;  %v1813_v50 = vpop.f32.mrf.mxu1  ;;  %v3428_v30 = vadd.f32 %v3427_v2, %v2676_v28  ;;  %v9210_v15 = vcombine.low %v4177_v8, %v4181_v10  ;;  %v2706_v11 = vmax.f32 %v10354_v24, 0.0  ;;  %7766 = vmatprep.subr.bf16.mxu0 %v9211_v26  ;;  %v9401_v24 = vld [vmem:[%s10863_s0 + $0xa0] sm:$0xff]   ;;  %v2746_v10 = vmax.f32 %v10396_v16, 0.0 }
 0x2c9   :  { %v3509_v5 = vadd.f32 %v3508_v7, %v2748_v52  ;;  %v2757_v46 = vmax.f32 %v1813_v50, 0.0  ;;  %v3391_v42 = vadd.f32 %v3390_v57, %v2675_v17  ;;  %v2716_v17 = vmax.f32 %v10362_v60, 0.0 }
 0x2ca   :  { %v10404_v48 = vpop.f32.mrf.mxu0  ;;  %v1815_v43 = vpop.f32.mrf.mxu1  ;;  %v3429_v37 = vadd.f32 %v3428_v30, %v2686_v0  ;;  %7767 = vmatpush1.bf16.msra.mxu0 %v9210_v15 }
 0x2cb   :  { %v3473_v59 = vadd.f32 %v3472_v3, %v2757_v46  ;;  %v2758_v45 = vmax.f32 %v1815_v43, 0.0  ;;  %v3392_v47 = vadd.f32 %v3391_v42, %v2685_v20 }
 0x2cc   :  { %v10408_v51 = vpop.f32.mrf.mxu0  ;;  %8661 = vmatmul.mubr.msk.bf16.gmra.mxu0 %vm328_vm1, %v9400_v25  ;;  %v1819_v53 = vpop.f32.mrf.mxu1  ;;  %v3430_v54 = vadd.f32 %v3429_v37, %v2696_v61  ;;  %v2726_v25 = vmax.f32 %v10375_v55, 0.0 }
 0x2cd   :  { %2100 = vmatprep.mubr.bf16.mxu0 %v10884_v38  ;;  %v3510_v9 = vadd.f32 %v3509_v5, %v2758_v45  ;;  %v2767_v14 = vmax.f32 %v1819_v53, 0.0  ;;  %v3393_v49 = vadd.f32 %v3392_v47, %v2695_v22  ;;  %v2736_v53 = vmax.f32 %v10383_v21, 0.0 }
 0x2ce   :  { %v10417_v41 = vpop.f32.mrf.mxu0  ;;  %v1821_v7 = vpop.f32.mrf.mxu1  ;;  %v3431_v43 = vadd.f32 %v3430_v54, %v2706_v11  ;;  %v2756_v47 = vmax.f32 %v10404_v48, 0.0  ;;  %v2538_v48 = vmax.f32 %v10220_v23, 0.0 }
 0x2cf   :  { %v3474_v31 = vadd.f32 %v3473_v59, %v2767_v14  ;;  %v2768_v1 = vmax.f32 %v1821_v7, 0.0  ;;  %v3394_v46 = vadd.f32 %v3393_v49, %v2705_v33  ;;  %v2735_v59 = vmax.f32 %v10379_v29, 0.0 }
 0x2d0   :  { %v10421_v32 = vpop.f32.mrf.mxu0  ;;  %v1823_v52 = vpop.f32.mrf.mxu1  ;;  %v3432_v0 = vadd.f32 %v3431_v43, %v2716_v17  ;;  %v2755_v7 = vmax.f32 %v10400_v39, 0.0  ;;  %v3040_v39 = vrot.slane %v10214_v12, 4  ;;  %v2766_v49 = vmax.f32 %v10417_v41, 0.0 }
 0x2d1   :  { %v3511_v62 = vadd.f32 %v3510_v9, %v2768_v1  ;;  %v2777_v50 = vmax.f32 %v1823_v52, 0.0  ;;  %v3395_v20 = vadd.f32 %v3394_v46, %v2715_v6  ;;  %v2745_v9 = vmax.f32 %v10387_v36, 0.0  ;;  %v9402_v36 = vld [vmem:[%s10863_s0 + $0xa8] sm:$0xff]  }
 0x2d2   :  { %v10425_v3 = vpop.f32.mrf.mxu0  ;;  %v1825_v34 = vpop.f32.mrf.mxu1  ;;  %v3433_v55 = vadd.f32 %v3432_v0, %v2726_v25  ;;  %v2765_v1 = vmax.f32 %v10408_v51, 0.0  ;;  %v2775_v54 = vmax.f32 %v10421_v32, 0.0  ;;  %v4169_v51 = vld [vmem:[#allocation5 + $0x1080] sm:$0xff]  ;;  %v3150_v32 = vadd.f32 %v10216_v13, %v2538_v48 }
 0x2d3   :  { %v3475_v28 = vadd.f32 %v3474_v31, %v2777_v50  ;;  %v2778_v58 = vmax.f32 %v1825_v34, 0.0  ;;  %v3396_v22 = vadd.f32 %v3395_v20, %v2725_v19  ;;  %v2776_v19 = vmax.f32 %v10425_v3, 0.0 }
 0x2d4   :  { %v10429_v5 = vpop.f32.mrf.mxu0  ;;  %8662 = vmatmul.mubr.msk.bf16.gmra.mxu0 %vm328_vm1, %v9401_v24  ;;  %v1829_v57 = vpop.f32.mrf.mxu1  ;;  %v3434_v21 = vadd.f32 %v3433_v55, %v2736_v53  ;;  %v4173_v24 = vld [vmem:[#allocation5 + $0x10a0] sm:$0xff] }
 0x2d5   :  { %2110 = vmatprep.mubr.bf16.mxu0 %v10884_v38  ;;  %v3512_v45 = vadd.f32 %v3511_v62, %v2778_v58  ;;  %v2787_v2 = vmax.f32 %v1829_v57, 0.0  ;;  %v3397_v29 = vadd.f32 %v3396_v22, %v2735_v59  ;;  %v9202_v43 = vcombine.low %v4169_v51, %v4173_v24 }
 0x2d6   :  { %v10438_v60 = vpop.f32.mrf.mxu0  ;;  %v1831_v18 = vpop.f32.mrf.mxu1  ;;  %v3435_v52 = vadd.f32 %v3434_v21, %v2746_v10  ;;  %v9203_v23 = vcombine.high %v4169_v51, %v4173_v24  ;;  %v2785_v41 = vmax.f32 %v10429_v5, 0.0  ;;  %v3041_v59 = vadd.f32 %v3040_v39, %v10214_v12 }
 0x2d7   :  { %v3476_v14 = vadd.f32 %v3475_v28, %v2787_v2  ;;  %v2788_v8 = vmax.f32 %v1831_v18, 0.0  ;;  %v3398_v16 = vadd.f32 %v3397_v29, %v2745_v9  ;;  %v2786_v2 = vmax.f32 %v10438_v60, 0.0  ;;  %v9403_v60 = vld [vmem:[%s10863_s0 + $0xb0] sm:$0xff]  }
 0x2d8   :  { %v10442_v42 = vpop.f32.mrf.mxu0  ;;  %v1833_v61 = vpop.f32.mrf.mxu1  ;;  %v3436_v46 = vadd.f32 %v3435_v52, %v2756_v47  ;;  %7768 = vmatprep.subr.bf16.mxu0 %v9203_v23  ;;  %v3077_v5 = vrot.slane %v10230_v35, 4 }
 0x2d9   :  { %v3513_v15 = vadd.f32 %v3512_v45, %v2788_v8  ;;  %v2797_v26 = vmax.f32 %v1833_v61, 0.0  ;;  %v3399_v50 = vadd.f32 %v3398_v16, %v2755_v7  ;;  %v2795_v18 = vmax.f32 %v10442_v42, 0.0  ;;  %7769 = vmatpush1.bf16.msra.mxu0 %v9202_v43 }
 0x2da   :  { %v10446_v30 = vpop.f32.mrf.mxu0  ;;  %v1835_v31 = vpop.f32.mrf.mxu1  ;;  %v3437_v45 = vadd.f32 %v3436_v46, %v2766_v49  ;;  %v3042_v7 = vrot.slane %v3041_v59, 2 }
 0x2db   :  { %v3477_v37 = vadd.f32 %v3476_v14, %v2797_v26  ;;  %v2798_v11 = vmax.f32 %v1835_v31, 0.0  ;;  %v3400_v25 = vadd.f32 %v3399_v50, %v2765_v1  ;;  %v3114_v14 = vrot.slane %v10232_v40, 4 }
 0x2dc   :  { %v10450_v33 = vpop.f32.mrf.mxu0  ;;  %8663 = vmatmul.mubr.msk.bf16.gmra.mxu0 %vm328_vm1, %v9402_v36  ;;  %v1839_v62 = vpop.f32.mrf.mxu1  ;;  %v3438_v8 = vadd.f32 %v3437_v45, %v2776_v19  ;;  %v2796_v12 = vmax.f32 %v10446_v30, 0.0 }
 0x2dd   :  { %2120 = vmatprep.mubr.bf16.mxu0 %v10884_v38  ;;  %v3514_v17 = vadd.f32 %v3513_v15, %v2798_v11  ;;  %v2807_v34 = vmax.f32 %v1839_v62, 0.0  ;;  %v3401_v3 = vadd.f32 %v3400_v25, %v2775_v54  ;;  %v2805_v42 = vmax.f32 %v10450_v33, 0.0 }
 0x2de   :  { %v10461_v6 = vpop.f32.mrf.mxu0  ;;  %v1841_v58 = vpop.f32.mrf.mxu1  ;;  %v3151_v15 = vrot.slane %v3150_v32, 4  ;;  %v3439_v26 = vadd.f32 %v3438_v8, %v2786_v2  ;;  %v3115_v11 = vadd.f32 %v3114_v14, %v10232_v40 }
 0x2df   :  { %v3478_v57 = vadd.f32 %v3477_v37, %v2807_v34  ;;  %v2808_v20 = vmax.f32 %v1841_v58, 0.0  ;;  %v3402_v10 = vadd.f32 %v3401_v3, %v2785_v41  ;;  %v2806_v30 = vmax.f32 %v10461_v6, 0.0 }
 0x2e0   :  { %v1490_v28 = vpop.f32.mrf.mxu0  ;;  %v1843_v53 = vpop.f32.mrf.mxu1  ;;  %v3078_v37 = vadd.f32 %v3077_v5, %v10230_v35  ;;  %v3440_v33 = vadd.f32 %v3439_v26, %v2796_v12  ;;  %v3152_v6 = vadd.f32 %v3151_v15, %v3150_v32  ;;  %v4161_v12 = vld [vmem:[#allocation5 + $0x1040] sm:$0xff] }
 0x2e1   :  { %v3515_v22 = vadd.f32 %v3514_v17, %v2808_v20  ;;  %v2817_v9 = vmax.f32 %v1843_v53, 0.0  ;;  %v3403_v31 = vadd.f32 %v3402_v10, %v2795_v18  ;;  %v2815_v36 = vmax.f32 %v1490_v28, 0.0 }
 0x2e2   :  { %v1492_v0 = vpop.f32.mrf.mxu0  ;;  %v1845_v55 = vpop.f32.mrf.mxu1  ;;  %v3043_v17 = vadd.f32 %v3042_v7, %v3041_v59  ;;  %v3441_v34 = vadd.f32 %v3440_v33, %v2806_v30  ;;  %v3079_v43 = vrot.slane %v3078_v37, 2  ;;  %v3153_v53 = vrot.slane %v3152_v6, 2 }
 0x2e3   :  { %v3479_v61 = vadd.f32 %v3478_v57, %v2817_v9  ;;  %v2818_v29 = vmax.f32 %v1845_v55, 0.0  ;;  %v2816_v39 = vmax.f32 %v1492_v0, 0.0  ;;  %v3404_v49 = vadd.f32 %v3403_v31, %v2805_v42  ;;  %v9404_v57 = vld [vmem:[%s10863_s0 + $0xb8] sm:$0xff]  }
 0x2e4   :  { %v1496_v13 = vpop.f32.mrf.mxu0  ;;  %8664 = vmatmul.mubr.msk.bf16.gmra.mxu0 %vm328_vm1, %v9403_v60  ;;  %v1849_v47 = vpop.f32.mrf.mxu1  ;;  %v3044_v2 = vrot.slane %v3043_v17, 1  ;;  %v3116_v0 = vrot.slane %v3115_v11, 2  ;;  %v3080_v55 = vadd.f32 %v3079_v43, %v3078_v37 }
 0x2e5   :  { %2130 = vmatprep.mubr.bf16.mxu0 %v10884_v38  ;;  %v3516_v16 = vadd.f32 %v3515_v22, %v2818_v29  ;;  %v2827_v1 = vmax.f32 %v1849_v47, 0.0  ;;  %v2825_v62 = vmax.f32 %v1496_v13, 0.0  ;;  %v3405_v19 = vadd.f32 %v3404_v49, %v2815_v36  ;;  %v4165_v13 = vld [vmem:[#allocation5 + $0x1060] sm:$0xff] }
 0x2e6   :  { %v1498_v21 = vpop.f32.mrf.mxu0  ;;  %v1851_v52 = vpop.f32.mrf.mxu1  ;;  %v3442_v40 = vadd.f32 %v3441_v34, %v2816_v39  ;;  %v9195_v29 = vcombine.high %v4161_v12, %v4165_v13  ;;  %v3154_v47 = vadd.f32 %v3153_v53, %v3152_v6  ;;  %v3045_v37 = vadd.f32 %v3044_v2, %v3043_v17 }
 0x2e7   :  { %v3480_v50 = vadd.f32 %v3479_v61, %v2827_v1  ;;  %v2828_v54 = vmax.f32 %v1851_v52, 0.0  ;;  %v2826_v51 = vmax.f32 %v1498_v21, 0.0  ;;  %v3406_v20 = vadd.f32 %v3405_v19, %v2825_v62 }
 0x2e8   :  { %v1500_v48 = vpop.f32.mrf.mxu0  ;;  %v1853_v46 = vpop.f32.mrf.mxu1  ;;  %v9194_v61 = vcombine.low %v4161_v12, %v4165_v13  ;;  %v3117_v21 = vadd.f32 %v3116_v0, %v3115_v11  ;;  %7770 = vmatprep.subr.bf16.mxu0 %v9195_v29  ;;  %v3081_v52 = vrot.slane %v3080_v55, 1  ;;  %v3605_v43 = vmul.f32 0.00390625, %v3045_v37 }
 0x2e9   :  { %v2835_v28 = vmax.f32 %v1500_v48, 0.0  ;;  %v3517_v58 = vadd.f32 %v3516_v16, %v2828_v54  ;;  %v2837_v35 = vmax.f32 %v1853_v46, 0.0  ;;  %v3443_v3 = vadd.f32 %v3442_v40, %v2826_v51 }
 0x2ea   :  { %v1502_v24 = vpop.f32.mrf.mxu0  ;;  %v1855_v41 = vpop.f32.mrf.mxu1  ;;  %7771 = vmatpush1.bf16.msra.mxu0 %v9194_v61  ;;  %v3118_v51 = vrot.slane %v3117_v21, 1  ;;  %v3082_v40 = vadd.f32 %v3081_v52, %v3080_v55 }
 0x2eb   :  { %v2836_v23 = vmax.f32 %v1502_v24, 0.0  ;;  %v3481_v59 = vadd.f32 %v3480_v50, %v2837_v35  ;;  %v2838_v45 = vmax.f32 %v1855_v41, 0.0  ;;  %v3407_v9 = vadd.f32 %v3406_v20, %v2835_v28  ;;  %v9405_v50 = vld [vmem:[%s10863_s0 + $0xc0] sm:$0xff]  }
 0x2ec   :  { %v1506_v25 = vpop.f32.mrf.mxu0  ;;  %8665 = vmatmul.mubr.msk.bf16.gmra.mxu0 %vm328_vm1, %v9404_v57  ;;  %v1859_v22 = vpop.f32.mrf.mxu1  ;;  %v3155_v24 = vrot.slane %v3154_v47, 1 }
 0x2ed   :  { %v2845_v32 = vmax.f32 %v1506_v25, 0.0  ;;  %2140 = vmatprep.mubr.bf16.mxu0 %v10884_v38  ;;  %v3518_v5 = vadd.f32 %v3517_v58, %v2838_v45  ;;  %v2847_v8 = vmax.f32 %v1859_v22, 0.0  ;;  %v3444_v60 = vadd.f32 %v3443_v3, %v2836_v23 }
 0x2ee   :  { %v1508_v18 = vpop.f32.mrf.mxu0  ;;  %v1861_v42 = vpop.f32.mrf.mxu1  ;;  %v3156_v45 = vadd.f32 %v3155_v24, %v3154_v47 }
 0x2ef   :  { %v2846_v14 = vmax.f32 %v1508_v18, 0.0  ;;  %v3408_v7 = vadd.f32 %v3407_v9, %v2845_v32  ;;  %v3482_v15 = vadd.f32 %v3481_v59, %v2847_v8  ;;  %v2848_v30 = vmax.f32 %v1861_v42, 0.0 }
 0x2f0   :  { %v1510_v10 = vpop.f32.mrf.mxu0  ;;  %v1863_v16 = vpop.f32.mrf.mxu1  ;;  %v3119_v32 = vadd.f32 %v3118_v51, %v3117_v21 }
 0x2f1   :  { %v2855_v26 = vmax.f32 %v1510_v10, 0.0  ;;  %v3445_v31 = vadd.f32 %v3444_v60, %v2846_v14  ;;  %v3519_v33 = vadd.f32 %v3518_v5, %v2848_v30  ;;  %v2857_v48 = vmax.f32 %v1863_v16, 0.0  ;;  %v9406_v60 = vld [vmem:[%s10863_s0 + $0xc8] sm:$0xff]  }
 0x2f2   :  { %v1512_v36 = vpop.f32.mrf.mxu0  ;;  %v1865_v49 = vpop.f32.mrf.mxu1  ;;  %v3606_v14 = vmul.f32 0.00390625, %v3082_v40 }
 0x2f3   :  { %v3409_v1 = vadd.f32 %v3408_v7, %v2855_v26  ;;  %v2856_v39 = vmax.f32 %v1512_v36, 0.0  ;;  %v3483_v6 = vadd.f32 %v3482_v15, %v2857_v48  ;;  %v2858_v34 = vmax.f32 %v1865_v49, 0.0 }
 0x2f4   :  { %v1902_v62 = vpop.f32.mrf.mxu0  ;;  %8666 = vmatmul.mubr.msk.bf16.gmra.mxu0 %vm328_vm1, %v9405_v50  ;;  %v10492_v19 = vpop.f32.mrf.mxu1  ;;  %v3607_v15 = vmul.f32 0.00390625, %v3119_v32  ;;  %v3608_v26 = vmul.f32 0.00390625, %v3156_v45 }
 0x2f5   :  { %v3410_v11 = vrot.slane %v3409_v1, 4  ;;  %v3446_v54 = vadd.f32 %v3445_v31, %v2856_v39  ;;  %2150 = vmatprep.mubr.bf16.mxu0 %v10884_v38  ;;  %v3484_v58 = vrot.slane %v3483_v6, 4  ;;  %v3520_v35 = vadd.f32 %v3519_v33, %v2858_v34 }
 0x2f6   :  { %v1904_v46 = vpop.f32.mrf.mxu0  ;;  %v10494_v25 = vpop.f32.mrf.mxu1  ;;  %v2229_v2 = vmax.f32 %v1902_v62, 0.0  ;;  %v3625_v33 = vpack.c.bf16 %v3605_v43, %v3605_v43  ;;  %v3626_v39 = vpack.c.bf16 %v3606_v14, %v3606_v14 }
 0x2f7   :  { %v3411_v17 = vadd.f32 %v3410_v11, %v3409_v1  ;;  %v3447_v28 = vrot.slane %v3446_v54, 4  ;;  %v3485_v20 = vadd.f32 %v3484_v58, %v3483_v6  ;;  %v3521_v59 = vrot.slane %v3520_v35, 4 }
 0x2f8   :  { %v1906_v23 = vpop.f32.mrf.mxu0  ;;  %v7632_v3 = vpop.f32.mrf.mxu1  ;;  %v2230_v8 = vmax.f32 %v1904_v46, 0.0  ;;  %v3628_v6 = vpack.c.bf16 %v3608_v26, %v3608_v26  ;;  %v4348_v40 = vunpack.c.l.b16 %v3626_v39 }
 0x2f9   :  { %v3412_v41 = vrot.slane %v3411_v17, 2  ;;  %v3448_v57 = vadd.f32 %v3447_v28, %v3446_v54  ;;  %v2239_v0 = vmax.f32 %v1906_v23, 0.0  ;;  %v3486_v9 = vrot.slane %v3485_v20, 2 }
 0x2fa   :  { %v1908_v53 = vpop.f32.mrf.mxu0  ;;  %v3522_v5 = vadd.f32 %v3521_v59, %v3520_v35  ;;  %v7633_v10 = vpop.f32.mrf.mxu1  ;;  %v3627_v54 = vpack.c.bf16 %v3607_v15, %v3607_v15  ;;  %v4347_v35 = vunpack.c.l.b16 %v3625_v33 }
 0x2fb   :  { %v3413_v18 = vadd.f32 %v3412_v41, %v3411_v17  ;;  %v3449_v22 = vrot.slane %v3448_v57, 2  ;;  %v3157_v12 = vadd.f32 %v2239_v0, %v2229_v2  ;;  %v2240_v13 = vmax.f32 %v1908_v53, 0.0 }
 0x2fc   :  { %v1912_v55 = vpop.f32.mrf.mxu0  ;;  %8667 = vmatmul.mubr.msk.bf16.gmra.mxu0 %vm328_vm1, %v9406_v60  ;;  %v3487_v29 = vadd.f32 %v3486_v9, %v3485_v20  ;;  %v3523_v7 = vrot.slane %v3522_v5, 2  ;;  %v4349_v2 = vunpack.c.l.b16 %v3627_v54  ;;  %v4350_v0 = vunpack.c.l.b16 %v3628_v6 }
 0x2fd   :  { %v3414_v42 = vrot.slane %v3413_v18, 1  ;;  %v3450_v61 = vadd.f32 %v3449_v22, %v3448_v57  ;;  %2160 = vmatprep.mubr.bf16.mxu0 %v10884_v38  ;;  %v3194_v30 = vadd.f32 %v2240_v13, %v2230_v8  ;;  %v2249_v21 = vmax.f32 %v1912_v55, 0.0  ;;  %v9407_v57 = vld [vmem:[%s10863_s0 + $0xd0] sm:$0xff]  }
 0x2fe   :  { %v1914_v47 = vpop.f32.mrf.mxu0  ;;  %v3488_v16 = vrot.slane %v3487_v29, 1  ;;  %v3524_v1 = vadd.f32 %v3523_v7, %v3522_v5  ;;  %v4073_v22 = vld [vmem:[#allocation5 + $0xd80] sm:$0xff]  ;;  %v10886_v54 = vcombine.low %v10268_v56, %v10270_v63 }
 0x2ff   :  { %v3415_v31 = vadd.f32 %v3414_v42, %v3413_v18  ;;  %v3451_v36 = vrot.slane %v3450_v61, 1  ;;  %v3158_v48 = vadd.f32 %v3157_v12, %v2249_v21  ;;  %v2250_v37 = vmax.f32 %v1914_v47, 0.0  ;;  %v4077_v12 = vld [vmem:[#allocation5 + $0xda0] sm:$0xff] }
 0x300   :  { %v1916_v52 = vpop.f32.mrf.mxu0  ;;  %v3489_v50 = vadd.f32 %v3488_v16, %v3487_v29  ;;  %v3525_v11 = vrot.slane %v3524_v1, 1  ;;  %v4153_v13 = vld [vmem:[#allocation5 + $0x1000] sm:$0xff] }
 0x301   :  { %v3615_v49 = vmul.f32 0.00390625, %v3415_v31  ;;  %v3452_v62 = vadd.f32 %v3451_v36, %v3450_v61  ;;  %v3195_v34 = vadd.f32 %v3194_v30, %v2250_v37  ;;  %v2259_v51 = vmax.f32 %v1916_v52, 0.0  ;;  %v4157_v55 = vld [vmem:[#allocation5 + $0x1020] sm:$0xff] }
 0x302   :  { %v1918_v24 = vpop.f32.mrf.mxu0  ;;  %v3617_v28 = vmul.f32 0.00390625, %v3489_v50  ;;  %v3526_v58 = vadd.f32 %v3525_v11, %v3524_v1  ;;  %v9186_v61 = vcombine.low %v4153_v13, %v4157_v55  ;;  %v9187_v29 = vcombine.high %v4153_v13, %v4157_v55  ;;  %v9408_v37 = vld [vmem:[%s10863_s0 + $0xd8] sm:$0xff]  }
 0x303   :  { %v3635_v46 = vpack.c.bf16 %v3615_v49, %v3615_v49  ;;  %v3616_v17 = vmul.f32 0.00390625, %v3452_v62  ;;  %v3159_v43 = vadd.f32 %v3158_v48, %v2259_v51  ;;  %v2260_v23 = vmax.f32 %v1918_v24, 0.0  ;;  %v4065_v49 = vld [vmem:[#allocation5 + $0xd40] sm:$0xff] }
 0x304   :  { %v1922_v41 = vpop.f32.mrf.mxu0  ;;  %8668 = vmatmul.mubr.msk.bf16.gmra.mxu0 %vm328_vm1, %v9407_v57  ;;  %v3637_v32 = vpack.c.bf16 %v3617_v28, %v3617_v28  ;;  %v3618_v45 = vmul.f32 0.00390625, %v3526_v58  ;;  %v9107_v31 = vcombine.high %v4073_v22, %v4077_v12  ;;  %7772 = vmatprep.subr.bf16.mxu0 %v9187_v29  ;;  %v4069_v62 = vld [vmem:[#allocation5 + $0xd60] sm:$0xff] }
 0x305   :  { %v4357_v20 = vunpack.c.l.b16 %v3635_v46  ;;  %v3636_v59 = vpack.c.bf16 %v3616_v17, %v3616_v17  ;;  %2170 = vmatprep.mubr.bf16.mxu0 %v10884_v38  ;;  %v3196_v53 = vadd.f32 %v3195_v34, %v2260_v23  ;;  %v2269_v3 = vmax.f32 %v1922_v41, 0.0  ;;  %7773 = vmatpush1.bf16.msra.mxu0 %v9186_v61  ;;  %v4273_v17 = vld [vmem:[#allocation5 + $0x13c0] sm:$0xff] }
 0x306   :  { %v1924_v18 = vpop.f32.mrf.mxu0  ;;  %v4359_v5 = vunpack.c.l.b16 %v3637_v32  ;;  %v3638_v14 = vpack.c.bf16 %v3618_v45, %v3618_v45  ;;  %v9106_v34 = vcombine.low %v4073_v22, %v4077_v12  ;;  %v9099_v46 = vcombine.high %v4065_v49, %v4069_v62  ;;  %v4277_v28 = vld [vmem:[#allocation5 + $0x13e0] sm:$0xff] }
 0x307   :  { %v4358_v9 = vunpack.c.l.b16 %v3636_v59  ;;  %v2270_v8 = vmax.f32 %v1924_v18, 0.0  ;;  %v3160_v60 = vadd.f32 %v3159_v43, %v2269_v3  ;;  %v4368_v42 = vsel %vm4363_vm2, %v4357_v20, %v4347_v35  ;;  %v4057_v35 = vld [vmem:[#allocation5 + $0xd00] sm:$0xff] }
 0x308   :  { %v1926_v10 = vpop.f32.mrf.mxu0  ;;  %v4360_v7 = vunpack.c.l.b16 %v3638_v14  ;;  %v10511_v36 = vsel %vm4363_vm2, %v4359_v5, %v4349_v2  ;;  %v10513_v33 = vpack.c.b16 %v4368_v42, %v4368_v42  ;;  %v9306_v43 = vcombine.low %v4273_v17, %v4277_v28  ;;  %v9409_v2 = vld [vmem:[%s10863_s0 + $0xe0] sm:$0xff]   ;;  %v4041_v13 = vld [vmem:[#allocation5 + $0xc80] sm:$0xff] }
 0x309   :  { %v3197_v15 = vadd.f32 %v3196_v53, %v2270_v8  ;;  %v2279_v26 = vmax.f32 %v1926_v10, 0.0  ;;  %v4369_v30 = vsel %vm4363_vm2, %v4358_v9, %v4348_v40  ;;  %v4061_v40 = vld [vmem:[#allocation5 + $0xd20] sm:$0xff]  ;;  %v9307_v23 = vcombine.high %v4273_v17, %v4277_v28 }
 0x30a   :  { %v1928_v21 = vpop.f32.mrf.mxu0  ;;  %v10508_v47 = vpack.c.b16 %v4369_v30, %v4369_v30  ;;  %v4371_v39 = vsel %vm4363_vm2, %v4360_v7, %v4350_v0  ;;  %v9098_v63 = vcombine.low %v4065_v49, %v4069_v62  ;;  %v9091_v32 = vcombine.high %v4057_v35, %v4061_v40  ;;  %v4049_v0 = vld [vmem:[#allocation5 + $0xcc0] sm:$0xff]  ;;  %v9410_v30 = vld [vmem:[%s10863_s0 + $0xe8] sm:$0xff]  }
 0x30b   :  { %v3161_v16 = vadd.f32 %v3160_v60, %v2279_v26  ;;  %v2280_v1 = vmax.f32 %v1928_v21, 0.0  ;;  %v10521_v52 = vpack.c.b16 %v4371_v39, %v4371_v39  ;;  %7774 = vmatprep.subr.bf16.mxu0 %v9307_v23  ;;  %v4053_v53 = vld [vmem:[#allocation5 + $0xce0] sm:$0xff]  ;;  %v9090_v9 = vcombine.low %v4057_v35, %v4061_v40 }
 0x30c   :  { %10885 = vst [vmem:[#allocation16_spill] sm:$0xff] %v10508_v47  ;;  %v1932_v48 = vpop.f32.mrf.mxu0  ;;  %8669 = vmatmul.mubr.msk.bf16.gmra.mxu0 %vm328_vm1, %v9408_v37  ;;  %7708 = vmatprep.mubr.bf16.mxu1 %v10508_v47  ;;  %v9083_v8 = vcombine.high %v4049_v0, %v4053_v53  ;;  %v4045_v55 = vld [vmem:[#allocation5 + $0xca0] sm:$0xff]  ;;  %v9082_v61 = vcombine.low %v4049_v0, %v4053_v53 }
 0x30d   :  { %v3198_v50 = vadd.f32 %v3197_v15, %v2280_v1  ;;  %v2289_v11 = vmax.f32 %v1932_v48, 0.0  ;;  %7709 = vmatmul.mubr.bf16.vlgmr.msra.gmra.mxu1 %v10513_v33  ;;  %2180 = vmatprep.mubr.bf16.mxu0 %v10884_v38  ;;  %v9075_v15 = vcombine.high %v4041_v13, %v4045_v55  ;;  %v4033_v21 = vld [vmem:[#allocation5 + $0xc40] sm:$0xff]  ;;  %v9074_v39 = vcombine.low %v4041_v13, %v4045_v55 }
 0x30e   :  { %7718 = vmatpush1.bf16.msra.mxu1 %v10886_v54  ;;  %v1934_v6 = vpop.f32.mrf.mxu0  ;;  %7749 = vmatprep.mubr.bf16.mxu1 %v10521_v52  ;;  %v9412_v55 = vld [vmem:[%s10863_s0 + $0xf8] sm:$0xff]  }
 0x30f   :  { %v3162_v51 = vadd.f32 %v3161_v16, %v2289_v11  ;;  %v2290_v24 = vmax.f32 %v1934_v6, 0.0  ;;  %7719 = vmatprep.subr.bf16.mxu1 %v9107_v31  ;;  %7775 = vmatpush2.bf16.msra.mxu0 %v9306_v43  ;;  %v4037_v31 = vld [vmem:[#allocation5 + $0xc60] sm:$0xff] }
 0x310   :  { %v1936_v58 = vpop.f32.mrf.mxu0  ;;  %v9067_v62 = vcombine.high %v4033_v21, %v4037_v31  ;;  %v4269_v11 = vld [vmem:[#allocation5 + $0x13a0] sm:$0xff] }
 0x311   :  { %v3199_v41 = vadd.f32 %v3198_v50, %v2290_v24  ;;  %v2299_v57 = vmax.f32 %v1936_v58, 0.0  ;;  %v4265_v50 = vld [vmem:[#allocation5 + $0x1380] sm:$0xff]  ;;  %v9066_v58 = vcombine.low %v4033_v21, %v4037_v31 }
 0x312   :  { %7720 = vmatpush1.bf16.msra.mxu1 %v9106_v34  ;;  %v1938_v56 = vpop.f32.mrf.mxu0  ;;  %v4025_v6 = vld [vmem:[#allocation5 + $0xc00] sm:$0xff]  ;;  %v9299_v24 = vcombine.high %v4265_v50, %v4269_v11 }
 0x313   :  { %v3163_v20 = vadd.f32 %v3162_v51, %v2299_v57  ;;  %v2300_v59 = vmax.f32 %v1938_v56, 0.0  ;;  %7721 = vmatprep.subr.bf16.mxu1 %v9099_v46  ;;  %v4029_v34 = vld [vmem:[#allocation5 + $0xc20] sm:$0xff]  ;;  %v9298_v51 = vcombine.low %v4265_v50, %v4269_v11 }
 0x314   :  { %v1942_v45 = vpop.f32.mrf.mxu0  ;;  %8670 = vmatmul.mubr.msk.bf16.gmra.mxu0 %vm328_vm1, %v9409_v2  ;;  %7776 = vmatprep.subr.bf16.mxu0 %v9299_v24  ;;  %v9059_v43 = vcombine.high %v4025_v6, %v4029_v34  ;;  %v4145_v57 = vld [vmem:[#allocation5 + $0xfc0] sm:$0xff] }
 0x315   :  { %v3200_v3 = vadd.f32 %v3199_v41, %v2300_v59  ;;  %v2309_v18 = vmax.f32 %v1942_v45, 0.0  ;;  %2190 = vmatprep.mubr.bf16.mxu0 %v10884_v38  ;;  %7777 = vmatpush2.bf16.msra.mxu0 %v9298_v51  ;;  %v9411_v41 = vld [vmem:[%s10863_s0 + $0xf0] sm:$0xff]   ;;  %v9058_v59 = vcombine.low %v4025_v6, %v4029_v34  ;;  %s9507_s0 = smov [#allocation8]  }
 0x316   :  { %7722 = vmatpush1.bf16.msra.mxu1 %v9098_v63  ;;  %v1944_v22 = vpop.f32.mrf.mxu0  ;;  %v4149_v56 = vld [vmem:[#allocation5 + $0xfe0] sm:$0xff]  ;;  %s8466_s7 = sshll.u32 %s9507_s0, 4  ;;  %s8467_s7 = int_to_ptr.vmem [resolvable:$true] %s8466_s7 }
 0x317   :  { %v3164_v5 = vadd.f32 %v3163_v20, %v2309_v18  ;;  %v2310_v14 = vmax.f32 %v1944_v22, 0.0  ;;  %7723 = vmatprep.subr.bf16.mxu1 %v9091_v32  ;;  %v9179_v0 = vcombine.high %v4145_v57, %v4149_v56  ;;  %v4141_v18 = vld [vmem:[#allocation5 + $0xfa0] sm:$0xff]  ;;  %s9474_s8 = scalar_lea.vmem %s8467_s7, 256  ;;  %p9479_p2 = scmp.lt.s32.totalorder %s8467_s7, %s8467_s7 }
 0x318   :  { %v1946_v12 = vpop.f32.mrf.mxu0  ;;  %p9475_p1 = scmp.ne.s32.totalorder %s8467_s7, %s9474_s8  ;;  %p9480_p3 = scmp.lt.s32.totalorder %s9474_s8, %s9474_s8 }
 0x319   :  { %v3201_v60 = vadd.f32 %v3200_v3, %v2310_v14  ;;  %v2319_v10 = vmax.f32 %v1946_v12, 0.0  ;;  %v4137_v3 = vld [vmem:[#allocation5 + $0xf80] sm:$0xff]  ;;  %v9178_v14 = vcombine.low %v4145_v57, %v4149_v56 }
 0x31a   :  { %7724 = vmatpush1.bf16.msra.mxu1 %v9090_v9  ;;  %v1948_v42 = vpop.f32.mrf.mxu0  ;;  %p9481_p4 = por %p9480_p3, %p9479_p2 }
 0x31b   :  { %v3165_v29 = vadd.f32 %v3164_v5, %v2319_v10  ;;  %v2320_v7 = vmax.f32 %v1948_v42, 0.0  ;;  %7725 = vmatprep.subr.bf16.mxu1 %v9083_v8  ;;  %v4133_v10 = vld [vmem:[#allocation5 + $0xf60] sm:$0xff]  ;;  %v4285_v42 = vsub.s32 0, %v9544_v4 }
 0x31c   :  { %v1952_v26 = vpop.f32.mrf.mxu0  ;;  %8671 = vmatmul.mubr.msk.bf16.gmra.mxu0 %vm328_vm1, %v9410_v30  ;;  %p9482_p5 = pnand %p9481_p4, %p9475_p1 }
 0x31d   :  { %v2329_v16 = vmax.f32 %v1952_v26, 0.0  ;;  %2200 = vmatprep.mubr.bf16.mxu0 %v10884_v38  ;;  %v3202_v48 = vadd.f32 %v3201_v60, %v2320_v7  ;;  %v4129_v60 = vld [vmem:[#allocation5 + $0xf40] sm:$0xff]  ;;  %v4289_v7 = vsub.s32 1, %v9544_v4  ;;  %v9170_v26 = vcombine.low %v4137_v3, %v4141_v18 }
 0x31e   :  { %7726 = vmatpush1.bf16.msra.mxu1 %v9082_v61  ;;  %v1954_v1 = vpop.f32.mrf.mxu0  ;;  %v9162_v24 = vcombine.low %v4129_v60, %v4133_v10 }
 0x31f   :  { %v3166_v37 = vadd.f32 %v3165_v29, %v2329_v16  ;;  %v2330_v49 = vmax.f32 %v1954_v1, 0.0  ;;  %7727 = vmatprep.subr.bf16.mxu1 %v9075_v15  ;;  %v4281_v29 = vld [vmem:[#allocation7] sm:$0xff]  ;;  %v9163_v16 = vcombine.high %v4129_v60, %v4133_v10 }
 0x320   :  { %v1956_v54 = vpop.f32.mrf.mxu0  ;;  %v4257_v1 = vld [vmem:[#allocation5 + $0x1340] sm:$0xff]  ;;  %v4286_v11 = vrot.slane %v4281_v29, %v4285_v42  ;;  %v4290_v34 = vrot.slane %v4281_v29, %v4289_v7 }
 0x321   :  { %v3203_v46 = vadd.f32 %v3202_v48, %v2330_v49  ;;  %v2339_v17 = vmax.f32 %v1956_v54, 0.0  ;;  %v4125_v49 = vld [vmem:[#allocation5 + $0xf20] sm:$0xff] }
 0x322   :  { %7728 = vmatpush1.bf16.msra.mxu1 %v9074_v39  ;;  %v1958_v28 = vpop.f32.mrf.mxu0  ;;  %v4261_v39 = vld [vmem:[#allocation5 + $0x1360] sm:$0xff] }
 0x323   :  { %v3167_v35 = vadd.f32 %v3166_v37, %v2339_v17  ;;  %v2340_v40 = vmax.f32 %v1958_v28, 0.0  ;;  %7729 = vmatprep.subr.bf16.mxu1 %v9067_v62  ;;  %v4121_v37 = vld [vmem:[#allocation5 + $0xf00] sm:$0xff]  ;;  %v9290_v62 = vcombine.low %v4257_v1, %v4261_v39  ;;  %v9291_v50 = vcombine.high %v4257_v1, %v4261_v39 }
 0x324   :  { %v1962_v23 = vpop.f32.mrf.mxu0  ;;  %8672 = vmatmul.mubr.msk.bf16.gmra.mxu0 %vm328_vm1, %v9411_v41  ;;  %v9155_v28 = vcombine.high %v4121_v37, %v4125_v49  ;;  %v7631_v41 = vadd.f32 %v10494_v25, %v4290_v34  ;;  %v4097_v60 = vld [vmem:[#allocation5 + $0xe40] sm:$0xff] }
 0x325   :  { %v2349_v63 = vmax.f32 %v1962_v23, 0.0  ;;  %2210 = vmatprep.mubr.bf16.mxu0 %v10884_v38  ;;  %v3204_v32 = vadd.f32 %v3203_v46, %v2340_v40  ;;  %v9171_v38 = vcombine.high %v4137_v3, %v4141_v18  ;;  %7778 = vmatprep.subr.bf16.mxu0 %v9291_v50  ;;  %v4105_v3 = vld [vmem:[#allocation5 + $0xe80] sm:$0xff] }
 0x326   :  { %7730 = vmatpush1.bf16.msra.mxu1 %v9066_v58  ;;  %v1964_v20 = vpop.f32.mrf.mxu0  ;;  %v4113_v58 = vld [vmem:[#allocation5 + $0xec0] sm:$0xff]  ;;  %7779 = vmatpush2.bf16.msra.mxu0 %v9290_v62 }
 0x327   :  { %v3168_v45 = vadd.f32 %v3167_v35, %v2349_v63  ;;  %v2350_v2 = vmax.f32 %v1964_v20, 0.0  ;;  %7731 = vmatprep.subr.bf16.mxu1 %v9059_v43  ;;  %v4117_v35 = vld [vmem:[#allocation5 + $0xee0] sm:$0xff]  ;;  %v7629_v43 = vadd.f32 %v10492_v19, %v4286_v11  ;;  %v9154_v63 = vcombine.low %v4121_v37, %v4125_v49 }
 0x328   :  { %v1966_v53 = vpop.f32.mrf.mxu0  ;;  %v9147_v20 = vcombine.high %v4113_v58, %v4117_v35  ;;  %v4109_v18 = vld [vmem:[#allocation5 + $0xea0] sm:$0xff] }
 0x329   :  { %v3205_v22 = vadd.f32 %v3204_v32, %v2350_v2  ;;  %v2359_v9 = vmax.f32 %v1966_v53, 0.0  ;;  %v4101_v10 = vld [vmem:[#allocation5 + $0xe60] sm:$0xff]  ;;  %v9138_v29 = vcombine.low %v4105_v3, %v4109_v18 }
 0x32a   :  { %7732 = vmatpush1.bf16.msra.mxu1 %v9058_v59  ;;  %v1968_v5 = vpop.f32.mrf.mxu0  ;;  %v4089_v1 = vld [vmem:[#allocation5 + $0xe00] sm:$0xff]  ;;  %v9130_v11 = vcombine.low %v4097_v60, %v4101_v10 }
 0x32b   :  { %v3169_v8 = vadd.f32 %v3168_v45, %v2359_v9  ;;  %v2360_v12 = vmax.f32 %v1968_v5, 0.0  ;;  %7733 = vmatprep.subr.bf16.mxu1 %v9179_v0  ;;  %v4093_v39 = vld [vmem:[#allocation5 + $0xe20] sm:$0xff] }
 0x32c   :  { %v1972_v13 = vpop.f32.mrf.mxu0  ;;  %8673 = vmatmul.mubr.msk.bf16.gmra.mxu0 %vm328_vm1, %v9412_v55  ;;  %v9123_v34 = vcombine.high %v4089_v1, %v4093_v39 }
 0x32d   :  { %v2369_v61 = vmax.f32 %v1972_v13, 0.0  ;;  %v3206_v30 = vadd.f32 %v3205_v22, %v2360_v12 }
 0x32e   :  { %7734 = vmatpush2.bf16.msra.mxu1 %v9178_v14  ;;  %v1974_v15 = vpop.f32.mrf.mxu0  ;;  %v9146_v14 = vcombine.low %v4113_v58, %v4117_v35  ;;  %v9122_v58 = vcombine.low %v4089_v1, %v4093_v39  ;;  %v3666_v39 = vld [vmem:[#allocation5 + $0xc8] sm:$0xff] }
 0x32f   :  { %v3170_v21 = vadd.f32 %v3169_v8, %v2369_v61  ;;  %v2370_v31 = vmax.f32 %v1974_v15, 0.0  ;;  %7735 = vmatprep.subr.bf16.mxu1 %v9171_v38  ;;  %v9139_v38 = vcombine.high %v4105_v3, %v4109_v18 }
 0x330   :  { %v1976_v48 = vpop.f32.mrf.mxu0 }
 0x331   :  { %v3207_v54 = vadd.f32 %v3206_v30, %v2370_v31  ;;  %v2379_v6 = vmax.f32 %v1976_v48, 0.0  ;;  %v9131_v30 = vcombine.high %v4097_v60, %v4101_v10  ;;  %v4253_v31 = vld [vmem:[#allocation5 + $0x1320] sm:$0xff]  ;;  %v3674_v10 = vld [vmem:[#allocation5 + $0x108] sm:$0xff] }
 0x332   :  { %7736 = vmatpush2.bf16.msra.mxu1 %v9170_v26  ;;  %v1978_v51 = vpop.f32.mrf.mxu0 }
 0x333   :  { %v3171_v46 = vadd.f32 %v3170_v21, %v2379_v6  ;;  %v2380_v17 = vmax.f32 %v1978_v51, 0.0  ;;  %7737 = vmatprep.subr.bf16.mxu1 %v9163_v16  ;;  %v4249_v21 = vld [vmem:[#allocation5 + $0x1300] sm:$0xff] }
 0x334   :  { %v1982_v40 = vpop.f32.mrf.mxu0  ;;  %v7669_v57 = vpop.f32.mrf.mxu1  ;;  %v9282_v48 = vcombine.low %v4249_v21, %v4253_v31  ;;  %v9283_v37 = vcombine.high %v4249_v21, %v4253_v31 }
 0x335   :  { %v2389_v23 = vmax.f32 %v1982_v40, 0.0  ;;  %v3208_v59 = vadd.f32 %v3207_v54, %v2380_v17  ;;  %v10552_v45 = vadd.f32 %v7669_v57, %v7629_v43  ;;  %v3690_v57 = vld [vmem:[#allocation5 + $0x188] sm:$0xff] }
 0x336   :  { %7738 = vmatpush2.bf16.msra.mxu1 %v9162_v24  ;;  %v1984_v56 = vpop.f32.mrf.mxu0  ;;  %v7671_v0 = vpop.f32.mrf.mxu1  ;;  %7780 = vmatprep.subr.bf16.mxu0 %v9283_v37  ;;  %v3698_v24 = vld [vmem:[#allocation5 + $0x1c8] sm:$0xff] }
 0x337   :  { %v3172_v32 = vadd.f32 %v3171_v46, %v2389_v23  ;;  %v2390_v2 = vmax.f32 %v1984_v56, 0.0  ;;  %7739 = vmatprep.subr.bf16.mxu1 %v9155_v28  ;;  %v10554_v19 = vadd.f32 %v7671_v0, %v7631_v41  ;;  %7781 = vmatpush2.bf16.msra.mxu0 %v9282_v48  ;;  %v3702_v46 = vld [vmem:[#allocation5 + $0x1e8] sm:$0xff] }
 0x338   :  { %v1986_v53 = vpop.f32.mrf.mxu0  ;;  %v7673_v25 = vpop.f32.mrf.mxu1  ;;  %v8733_v23 = vcombine.high %v3698_v24, %v3702_v46  ;;  %v3694_v56 = vld [vmem:[#allocation5 + $0x1a8] sm:$0xff] }
 0x339   :  { %v3209_v22 = vadd.f32 %v3208_v59, %v2390_v2  ;;  %v2399_v9 = vmax.f32 %v1986_v53, 0.0  ;;  %v10558_v53 = vpack.c.b16 %v10511_v36, %v10511_v36  ;;  %v8725_v3 = vcombine.high %v3690_v57, %v3694_v56  ;;  %v4241_v36 = vld [vmem:[#allocation5 + $0x12c0] sm:$0xff]  ;;  %v3670_v48 = vld [vmem:[#allocation5 + $0xe8] sm:$0xff] }
 0x33a   :  { %7740 = vmatpush2.bf16.msra.mxu1 %v9154_v63  ;;  %v1988_v5 = vpop.f32.mrf.mxu0  ;;  %v7674_v13 = vpop.f32.mrf.mxu1 }
 0x33b   :  { %v3173_v8 = vadd.f32 %v3172_v32, %v2399_v9  ;;  %v2400_v12 = vmax.f32 %v1988_v5, 0.0  ;;  %7741 = vmatprep.subr.bf16.mxu1 %v9147_v20  ;;  %v8732_v32 = vcombine.low %v3698_v24, %v3702_v46  ;;  %v3686_v9 = vld [vmem:[#allocation5 + $0x168] sm:$0xff] }
 0x33c   :  { %v1992_v55 = vpop.f32.mrf.mxu0  ;;  %v3662_v24 = vld [vmem:[#allocation5 + $0xa8] sm:$0xff] }
 0x33d   :  { %v2409_v42 = vmax.f32 %v1992_v55, 0.0  ;;  %v3210_v7 = vadd.f32 %v3209_v22, %v2400_v12  ;;  %v3682_v22 = vld [vmem:[#allocation5 + $0x148] sm:$0xff]  ;;  %v4245_v55 = vld [vmem:[#allocation5 + $0x12e0] sm:$0xff] }
 0x33e   :  { %7742 = vmatpush2.bf16.msra.mxu1 %v9146_v14  ;;  %v1994_v61 = vpop.f32.mrf.mxu0  ;;  %v8724_v14 = vcombine.low %v3690_v57, %v3694_v56  ;;  %v8717_v13 = vcombine.high %v3682_v22, %v3686_v9  ;;  %v3654_v57 = vld [vmem:[#allocation5 + $0x68] sm:$0xff] }
 0x33f   :  { %v3174_v15 = vadd.f32 %v3173_v8, %v2409_v42  ;;  %v2410_v26 = vmax.f32 %v1994_v61, 0.0  ;;  %7743 = vmatprep.subr.bf16.mxu1 %v9139_v38  ;;  %v3678_v42 = vld [vmem:[#allocation5 + $0x128] sm:$0xff]  ;;  %v9274_v61 = vcombine.low %v4241_v36, %v4245_v55 }
 0x340   :  { %v1996_v16 = vpop.f32.mrf.mxu0 }
 0x341   :  { %v3211_v49 = vadd.f32 %v3210_v7, %v2410_v26  ;;  %v2419_v62 = vmax.f32 %v1996_v16, 0.0  ;;  %v8709_v16 = vcombine.high %v3674_v10, %v3678_v42 }
 0x342   :  { %7744 = vmatpush2.bf16.msra.mxu1 %v9138_v29  ;;  %v1998_v50 = vpop.f32.mrf.mxu0  ;;  %v9275_v29 = vcombine.high %v4241_v36, %v4245_v55 }
 0x343   :  { %v3175_v54 = vadd.f32 %v3174_v15, %v2419_v62  ;;  %v2420_v6 = vmax.f32 %v1998_v50, 0.0  ;;  %7745 = vmatprep.subr.bf16.mxu1 %v9131_v30  ;;  %v8716_v30 = vcombine.low %v3682_v22, %v3686_v9  ;;  %v8708_v62 = vcombine.low %v3674_v10, %v3678_v42  ;;  %v3642_v9 = vld [vmem:[#allocation5 + $0x8] sm:$0xff] }
 0x344   :  { %v2002_v51 = vpop.f32.mrf.mxu0  ;;  %7782 = vmatprep.subr.bf16.mxu0 %v9275_v29  ;;  %v3762_v42 = vld [vmem:[#allocation5 + $0x3c8] sm:$0xff] }
 0x345   :  { %v2429_v17 = vmax.f32 %v2002_v51, 0.0  ;;  %v3212_v35 = vadd.f32 %v3211_v49, %v2420_v6  ;;  %7783 = vmatpush2.bf16.msra.mxu0 %v9274_v61  ;;  %v8701_v6 = vcombine.high %v3666_v39, %v3670_v48  ;;  %v3658_v51 = vld [vmem:[#allocation5 + $0x88] sm:$0xff] }
 0x346   :  { %7746 = vmatpush2.bf16.msra.mxu1 %v9130_v11  ;;  %v2004_v28 = vpop.f32.mrf.mxu0  ;;  %v3766_v61 = vld [vmem:[#allocation5 + $0x3e8] sm:$0xff] }
 0x347   :  { %v3176_v40 = vadd.f32 %v3175_v54, %v2429_v17  ;;  %v2430_v43 = vmax.f32 %v2004_v28, 0.0  ;;  %7747 = vmatprep.subr.bf16.mxu1 %v9123_v34 }
 0x348   :  { %v2006_v41 = vpop.f32.mrf.mxu0 }
 0x349   :  { %v3213_v63 = vadd.f32 %v3212_v35, %v2430_v43  ;;  %v2439_v20 = vmax.f32 %v2006_v41, 0.0  ;;  %v8693_v43 = vcombine.high %v3658_v51, %v3662_v24  ;;  %v3650_v41 = vld [vmem:[#allocation5 + $0x48] sm:$0xff] }
 0x34a   :  { %7748 = vmatpush2.bf16.msra.mxu1 %v9122_v58  ;;  %v2008_v59 = vpop.f32.mrf.mxu0  ;;  %v8700_v58 = vcombine.low %v3666_v39, %v3670_v48  ;;  %v3758_v39 = vld [vmem:[#allocation5 + $0x3a8] sm:$0xff] }
 0x34b   :  { %v3177_v2 = vadd.f32 %v3176_v40, %v2439_v20  ;;  %v2440_v0 = vmax.f32 %v2008_v59, 0.0  ;;  %7799 = vmatprep.subr.bf16.mxu1 %v8733_v23  ;;  %v8692_v59 = vcombine.low %v3658_v51, %v3662_v24  ;;  %v3750_v51 = vld [vmem:[#allocation5 + $0x368] sm:$0xff] }
 0x34c   :  { %v2012_v18 = vpop.f32.mrf.mxu0 }
 0x34d   :  { %v2449_v25 = vmax.f32 %v2012_v18, 0.0  ;;  %7750 = vmatmul.mubr.bf16.vlgmr.msra.gmra.mxu1 %v10558_v53  ;;  %v3214_v8 = vadd.f32 %v3213_v63, %v2440_v0  ;;  %v8685_v0 = vcombine.high %v3650_v41, %v3654_v57  ;;  %v4237_v18 = vld [vmem:[#allocation5 + $0x12a0] sm:$0xff] }
 0x34e   :  { %7800 = vmatpush1.bf16.msra.mxu1 %v8732_v32  ;;  %7831 = vmatprep.mubr.bf16.mxu1 %v10156_v27  ;;  %v2014_v5 = vpop.f32.mrf.mxu0 }
 0x34f   :  { %v3178_v12 = vadd.f32 %v3177_v2, %v2449_v25  ;;  %v2450_v38 = vmax.f32 %v2014_v5, 0.0  ;;  %7801 = vmatprep.subr.bf16.mxu1 %v8725_v3  ;;  %v4233_v3 = vld [vmem:[#allocation5 + $0x1280] sm:$0xff]  ;;  %v3646_v25 = vld [vmem:[#allocation5 + $0x28] sm:$0xff] }
 0x350   :  { %v2016_v60 = vpop.f32.mrf.mxu0  ;;  %v9266_v5 = vcombine.low %v4233_v3, %v4237_v18 }
 0x351   :  { %v3215_v7 = vadd.f32 %v3214_v8, %v2450_v38  ;;  %v2459_v15 = vmax.f32 %v2016_v60, 0.0  ;;  %v8677_v60 = vcombine.high %v3642_v9, %v3646_v25 }
 0x352   :  { %7802 = vmatpush1.bf16.msra.mxu1 %v8724_v14  ;;  %v2018_v26 = vpop.f32.mrf.mxu0  ;;  %v9267_v14 = vcombine.high %v4233_v3, %v4237_v18 }
 0x353   :  { %v3179_v21 = vadd.f32 %v3178_v12, %v2459_v15  ;;  %v2460_v31 = vmax.f32 %v2018_v26, 0.0  ;;  %7803 = vmatprep.subr.bf16.mxu1 %v8717_v13  ;;  %v8684_v13 = vcombine.low %v3650_v41, %v3654_v57  ;;  %v8676_v26 = vcombine.low %v3642_v9, %v3646_v25  ;;  %v3738_v57 = vld [vmem:[#allocation5 + $0x308] sm:$0xff] }
 0x354   :  { %v2022_v1 = vpop.f32.mrf.mxu0  ;;  %7784 = vmatprep.subr.bf16.mxu0 %v9267_v14  ;;  %v3730_v25 = vld [vmem:[#allocation5 + $0x2c8] sm:$0xff] }
 0x355   :  { %v2469_v37 = vmax.f32 %v2022_v1, 0.0  ;;  %v3216_v50 = vadd.f32 %v3215_v7, %v2460_v31  ;;  %7785 = vmatpush2.bf16.msra.mxu0 %v9266_v5  ;;  %v8797_v31 = vcombine.high %v3762_v42, %v3766_v61  ;;  %v3754_v1 = vld [vmem:[#allocation5 + $0x388] sm:$0xff] }
 0x356   :  { %7804 = vmatpush1.bf16.msra.mxu1 %v8716_v30  ;;  %v2024_v49 = vpop.f32.mrf.mxu0  ;;  %v3734_v5 = vld [vmem:[#allocation5 + $0x2e8] sm:$0xff] }
 0x357   :  { %v3180_v11 = vadd.f32 %v3179_v21, %v2469_v37  ;;  %v2470_v54 = vmax.f32 %v2024_v49, 0.0  ;;  %7805 = vmatprep.subr.bf16.mxu1 %v8709_v16 }
 0x358   :  { %v2026_v34 = vpop.f32.mrf.mxu0 }
 0x359   :  { %v3217_v46 = vadd.f32 %v3216_v50, %v2470_v54  ;;  %v2479_v17 = vmax.f32 %v2026_v34, 0.0  ;;  %v8789_v54 = vcombine.high %v3754_v1, %v3758_v39  ;;  %v3746_v34 = vld [vmem:[#allocation5 + $0x348] sm:$0xff] }
 0x35a   :  { %7806 = vmatpush1.bf16.msra.mxu1 %v8708_v62  ;;  %v2028_v28 = vpop.f32.mrf.mxu0  ;;  %v8796_v62 = vcombine.low %v3762_v42, %v3766_v61 }
 0x35b   :  { %v3181_v35 = vadd.f32 %v3180_v11, %v2479_v17  ;;  %v2480_v40 = vmax.f32 %v2028_v28, 0.0  ;;  %7807 = vmatprep.subr.bf16.mxu1 %v8701_v6  ;;  %v8788_v28 = vcombine.low %v3754_v1, %v3758_v39 }
 0x35c   :  { %v2032_v23 = vpop.f32.mrf.mxu0 }
 0x35d   :  { %v3218_v56 = vadd.f32 %v3217_v46, %v2480_v40  ;;  %v2489_v63 = vmax.f32 %v2032_v23, 0.0  ;;  %v8781_v40 = vcombine.high %v3746_v34, %v3750_v51  ;;  %v4229_v23 = vld [vmem:[#allocation5 + $0x1260] sm:$0xff] }
 0x35e   :  { %7808 = vmatpush1.bf16.msra.mxu1 %v8700_v58  ;;  %v2034_v20 = vpop.f32.mrf.mxu0 }
 0x35f   :  { %v3182_v32 = vadd.f32 %v3181_v35, %v2489_v63  ;;  %v2490_v2 = vmax.f32 %v2034_v20, 0.0  ;;  %7809 = vmatprep.subr.bf16.mxu1 %v8693_v43  ;;  %v4225_v43 = vld [vmem:[#allocation5 + $0x1240] sm:$0xff] }
 0x360   :  { %v2036_v22 = vpop.f32.mrf.mxu0  ;;  %v9258_v63 = vcombine.low %v4225_v43, %v4229_v23  ;;  %v9259_v20 = vcombine.high %v4225_v43, %v4229_v23  ;;  %v10590_v43 = vld [vmem:[#allocation5 + $0x5c8] sm:$0xff] }
 0x361   :  { %v3219_v8 = vadd.f32 %v3218_v56, %v2490_v2  ;;  %v2499_v12 = vmax.f32 %v2036_v22, 0.0  ;;  %v3742_v56 = vld [vmem:[#allocation5 + $0x328] sm:$0xff] }
 0x362   :  { %7810 = vmatpush1.bf16.msra.mxu1 %v8692_v59  ;;  %v2038_v38 = vpop.f32.mrf.mxu0  ;;  %7786 = vmatprep.subr.bf16.mxu0 %v9259_v20  ;;  %v8773_v22 = vcombine.high %v3738_v57, %v3742_v56  ;;  %v10592_v23 = vld [vmem:[#allocation5 + $0x5e8] sm:$0xff] }
 0x363   :  { %v3183_v36 = vadd.f32 %v3182_v32, %v2499_v12  ;;  %v2500_v55 = vmax.f32 %v2038_v38, 0.0  ;;  %7811 = vmatprep.subr.bf16.mxu1 %v8685_v0  ;;  %v8780_v0 = vcombine.low %v3746_v34, %v3750_v51  ;;  %7787 = vmatpush2.bf16.msra.mxu0 %v9258_v63  ;;  %v8772_v12 = vcombine.low %v3738_v57, %v3742_v56  ;;  %v4221_v34 = vld [vmem:[#allocation5 + $0x1220] sm:$0xff]  ;;  %v3938_v57 = vld [vmem:[#allocation5 + $0x948] sm:$0xff] }
 0x364   :  { %v2042_v10 = vpop.f32.mrf.mxu0  ;;  %v8765_v38 = vcombine.high %v3730_v25, %v3734_v5  ;;  %v3942_v56 = vld [vmem:[#allocation5 + $0x968] sm:$0xff]  ;;  %v8861_v63 = vcombine.high %v10590_v43, %v10592_v23 }
 0x365   :  { %v3220_v29 = vadd.f32 %v3219_v8, %v2500_v55  ;;  %v2509_v7 = vmax.f32 %v2042_v10, 0.0  ;;  %v3726_v55 = vld [vmem:[#allocation5 + $0x2a8] sm:$0xff]  ;;  %v8764_v10 = vcombine.low %v3730_v25, %v3734_v5  ;;  %v8972_v5 = vcombine.low %v3938_v57, %v3942_v56 }
 0x366   :  { %7812 = vmatpush1.bf16.msra.mxu1 %v8684_v13  ;;  %v2044_v15 = vpop.f32.mrf.mxu0  ;;  %v3982_v20 = vld [vmem:[#allocation5 + $0xaa8] sm:$0xff] }
 0x367   :  { %v3184_v30 = vadd.f32 %v3183_v36, %v2509_v7  ;;  %v2510_v21 = vmax.f32 %v2044_v15, 0.0  ;;  %7813 = vmatprep.subr.bf16.mxu1 %v8677_v60  ;;  %v3722_v36 = vld [vmem:[#allocation5 + $0x288] sm:$0xff] }
 0x368   :  { %v2046_v16 = vpop.f32.mrf.mxu0  ;;  %v8757_v42 = vcombine.high %v3722_v36, %v3726_v55  ;;  %v3718_v7 = vld [vmem:[#allocation5 + $0x268] sm:$0xff] }
 0x369   :  { %v3221_v48 = vadd.f32 %v3220_v29, %v2510_v21  ;;  %v2519_v37 = vmax.f32 %v2046_v16, 0.0  ;;  %v3714_v29 = vld [vmem:[#allocation5 + $0x248] sm:$0xff] }
 0x36a   :  { %7814 = vmatpush1.bf16.msra.mxu1 %v8676_v26  ;;  %v2048_v49 = vpop.f32.mrf.mxu0  ;;  %v8756_v26 = vcombine.low %v3722_v36, %v3726_v55  ;;  %v3710_v16 = vld [vmem:[#allocation5 + $0x228] sm:$0xff]  ;;  %v8748_v39 = vcombine.low %v3714_v29, %v3718_v7 }
 0x36b   :  { %v3185_v50 = vadd.f32 %v3184_v30, %v2519_v37  ;;  %v2520_v11 = vmax.f32 %v2048_v49, 0.0  ;;  %7815 = vmatprep.subr.bf16.mxu1 %v8797_v31  ;;  %v8749_v30 = vcombine.high %v3714_v29, %v3718_v7  ;;  %v3706_v31 = vld [vmem:[#allocation5 + $0x208] sm:$0xff] }
 0x36c   :  { %v2052_v6 = vpop.f32.mrf.mxu0  ;;  %v3954_v49 = vld [vmem:[#allocation5 + $0x9c8] sm:$0xff] }
 0x36d   :  { %v3222_v24 = vadd.f32 %v3221_v48, %v2520_v11  ;;  %v2529_v46 = vmax.f32 %v2052_v6, 0.0  ;;  %v8741_v48 = vcombine.high %v3706_v31, %v3710_v16  ;;  %v8740_v11 = vcombine.low %v3706_v31, %v3710_v16  ;;  %v4217_v6 = vld [vmem:[#allocation5 + $0x1200] sm:$0xff]  ;;  %v3922_v36 = vld [vmem:[#allocation5 + $0x8c8] sm:$0xff] }
 0x36e   :  { %7816 = vmatpush2.bf16.msra.mxu1 %v8796_v62  ;;  %v2054_v17 = vpop.f32.mrf.mxu0  ;;  %v3958_v62 = vld [vmem:[#allocation5 + $0x9e8] sm:$0xff] }
 0x36f   :  { %v3186_v58 = vadd.f32 %v3185_v50, %v2529_v46  ;;  %v2530_v35 = vmax.f32 %v2054_v17, 0.0  ;;  %7817 = vmatprep.subr.bf16.mxu1 %v8789_v54  ;;  %v8989_v54 = vcombine.high %v3954_v49, %v3958_v62  ;;  %v3950_v46 = vld [vmem:[#allocation5 + $0x9a8] sm:$0xff]  ;;  %v9250_v17 = vcombine.low %v4217_v6, %v4221_v34 }
 0x370   :  { %v2056_v41 = vpop.f32.mrf.mxu0  ;;  %v3926_v55 = vld [vmem:[#allocation5 + $0x8e8] sm:$0xff] }
 0x371   :  { %v3223_v59 = vadd.f32 %v3222_v24, %v2530_v35  ;;  %v2539_v32 = vmax.f32 %v2056_v41, 0.0  ;;  %v3946_v24 = vld [vmem:[#allocation5 + $0x988] sm:$0xff]  ;;  %v8988_v35 = vcombine.low %v3954_v49, %v3958_v62  ;;  %v8957_v29 = vcombine.high %v3922_v36, %v3926_v55 }
 0x372   :  { %7818 = vmatpush2.bf16.msra.mxu1 %v8788_v28  ;;  %v2058_v2 = vpop.f32.mrf.mxu0  ;;  %v9251_v28 = vcombine.high %v4217_v6, %v4221_v34  ;;  %v8956_v16 = vcombine.low %v3922_v36, %v3926_v55  ;;  %v3906_v49 = vld [vmem:[#allocation5 + $0x848] sm:$0xff] }
 0x373   :  { %v10562_v3 = vadd.f32 %v3186_v58, %v2539_v32  ;;  %v2540_v18 = vmax.f32 %v2058_v2, 0.0  ;;  %7819 = vmatprep.subr.bf16.mxu1 %v8781_v40  ;;  %v8981_v40 = vcombine.high %v3946_v24, %v3950_v46  ;;  %v8980_v32 = vcombine.low %v3946_v24, %v3950_v46  ;;  %v3910_v62 = vld [vmem:[#allocation5 + $0x868] sm:$0xff] }
 0x374   :  { %v10564_v9 = vpop.f32.mrf.mxu0  ;;  %7788 = vmatprep.subr.bf16.mxu0 %v9251_v28  ;;  %v8973_v2 = vcombine.high %v3938_v57, %v3942_v56  ;;  %v8941_v6 = vcombine.high %v3906_v49, %v3910_v62  ;;  %v3898_v24 = vld [vmem:[#allocation5 + $0x808] sm:$0xff]  ;;  %v8940_v28 = vcombine.low %v3906_v49, %v3910_v62 }
 0x375   :  { %v10566_v14 = vadd.f32 %v3223_v59, %v2540_v18  ;;  %7789 = vmatpush2.bf16.msra.mxu0 %v9250_v17  ;;  %v3930_v18 = vld [vmem:[#allocation5 + $0x908] sm:$0xff] }
 0x376   :  { %7820 = vmatpush2.bf16.msra.mxu1 %v8780_v0  ;;  %v10568_v8 = vpop.f32.mrf.mxu0  ;;  %7840 = vmatprep.subr.bf16.mxu0 %v8861_v63  ;;  %v3902_v46 = vld [vmem:[#allocation5 + $0x828] sm:$0xff] }
 0x377   :  { %7821 = vmatprep.subr.bf16.mxu1 %v8773_v22  ;;  %v3934_v22 = vld [vmem:[#allocation5 + $0x928] sm:$0xff] }
 0x378   :  { %v10570_v13 = vpop.f32.mrf.mxu0  ;;  %v4018_v57 = vld [vmem:[#allocation5 + $0xbc8] sm:$0xff] }
 0x379   :  { %v4022_v56 = vld [vmem:[#allocation5 + $0xbe8] sm:$0xff] }
 0x37a   :  { %7822 = vmatpush2.bf16.msra.mxu1 %v8772_v12  ;;  %v10572_v60 = vpop.f32.mrf.mxu0  ;;  %v8965_v12 = vcombine.high %v3930_v18, %v3934_v22  ;;  %v9052_v36 = vcombine.low %v4018_v57, %v4022_v56  ;;  %v3994_v62 = vld [vmem:[#allocation5 + $0xb08] sm:$0xff] }
 0x37b   :  { %7823 = vmatprep.subr.bf16.mxu1 %v8765_v38 }
 0x37c   :  { %v10574_v61 = vpop.f32.mrf.mxu0 }
 0x37e   :  { %7824 = vmatpush2.bf16.msra.mxu1 %v8764_v10  ;;  %v10576_v15 = vpop.f32.mrf.mxu0 }
 0x37f   :  { %7825 = vmatprep.subr.bf16.mxu1 %v8757_v42  ;;  %v8964_v42 = vcombine.low %v3930_v18, %v3934_v22  ;;  %v4010_v22 = vld [vmem:[#allocation5 + $0xb88] sm:$0xff] }
 0x380   :  { %v10578_v21 = vpop.f32.mrf.mxu0 }
 0x382   :  { %7826 = vmatpush2.bf16.msra.mxu1 %v8756_v26  ;;  %v10580_v1 = vpop.f32.mrf.mxu0  ;;  %v3914_v26 = vld [vmem:[#allocation5 + $0x888] sm:$0xff] }
 0x383   :  { %7827 = vmatprep.subr.bf16.mxu1 %v8749_v30  ;;  %v3918_v30 = vld [vmem:[#allocation5 + $0x8a8] sm:$0xff] }
 0x384   :  { %v10582_v37 = vpop.f32.mrf.mxu0 }
 0x386   :  { %7828 = vmatpush2.bf16.msra.mxu1 %v8748_v39  ;;  %v10584_v50 = vpop.f32.mrf.mxu0  ;;  %v8949_v39 = vcombine.high %v3914_v26, %v3918_v30 }
 0x387   :  { %7829 = vmatprep.subr.bf16.mxu1 %v8741_v48 }
 0x388   :  { %v10586_v51 = vpop.f32.mrf.mxu0 }
 0x38a   :  { %7830 = vmatpush2.bf16.msra.mxu1 %v8740_v11  ;;  %v10588_v58 = vpop.f32.mrf.mxu0 }
 0x38b   :  { %7881 = vmatprep.subr.bf16.mxu1 %v8989_v54  ;;  %v8948_v54 = vcombine.low %v3914_v26, %v3918_v30  ;;  %v4006_v26 = vld [vmem:[#allocation5 + $0xb68] sm:$0xff] }
 0x38c   :  { %v10594_v41 = vpop.f32.mrf.mxu0 }
 0x38d   :  { %7832 = vmatmul.mubr.bf16.vlgmr.msra.gmra.mxu1 %v10163_v44 }
 0x38e   :  { %7882 = vmatpush1.bf16.msra.mxu1 %v8988_v35  ;;  %7913 = vmatprep.mubr.bf16.mxu1 %v10508_v47  ;;  %v10602_v59 = vpop.f32.mrf.mxu0  ;;  %v8933_v35 = vcombine.high %v3898_v24, %v3902_v46  ;;  %v3974_v47 = vld [vmem:[#allocation5 + $0xa68] sm:$0xff] }
 0x38f   :  { %7883 = vmatprep.subr.bf16.mxu1 %v8981_v40 }
 0x390   :  { %v10604_v0 = vpop.f32.mrf.mxu0 }
 0x392   :  { %7884 = vmatpush1.bf16.msra.mxu1 %v8980_v32  ;;  %v10606_v25 = vpop.f32.mrf.mxu0  ;;  %v8932_v32 = vcombine.low %v3898_v24, %v3902_v46  ;;  %v2559_v46 = vmax.f32 %v10570_v13, 0.0 }
 0x393   :  { %7885 = vmatprep.subr.bf16.mxu1 %v8973_v2  ;;  %v9053_v2 = vcombine.high %v4018_v57, %v4022_v56  ;;  %v3990_v57 = vld [vmem:[#allocation5 + $0xae8] sm:$0xff] }
 0x394   :  { %v10608_v38 = vpop.f32.mrf.mxu0 }
 0x396   :  { %7886 = vmatpush1.bf16.msra.mxu1 %v8972_v5  ;;  %v10610_v10 = vpop.f32.mrf.mxu0  ;;  %v4014_v5 = vld [vmem:[#allocation5 + $0xba8] sm:$0xff] }
 0x397   :  { %7887 = vmatprep.subr.bf16.mxu1 %v8965_v12  ;;  %v9045_v55 = vcombine.high %v4010_v22, %v4014_v5 }
 0x398   :  { %v10612_v7 = vpop.f32.mrf.mxu0 }
 0x39a   :  { %7888 = vmatpush1.bf16.msra.mxu1 %v8964_v42  ;;  %v10614_v31 = vpop.f32.mrf.mxu0 }
 0x39b   :  { %7889 = vmatprep.subr.bf16.mxu1 %v8957_v29  ;;  %v4002_v29 = vld [vmem:[#allocation5 + $0xb48] sm:$0xff] }
 0x39c   :  { %v10616_v48 = vpop.f32.mrf.mxu0  ;;  %v9036_v24 = vcombine.low %v4002_v29, %v4006_v26 }
 0x39e   :  { %7890 = vmatpush1.bf16.msra.mxu1 %v8956_v16  ;;  %v10618_v11 = vpop.f32.mrf.mxu0  ;;  %v9044_v16 = vcombine.low %v4010_v22, %v4014_v5  ;;  %v2569_v22 = vmax.f32 %v10574_v61, 0.0  ;;  %v2580_v61 = vmax.f32 %v10580_v1, 0.0 }
 0x39f   :  { %7891 = vmatprep.subr.bf16.mxu1 %v8949_v39  ;;  %v9037_v39 = vcombine.high %v4002_v29, %v4006_v26  ;;  %v2550_v29 = vmax.f32 %v10568_v8, 0.0  ;;  %v2570_v26 = vmax.f32 %v10576_v15, 0.0 }
 0x3a0   :  { %v10620_v34 = vpop.f32.mrf.mxu0 }
 0x3a2   :  { %7892 = vmatpush1.bf16.msra.mxu1 %v8948_v54  ;;  %v10622_v17 = vpop.f32.mrf.mxu0  ;;  %v3998_v54 = vld [vmem:[#allocation5 + $0xb28] sm:$0xff] }
 0x3a3   :  { %7893 = vmatprep.subr.bf16.mxu1 %v8941_v6 }
 0x3a4   :  { %v10624_v40 = vpop.f32.mrf.mxu0 }
 0x3a6   :  { %7894 = vmatpush1.bf16.msra.mxu1 %v8940_v28  ;;  %v10626_v63 = vpop.f32.mrf.mxu0  ;;  %v9029_v28 = vcombine.high %v3994_v62, %v3998_v54 }
 0x3a7   :  { %7895 = vmatprep.subr.bf16.mxu1 %v8933_v35  ;;  %v3986_v35 = vld [vmem:[#allocation5 + $0xac8] sm:$0xff] }
 0x3a8   :  { %v10628_v18 = vpop.f32.mrf.mxu0  ;;  %v9020_v8 = vcombine.low %v3986_v35, %v3990_v57 }
 0x3aa   :  { %7896 = vmatpush1.bf16.msra.mxu1 %v8932_v32  ;;  %v10630_v12 = vpop.f32.mrf.mxu0  ;;  %v2549_v32 = vmax.f32 %v10564_v9, 0.0 }
 0x3ab   :  { %7897 = vmatprep.subr.bf16.mxu1 %v9053_v2  ;;  %v2560_v2 = vmax.f32 %v10572_v60, 0.0 }
 0x3ac   :  { %v10632_v42 = vpop.f32.mrf.mxu0  ;;  %v3527_v13 = vadd.f32 %v2559_v46, %v2549_v32  ;;  %v3970_v32 = vld [vmem:[#allocation5 + $0xa48] sm:$0xff] }
 0x3ad   :  { %v3564_v60 = vadd.f32 %v2560_v2, %v2550_v29 }
 0x3ae   :  { %7898 = vmatpush2.bf16.msra.mxu1 %v9052_v36  ;;  %v10634_v30 = vpop.f32.mrf.mxu0  ;;  %v9028_v36 = vcombine.low %v3994_v62, %v3998_v54  ;;  %v3528_v4 = vadd.f32 %v3527_v13, %v2569_v22  ;;  %v3962_v13 = vld [vmem:[#allocation5 + $0xa08] sm:$0xff] }
 0x3af   :  { %7899 = vmatprep.subr.bf16.mxu1 %v9045_v55  ;;  %v9021_v55 = vcombine.high %v3986_v35, %v3990_v57  ;;  %v3565_v46 = vadd.f32 %v3564_v60, %v2570_v26  ;;  %v3966_v26 = vld [vmem:[#allocation5 + $0xa28] sm:$0xff] }
 0x3b0   :  { %v10636_v49 = vpop.f32.mrf.mxu0 }
 0x3b1   :  { %v3566_v22 = vadd.f32 %v3565_v46, %v2580_v61  ;;  %v2629_v61 = vmax.f32 %v10608_v38, 0.0  ;;  %v4210_v46 = vld [vmem:[#allocation5 + $0x11c8] sm:$0xff]  ;;  %v2640_v38 = vmax.f32 %v10614_v31, 0.0 }
 0x3b2   :  { %7900 = vmatpush2.bf16.msra.mxu1 %v9044_v16  ;;  %v10638_v6 = vpop.f32.mrf.mxu0  ;;  %v2579_v16 = vmax.f32 %v10578_v21, 0.0  ;;  %v2590_v21 = vmax.f32 %v10584_v50, 0.0 }
 0x3b3   :  { %7901 = vmatprep.subr.bf16.mxu1 %v9037_v39  ;;  %v3978_v39 = vld [vmem:[#allocation5 + $0xa88] sm:$0xff] }
 0x3b4   :  { %v10641_v56 = vpop.f32.mrf.mxu0  ;;  %v9013_v54 = vcombine.high %v3978_v39, %v3982_v20  ;;  %v3529_v15 = vadd.f32 %v3528_v4, %v2579_v16  ;;  %v9012_v57 = vcombine.low %v3978_v39, %v3982_v20  ;;  %v9005_v4 = vcombine.high %v3970_v32, %v3974_v47 }
 0x3b5   :  { %v3567_v29 = vadd.f32 %v3566_v22, %v2590_v21  ;;  %v9004_v39 = vcombine.low %v3970_v32, %v3974_v47  ;;  %v2649_v22 = vmax.f32 %v10616_v48, 0.0  ;;  %v8996_v32 = vcombine.low %v3962_v13, %v3966_v26 }
 0x3b6   :  { %7902 = vmatpush2.bf16.msra.mxu1 %v9036_v24  ;;  %v10646_v5 = vpop.f32.mrf.mxu0  ;;  %v2589_v24 = vmax.f32 %v10582_v37, 0.0  ;;  %v2600_v37 = vmax.f32 %v10588_v58, 0.0  ;;  %v2660_v48 = vmax.f32 %v10622_v17, 0.0 }
 0x3b7   :  { %7903 = vmatprep.subr.bf16.mxu1 %v9029_v28  ;;  %v2599_v28 = vmax.f32 %v10586_v51, 0.0  ;;  %v2610_v51 = vmax.f32 %v10602_v59, 0.0 }
 0x3b8   :  { %v10651_v9 = vpop.f32.mrf.mxu0  ;;  %v3530_v1 = vadd.f32 %v3529_v15, %v2589_v24  ;;  %v3568_v60 = vadd.f32 %v3567_v29, %v2600_v37  ;;  %v8997_v24 = vcombine.high %v3962_v13, %v3966_v26  ;;  %v4214_v15 = vld [vmem:[#allocation5 + $0x11e8] sm:$0xff] }
 0x3b9   :  { %v9244_v13 = vcombine.low %v4210_v46, %v4214_v15 }
 0x3ba   :  { %7904 = vmatpush2.bf16.msra.mxu1 %v9028_v36  ;;  %v10655_v62 = vpop.f32.mrf.mxu0  ;;  %v2609_v36 = vmax.f32 %v10594_v41, 0.0  ;;  %v3531_v50 = vadd.f32 %v3530_v1, %v2599_v28  ;;  %v2620_v41 = vmax.f32 %v10606_v25, 0.0  ;;  %v9245_v1 = vcombine.high %v4210_v46, %v4214_v15 }
 0x3bb   :  { %7905 = vmatprep.subr.bf16.mxu1 %v9021_v55  ;;  %v2619_v55 = vmax.f32 %v10604_v0, 0.0  ;;  %v2630_v0 = vmax.f32 %v10610_v10, 0.0 }
 0x3bc   :  { %v10659_v2 = vpop.f32.mrf.mxu0  ;;  %v3532_v58 = vadd.f32 %v3531_v50, %v2609_v36  ;;  %v2659_v36 = vmax.f32 %v10620_v34, 0.0  ;;  %v2670_v34 = vmax.f32 %v10626_v63, 0.0 }
 0x3be   :  { %7906 = vmatpush2.bf16.msra.mxu1 %v9020_v8  ;;  %v10663_v35 = vpop.f32.mrf.mxu0  ;;  %v3569_v8 = vadd.f32 %v3568_v60, %v2610_v51  ;;  %v3533_v59 = vadd.f32 %v3532_v58, %v2619_v55  ;;  %v2669_v51 = vmax.f32 %v10624_v40, 0.0  ;;  %v2679_v58 = vmax.f32 %v10628_v18, 0.0 }
 0x3bf   :  { %7907 = vmatprep.subr.bf16.mxu1 %v9013_v54  ;;  %v2639_v54 = vmax.f32 %v10612_v7, 0.0  ;;  %v2650_v7 = vmax.f32 %v10618_v11, 0.0  ;;  %v2680_v40 = vmax.f32 %v10630_v12, 0.0 }
 0x3c0   :  { %v10667_v16 = vpop.f32.mrf.mxu0  ;;  %v3570_v28 = vadd.f32 %v3569_v8, %v2620_v41  ;;  %v3534_v25 = vadd.f32 %v3533_v59, %v2629_v61  ;;  %v4194_v41 = vld [vmem:[#allocation5 + $0x1148] sm:$0xff]  ;;  %v2689_v8 = vmax.f32 %v10632_v42, 0.0 }
 0x3c1   :  { %v4198_v61 = vld [vmem:[#allocation5 + $0x1168] sm:$0xff] }
 0x3c2   :  { %7908 = vmatpush2.bf16.msra.mxu1 %v9012_v57  ;;  %v10671_v20 = vpop.f32.mrf.mxu0  ;;  %v3571_v37 = vadd.f32 %v3570_v28, %v2630_v0  ;;  %v3535_v10 = vadd.f32 %v3534_v25, %v2639_v54  ;;  %v4202_v57 = vld [vmem:[#allocation5 + $0x1188] sm:$0xff]  ;;  %v9229_v54 = vcombine.high %v4194_v41, %v4198_v61  ;;  %v2690_v28 = vmax.f32 %v10634_v30, 0.0 }
 0x3c3   :  { %7909 = vmatprep.subr.bf16.mxu1 %v9005_v4  ;;  %v4206_v4 = vld [vmem:[#allocation5 + $0x11a8] sm:$0xff]  ;;  %v2699_v25 = vmax.f32 %v10636_v49, 0.0  ;;  %v9228_v49 = vcombine.low %v4194_v41, %v4198_v61  ;;  %v2739_v61 = vmax.f32 %v10667_v16, 0.0 }
 0x3c4   :  { %v10675_v21 = vpop.f32.mrf.mxu0  ;;  %v3572_v50 = vadd.f32 %v3571_v37, %v2640_v38  ;;  %v3536_v31 = vadd.f32 %v3535_v10, %v2649_v22  ;;  %v9237_v26 = vcombine.high %v4202_v57, %v4206_v4  ;;  %v9236_v18 = vcombine.low %v4202_v57, %v4206_v4  ;;  %v4186_v42 = vld [vmem:[#allocation5 + $0x1108] sm:$0xff] }
 0x3c5   :  { %v4190_v38 = vld [vmem:[#allocation5 + $0x1128] sm:$0xff]  ;;  %v2700_v37 = vmax.f32 %v10638_v6, 0.0  ;;  %v2709_v10 = vmax.f32 %v10641_v56, 0.0 }
 0x3c6   :  { %7910 = vmatpush2.bf16.msra.mxu1 %v9004_v39  ;;  %v10679_v47 = vpop.f32.mrf.mxu0  ;;  %v3573_v60 = vadd.f32 %v3572_v50, %v2650_v7  ;;  %v3537_v11 = vadd.f32 %v3536_v31, %v2659_v36  ;;  %v9221_v36 = vcombine.high %v4186_v42, %v4190_v38  ;;  %v2710_v50 = vmax.f32 %v10646_v5, 0.0 }
 0x3c7   :  { %7911 = vmatprep.subr.bf16.mxu1 %v8997_v24 }
 0x3c8   :  { %v10683_v29 = vpop.f32.mrf.mxu0  ;;  %v3574_v24 = vadd.f32 %v3573_v60, %v2660_v48  ;;  %v3538_v17 = vadd.f32 %v3537_v11, %v2669_v51  ;;  %v4178_v48 = vld [vmem:[#allocation5 + $0x10c8] sm:$0xff]  ;;  %v2729_v60 = vmax.f32 %v10659_v2, 0.0  ;;  %v2749_v2 = vmax.f32 %v10675_v21, 0.0 }
 0x3c9   :  { %v4182_v51 = vld [vmem:[#allocation5 + $0x10e8] sm:$0xff]  ;;  %v2759_v16 = vmax.f32 %v10683_v29, 0.0 }
 0x3ca   :  { %7912 = vmatpush2.bf16.msra.mxu1 %v8996_v32  ;;  %v10687_v55 = vpop.f32.mrf.mxu0  ;;  %v3575_v46 = vadd.f32 %v3574_v24, %v2670_v34  ;;  %v3539_v15 = vadd.f32 %v3538_v17, %v2679_v58  ;;  %v9220_v34 = vcombine.low %v4186_v42, %v4190_v38  ;;  %v9213_v58 = vcombine.high %v4178_v48, %v4182_v51  ;;  %v4170_v24 = vld [vmem:[#allocation5 + $0x1088] sm:$0xff] }
 0x3cb   :  { %7963 = vmatprep.subr.bf16.mxu1 %v9245_v1  ;;  %v4174_v17 = vld [vmem:[#allocation5 + $0x10a8] sm:$0xff] }
 0x3cc   :  { %v10691_v39 = vpop.f32.mrf.mxu0  ;;  %v3576_v32 = vadd.f32 %v3575_v46, %v2680_v40  ;;  %v3540_v1 = vadd.f32 %v3539_v15, %v2689_v8  ;;  %v9205_v46 = vcombine.high %v4170_v24, %v4174_v17 }
 0x3cd   :  { %7914 = vmatmul.mubr.bf16.vlgmr.msra.gmra.mxu1 %v10513_v33  ;;  %v7710_v59 = vpop.f32.mrf.mxu1  ;;  %v2769_v21 = vmax.f32 %v10691_v39, 0.0 }
 0x3ce   :  { %v10697_v0 = vadd.f32 %v7710_v59, %v10552_v45  ;;  %7964 = vmatpush1.bf16.msra.mxu1 %v9244_v13  ;;  %v10699_v63 = vpop.f32.mrf.mxu0  ;;  %v3577_v57 = vadd.f32 %v3576_v32, %v2690_v28  ;;  %v3541_v4 = vadd.f32 %v3540_v1, %v2699_v25  ;;  %v4162_v25 = vld [vmem:[#allocation5 + $0x1048] sm:$0xff] }
 0x3cf   :  { %v7712_v12 = vpop.f32.mrf.mxu1  ;;  %7965 = vmatprep.subr.bf16.mxu1 %v9237_v26  ;;  %v2720_v26 = vmax.f32 %v10655_v62, 0.0  ;;  %v2740_v62 = vmax.f32 %v10671_v20, 0.0  ;;  %v2760_v20 = vmax.f32 %v10687_v55, 0.0 }
 0x3d0   :  { %v10704_v22 = vadd.f32 %v7712_v12, %v10554_v19  ;;  %v10706_v45 = vpop.f32.mrf.mxu0  ;;  %v2719_v19 = vmax.f32 %v10651_v9, 0.0  ;;  %v3578_v6 = vadd.f32 %v3577_v57, %v2700_v37  ;;  %v3542_v56 = vadd.f32 %v3541_v4, %v2709_v10  ;;  %v4166_v12 = vld [vmem:[#allocation5 + $0x1068] sm:$0xff] }
 0x3d1   :  { %v7714_v7 = vpop.f32.mrf.mxu1  ;;  %v2730_v9 = vmax.f32 %v10663_v35, 0.0  ;;  %v2750_v35 = vmax.f32 %v10679_v47, 0.0  ;;  %v9204_v37 = vcombine.low %v4170_v24, %v4174_v17  ;;  %v9197_v10 = vcombine.high %v4162_v25, %v4166_v12  ;;  %v4158_v57 = vld [vmem:[#allocation5 + $0x1028] sm:$0xff] }
 0x3d2   :  { %7966 = vmatpush1.bf16.msra.mxu1 %v9236_v18  ;;  %v10710_v30 = vpop.f32.mrf.mxu0  ;;  %v3579_v5 = vadd.f32 %v3578_v6, %v2710_v50  ;;  %v3543_v41 = vadd.f32 %v3542_v56, %v2719_v19  ;;  %v2770_v47 = vmax.f32 %v10699_v63, 0.0  ;;  %v2779_v29 = vmax.f32 %v10706_v45, 0.0  ;;  %v4274_v45 = vld [vmem:[#allocation5 + $0x13c8] sm:$0xff] }
 0x3d3   :  { %v7715_v31 = vpop.f32.mrf.mxu1  ;;  %7967 = vmatprep.subr.bf16.mxu1 %v9229_v54  ;;  %v9212_v54 = vcombine.low %v4178_v48, %v4182_v51  ;;  %v2780_v55 = vmax.f32 %v10710_v30, 0.0  ;;  %v9196_v48 = vcombine.low %v4162_v25, %v4166_v12 }
 0x3d4   :  { %v10714_v13 = vpop.f32.mrf.mxu0  ;;  %v3580_v8 = vadd.f32 %v3579_v5, %v2720_v26  ;;  %v3544_v59 = vadd.f32 %v3543_v41, %v2729_v60  ;;  %v4278_v60 = vld [vmem:[#allocation5 + $0x13e8] sm:$0xff] }
 0x3d5   :  { %v2789_v39 = vmax.f32 %v10714_v13, 0.0  ;;  %v9309_v17 = vcombine.high %v4274_v45, %v4278_v60  ;;  %v9308_v12 = vcombine.low %v4274_v45, %v4278_v60 }
 0x3d6   :  { %7968 = vmatpush1.bf16.msra.mxu1 %v9228_v49  ;;  %v10718_v11 = vpop.f32.mrf.mxu0  ;;  %v3581_v15 = vadd.f32 %v3580_v8, %v2730_v9  ;;  %v3545_v28 = vadd.f32 %v3544_v59, %v2739_v61  ;;  %v3225_v9 = vrot.slane %v10566_v14, 4 }
 0x3d7   :  { %7969 = vmatprep.subr.bf16.mxu1 %v9221_v36  ;;  %v4154_v36 = vld [vmem:[#allocation5 + $0x1008] sm:$0xff]  ;;  %v2790_v63 = vmax.f32 %v10718_v11, 0.0 }
 0x3d8   :  { %v2186_v40 = vpop.f32.mrf.mxu0  ;;  %v3582_v38 = vadd.f32 %v3581_v15, %v2740_v62  ;;  %v3546_v32 = vadd.f32 %v3545_v28, %v2749_v2  ;;  %v9189_v51 = vcombine.high %v4154_v36, %v4158_v57  ;;  %v9188_v24 = vcombine.low %v4154_v36, %v4158_v57  ;;  %v4266_v62 = vld [vmem:[#allocation5 + $0x1388] sm:$0xff] }
 0x3d9   :  { %v2799_v26 = vmax.f32 %v2186_v40, 0.0  ;;  %v4270_v2 = vld [vmem:[#allocation5 + $0x13a8] sm:$0xff] }
 0x3da   :  { %7970 = vmatpush1.bf16.msra.mxu1 %v9220_v34  ;;  %v10724_v18 = vpop.f32.mrf.mxu0  ;;  %v3583_v7 = vadd.f32 %v3582_v38, %v2750_v35  ;;  %v3547_v49 = vadd.f32 %v3546_v32, %v2759_v16  ;;  %v3188_v34 = vrot.slane %v10562_v3, 4  ;;  %v3226_v16 = vadd.f32 %v3225_v9, %v10566_v14 }
 0x3db   :  { %7971 = vmatprep.subr.bf16.mxu1 %v9213_v58  ;;  %v2800_v30 = vmax.f32 %v10724_v18, 0.0  ;;  %v9300_v14 = vcombine.low %v4266_v62, %v4270_v2 }
 0x3dc   :  { %v2192_v42 = vpop.f32.mrf.mxu0  ;;  %v3584_v50 = vadd.f32 %v3583_v7, %v2760_v20  ;;  %v3548_v19 = vadd.f32 %v3547_v49, %v2769_v21 }
 0x3dd   :  { %v2809_v13 = vmax.f32 %v2192_v42, 0.0  ;;  %v9301_v42 = vcombine.high %v4266_v62, %v4270_v2  ;;  %v4234_v62 = vld [vmem:[#allocation5 + $0x1288] sm:$0xff] }
 0x3de   :  { %7972 = vmatpush1.bf16.msra.mxu1 %v9212_v54  ;;  %v2194_v1 = vpop.f32.mrf.mxu0  ;;  %v3585_v6 = vadd.f32 %v3584_v50, %v2770_v47  ;;  %v3549_v56 = vadd.f32 %v3548_v19, %v2779_v29  ;;  %v3189_v54 = vadd.f32 %v3188_v34, %v10562_v3  ;;  %v4238_v2 = vld [vmem:[#allocation5 + $0x12a8] sm:$0xff] }
 0x3df   :  { %7973 = vmatprep.subr.bf16.mxu1 %v9205_v46  ;;  %v2810_v40 = vmax.f32 %v2194_v1, 0.0  ;;  %v4258_v1 = vld [vmem:[#allocation5 + $0x1348] sm:$0xff] }
 0x3e0   :  { %v2196_v4 = vpop.f32.mrf.mxu0  ;;  %v3586_v5 = vadd.f32 %v3585_v6, %v2780_v55  ;;  %v3550_v41 = vadd.f32 %v3549_v56, %v2789_v39  ;;  %v4250_v39 = vld [vmem:[#allocation5 + $0x1308] sm:$0xff] }
 0x3e1   :  { %v2819_v59 = vmax.f32 %v2196_v4, 0.0  ;;  %v3227_v4 = vrot.slane %v3226_v16, 2 }
 0x3e2   :  { %7974 = vmatpush1.bf16.msra.mxu1 %v9204_v37  ;;  %v2198_v31 = vpop.f32.mrf.mxu0  ;;  %v3587_v8 = vadd.f32 %v3586_v5, %v2790_v63  ;;  %v3551_v11 = vadd.f32 %v3550_v41, %v2799_v26  ;;  %v4262_v37 = vld [vmem:[#allocation5 + $0x1368] sm:$0xff] }
 0x3e3   :  { %7975 = vmatprep.subr.bf16.mxu1 %v9197_v10  ;;  %v2820_v18 = vmax.f32 %v2198_v31, 0.0  ;;  %v3190_v10 = vrot.slane %v3189_v54, 2  ;;  %v9293_v57 = vcombine.high %v4258_v1, %v4262_v37  ;;  %v4254_v31 = vld [vmem:[#allocation5 + $0x1328] sm:$0xff]  ;;  %v9292_v45 = vcombine.low %v4258_v1, %v4262_v37 }
 0x3e4   :  { %v2202_v58 = vpop.f32.mrf.mxu0  ;;  %v3588_v15 = vadd.f32 %v3587_v8, %v2800_v30  ;;  %v3552_v28 = vadd.f32 %v3551_v11, %v2809_v13  ;;  %v9285_v60 = vcombine.high %v4250_v39, %v4254_v31  ;;  %v3228_v34 = vadd.f32 %v3227_v4, %v3226_v16  ;;  %v4242_v30 = vld [vmem:[#allocation5 + $0x12c8] sm:$0xff] }
 0x3e5   :  { %v2829_v35 = vmax.f32 %v2202_v58, 0.0  ;;  %v4246_v13 = vld [vmem:[#allocation5 + $0x12e8] sm:$0xff] }
 0x3e6   :  { %7976 = vmatpush1.bf16.msra.mxu1 %v9196_v48  ;;  %v2204_v61 = vpop.f32.mrf.mxu0  ;;  %v3589_v38 = vadd.f32 %v3588_v15, %v2810_v40  ;;  %v3553_v32 = vadd.f32 %v3552_v28, %v2819_v59  ;;  %v3229_v8 = vrot.slane %v3228_v34, 1  ;;  %v9277_v59 = vcombine.high %v4242_v30, %v4246_v13 }
 0x3e7   :  { %7977 = vmatprep.subr.bf16.mxu1 %v9189_v51  ;;  %v2830_v20 = vmax.f32 %v2204_v61, 0.0  ;;  %v3191_v51 = vadd.f32 %v3190_v10, %v3189_v54  ;;  %v9276_v28 = vcombine.low %v4242_v30, %v4246_v13 }
 0x3e8   :  { %v2206_v46 = vpop.f32.mrf.mxu0  ;;  %v3590_v7 = vadd.f32 %v3589_v38, %v2820_v18  ;;  %v3554_v49 = vadd.f32 %v3553_v32, %v2829_v35  ;;  %v3230_v18 = vadd.f32 %v3229_v8, %v3228_v34  ;;  %v3814_v8 = vld [vmem:[#allocation5 + $0x568] sm:$0xff] }
 0x3e9   :  { %v2839_v21 = vmax.f32 %v2206_v46, 0.0  ;;  %v3192_v9 = vrot.slane %v3191_v51, 1 }
 0x3ea   :  { %7978 = vmatpush1.bf16.msra.mxu1 %v9188_v24  ;;  %v2208_v25 = vpop.f32.mrf.mxu0  ;;  %v3591_v50 = vadd.f32 %v3590_v7, %v2830_v20  ;;  %v3610_v1 = vmul.f32 0.00390625, %v3230_v18  ;;  %v4218_v7 = vld [vmem:[#allocation5 + $0x1208] sm:$0xff] }
 0x3eb   :  { %7979 = vmatprep.subr.bf16.mxu1 %v9309_v17  ;;  %v2840_v47 = vmax.f32 %v2208_v25, 0.0  ;;  %v3555_v19 = vadd.f32 %v3554_v49, %v2839_v21  ;;  %v9284_v17 = vcombine.low %v4250_v39, %v4254_v31  ;;  %v3193_v54 = vadd.f32 %v3192_v9, %v3191_v51  ;;  %v4222_v49 = vld [vmem:[#allocation5 + $0x1228] sm:$0xff]  ;;  %v3831_v39 = vld [vmem:[#allocation5 + $0x5f0] sm:$0xff] }
 0x3ec   :  { %v2212_v3 = vpop.f32.mrf.mxu0  ;;  %v9269_v25 = vcombine.high %v4234_v62, %v4238_v2  ;;  %v9268_v21 = vcombine.low %v4234_v62, %v4238_v2  ;;  %v10887_v2 = vcombine.low %v10590_v43, %v10592_v23  ;;  %v3807_v43 = vld [vmem:[#allocation5 + $0x530] sm:$0xff] }
 0x3ed   :  { %v2849_v29 = vmax.f32 %v2212_v3, 0.0  ;;  %v3592_v6 = vadd.f32 %v3591_v50, %v2840_v47  ;;  %v3609_v38 = vmul.f32 0.00390625, %v3193_v54 }
 0x3ee   :  { %7980 = vmatpush2.bf16.msra.mxu1 %v9308_v12  ;;  %v2214_v36 = vpop.f32.mrf.mxu0  ;;  %v4226_v12 = vld [vmem:[#allocation5 + $0x1248] sm:$0xff] }
 0x3ef   :  { %v2850_v55 = vmax.f32 %v2214_v36, 0.0  ;;  %7981 = vmatprep.subr.bf16.mxu1 %v9301_v42  ;;  %v3556_v56 = vadd.f32 %v3555_v19, %v2849_v29  ;;  %v4230_v42 = vld [vmem:[#allocation5 + $0x1268] sm:$0xff]  ;;  %v3629_v47 = vpack.c.bf16 %v3609_v38, %v3609_v38  ;;  %v9253_v19 = vcombine.high %v4218_v7, %v4222_v49 }
 0x3f0   :  { %v2216_v48 = vpop.f32.mrf.mxu0  ;;  %v9261_v3 = vcombine.high %v4226_v12, %v4230_v42 }
 0x3f1   :  { %v2859_v63 = vmax.f32 %v2216_v48, 0.0  ;;  %v3593_v58 = vadd.f32 %v3592_v6, %v2850_v55  ;;  %v3827_v55 = vld [vmem:[#allocation5 + $0x5d0] sm:$0xff]  ;;  %v4351_v31 = vunpack.c.l.b16 %v3629_v47  ;;  %v9252_v6 = vcombine.low %v4218_v7, %v4222_v49 }
 0x3f2   :  { %7982 = vmatpush2.bf16.msra.mxu1 %v9300_v14  ;;  %v2218_v26 = vpop.f32.mrf.mxu0  ;;  %v9260_v14 = vcombine.low %v4226_v12, %v4230_v42  ;;  %v8862_v13 = vcombine.low %v3827_v55, %v3831_v39  ;;  %v3803_v12 = vld [vmem:[#allocation5 + $0x510] sm:$0xff] }
 0x3f3   :  { %v3557_v5 = vadd.f32 %v3556_v56, %v2859_v63  ;;  %v2860_v41 = vmax.f32 %v2218_v26, 0.0  ;;  %7983 = vmatprep.subr.bf16.mxu1 %v9293_v57  ;;  %v3630_v57 = vpack.c.bf16 %v3610_v1, %v3610_v1  ;;  %v3794_v1 = vld [vmem:[#allocation5 + $0x4c8] sm:$0xff]  ;;  %v8838_v7 = vcombine.low %v3803_v12, %v3807_v43 }
 0x3f5   :  { %v3558_v61 = vrot.slane %v3557_v5, 4  ;;  %v3594_v24 = vadd.f32 %v3593_v58, %v2860_v41  ;;  %v4352_v56 = vunpack.c.l.b16 %v3630_v57  ;;  %v3822_v58 = vld [vmem:[#allocation5 + $0x5a8] sm:$0xff]  ;;  %v3823_v41 = vld [vmem:[#allocation5 + $0x5b0] sm:$0xff] }
 0x3f6   :  { %7984 = vmatpush2.bf16.msra.mxu1 %v9292_v45  ;;  %v8863_v45 = vcombine.high %v3827_v55, %v3831_v39  ;;  %v3791_v57 = vld [vmem:[#allocation5 + $0x4b0] sm:$0xff]  ;;  %v3778_v39 = vld [vmem:[#allocation5 + $0x448] sm:$0xff] }
 0x3f7   :  { %v3559_v11 = vadd.f32 %v3558_v61, %v3557_v5  ;;  %v3595_v40 = vrot.slane %v3594_v24, 4  ;;  %7985 = vmatprep.subr.bf16.mxu1 %v9285_v60  ;;  %v3818_v60 = vld [vmem:[#allocation5 + $0x588] sm:$0xff]  ;;  %v3819_v5 = vld [vmem:[#allocation5 + $0x590] sm:$0xff] }
 0x3f8   :  { %v3810_v61 = vld [vmem:[#allocation5 + $0x548] sm:$0xff]  ;;  %v8852_v54 = vcombine.low %v3818_v60, %v3822_v58 }
 0x3f9   :  { %v3560_v46 = vrot.slane %v3559_v11, 2  ;;  %v3596_v15 = vadd.f32 %v3595_v40, %v3594_v24  ;;  %v8853_v24 = vcombine.high %v3818_v60, %v3822_v58  ;;  %v3815_v40 = vld [vmem:[#allocation5 + $0x570] sm:$0xff]  ;;  %v8845_v18 = vcombine.high %v3810_v61, %v3814_v8  ;;  %v3774_v60 = vld [vmem:[#allocation5 + $0x428] sm:$0xff] }
 0x3fa   :  { %7986 = vmatpush2.bf16.msra.mxu1 %v9284_v17  ;;  %v8855_v17 = vcombine.high %v3819_v5, %v3823_v41  ;;  %v8844_v42 = vcombine.low %v3810_v61, %v3814_v8  ;;  %v3775_v58 = vld [vmem:[#allocation5 + $0x430] sm:$0xff] }
 0x3fb   :  { %v3561_v35 = vadd.f32 %v3560_v46, %v3559_v11  ;;  %v3597_v16 = vrot.slane %v3596_v15, 2  ;;  %7987 = vmatprep.subr.bf16.mxu1 %v9277_v59  ;;  %v3811_v11 = vld [vmem:[#allocation5 + $0x550] sm:$0xff]  ;;  %v8854_v46 = vcombine.low %v3819_v5, %v3823_v41 }
 0x3fc   :  { %v8846_v38 = vcombine.low %v3811_v11, %v3815_v40  ;;  %v3891_v8 = vld [vmem:[#allocation5 + $0x7d0] sm:$0xff] }
 0x3fd   :  { %v3562_v32 = vrot.slane %v3561_v35, 1  ;;  %v3598_v20 = vadd.f32 %v3597_v16, %v3596_v15  ;;  %v3802_v16 = vld [vmem:[#allocation5 + $0x508] sm:$0xff] }
 0x3fe   :  { %7988 = vmatpush2.bf16.msra.mxu1 %v9276_v28  ;;  %v10888_v28 = vld [vmem:[#allocation14_spill] sm:$0xff] }
 0x3ff   :  { %v3563_v37 = vadd.f32 %v3562_v32, %v3561_v35  ;;  %v3599_v10 = vrot.slane %v3598_v20, 1  ;;  %7989 = vmatprep.subr.bf16.mxu1 %v9269_v25  ;;  %v8847_v35 = vcombine.high %v3811_v11, %v3815_v40  ;;  %v3895_v11 = vld [vmem:[#allocation5 + $0x7f0] sm:$0xff] }
 0x401   :  { %v3619_v29 = vmul.f32 0.00390625, %v3563_v37  ;;  %v3600_v36 = vadd.f32 %v3599_v10, %v3598_v20  ;;  %v3798_v37 = vld [vmem:[#allocation5 + $0x4e8] sm:$0xff]  ;;  %v3795_v10 = vld [vmem:[#allocation5 + $0x4d0] sm:$0xff] }
 0x402   :  { %7990 = vmatpush2.bf16.msra.mxu1 %v9268_v21  ;;  %v8839_v21 = vcombine.high %v3803_v12, %v3807_v43  ;;  %v8829_v49 = vcombine.high %v3794_v1, %v3798_v37 }
 0x403   :  { %v3639_v4 = vpack.c.bf16 %v3619_v29, %v3619_v29  ;;  %v3620_v50 = vmul.f32 0.00390625, %v3600_v36  ;;  %7991 = vmatprep.subr.bf16.mxu1 %v9261_v3  ;;  %v3786_v29 = vld [vmem:[#allocation5 + $0x488] sm:$0xff] }
 0x404   :  { %v3790_v36 = vld [vmem:[#allocation5 + $0x4a8] sm:$0xff] }
 0x405   :  { %v4361_v48 = vunpack.c.l.b16 %v3639_v4  ;;  %v3640_v51 = vpack.c.bf16 %v3620_v50, %v3620_v50  ;;  %v8828_v4 = vcombine.low %v3794_v1, %v3798_v37 }
 0x406   :  { %7992 = vmatpush2.bf16.msra.mxu1 %v9260_v14  ;;  %v3787_v14 = vld [vmem:[#allocation5 + $0x490] sm:$0xff] }
 0x407   :  { %v4372_v63 = vsel %vm4363_vm2, %v4361_v48, %v4351_v31  ;;  %v4362_v26 = vunpack.c.l.b16 %v3640_v51  ;;  %7993 = vmatprep.subr.bf16.mxu1 %v9253_v19  ;;  %v8821_v19 = vcombine.high %v3786_v29, %v3790_v36  ;;  %v8823_v55 = vcombine.high %v3787_v14, %v3791_v57  ;;  %v3782_v31 = vld [vmem:[#allocation5 + $0x468] sm:$0xff]  ;;  %v3779_v48 = vld [vmem:[#allocation5 + $0x450] sm:$0xff] }
 0x408   :  { %v10744_v9 = vpack.c.b16 %v4372_v63, %v4372_v63  ;;  %v3783_v51 = vld [vmem:[#allocation5 + $0x470] sm:$0xff]  ;;  %v8813_v63 = vcombine.high %v3778_v39, %v3782_v31  ;;  %v8812_v5 = vcombine.low %v3778_v39, %v3782_v31 }
 0x409   :  { %v4373_v34 = vsel %vm4363_vm2, %v4362_v26, %v4352_v56  ;;  %v8822_v56 = vcombine.low %v3787_v14, %v3791_v57  ;;  %v8815_v26 = vcombine.high %v3779_v48, %v3783_v51  ;;  %v8814_v41 = vcombine.low %v3779_v48, %v3783_v51  ;;  %v3858_v14 = vld [vmem:[#allocation5 + $0x6c8] sm:$0xff] }
 0x40a   :  { %7994 = vmatpush2.bf16.msra.mxu1 %v9252_v6  ;;  %v10742_v30 = vpack.c.b16 %v4373_v34, %v4373_v34  ;;  %v8820_v6 = vcombine.low %v3786_v29, %v3790_v36  ;;  %v3771_v34 = vld [vmem:[#allocation5 + $0x410] sm:$0xff]  ;;  %v3862_v57 = vld [vmem:[#allocation5 + $0x6e8] sm:$0xff] }
 0x40b   :  { %8045 = vmatprep.subr.bf16.mxu1 %v8863_v45  ;;  %v3770_v45 = vld [vmem:[#allocation5 + $0x408] sm:$0xff]  ;;  %v8807_v61 = vcombine.high %v3771_v34, %v3775_v58  ;;  %v8893_v39 = vcombine.high %v3858_v14, %v3862_v57 }
 0x40c   :  { %7790 = vmatprep.mubr.bf16.mxu0 %v10742_v30  ;;  %7995 = vmatprep.mubr.bf16.mxu1 %v10742_v30  ;;  %v8804_v40 = vcombine.low %v3770_v45, %v3774_v60  ;;  %v3850_v48 = vld [vmem:[#allocation5 + $0x688] sm:$0xff] }
 0x40d   :  { %v7751_v59 = vpop.f32.mrf.mxu1  ;;  %7791 = vmatmul.mubr.bf16.vlgmr.msra.gmra.mxu0 %v10744_v9  ;;  %7996 = vmatmul.mubr.bf16.vlgmr.msra.gmra.mxu1 %v10744_v9  ;;  %v3854_v51 = vld [vmem:[#allocation5 + $0x6a8] sm:$0xff] }
 0x40e   :  { %v10751_v62 = vadd.f32 %v7751_v59, %v10697_v0  ;;  %7841 = vmatpush1.bf16.msra.mxu0 %v10887_v2  ;;  %8046 = vmatpush1.bf16.msra.mxu1 %v8862_v13  ;;  %v3806_v0 = vld [vmem:[#allocation5 + $0x528] sm:$0xff]  ;;  %v8805_v13 = vcombine.high %v3770_v45, %v3774_v60  ;;  %v8806_v59 = vcombine.low %v3771_v34, %v3775_v58 }
 0x40f   :  { %v7753_v15 = vpop.f32.mrf.mxu1  ;;  %7872 = vmatprep.mubr.bf16.mxu0 %v10888_v28  ;;  %8077 = vmatprep.mubr.bf16.mxu1 %v10888_v28  ;;  %v8837_v20 = vcombine.high %v3802_v16, %v3806_v0  ;;  %v8836_v3 = vcombine.low %v3802_v16, %v3806_v0  ;;  %v8926_v0 = vcombine.low %v3891_v8, %v3895_v11  ;;  %v3842_v34 = vld [vmem:[#allocation5 + $0x648] sm:$0xff] }
 0x410   :  { %v10759_v25 = vadd.f32 %v7753_v15, %v10704_v22  ;;  %7842 = vmatprep.subr.bf16.mxu0 %v8853_v24  ;;  %8047 = vmatprep.subr.bf16.mxu1 %v8855_v17  ;;  %v3799_v22 = vld [vmem:[#allocation5 + $0x4f0] sm:$0xff]  ;;  %v3890_v24 = vld [vmem:[#allocation5 + $0x7c8] sm:$0xff]  ;;  %v8885_v45 = vcombine.high %v3850_v48, %v3854_v51 }
 0x411   :  { %v7755_v23 = vpop.f32.mrf.mxu1  ;;  %v8831_v47 = vcombine.high %v3795_v10, %v3799_v22  ;;  %v8830_v50 = vcombine.low %v3795_v10, %v3799_v22  ;;  %v3894_v17 = vld [vmem:[#allocation5 + $0x7e8] sm:$0xff] }
 0x412   :  { %7843 = vmatpush1.bf16.msra.mxu0 %v8852_v54  ;;  %8048 = vmatpush1.bf16.msra.mxu1 %v8854_v46  ;;  %v8925_v2 = vcombine.high %v3890_v24, %v3894_v17  ;;  %v8927_v54 = vcombine.high %v3891_v8, %v3895_v11  ;;  %v3882_v46 = vld [vmem:[#allocation5 + $0x788] sm:$0xff]  ;;  %v8924_v16 = vcombine.low %v3890_v24, %v3894_v17 }
 0x413   :  { %v7756_v32 = vpop.f32.mrf.mxu1  ;;  %7844 = vmatprep.subr.bf16.mxu0 %v8845_v18  ;;  %8049 = vmatprep.subr.bf16.mxu1 %v8847_v35  ;;  %v3886_v15 = vld [vmem:[#allocation5 + $0x7a8] sm:$0xff]  ;;  %v3883_v18 = vld [vmem:[#allocation5 + $0x790] sm:$0xff] }
 0x414   :  { %v3887_v35 = vld [vmem:[#allocation5 + $0x7b0] sm:$0xff]  ;;  %v8917_v12 = vcombine.high %v3882_v46, %v3886_v15  ;;  %v3874_v23 = vld [vmem:[#allocation5 + $0x748] sm:$0xff] }
 0x415   :  { %v8919_v43 = vcombine.high %v3883_v18, %v3887_v35  ;;  %v3879_v32 = vld [vmem:[#allocation5 + $0x770] sm:$0xff]  ;;  %v3866_v10 = vld [vmem:[#allocation5 + $0x708] sm:$0xff] }
 0x416   :  { %7845 = vmatpush1.bf16.msra.mxu0 %v8844_v42  ;;  %8050 = vmatpush1.bf16.msra.mxu1 %v8846_v38  ;;  %v3878_v42 = vld [vmem:[#allocation5 + $0x768] sm:$0xff]  ;;  %v3875_v38 = vld [vmem:[#allocation5 + $0x750] sm:$0xff] }
 0x417   :  { %7846 = vmatprep.subr.bf16.mxu0 %v8837_v20  ;;  %8051 = vmatprep.subr.bf16.mxu1 %v8839_v21  ;;  %v8916_v20 = vcombine.low %v3882_v46, %v3886_v15  ;;  %v8918_v21 = vcombine.low %v3883_v18, %v3887_v35  ;;  %v8909_v1 = vcombine.high %v3874_v23, %v3878_v42  ;;  %v3870_v22 = vld [vmem:[#allocation5 + $0x728] sm:$0xff] }
 0x418   :  { %v8911_v37 = vcombine.high %v3875_v38, %v3879_v32  ;;  %v8901_v29 = vcombine.high %v3866_v10, %v3870_v22  ;;  %v3846_v58 = vld [vmem:[#allocation5 + $0x668] sm:$0xff] }
 0x419   :  { %v8877_v24 = vcombine.high %v3842_v34, %v3846_v58  ;;  %v3834_v8 = vld [vmem:[#allocation5 + $0x608] sm:$0xff] }
 0x41a   :  { %7847 = vmatpush1.bf16.msra.mxu0 %v8836_v3  ;;  %8052 = vmatpush1.bf16.msra.mxu1 %v8838_v7  ;;  %v3867_v3 = vld [vmem:[#allocation5 + $0x710] sm:$0xff]  ;;  %v3838_v11 = vld [vmem:[#allocation5 + $0x628] sm:$0xff] }
 0x41b   :  { %7848 = vmatprep.subr.bf16.mxu0 %v8829_v49  ;;  %8053 = vmatprep.subr.bf16.mxu1 %v8831_v47  ;;  %v3871_v7 = vld [vmem:[#allocation5 + $0x730] sm:$0xff]  ;;  %v8908_v49 = vcombine.low %v3874_v23, %v3878_v42  ;;  %v8910_v47 = vcombine.low %v3875_v38, %v3879_v32  ;;  %v8869_v46 = vcombine.high %v3834_v8, %v3838_v11  ;;  %v4082_v18 = vld [vmem:[#allocation5 + $0xdc8] sm:$0xff] }
 0x41c   :  { %v8903_v36 = vcombine.high %v3867_v3, %v3871_v7  ;;  %v4086_v35 = vld [vmem:[#allocation5 + $0xde8] sm:$0xff] }
 0x41d   :  { %v9117_v23 = vcombine.high %v4082_v18, %v4086_v35  ;;  %v4074_v38 = vld [vmem:[#allocation5 + $0xd88] sm:$0xff] }
 0x41e   :  { %7849 = vmatpush1.bf16.msra.mxu0 %v8828_v4  ;;  %8054 = vmatpush1.bf16.msra.mxu1 %v8830_v50  ;;  %v3859_v4 = vld [vmem:[#allocation5 + $0x6d0] sm:$0xff]  ;;  %v4078_v32 = vld [vmem:[#allocation5 + $0xda8] sm:$0xff] }
 0x41f   :  { %7850 = vmatprep.subr.bf16.mxu0 %v8821_v19  ;;  %8055 = vmatprep.subr.bf16.mxu1 %v8823_v55  ;;  %v3863_v50 = vld [vmem:[#allocation5 + $0x6f0] sm:$0xff]  ;;  %v8900_v19 = vcombine.low %v3866_v10, %v3870_v22  ;;  %v8902_v55 = vcombine.low %v3867_v3, %v3871_v7  ;;  %v9109_v10 = vcombine.high %v4074_v38, %v4078_v32  ;;  %v4066_v3 = vld [vmem:[#allocation5 + $0xd48] sm:$0xff] }
 0x420   :  { %v8895_v31 = vcombine.high %v3859_v4, %v3863_v50  ;;  %v4070_v7 = vld [vmem:[#allocation5 + $0xd68] sm:$0xff] }
 0x422   :  { %7851 = vmatpush1.bf16.msra.mxu0 %v8820_v6  ;;  %8056 = vmatpush1.bf16.msra.mxu1 %v8822_v56  ;;  %v3851_v6 = vld [vmem:[#allocation5 + $0x690] sm:$0xff] }
 0x423   :  { %7852 = vmatprep.subr.bf16.mxu0 %v8813_v63  ;;  %8057 = vmatprep.subr.bf16.mxu1 %v8815_v26  ;;  %v3855_v56 = vld [vmem:[#allocation5 + $0x6b0] sm:$0xff]  ;;  %v8892_v63 = vcombine.low %v3858_v14, %v3862_v57  ;;  %v8894_v26 = vcombine.low %v3859_v4, %v3863_v50  ;;  %v9108_v14 = vcombine.low %v4074_v38, %v4078_v32  ;;  %v4030_v38 = vld [vmem:[#allocation5 + $0xc28] sm:$0xff] }
 0x424   :  { %v8887_v60 = vcombine.high %v3851_v6, %v3855_v56  ;;  %v9101_v50 = vcombine.high %v4066_v3, %v4070_v7  ;;  %v4027_v32 = vld [vmem:[#allocation5 + $0xc10] sm:$0xff] }
 0x426   :  { %7853 = vmatpush1.bf16.msra.mxu0 %v8812_v5  ;;  %8058 = vmatpush1.bf16.msra.mxu1 %v8814_v41  ;;  %v3843_v5 = vld [vmem:[#allocation5 + $0x650] sm:$0xff] }
 0x427   :  { %7854 = vmatprep.subr.bf16.mxu0 %v8805_v13  ;;  %8059 = vmatprep.subr.bf16.mxu1 %v8807_v61  ;;  %v3847_v41 = vld [vmem:[#allocation5 + $0x670] sm:$0xff]  ;;  %v8884_v13 = vcombine.low %v3850_v48, %v3854_v51  ;;  %v8886_v61 = vcombine.low %v3851_v6, %v3855_v56  ;;  %v9100_v6 = vcombine.low %v4066_v3, %v4070_v7  ;;  %v4150_v3 = vld [vmem:[#allocation5 + $0xfe8] sm:$0xff] }
 0x428   :  { %v8879_v17 = vcombine.high %v3843_v5, %v3847_v41  ;;  %v4059_v48 = vld [vmem:[#allocation5 + $0xd10] sm:$0xff] }
 0x429   :  { %v4063_v51 = vld [vmem:[#allocation5 + $0xd30] sm:$0xff] }
 0x42a   :  { %7855 = vmatpush1.bf16.msra.mxu0 %v8804_v40  ;;  %8060 = vmatpush1.bf16.msra.mxu1 %v8806_v59  ;;  %v3835_v40 = vld [vmem:[#allocation5 + $0x610] sm:$0xff] }
 0x42b   :  { %7856 = vmatprep.subr.bf16.mxu0 %v8925_v2  ;;  %8061 = vmatprep.subr.bf16.mxu1 %v8927_v54  ;;  %v3839_v59 = vld [vmem:[#allocation5 + $0x630] sm:$0xff]  ;;  %v8876_v2 = vcombine.low %v3842_v34, %v3846_v58  ;;  %v8878_v54 = vcombine.low %v3843_v5, %v3847_v41  ;;  %v4054_v34 = vld [vmem:[#allocation5 + $0xce8] sm:$0xff] }
 0x42c   :  { %v8871_v15 = vcombine.high %v3835_v40, %v3839_v59  ;;  %v4051_v58 = vld [vmem:[#allocation5 + $0xcd0] sm:$0xff] }
 0x42d   :  { %v4055_v5 = vld [vmem:[#allocation5 + $0xcf0] sm:$0xff] }
 0x42e   :  { %7857 = vmatpush2.bf16.msra.mxu0 %v8924_v16  ;;  %8062 = vmatpush2.bf16.msra.mxu1 %v8926_v0  ;;  %v4083_v16 = vld [vmem:[#allocation5 + $0xdd0] sm:$0xff] }
 0x42f   :  { %7858 = vmatprep.subr.bf16.mxu0 %v8917_v12  ;;  %8063 = vmatprep.subr.bf16.mxu1 %v8919_v43  ;;  %v4087_v0 = vld [vmem:[#allocation5 + $0xdf0] sm:$0xff]  ;;  %v8868_v12 = vcombine.low %v3834_v8, %v3838_v11  ;;  %v8870_v43 = vcombine.low %v3835_v40, %v3839_v59  ;;  %v4046_v8 = vld [vmem:[#allocation5 + $0xca8] sm:$0xff] }
 0x430   :  { %v9119_v42 = vcombine.high %v4083_v16, %v4087_v0  ;;  %v4043_v11 = vld [vmem:[#allocation5 + $0xc90] sm:$0xff] }
 0x431   :  { %v4047_v40 = vld [vmem:[#allocation5 + $0xcb0] sm:$0xff] }
 0x432   :  { %7859 = vmatpush2.bf16.msra.mxu0 %v8916_v20  ;;  %8064 = vmatpush2.bf16.msra.mxu1 %v8918_v21  ;;  %v4075_v20 = vld [vmem:[#allocation5 + $0xd90] sm:$0xff] }
 0x433   :  { %7860 = vmatprep.subr.bf16.mxu0 %v8909_v1  ;;  %8065 = vmatprep.subr.bf16.mxu1 %v8911_v37  ;;  %v4079_v21 = vld [vmem:[#allocation5 + $0xdb0] sm:$0xff]  ;;  %v9116_v1 = vcombine.low %v4082_v18, %v4086_v35  ;;  %v9118_v37 = vcombine.low %v4083_v16, %v4087_v0  ;;  %v4038_v18 = vld [vmem:[#allocation5 + $0xc68] sm:$0xff] }
 0x434   :  { %v9111_v22 = vcombine.high %v4075_v20, %v4079_v21  ;;  %v9110_v4 = vcombine.low %v4075_v20, %v4079_v21  ;;  %v4035_v35 = vld [vmem:[#allocation5 + $0xc50] sm:$0xff] }
 0x435   :  { %v4039_v16 = vld [vmem:[#allocation5 + $0xc70] sm:$0xff] }
 0x436   :  { %7861 = vmatpush2.bf16.msra.mxu0 %v8908_v49  ;;  %8066 = vmatpush2.bf16.msra.mxu1 %v8910_v47  ;;  %v10889_v47 = vld [vmem:[#allocation15_spill] sm:$0xff] }
 0x437   :  { %7862 = vmatprep.subr.bf16.mxu0 %v8901_v29  ;;  %8067 = vmatprep.subr.bf16.mxu1 %v8903_v36  ;;  %v4067_v29 = vld [vmem:[#allocation5 + $0xd50] sm:$0xff] }
 0x438   :  { %v4071_v36 = vld [vmem:[#allocation5 + $0xd70] sm:$0xff] }
 0x439   :  { %v4031_v20 = vld [vmem:[#allocation5 + $0xc30] sm:$0xff] }
 0x43a   :  { %7863 = vmatpush2.bf16.msra.mxu0 %v8900_v19  ;;  %8068 = vmatpush2.bf16.msra.mxu1 %v8902_v55  ;;  %v9103_v19 = vcombine.high %v4067_v29, %v4071_v36  ;;  %v4058_v55 = vld [vmem:[#allocation5 + $0xd08] sm:$0xff]  ;;  %v4147_v7 = vld [vmem:[#allocation5 + $0xfd0] sm:$0xff] }
 0x43b   :  { %7864 = vmatprep.subr.bf16.mxu0 %v8893_v39  ;;  %8069 = vmatprep.subr.bf16.mxu1 %v8895_v31  ;;  %v4062_v39 = vld [vmem:[#allocation5 + $0xd28] sm:$0xff] }
 0x43c   :  { %v9092_v41 = vcombine.low %v4058_v55, %v4062_v39 }
 0x43e   :  { %7865 = vmatpush2.bf16.msra.mxu0 %v8892_v63  ;;  %8070 = vmatpush2.bf16.msra.mxu1 %v8894_v26  ;;  %v9102_v63 = vcombine.low %v4067_v29, %v4071_v36  ;;  %v9093_v26 = vcombine.high %v4058_v55, %v4062_v39  ;;  %v4151_v29 = vld [vmem:[#allocation5 + $0xff0] sm:$0xff]  ;;  %v4142_v55 = vld [vmem:[#allocation5 + $0xfa8] sm:$0xff] }
 0x43f   :  { %7866 = vmatprep.subr.bf16.mxu0 %v8885_v45  ;;  %8071 = vmatprep.subr.bf16.mxu1 %v8887_v60  ;;  %v9095_v45 = vcombine.high %v4059_v48, %v4063_v51  ;;  %v4050_v60 = vld [vmem:[#allocation5 + $0xcc8] sm:$0xff]  ;;  %v4139_v39 = vld [vmem:[#allocation5 + $0xf90] sm:$0xff] }
 0x440   :  { %v9084_v59 = vcombine.low %v4050_v60, %v4054_v34 }
 0x442   :  { %7867 = vmatpush2.bf16.msra.mxu0 %v8884_v13  ;;  %8072 = vmatpush2.bf16.msra.mxu1 %v8886_v61  ;;  %v9094_v13 = vcombine.low %v4059_v48, %v4063_v51  ;;  %v9085_v61 = vcombine.high %v4050_v60, %v4054_v34  ;;  %v9182_v51 = vcombine.low %v4147_v7, %v4151_v29  ;;  %v4135_v60 = vld [vmem:[#allocation5 + $0xf70] sm:$0xff] }
 0x443   :  { %7868 = vmatprep.subr.bf16.mxu0 %v8877_v24  ;;  %8073 = vmatprep.subr.bf16.mxu1 %v8879_v17  ;;  %v9087_v24 = vcombine.high %v4051_v58, %v4055_v5  ;;  %v4042_v17 = vld [vmem:[#allocation5 + $0xc88] sm:$0xff] }
 0x444   :  { %v9076_v0 = vcombine.low %v4042_v17, %v4046_v8 }
 0x446   :  { %7869 = vmatpush2.bf16.msra.mxu0 %v8876_v2  ;;  %8074 = vmatpush2.bf16.msra.mxu1 %v8878_v54  ;;  %v9086_v2 = vcombine.low %v4051_v58, %v4055_v5  ;;  %v9077_v54 = vcombine.high %v4042_v17, %v4046_v8  ;;  %v4127_v17 = vld [vmem:[#allocation5 + $0xf30] sm:$0xff] }
 0x447   :  { %7870 = vmatprep.subr.bf16.mxu0 %v8869_v46  ;;  %8075 = vmatprep.subr.bf16.mxu1 %v8871_v15  ;;  %v9079_v46 = vcombine.high %v4043_v11, %v4047_v40  ;;  %v4034_v15 = vld [vmem:[#allocation5 + $0xc48] sm:$0xff] }
 0x448   :  { %v9068_v21 = vcombine.low %v4034_v15, %v4038_v18 }
 0x44a   :  { %7871 = vmatpush2.bf16.msra.mxu0 %v8868_v12  ;;  %8076 = vmatpush2.bf16.msra.mxu1 %v8870_v43  ;;  %v9078_v12 = vcombine.low %v4043_v11, %v4047_v40  ;;  %v9069_v43 = vcombine.high %v4034_v15, %v4038_v18  ;;  %v4119_v15 = vld [vmem:[#allocation5 + $0xef0] sm:$0xff] }
 0x44b   :  { %7922 = vmatprep.subr.bf16.mxu0 %v9117_v23  ;;  %8127 = vmatprep.subr.bf16.mxu1 %v9119_v42  ;;  %v9071_v23 = vcombine.high %v4035_v35, %v4039_v16  ;;  %v4026_v42 = vld [vmem:[#allocation5 + $0xc08] sm:$0xff] }
 0x44c   :  { %v9060_v36 = vcombine.low %v4026_v42, %v4030_v38 }
 0x44d   :  { %v10761_v49 = vpop.f32.mrf.mxu1  ;;  %7873 = vmatmul.mubr.bf16.vlgmr.msra.gmra.mxu0 %v10889_v47  ;;  %8078 = vmatmul.mubr.bf16.vlgmr.msra.gmra.mxu1 %v10889_v47 }
 0x44e   :  { %7923 = vmatpush1.bf16.msra.mxu0 %v9116_v1  ;;  %7954 = vmatprep.mubr.bf16.mxu0 %v10521_v52  ;;  %v9070_v1 = vcombine.low %v4035_v35, %v4039_v16 }
 0x44f   :  { %8128 = vmatpush1.bf16.msra.mxu1 %v9118_v37  ;;  %8159 = vmatprep.mubr.bf16.mxu1 %v10521_v52  ;;  %v10767_v57 = vpop.f32.mrf.mxu1  ;;  %v9061_v37 = vcombine.high %v4026_v42, %v4030_v38  ;;  %v4111_v42 = vld [vmem:[#allocation5 + $0xeb0] sm:$0xff] }
 0x450   :  { %7924 = vmatprep.subr.bf16.mxu0 %v9109_v10  ;;  %8129 = vmatprep.subr.bf16.mxu1 %v9111_v22  ;;  %v9063_v10 = vcombine.high %v4027_v32, %v4031_v20  ;;  %v4146_v22 = vld [vmem:[#allocation5 + $0xfc8] sm:$0xff] }
 0x451   :  { %v7837_v31 = vpop.f32.mrf.mxu1  ;;  %v9180_v48 = vcombine.low %v4146_v22, %v4150_v3 }
 0x452   :  { %7925 = vmatpush1.bf16.msra.mxu0 %v9108_v14  ;;  %v9062_v14 = vcombine.low %v4027_v32, %v4031_v20  ;;  %v4143_v31 = vld [vmem:[#allocation5 + $0xfb0] sm:$0xff] }
 0x453   :  { %8130 = vmatpush1.bf16.msra.mxu1 %v9110_v4  ;;  %v7838_v56 = vpop.f32.mrf.mxu1  ;;  %7926 = vmatprep.subr.bf16.mxu0 %v9101_v50  ;;  %v9181_v4 = vcombine.high %v4146_v22, %v4150_v3  ;;  %v9183_v50 = vcombine.high %v4147_v7, %v4151_v29  ;;  %v9174_v58 = vcombine.low %v4139_v39, %v4143_v31  ;;  %v4103_v22 = vld [vmem:[#allocation5 + $0xe70] sm:$0xff] }
 0x454   :  { %8131 = vmatprep.subr.bf16.mxu1 %v9103_v19  ;;  %v4138_v19 = vld [vmem:[#allocation5 + $0xf88] sm:$0xff]  ;;  %v9175_v56 = vcombine.high %v4139_v39, %v4143_v31 }
 0x455   :  { %v9172_v34 = vcombine.low %v4138_v19, %v4142_v55 }
 0x456   :  { %7927 = vmatpush1.bf16.msra.mxu0 %v9100_v6  ;;  %v9173_v6 = vcombine.high %v4138_v19, %v4142_v55  ;;  %v4095_v19 = vld [vmem:[#allocation5 + $0xe30] sm:$0xff] }
 0x457   :  { %8132 = vmatpush1.bf16.msra.mxu1 %v9102_v63  ;;  %7928 = vmatprep.subr.bf16.mxu0 %v9093_v26  ;;  %v4130_v63 = vld [vmem:[#allocation5 + $0xf48] sm:$0xff] }
 0x458   :  { %8133 = vmatprep.subr.bf16.mxu1 %v9095_v45  ;;  %v4134_v26 = vld [vmem:[#allocation5 + $0xf68] sm:$0xff]  ;;  %v4131_v45 = vld [vmem:[#allocation5 + $0xf50] sm:$0xff] }
 0x459   :  { %v9165_v5 = vcombine.high %v4130_v63, %v4134_v26  ;;  %v9164_v8 = vcombine.low %v4130_v63, %v4134_v26  ;;  %v9166_v11 = vcombine.low %v4131_v45, %v4135_v60  ;;  %v3704_v63 = vld [vmem:[#allocation5 + $0x1f8] sm:$0xff] }
 0x45a   :  { %7929 = vmatpush1.bf16.msra.mxu0 %v9092_v41  ;;  %v9167_v41 = vcombine.high %v4131_v45, %v4135_v60 }
 0x45b   :  { %8134 = vmatpush1.bf16.msra.mxu1 %v9094_v13  ;;  %7930 = vmatprep.subr.bf16.mxu0 %v9085_v61  ;;  %v4122_v13 = vld [vmem:[#allocation5 + $0xf08] sm:$0xff] }
 0x45c   :  { %8135 = vmatprep.subr.bf16.mxu1 %v9087_v24  ;;  %v4126_v61 = vld [vmem:[#allocation5 + $0xf28] sm:$0xff]  ;;  %v4123_v24 = vld [vmem:[#allocation5 + $0xf10] sm:$0xff] }
 0x45d   :  { %v9157_v40 = vcombine.high %v4122_v13, %v4126_v61  ;;  %v9156_v18 = vcombine.low %v4122_v13, %v4126_v61  ;;  %v9158_v35 = vcombine.low %v4123_v24, %v4127_v17  ;;  %v3692_v13 = vld [vmem:[#allocation5 + $0x198] sm:$0xff] }
 0x45e   :  { %7931 = vmatpush1.bf16.msra.mxu0 %v9084_v59  ;;  %v9159_v59 = vcombine.high %v4123_v24, %v4127_v17  ;;  %v3696_v61 = vld [vmem:[#allocation5 + $0x1b8] sm:$0xff] }
 0x45f   :  { %8136 = vmatpush1.bf16.msra.mxu1 %v9086_v2  ;;  %7932 = vmatprep.subr.bf16.mxu0 %v9077_v54  ;;  %v4114_v2 = vld [vmem:[#allocation5 + $0xec8] sm:$0xff] }
 0x460   :  { %8137 = vmatprep.subr.bf16.mxu1 %v9079_v46  ;;  %v4118_v54 = vld [vmem:[#allocation5 + $0xee8] sm:$0xff]  ;;  %v4115_v46 = vld [vmem:[#allocation5 + $0xed0] sm:$0xff] }
 0x461   :  { %v9149_v16 = vcombine.high %v4114_v2, %v4118_v54  ;;  %v9148_v38 = vcombine.low %v4114_v2, %v4118_v54  ;;  %v9150_v32 = vcombine.low %v4115_v46, %v4119_v15  ;;  %v3684_v2 = vld [vmem:[#allocation5 + $0x158] sm:$0xff] }
 0x462   :  { %7933 = vmatpush1.bf16.msra.mxu0 %v9076_v0  ;;  %v9151_v0 = vcombine.high %v4115_v46, %v4119_v15  ;;  %v3688_v54 = vld [vmem:[#allocation5 + $0x178] sm:$0xff] }
 0x463   :  { %8138 = vmatpush1.bf16.msra.mxu1 %v9078_v12  ;;  %7934 = vmatprep.subr.bf16.mxu0 %v9069_v43  ;;  %v4106_v12 = vld [vmem:[#allocation5 + $0xe88] sm:$0xff] }
 0x464   :  { %8139 = vmatprep.subr.bf16.mxu1 %v9071_v23  ;;  %v4110_v43 = vld [vmem:[#allocation5 + $0xea8] sm:$0xff]  ;;  %v4107_v23 = vld [vmem:[#allocation5 + $0xe90] sm:$0xff] }
 0x465   :  { %v9141_v20 = vcombine.high %v4106_v12, %v4110_v43  ;;  %v9140_v3 = vcombine.low %v4106_v12, %v4110_v43  ;;  %v9142_v7 = vcombine.low %v4107_v23, %v4111_v42  ;;  %v3679_v12 = vld [vmem:[#allocation5 + $0x130] sm:$0xff] }
 0x466   :  { %7935 = vmatpush1.bf16.msra.mxu0 %v9068_v21  ;;  %v9143_v21 = vcombine.high %v4107_v23, %v4111_v42  ;;  %v3676_v23 = vld [vmem:[#allocation5 + $0x118] sm:$0xff] }
 0x467   :  { %8140 = vmatpush1.bf16.msra.mxu1 %v9070_v1  ;;  %7936 = vmatprep.subr.bf16.mxu0 %v9061_v37  ;;  %v4098_v1 = vld [vmem:[#allocation5 + $0xe48] sm:$0xff]  ;;  %v3680_v42 = vld [vmem:[#allocation5 + $0x138] sm:$0xff] }
 0x468   :  { %8141 = vmatprep.subr.bf16.mxu1 %v9063_v10  ;;  %v4102_v37 = vld [vmem:[#allocation5 + $0xe68] sm:$0xff]  ;;  %v4099_v10 = vld [vmem:[#allocation5 + $0xe50] sm:$0xff] }
 0x469   :  { %v9133_v29 = vcombine.high %v4098_v1, %v4102_v37  ;;  %v9132_v55 = vcombine.low %v4098_v1, %v4102_v37  ;;  %v9134_v39 = vcombine.low %v4099_v10, %v4103_v22  ;;  %v8713_v1 = vcombine.high %v3676_v23, %v3680_v42  ;;  %v3667_v37 = vld [vmem:[#allocation5 + $0xd0] sm:$0xff] }
 0x46a   :  { %7937 = vmatpush1.bf16.msra.mxu0 %v9060_v36  ;;  %v9135_v36 = vcombine.high %v4099_v10, %v4103_v22  ;;  %v3671_v10 = vld [vmem:[#allocation5 + $0xf0] sm:$0xff]  ;;  %v3672_v22 = vld [vmem:[#allocation5 + $0xf8] sm:$0xff] }
 0x46b   :  { %8142 = vmatpush1.bf16.msra.mxu1 %v9062_v14  ;;  %7938 = vmatprep.subr.bf16.mxu0 %v9181_v4  ;;  %v4090_v14 = vld [vmem:[#allocation5 + $0xe08] sm:$0xff] }
 0x46c   :  { %8143 = vmatprep.subr.bf16.mxu1 %v9183_v50  ;;  %v4094_v4 = vld [vmem:[#allocation5 + $0xe28] sm:$0xff]  ;;  %v4091_v50 = vld [vmem:[#allocation5 + $0xe10] sm:$0xff] }
 0x46d   :  { %v9125_v31 = vcombine.high %v4090_v14, %v4094_v4  ;;  %v9124_v26 = vcombine.low %v4090_v14, %v4094_v4  ;;  %v9126_v45 = vcombine.low %v4091_v50, %v4095_v19  ;;  %v3659_v14 = vld [vmem:[#allocation5 + $0x90] sm:$0xff] }
 0x46e   :  { %7939 = vmatpush2.bf16.msra.mxu0 %v9180_v48  ;;  %v9127_v48 = vcombine.high %v4091_v50, %v4095_v19  ;;  %v3663_v4 = vld [vmem:[#allocation5 + $0xb0] sm:$0xff]  ;;  %v3660_v50 = vld [vmem:[#allocation5 + $0x98] sm:$0xff] }
 0x46f   :  { %8144 = vmatpush2.bf16.msra.mxu1 %v9182_v51  ;;  %7940 = vmatprep.subr.bf16.mxu0 %v9173_v6  ;;  %v3699_v51 = vld [vmem:[#allocation5 + $0x1d0] sm:$0xff]  ;;  %v3664_v19 = vld [vmem:[#allocation5 + $0xb8] sm:$0xff] }
 0x470   :  { %8145 = vmatprep.subr.bf16.mxu1 %v9175_v56  ;;  %v3703_v6 = vld [vmem:[#allocation5 + $0x1f0] sm:$0xff]  ;;  %v3700_v56 = vld [vmem:[#allocation5 + $0x1d8] sm:$0xff] }
 0x471   :  { %v8735_v60 = vcombine.high %v3699_v51, %v3703_v6  ;;  %v8736_v24 = vcombine.low %v3700_v56, %v3704_v63 }
 0x472   :  { %7941 = vmatpush2.bf16.msra.mxu0 %v9172_v34  ;;  %v8737_v34 = vcombine.high %v3700_v56, %v3704_v63  ;;  %v3652_v56 = vld [vmem:[#allocation5 + $0x58] sm:$0xff] }
 0x473   :  { %8146 = vmatpush2.bf16.msra.mxu1 %v9174_v58  ;;  %7942 = vmatprep.subr.bf16.mxu0 %v9165_v5  ;;  %v3691_v58 = vld [vmem:[#allocation5 + $0x190] sm:$0xff]  ;;  %v3656_v63 = vld [vmem:[#allocation5 + $0x78] sm:$0xff] }
 0x474   :  { %8147 = vmatprep.subr.bf16.mxu1 %v9167_v41  ;;  %v3695_v5 = vld [vmem:[#allocation5 + $0x1b0] sm:$0xff]  ;;  %v8734_v41 = vcombine.low %v3699_v51, %v3703_v6 }
 0x475   :  { %v8727_v17 = vcombine.high %v3691_v58, %v3695_v5  ;;  %v8726_v46 = vcombine.low %v3691_v58, %v3695_v5  ;;  %v3651_v51 = vld [vmem:[#allocation5 + $0x50] sm:$0xff] }
 0x476   :  { %7943 = vmatpush2.bf16.msra.mxu0 %v9164_v8  ;;  %v3683_v8 = vld [vmem:[#allocation5 + $0x150] sm:$0xff] }
 0x477   :  { %8148 = vmatpush2.bf16.msra.mxu1 %v9166_v11  ;;  %7944 = vmatprep.subr.bf16.mxu0 %v9157_v40  ;;  %v3687_v11 = vld [vmem:[#allocation5 + $0x170] sm:$0xff] }
 0x478   :  { %8149 = vmatprep.subr.bf16.mxu1 %v9159_v59  ;;  %v8729_v59 = vcombine.high %v3692_v13, %v3696_v61  ;;  %v3655_v6 = vld [vmem:[#allocation5 + $0x70] sm:$0xff] }
 0x479   :  { %v3643_v58 = vld [vmem:[#allocation5 + $0x10] sm:$0xff] }
 0x47a   :  { %7945 = vmatpush2.bf16.msra.mxu0 %v9156_v18  ;;  %v8728_v18 = vcombine.low %v3692_v13, %v3696_v61  ;;  %v3647_v5 = vld [vmem:[#allocation5 + $0x30] sm:$0xff]  ;;  %v3648_v13 = vld [vmem:[#allocation5 + $0x38] sm:$0xff]  ;;  %v8686_v61 = vcombine.low %v3651_v51, %v3655_v6 }
 0x47b   :  { %8150 = vmatpush2.bf16.msra.mxu1 %v9158_v35  ;;  %7946 = vmatprep.subr.bf16.mxu0 %v9149_v16  ;;  %v8719_v35 = vcombine.high %v3683_v8, %v3687_v11  ;;  %v8721_v16 = vcombine.high %v3684_v2, %v3688_v54 }
 0x47c   :  { %8151 = vmatprep.subr.bf16.mxu1 %v9151_v0  ;;  %v3675_v0 = vld [vmem:[#allocation5 + $0x110] sm:$0xff] }
 0x47e   :  { %7947 = vmatpush2.bf16.msra.mxu0 %v9148_v38  ;;  %v8718_v38 = vcombine.low %v3683_v8, %v3687_v11  ;;  %v3763_v11 = vld [vmem:[#allocation5 + $0x3d0] sm:$0xff] }
 0x47f   :  { %8152 = vmatpush2.bf16.msra.mxu1 %v9150_v32  ;;  %7948 = vmatprep.subr.bf16.mxu0 %v9141_v20  ;;  %v8720_v20 = vcombine.low %v3684_v2, %v3688_v54  ;;  %v3764_v2 = vld [vmem:[#allocation5 + $0x3d8] sm:$0xff] }
 0x480   :  { %8153 = vmatprep.subr.bf16.mxu1 %v9143_v21  ;;  %v8711_v21 = vcombine.high %v3675_v0, %v3679_v12  ;;  %v3768_v54 = vld [vmem:[#allocation5 + $0x3f8] sm:$0xff] }
 0x482   :  { %7949 = vmatpush2.bf16.msra.mxu0 %v9140_v3  ;;  %v8710_v3 = vcombine.low %v3675_v0, %v3679_v12  ;;  %v3755_v0 = vld [vmem:[#allocation5 + $0x390] sm:$0xff] }
 0x483   :  { %8154 = vmatpush2.bf16.msra.mxu1 %v9142_v7  ;;  %7950 = vmatprep.subr.bf16.mxu0 %v9133_v29  ;;  %v8712_v7 = vcombine.low %v3676_v23, %v3680_v42  ;;  %v8703_v29 = vcombine.high %v3667_v37, %v3671_v10  ;;  %v3759_v12 = vld [vmem:[#allocation5 + $0x3b0] sm:$0xff]  ;;  %v3760_v23 = vld [vmem:[#allocation5 + $0x3b8] sm:$0xff] }
 0x484   :  { %8155 = vmatprep.subr.bf16.mxu1 %v9135_v36 }
 0x486   :  { %7951 = vmatpush2.bf16.msra.mxu0 %v9132_v55  ;;  %v8702_v55 = vcombine.low %v3667_v37, %v3671_v10  ;;  %v3748_v37 = vld [vmem:[#allocation5 + $0x358] sm:$0xff] }
 0x487   :  { %8156 = vmatpush2.bf16.msra.mxu1 %v9134_v39  ;;  %7952 = vmatprep.subr.bf16.mxu0 %v9125_v31  ;;  %v8695_v31 = vcombine.high %v3659_v14, %v3663_v4  ;;  %v3752_v10 = vld [vmem:[#allocation5 + $0x378] sm:$0xff] }
 0x488   :  { %8157 = vmatprep.subr.bf16.mxu1 %v9127_v48  ;;  %v8697_v48 = vcombine.high %v3660_v50, %v3664_v19 }
 0x48a   :  { %7953 = vmatpush2.bf16.msra.mxu0 %v9124_v26  ;;  %v8694_v26 = vcombine.low %v3659_v14, %v3663_v4  ;;  %v3740_v14 = vld [vmem:[#allocation5 + $0x318] sm:$0xff] }
 0x48b   :  { %8158 = vmatpush2.bf16.msra.mxu1 %v9126_v45  ;;  %8004 = vmatprep.subr.bf16.mxu0 %v8735_v60  ;;  %v8696_v45 = vcombine.low %v3660_v50, %v3664_v19  ;;  %v8687_v60 = vcombine.high %v3651_v51, %v3655_v6  ;;  %v3744_v4 = vld [vmem:[#allocation5 + $0x338] sm:$0xff]  ;;  %v8784_v19 = vcombine.low %v3748_v37, %v3752_v10 }
 0x48c   :  { %8209 = vmatprep.subr.bf16.mxu1 %v8737_v34  ;;  %v8689_v34 = vcombine.high %v3652_v56, %v3656_v63  ;;  %v3732_v51 = vld [vmem:[#allocation5 + $0x2d8] sm:$0xff] }
 0x48d   :  { %v10769_v40 = vpop.f32.mrf.mxu1  ;;  %7955 = vmatmul.mubr.bf16.vlgmr.msra.gmra.mxu0 %v10558_v53  ;;  %v3736_v6 = vld [vmem:[#allocation5 + $0x2f8] sm:$0xff] }
 0x48e   :  { %8160 = vmatmul.mubr.bf16.vlgmr.msra.gmra.mxu1 %v10558_v53  ;;  %8005 = vmatpush1.bf16.msra.mxu0 %v8734_v41  ;;  %v3644_v41 = vld [vmem:[#allocation5 + $0x18] sm:$0xff] }
 0x48f   :  { %8036 = vmatprep.mubr.bf16.mxu0 %v10156_v27  ;;  %8210 = vmatpush1.bf16.msra.mxu1 %v8736_v24  ;;  %v10774_v15 = vpop.f32.mrf.mxu1  ;;  %v8688_v24 = vcombine.low %v3652_v56, %v3656_v63  ;;  %v8681_v8 = vcombine.high %v3644_v41, %v3648_v13  ;;  %v8776_v63 = vcombine.low %v3740_v14, %v3744_v4 }
 0x490   :  { %8241 = vmatprep.mubr.bf16.mxu1 %v10156_v27  ;;  %8006 = vmatprep.subr.bf16.mxu0 %v8727_v17  ;;  %v3668_v27 = vld [vmem:[#allocation5 + $0xd8] sm:$0xff]  ;;  %v8679_v17 = vcombine.high %v3643_v58, %v3647_v5 }
 0x491   :  { %v7919_v43 = vpop.f32.mrf.mxu1  ;;  %8211 = vmatprep.subr.bf16.mxu1 %v8729_v59  ;;  %v8705_v36 = vcombine.high %v3668_v27, %v3672_v22  ;;  %v8704_v39 = vcombine.low %v3668_v27, %v3672_v22  ;;  %v3767_v59 = vld [vmem:[#allocation5 + $0x3f0] sm:$0xff]  ;;  %v8790_v27 = vcombine.low %v3755_v0, %v3759_v12 }
 0x492   :  { %8007 = vmatpush1.bf16.msra.mxu0 %v8726_v46  ;;  %v8678_v46 = vcombine.low %v3643_v58, %v3647_v5  ;;  %v3756_v43 = vld [vmem:[#allocation5 + $0x398] sm:$0xff]  ;;  %v8798_v42 = vcombine.low %v3763_v11, %v3767_v59 }
 0x493   :  { %8212 = vmatpush1.bf16.msra.mxu1 %v8728_v18  ;;  %v7920_v32 = vpop.f32.mrf.mxu1  ;;  %8008 = vmatprep.subr.bf16.mxu0 %v8719_v35  ;;  %v8680_v18 = vcombine.low %v3644_v41, %v3648_v13  ;;  %v8799_v35 = vcombine.high %v3763_v11, %v3767_v59  ;;  %v8792_v22 = vcombine.low %v3756_v43, %v3760_v23  ;;  %v3724_v58 = vld [vmem:[#allocation5 + $0x298] sm:$0xff] }
 0x494   :  { %8213 = vmatprep.subr.bf16.mxu1 %v8721_v16  ;;  %v8801_v16 = vcombine.high %v3764_v2, %v3768_v54  ;;  %v8791_v32 = vcombine.high %v3755_v0, %v3759_v12  ;;  %v3728_v5 = vld [vmem:[#allocation5 + $0x2b8] sm:$0xff]  ;;  %v8768_v13 = vcombine.low %v3732_v51, %v3736_v6 }
 0x495   :  { %v3716_v11 = vld [vmem:[#allocation5 + $0x258] sm:$0xff] }
 0x496   :  { %8009 = vmatpush1.bf16.msra.mxu0 %v8718_v38  ;;  %v8800_v38 = vcombine.low %v3764_v2, %v3768_v54  ;;  %v3720_v59 = vld [vmem:[#allocation5 + $0x278] sm:$0xff]  ;;  %v8760_v54 = vcombine.low %v3724_v58, %v3728_v5 }
 0x497   :  { %8214 = vmatpush1.bf16.msra.mxu1 %v8720_v20  ;;  %8010 = vmatprep.subr.bf16.mxu0 %v8711_v21  ;;  %v8793_v20 = vcombine.high %v3756_v43, %v3760_v23  ;;  %v3747_v21 = vld [vmem:[#allocation5 + $0x350] sm:$0xff]  ;;  %v3708_v0 = vld [vmem:[#allocation5 + $0x218] sm:$0xff]  ;;  %v8752_v23 = vcombine.low %v3716_v11, %v3720_v59 }
 0x498   :  { %8215 = vmatprep.subr.bf16.mxu1 %v8713_v1  ;;  %v3751_v1 = vld [vmem:[#allocation5 + $0x370] sm:$0xff]  ;;  %v3712_v12 = vld [vmem:[#allocation5 + $0x238] sm:$0xff] }
 0x499   :  { %v8782_v50 = vcombine.low %v3747_v21, %v3751_v1 }
 0x49a   :  { %8011 = vmatpush1.bf16.msra.mxu0 %v8710_v3  ;;  %v8783_v3 = vcombine.high %v3747_v21, %v3751_v1  ;;  %v3956_v21 = vld [vmem:[#allocation5 + $0x9d8] sm:$0xff] }
 0x49b   :  { %8216 = vmatpush1.bf16.msra.mxu1 %v8712_v7  ;;  %8012 = vmatprep.subr.bf16.mxu0 %v8703_v29  ;;  %v8785_v7 = vcombine.high %v3748_v37, %v3752_v10  ;;  %v3739_v29 = vld [vmem:[#allocation5 + $0x310] sm:$0xff]  ;;  %v3960_v1 = vld [vmem:[#allocation5 + $0x9f8] sm:$0xff]  ;;  %v8744_v10 = vcombine.low %v3708_v0, %v3712_v12 }
 0x49c   :  { %8217 = vmatprep.subr.bf16.mxu1 %v8705_v36  ;;  %v3743_v36 = vld [vmem:[#allocation5 + $0x330] sm:$0xff] }
 0x49d   :  { %v8774_v56 = vcombine.low %v3739_v29, %v3743_v36 }
 0x49e   :  { %8013 = vmatpush1.bf16.msra.mxu0 %v8702_v55  ;;  %v8775_v55 = vcombine.high %v3739_v29, %v3743_v36  ;;  %v3948_v36 = vld [vmem:[#allocation5 + $0x998] sm:$0xff] }
 0x49f   :  { %8218 = vmatpush1.bf16.msra.mxu1 %v8704_v39  ;;  %8014 = vmatprep.subr.bf16.mxu0 %v8695_v31  ;;  %v8777_v39 = vcombine.high %v3740_v14, %v3744_v4  ;;  %v3731_v31 = vld [vmem:[#allocation5 + $0x2d0] sm:$0xff]  ;;  %v3952_v14 = vld [vmem:[#allocation5 + $0x9b8] sm:$0xff]  ;;  %v8992_v4 = vcombine.low %v3956_v21, %v3960_v1 }
 0x4a0   :  { %8219 = vmatprep.subr.bf16.mxu1 %v8697_v48  ;;  %v3735_v48 = vld [vmem:[#allocation5 + $0x2f0] sm:$0xff] }
 0x4a1   :  { %v8766_v41 = vcombine.low %v3731_v31, %v3735_v48 }
 0x4a2   :  { %8015 = vmatpush1.bf16.msra.mxu0 %v8694_v26  ;;  %v8767_v26 = vcombine.high %v3731_v31, %v3735_v48  ;;  %v8985_v48 = vcombine.high %v3948_v36, %v3952_v14 }
 0x4a3   :  { %8220 = vmatpush1.bf16.msra.mxu1 %v8696_v45  ;;  %8016 = vmatprep.subr.bf16.mxu0 %v8687_v60  ;;  %v8769_v45 = vcombine.high %v3732_v51, %v3736_v6  ;;  %v3723_v60 = vld [vmem:[#allocation5 + $0x290] sm:$0xff]  ;;  %v3940_v51 = vld [vmem:[#allocation5 + $0x958] sm:$0xff] }
 0x4a4   :  { %8221 = vmatprep.subr.bf16.mxu1 %v8689_v34  ;;  %v3727_v34 = vld [vmem:[#allocation5 + $0x2b0] sm:$0xff]  ;;  %v3944_v6 = vld [vmem:[#allocation5 + $0x978] sm:$0xff] }
 0x4a5   :  { %v8758_v2 = vcombine.low %v3723_v60, %v3727_v34 }
 0x4a6   :  { %8017 = vmatpush1.bf16.msra.mxu0 %v8686_v61  ;;  %v8759_v61 = vcombine.high %v3723_v60, %v3727_v34  ;;  %v8984_v34 = vcombine.low %v3948_v36, %v3952_v14 }
 0x4a7   :  { %8222 = vmatpush1.bf16.msra.mxu1 %v8688_v24  ;;  %8018 = vmatprep.subr.bf16.mxu0 %v8679_v17  ;;  %v8761_v24 = vcombine.high %v3724_v58, %v3728_v5  ;;  %v3715_v17 = vld [vmem:[#allocation5 + $0x250] sm:$0xff] }
 0x4a8   :  { %8223 = vmatprep.subr.bf16.mxu1 %v8681_v8  ;;  %v3719_v8 = vld [vmem:[#allocation5 + $0x270] sm:$0xff] }
 0x4a9   :  { %v8750_v43 = vcombine.low %v3715_v17, %v3719_v8 }
 0x4aa   :  { %8019 = vmatpush1.bf16.msra.mxu0 %v8678_v46  ;;  %v8751_v46 = vcombine.high %v3715_v17, %v3719_v8  ;;  %v3936_v17 = vld [vmem:[#allocation5 + $0x938] sm:$0xff] }
 0x4ab   :  { %8224 = vmatpush1.bf16.msra.mxu1 %v8680_v18  ;;  %8020 = vmatprep.subr.bf16.mxu0 %v8799_v35  ;;  %v8753_v18 = vcombine.high %v3716_v11, %v3720_v59  ;;  %v3707_v35 = vld [vmem:[#allocation5 + $0x210] sm:$0xff] }
 0x4ac   :  { %8225 = vmatprep.subr.bf16.mxu1 %v8801_v16  ;;  %v3711_v16 = vld [vmem:[#allocation5 + $0x230] sm:$0xff] }
 0x4ad   :  { %v8742_v37 = vcombine.low %v3707_v35, %v3711_v16 }
 0x4ae   :  { %8021 = vmatpush2.bf16.msra.mxu0 %v8798_v42  ;;  %v8743_v42 = vcombine.high %v3707_v35, %v3711_v16  ;;  %v3927_v35 = vld [vmem:[#allocation5 + $0x8f0] sm:$0xff]  ;;  %v3924_v16 = vld [vmem:[#allocation5 + $0x8d8] sm:$0xff] }
 0x4af   :  { %8226 = vmatpush2.bf16.msra.mxu1 %v8800_v38  ;;  %8022 = vmatprep.subr.bf16.mxu0 %v8791_v32  ;;  %v8745_v38 = vcombine.high %v3708_v0, %v3712_v12  ;;  %v3955_v32 = vld [vmem:[#allocation5 + $0x9d0] sm:$0xff]  ;;  %v3928_v0 = vld [vmem:[#allocation5 + $0x8f8] sm:$0xff] }
 0x4b0   :  { %8227 = vmatprep.subr.bf16.mxu1 %v8793_v20  ;;  %v3959_v20 = vld [vmem:[#allocation5 + $0x9f0] sm:$0xff] }
 0x4b1   :  { %v8990_v29 = vcombine.low %v3955_v32, %v3959_v20 }
 0x4b2   :  { %8023 = vmatpush2.bf16.msra.mxu0 %v8790_v27  ;;  %v8991_v27 = vcombine.high %v3955_v32, %v3959_v20  ;;  %v3919_v32 = vld [vmem:[#allocation5 + $0x8b0] sm:$0xff]  ;;  %v3916_v20 = vld [vmem:[#allocation5 + $0x898] sm:$0xff] }
 0x4b3   :  { %8228 = vmatpush2.bf16.msra.mxu1 %v8792_v22  ;;  %8024 = vmatprep.subr.bf16.mxu0 %v8783_v3  ;;  %v8993_v22 = vcombine.high %v3956_v21, %v3960_v1  ;;  %v3947_v3 = vld [vmem:[#allocation5 + $0x990] sm:$0xff]  ;;  %v3920_v21 = vld [vmem:[#allocation5 + $0x8b8] sm:$0xff] }
 0x4b4   :  { %8229 = vmatprep.subr.bf16.mxu1 %v8785_v7  ;;  %v3951_v7 = vld [vmem:[#allocation5 + $0x9b0] sm:$0xff]  ;;  %v8952_v14 = vcombine.low %v3916_v20, %v3920_v21 }
 0x4b6   :  { %8025 = vmatpush2.bf16.msra.mxu0 %v8782_v50  ;;  %v8983_v50 = vcombine.high %v3947_v3, %v3951_v7 }
 0x4b7   :  { %8230 = vmatpush2.bf16.msra.mxu1 %v8784_v19  ;;  %8026 = vmatprep.subr.bf16.mxu0 %v8775_v55  ;;  %v3939_v19 = vld [vmem:[#allocation5 + $0x950] sm:$0xff] }
 0x4b8   :  { %8231 = vmatprep.subr.bf16.mxu1 %v8777_v39  ;;  %v3943_v55 = vld [vmem:[#allocation5 + $0x970] sm:$0xff] }
 0x4b9   :  { %v8975_v58 = vcombine.high %v3939_v19, %v3943_v55  ;;  %v8974_v11 = vcombine.low %v3939_v19, %v3943_v55  ;;  %v3899_v19 = vld [vmem:[#allocation5 + $0x810] sm:$0xff] }
 0x4ba   :  { %8027 = vmatpush2.bf16.msra.mxu0 %v8774_v56  ;;  %v3903_v55 = vld [vmem:[#allocation5 + $0x830] sm:$0xff] }
 0x4bb   :  { %8232 = vmatpush2.bf16.msra.mxu1 %v8776_v63  ;;  %8028 = vmatprep.subr.bf16.mxu0 %v8767_v26  ;;  %v8982_v63 = vcombine.low %v3947_v3, %v3951_v7  ;;  %v10890_v26 = vld [vmem:[#allocation16_spill] sm:$0xff]  ;;  %v3911_v3 = vld [vmem:[#allocation5 + $0x870] sm:$0xff] }
 0x4bc   :  { %8233 = vmatprep.subr.bf16.mxu1 %v8769_v45  ;;  %v3908_v7 = vld [vmem:[#allocation5 + $0x858] sm:$0xff] }
 0x4be   :  { %8029 = vmatpush2.bf16.msra.mxu0 %v8766_v41  ;;  %v3931_v41 = vld [vmem:[#allocation5 + $0x910] sm:$0xff] }
 0x4bf   :  { %8234 = vmatpush2.bf16.msra.mxu1 %v8768_v13  ;;  %8030 = vmatprep.subr.bf16.mxu0 %v8759_v61 }
 0x4c0   :  { %8235 = vmatprep.subr.bf16.mxu1 %v8761_v24  ;;  %v3932_v24 = vld [vmem:[#allocation5 + $0x918] sm:$0xff] }
 0x4c2   :  { %8031 = vmatpush2.bf16.msra.mxu0 %v8758_v2 }
 0x4c3   :  { %8236 = vmatpush2.bf16.msra.mxu1 %v8760_v54  ;;  %8032 = vmatprep.subr.bf16.mxu0 %v8751_v46  ;;  %v8969_v46 = vcombine.high %v3932_v24, %v3936_v17 }
 0x4c4   :  { %8237 = vmatprep.subr.bf16.mxu1 %v8753_v18  ;;  %v3923_v18 = vld [vmem:[#allocation5 + $0x8d0] sm:$0xff] }
 0x4c5   :  { %v8958_v1 = vcombine.low %v3923_v18, %v3927_v35 }
 0x4c6   :  { %8033 = vmatpush2.bf16.msra.mxu0 %v8750_v43  ;;  %v8968_v43 = vcombine.low %v3932_v24, %v3936_v17  ;;  %v4011_v24 = vld [vmem:[#allocation5 + $0xb90] sm:$0xff] }
 0x4c7   :  { %8238 = vmatpush2.bf16.msra.mxu1 %v8752_v23  ;;  %8034 = vmatprep.subr.bf16.mxu0 %v8743_v42  ;;  %v8959_v23 = vcombine.high %v3923_v18, %v3927_v35  ;;  %v8961_v42 = vcombine.high %v3924_v16, %v3928_v0  ;;  %v4015_v17 = vld [vmem:[#allocation5 + $0xbb0] sm:$0xff] }
 0x4c8   :  { %8239 = vmatprep.subr.bf16.mxu1 %v8745_v38  ;;  %v3915_v38 = vld [vmem:[#allocation5 + $0x890] sm:$0xff] }
 0x4c9   :  { %v8950_v36 = vcombine.low %v3915_v38, %v3919_v32  ;;  %v4003_v18 = vld [vmem:[#allocation5 + $0xb50] sm:$0xff] }
 0x4ca   :  { %8035 = vmatpush2.bf16.msra.mxu0 %v8742_v37  ;;  %v8960_v37 = vcombine.low %v3924_v16, %v3928_v0  ;;  %v4007_v35 = vld [vmem:[#allocation5 + $0xb70] sm:$0xff]  ;;  %v4004_v16 = vld [vmem:[#allocation5 + $0xb58] sm:$0xff] }
 0x4cb   :  { %8240 = vmatpush2.bf16.msra.mxu1 %v8744_v10  ;;  %8086 = vmatprep.subr.bf16.mxu0 %v8991_v27  ;;  %v8951_v10 = vcombine.high %v3915_v38, %v3919_v32  ;;  %v8953_v27 = vcombine.high %v3916_v20, %v3920_v21  ;;  %v4008_v0 = vld [vmem:[#allocation5 + $0xb78] sm:$0xff]  ;;  %v3995_v38 = vld [vmem:[#allocation5 + $0xb10] sm:$0xff] }
 0x4cc   :  { %8291 = vmatprep.subr.bf16.mxu1 %v8993_v22  ;;  %v3907_v22 = vld [vmem:[#allocation5 + $0x850] sm:$0xff]  ;;  %v3996_v20 = vld [vmem:[#allocation5 + $0xb18] sm:$0xff] }
 0x4cd   :  { %8037 = vmatmul.mubr.bf16.vlgmr.msra.gmra.mxu0 %v10163_v44  ;;  %v7792_v39 = vpop.f32.mrf.mxu0  ;;  %v10778_v31 = vpop.f32.mrf.mxu1  ;;  %v3999_v32 = vld [vmem:[#allocation5 + $0xb30] sm:$0xff]  ;;  %v4000_v21 = vld [vmem:[#allocation5 + $0xb38] sm:$0xff] }
 0x4ce   :  { %8242 = vmatmul.mubr.bf16.vlgmr.msra.gmra.mxu1 %v10163_v44  ;;  %v10782_v56 = vadd.f32 %v7792_v39, %v10751_v62  ;;  %8087 = vmatpush1.bf16.msra.mxu0 %v8990_v29  ;;  %v8977_v44 = vcombine.high %v3940_v51, %v3944_v6  ;;  %v3935_v62 = vld [vmem:[#allocation5 + $0x930] sm:$0xff]  ;;  %v3912_v29 = vld [vmem:[#allocation5 + $0x878] sm:$0xff] }
 0x4cf   :  { %8118 = vmatprep.mubr.bf16.mxu0 %v10890_v26  ;;  %8292 = vmatpush1.bf16.msra.mxu1 %v8992_v4  ;;  %v7794_v45 = vpop.f32.mrf.mxu0  ;;  %v10785_v60 = vpop.f32.mrf.mxu1  ;;  %v8967_v54 = vcombine.high %v3931_v41, %v3935_v62  ;;  %v8966_v12 = vcombine.low %v3931_v41, %v3935_v62  ;;  %v8943_v4 = vcombine.high %v3907_v22, %v3911_v3  ;;  %v3900_v39 = vld [vmem:[#allocation5 + $0x818] sm:$0xff] }
 0x4d0   :  { %8323 = vmatprep.mubr.bf16.mxu1 %v10890_v26  ;;  %v10789_v5 = vadd.f32 %v7794_v45, %v10759_v25  ;;  %8088 = vmatprep.subr.bf16.mxu0 %v8983_v50  ;;  %v8976_v25 = vcombine.low %v3940_v51, %v3944_v6  ;;  %v8945_v50 = vcombine.high %v3908_v7, %v3912_v29  ;;  %v4019_v45 = vld [vmem:[#allocation5 + $0xbd0] sm:$0xff] }
 0x4d1   :  { %8293 = vmatprep.subr.bf16.mxu1 %v8985_v48  ;;  %v7796_v13 = vpop.f32.mrf.mxu0  ;;  %v8001_v61 = vpop.f32.mrf.mxu1  ;;  %v3904_v48 = vld [vmem:[#allocation5 + $0x838] sm:$0xff]  ;;  %v8942_v51 = vcombine.low %v3907_v22, %v3911_v3  ;;  %v8944_v6 = vcombine.low %v3908_v7, %v3912_v29  ;;  %v8934_v41 = vcombine.low %v3899_v19, %v3903_v55  ;;  %v3987_v22 = vld [vmem:[#allocation5 + $0xad0] sm:$0xff] }
 0x4d2   :  { %v8422_v8 = vcombine.low %v10782_v56, %v10789_v5  ;;  %8089 = vmatpush1.bf16.msra.mxu0 %v8982_v63  ;;  %v8935_v63 = vcombine.high %v3899_v19, %v3903_v55  ;;  %v8937_v26 = vcombine.high %v3900_v39, %v3904_v48  ;;  %v8936_v62 = vcombine.low %v3900_v39, %v3904_v48  ;;  %v3991_v3 = vld [vmem:[#allocation5 + $0xaf0] sm:$0xff]  ;;  %v3988_v7 = vld [vmem:[#allocation5 + $0xad8] sm:$0xff] }
 0x4d3   :  { %8294 = vmatpush1.bf16.msra.mxu1 %v8984_v34  ;;  %v7797_v59 = vpop.f32.mrf.mxu0  ;;  %v8002_v2 = vpop.f32.mrf.mxu1  ;;  %8090 = vmatprep.subr.bf16.mxu0 %v8975_v58  ;;  %v4023_v34 = vld [vmem:[#allocation5 + $0xbf0] sm:$0xff]  ;;  %v4020_v58 = vld [vmem:[#allocation5 + $0xbd8] sm:$0xff] }
 0x4d4   :  { %8295 = vmatprep.subr.bf16.mxu1 %v8977_v44  ;;  %v4024_v44 = vld [vmem:[#allocation5 + $0xbf8] sm:$0xff]  ;;  %v9055_v13 = vcombine.high %v4019_v45, %v4023_v34  ;;  %v9054_v2 = vcombine.low %v4019_v45, %v4023_v34  ;;  %v3979_v19 = vld [vmem:[#allocation5 + $0xa90] sm:$0xff] }
 0x4d5   :  { %v9057_v61 = vcombine.high %v4020_v58, %v4024_v44  ;;  %v4016_v59 = vld [vmem:[#allocation5 + $0xbb8] sm:$0xff]  ;;  %v3983_v55 = vld [vmem:[#allocation5 + $0xab0] sm:$0xff] }
 0x4d6   :  { %8091 = vmatpush1.bf16.msra.mxu0 %v8974_v11  ;;  %v4012_v11 = vld [vmem:[#allocation5 + $0xb98] sm:$0xff]  ;;  %v3971_v45 = vld [vmem:[#allocation5 + $0xa50] sm:$0xff] }
 0x4d7   :  { %8296 = vmatpush1.bf16.msra.mxu1 %v8976_v25  ;;  %8092 = vmatprep.subr.bf16.mxu0 %v8967_v54  ;;  %v9056_v25 = vcombine.low %v4020_v58, %v4024_v44  ;;  %v9047_v54 = vcombine.high %v4011_v24, %v4015_v17  ;;  %v3992_v29 = vld [vmem:[#allocation5 + $0xaf8] sm:$0xff]  ;;  %v3975_v34 = vld [vmem:[#allocation5 + $0xa70] sm:$0xff] }
 0x4d8   :  { %8297 = vmatprep.subr.bf16.mxu1 %v8969_v46  ;;  %v9049_v46 = vcombine.high %v4012_v11, %v4016_v59  ;;  %v3980_v39 = vld [vmem:[#allocation5 + $0xa98] sm:$0xff] }
 0x4d9   :  { %v3984_v48 = vld [vmem:[#allocation5 + $0xab8] sm:$0xff] }
 0x4da   :  { %8093 = vmatpush1.bf16.msra.mxu0 %v8966_v12  ;;  %v9046_v12 = vcombine.low %v4011_v24, %v4015_v17  ;;  %v3972_v58 = vld [vmem:[#allocation5 + $0xa58] sm:$0xff]  ;;  %v3963_v24 = vld [vmem:[#allocation5 + $0xa10] sm:$0xff] }
 0x4db   :  { %8298 = vmatpush1.bf16.msra.mxu1 %v8968_v43  ;;  %8094 = vmatprep.subr.bf16.mxu0 %v8959_v23  ;;  %v9048_v43 = vcombine.low %v4012_v11, %v4016_v59  ;;  %v9039_v23 = vcombine.high %v4003_v18, %v4007_v35  ;;  %v3976_v44 = vld [vmem:[#allocation5 + $0xa78] sm:$0xff]  ;;  %v3967_v17 = vld [vmem:[#allocation5 + $0xa30] sm:$0xff] }
 0x4dc   :  { %8299 = vmatprep.subr.bf16.mxu1 %v8961_v42  ;;  %v9041_v42 = vcombine.high %v4004_v16, %v4008_v0  ;;  %v3964_v11 = vld [vmem:[#allocation5 + $0xa18] sm:$0xff] }
 0x4dd   :  { %v3968_v59 = vld [vmem:[#allocation5 + $0xa38] sm:$0xff] }
 0x4de   :  { %8095 = vmatpush1.bf16.msra.mxu0 %v8958_v1  ;;  %v9038_v1 = vcombine.low %v4003_v18, %v4007_v35  ;;  %v4211_v18 = vld [vmem:[#allocation5 + $0x11d0] sm:$0xff]  ;;  %v3772_v5 = vld [vmem:[#allocation5 + $0x418] sm:$0xff] }
 0x4df   :  { %8300 = vmatpush1.bf16.msra.mxu1 %v8960_v37  ;;  %8096 = vmatprep.subr.bf16.mxu0 %v8951_v10  ;;  %v9040_v37 = vcombine.low %v4004_v16, %v4008_v0  ;;  %v9031_v10 = vcombine.high %v3995_v38, %v3999_v32  ;;  %v4215_v35 = vld [vmem:[#allocation5 + $0x11f0] sm:$0xff]  ;;  %v4212_v16 = vld [vmem:[#allocation5 + $0x11d8] sm:$0xff] }
 0x4e0   :  { %8301 = vmatprep.subr.bf16.mxu1 %v8953_v27  ;;  %v9033_v27 = vcombine.high %v3996_v20, %v4000_v21  ;;  %v4216_v0 = vld [vmem:[#allocation5 + $0x11f8] sm:$0xff] }
 0x4e2   :  { %8097 = vmatpush1.bf16.msra.mxu0 %v8950_v36  ;;  %v9030_v36 = vcombine.low %v3995_v38, %v3999_v32  ;;  %v4203_v38 = vld [vmem:[#allocation5 + $0x1190] sm:$0xff] }
 0x4e3   :  { %8302 = vmatpush1.bf16.msra.mxu1 %v8952_v14  ;;  %8098 = vmatprep.subr.bf16.mxu0 %v8943_v4  ;;  %v9032_v14 = vcombine.low %v3996_v20, %v4000_v21  ;;  %v9023_v4 = vcombine.high %v3987_v22, %v3991_v3  ;;  %v4207_v32 = vld [vmem:[#allocation5 + $0x11b0] sm:$0xff]  ;;  %v9246_v20 = vcombine.low %v4211_v18, %v4215_v35  ;;  %v4204_v21 = vld [vmem:[#allocation5 + $0x1198] sm:$0xff] }
 0x4e4   :  { %8303 = vmatprep.subr.bf16.mxu1 %v8945_v50  ;;  %v9025_v50 = vcombine.high %v3988_v7, %v3992_v29 }
 0x4e6   :  { %8099 = vmatpush1.bf16.msra.mxu0 %v8942_v51  ;;  %v9022_v51 = vcombine.low %v3987_v22, %v3991_v3  ;;  %v4199_v22 = vld [vmem:[#allocation5 + $0x1170] sm:$0xff] }
 0x4e7   :  { %8304 = vmatpush1.bf16.msra.mxu1 %v8944_v6  ;;  %8100 = vmatprep.subr.bf16.mxu0 %v8935_v63  ;;  %v9024_v6 = vcombine.low %v3988_v7, %v3992_v29  ;;  %v9015_v63 = vcombine.high %v3979_v19, %v3983_v55 }
 0x4e8   :  { %8305 = vmatprep.subr.bf16.mxu1 %v8937_v26  ;;  %v9017_v26 = vcombine.high %v3980_v39, %v3984_v48 }
 0x4ea   :  { %8101 = vmatpush1.bf16.msra.mxu0 %v8934_v41  ;;  %v9014_v41 = vcombine.low %v3979_v19, %v3983_v55 }
 0x4eb   :  { %8306 = vmatpush1.bf16.msra.mxu1 %v8936_v62  ;;  %8102 = vmatprep.subr.bf16.mxu0 %v9055_v13  ;;  %v9016_v62 = vcombine.low %v3980_v39, %v3984_v48  ;;  %v9007_v13 = vcombine.high %v3971_v45, %v3975_v34 }
 0x4ec   :  { %8307 = vmatprep.subr.bf16.mxu1 %v9057_v61  ;;  %v9009_v61 = vcombine.high %v3972_v58, %v3976_v44 }
 0x4ee   :  { %8103 = vmatpush2.bf16.msra.mxu0 %v9054_v2  ;;  %v9006_v2 = vcombine.low %v3971_v45, %v3975_v34  ;;  %v4192_v45 = vld [vmem:[#allocation5 + $0x1138] sm:$0xff] }
 0x4ef   :  { %8308 = vmatpush2.bf16.msra.mxu1 %v9056_v25  ;;  %8104 = vmatprep.subr.bf16.mxu0 %v9047_v54  ;;  %v9008_v25 = vcombine.low %v3972_v58, %v3976_v44  ;;  %v8999_v54 = vcombine.high %v3963_v24, %v3967_v17 }
 0x4f0   :  { %8309 = vmatprep.subr.bf16.mxu1 %v9049_v46  ;;  %v9001_v46 = vcombine.high %v3964_v11, %v3968_v59 }
 0x4f2   :  { %8105 = vmatpush2.bf16.msra.mxu0 %v9046_v12  ;;  %v8998_v12 = vcombine.low %v3963_v24, %v3967_v17  ;;  %v4180_v24 = vld [vmem:[#allocation5 + $0x10d8] sm:$0xff] }
 0x4f3   :  { %8310 = vmatpush2.bf16.msra.mxu1 %v9048_v43  ;;  %8106 = vmatprep.subr.bf16.mxu0 %v9039_v23  ;;  %v9000_v43 = vcombine.low %v3964_v11, %v3968_v59  ;;  %v9247_v23 = vcombine.high %v4211_v18, %v4215_v35  ;;  %v4184_v17 = vld [vmem:[#allocation5 + $0x10f8] sm:$0xff] }
 0x4f4   :  { %8311 = vmatprep.subr.bf16.mxu1 %v9041_v42  ;;  %v9249_v42 = vcombine.high %v4212_v16, %v4216_v0  ;;  %v4172_v18 = vld [vmem:[#allocation5 + $0x1098] sm:$0xff] }
 0x4f5   :  { %v4176_v35 = vld [vmem:[#allocation5 + $0x10b8] sm:$0xff] }
 0x4f6   :  { %8107 = vmatpush2.bf16.msra.mxu0 %v9038_v1  ;;  %v4208_v1 = vld [vmem:[#allocation5 + $0x11b8] sm:$0xff] }
 0x4f7   :  { %8312 = vmatpush2.bf16.msra.mxu1 %v9040_v37  ;;  %8108 = vmatprep.subr.bf16.mxu0 %v9031_v10  ;;  %v9248_v37 = vcombine.low %v4212_v16, %v4216_v0  ;;  %v9239_v10 = vcombine.high %v4203_v38, %v4207_v32  ;;  %v9241_v29 = vcombine.high %v4204_v21, %v4208_v1 }
 0x4f8   :  { %8313 = vmatprep.subr.bf16.mxu1 %v9033_v27  ;;  %v4195_v27 = vld [vmem:[#allocation5 + $0x1150] sm:$0xff]  ;;  %v9240_v55 = vcombine.low %v4204_v21, %v4208_v1  ;;  %v9216_v0 = vcombine.low %v4180_v24, %v4184_v17  ;;  %v9208_v21 = vcombine.low %v4172_v18, %v4176_v35 }
 0x4f9   :  { %v9231_v39 = vcombine.high %v4195_v27, %v4199_v22  ;;  %v9230_v34 = vcombine.low %v4195_v27, %v4199_v22  ;;  %v4159_v27 = vld [vmem:[#allocation5 + $0x1030] sm:$0xff]  ;;  %v4156_v22 = vld [vmem:[#allocation5 + $0x1018] sm:$0xff] }
 0x4fa   :  { %8109 = vmatpush2.bf16.msra.mxu0 %v9030_v36  ;;  %v4196_v36 = vld [vmem:[#allocation5 + $0x1158] sm:$0xff] }
 0x4fb   :  { %8314 = vmatpush2.bf16.msra.mxu1 %v9032_v14  ;;  %8110 = vmatprep.subr.bf16.mxu0 %v9023_v4  ;;  %v4200_v14 = vld [vmem:[#allocation5 + $0x1178] sm:$0xff]  ;;  %v9238_v4 = vcombine.low %v4203_v38, %v4207_v32 }
 0x4fc   :  { %8315 = vmatprep.subr.bf16.mxu1 %v9025_v50  ;;  %v9233_v48 = vcombine.high %v4196_v36, %v4200_v14  ;;  %v4164_v38 = vld [vmem:[#allocation5 + $0x1058] sm:$0xff] }
 0x4fd   :  { %v4168_v32 = vld [vmem:[#allocation5 + $0x1078] sm:$0xff] }
 0x4fe   :  { %8111 = vmatpush2.bf16.msra.mxu0 %v9022_v51  ;;  %v4187_v51 = vld [vmem:[#allocation5 + $0x1110] sm:$0xff] }
 0x4ff   :  { %8316 = vmatpush2.bf16.msra.mxu1 %v9024_v6  ;;  %8112 = vmatprep.subr.bf16.mxu0 %v9015_v63  ;;  %v4191_v6 = vld [vmem:[#allocation5 + $0x1130] sm:$0xff] }
 0x500   :  { %8317 = vmatprep.subr.bf16.mxu1 %v9017_v26  ;;  %v9222_v11 = vcombine.low %v4187_v51, %v4191_v6 }
 0x502   :  { %8113 = vmatpush2.bf16.msra.mxu0 %v9014_v41  ;;  %v9232_v41 = vcombine.low %v4196_v36, %v4200_v14  ;;  %v9200_v14 = vcombine.low %v4164_v38, %v4168_v32 }
 0x503   :  { %8318 = vmatpush2.bf16.msra.mxu1 %v9016_v62  ;;  %8114 = vmatprep.subr.bf16.mxu0 %v9007_v13  ;;  %v9223_v62 = vcombine.high %v4187_v51, %v4191_v6  ;;  %v4276_v51 = vld [vmem:[#allocation5 + $0x13d8] sm:$0xff] }
 0x504   :  { %8319 = vmatprep.subr.bf16.mxu1 %v9009_v61  ;;  %v4183_v61 = vld [vmem:[#allocation5 + $0x10f0] sm:$0xff]  ;;  %v4280_v6 = vld [vmem:[#allocation5 + $0x13f8] sm:$0xff] }
 0x506   :  { %8115 = vmatpush2.bf16.msra.mxu0 %v9006_v2 }
 0x507   :  { %8320 = vmatpush2.bf16.msra.mxu1 %v9008_v25  ;;  %8116 = vmatprep.subr.bf16.mxu0 %v8999_v54  ;;  %v9217_v25 = vcombine.high %v4180_v24, %v4184_v17  ;;  %v4171_v54 = vld [vmem:[#allocation5 + $0x1090] sm:$0xff] }
 0x508   :  { %8321 = vmatprep.subr.bf16.mxu1 %v9001_v46  ;;  %v4175_v46 = vld [vmem:[#allocation5 + $0x10b0] sm:$0xff] }
 0x509   :  { %v4259_v24 = vld [vmem:[#allocation5 + $0x1350] sm:$0xff] }
 0x50a   :  { %8117 = vmatpush2.bf16.msra.mxu0 %v8998_v12  ;;  %v9207_v12 = vcombine.high %v4171_v54, %v4175_v46  ;;  %v4263_v17 = vld [vmem:[#allocation5 + $0x1370] sm:$0xff] }
 0x50b   :  { %8322 = vmatpush2.bf16.msra.mxu1 %v9000_v43  ;;  %8168 = vmatprep.subr.bf16.mxu0 %v9247_v23  ;;  %v9209_v43 = vcombine.high %v4172_v18, %v4176_v35  ;;  %v4163_v23 = vld [vmem:[#allocation5 + $0x1050] sm:$0xff] }
 0x50c   :  { %8373 = vmatprep.subr.bf16.mxu1 %v9249_v42  ;;  %v4167_v42 = vld [vmem:[#allocation5 + $0x1070] sm:$0xff] }
 0x50d   :  { %v10793_v3 = vpop.f32.mrf.mxu0  ;;  %v10795_v7 = vpop.f32.mrf.mxu1  ;;  %8119 = vmatmul.mubr.bf16.vlgmr.msra.gmra.mxu0 %v10513_v33  ;;  %v9199_v1 = vcombine.high %v4163_v23, %v4167_v42  ;;  %v9198_v36 = vcombine.low %v4163_v23, %v4167_v42  ;;  %v4251_v18 = vld [vmem:[#allocation5 + $0x1310] sm:$0xff] }
 0x50e   :  { %8324 = vmatmul.mubr.bf16.vlgmr.msra.gmra.mxu1 %v10513_v33  ;;  %8169 = vmatpush1.bf16.msra.mxu0 %v9246_v20  ;;  %v4188_v33 = vld [vmem:[#allocation5 + $0x1118] sm:$0xff]  ;;  %v9206_v20 = vcombine.low %v4171_v54, %v4175_v46  ;;  %v9295_v54 = vcombine.high %v4259_v24, %v4263_v17  ;;  %v4255_v35 = vld [vmem:[#allocation5 + $0x1330] sm:$0xff] }
 0x50f   :  { %8200 = vmatprep.mubr.bf16.mxu0 %v10742_v30  ;;  %8374 = vmatpush1.bf16.msra.mxu1 %v9248_v37  ;;  %v10800_v50 = vpop.f32.mrf.mxu0  ;;  %v10802_v19 = vpop.f32.mrf.mxu1  ;;  %v9225_v13 = vcombine.high %v4188_v33, %v4192_v45  ;;  %v9224_v59 = vcombine.low %v4188_v33, %v4192_v45  ;;  %v9201_v37 = vcombine.high %v4164_v38, %v4168_v32  ;;  %v4243_v38 = vld [vmem:[#allocation5 + $0x12d0] sm:$0xff] }
 0x510   :  { %8405 = vmatprep.mubr.bf16.mxu1 %v10742_v30  ;;  %8170 = vmatprep.subr.bf16.mxu0 %v9239_v10  ;;  %v4179_v30 = vld [vmem:[#allocation5 + $0x10d0] sm:$0xff]  ;;  %v9313_v45 = vcombine.high %v4276_v51, %v4280_v6  ;;  %v9287_v23 = vcombine.high %v4251_v18, %v4255_v35 }
 0x511   :  { %v7878_v63 = vpop.f32.mrf.mxu0  ;;  %v8083_v26 = vpop.f32.mrf.mxu1  ;;  %8375 = vmatprep.subr.bf16.mxu1 %v9241_v29  ;;  %v9215_v2 = vcombine.high %v4179_v30, %v4183_v61  ;;  %v9214_v16 = vcombine.low %v4179_v30, %v4183_v61  ;;  %v4155_v10 = vld [vmem:[#allocation5 + $0x1010] sm:$0xff]  ;;  %v4160_v29 = vld [vmem:[#allocation5 + $0x1038] sm:$0xff] }
 0x512   :  { %8171 = vmatpush1.bf16.msra.mxu0 %v9238_v4  ;;  %v9191_v4 = vcombine.high %v4155_v10, %v4159_v27  ;;  %v9190_v63 = vcombine.low %v4155_v10, %v4159_v27  ;;  %v9192_v26 = vcombine.low %v4156_v22, %v4160_v29  ;;  %v4247_v32 = vld [vmem:[#allocation5 + $0x12f0] sm:$0xff] }
 0x513   :  { %8376 = vmatpush1.bf16.msra.mxu1 %v9240_v55  ;;  %v7879_v58 = vpop.f32.mrf.mxu0  ;;  %v8084_v44 = vpop.f32.mrf.mxu1  ;;  %8172 = vmatprep.subr.bf16.mxu0 %v9231_v39  ;;  %v9193_v55 = vcombine.high %v4156_v22, %v4160_v29  ;;  %v4275_v39 = vld [vmem:[#allocation5 + $0x13d0] sm:$0xff]  ;;  %v9279_v10 = vcombine.high %v4243_v38, %v4247_v32 }
 0x514   :  { %8377 = vmatprep.subr.bf16.mxu1 %v9233_v48  ;;  %v4279_v48 = vld [vmem:[#allocation5 + $0x13f0] sm:$0xff]  ;;  %v4268_v44 = vld [vmem:[#allocation5 + $0x1398] sm:$0xff] }
 0x515   :  { %v9311_v33 = vcombine.high %v4275_v39, %v4279_v48  ;;  %v4271_v58 = vld [vmem:[#allocation5 + $0x13b0] sm:$0xff] }
 0x516   :  { %8173 = vmatpush1.bf16.msra.mxu0 %v9230_v34  ;;  %v4267_v34 = vld [vmem:[#allocation5 + $0x1390] sm:$0xff] }
 0x517   :  { %8378 = vmatpush1.bf16.msra.mxu1 %v9232_v41  ;;  %8174 = vmatprep.subr.bf16.mxu0 %v9223_v62  ;;  %v4272_v41 = vld [vmem:[#allocation5 + $0x13b8] sm:$0xff]  ;;  %v9310_v62 = vcombine.low %v4275_v39, %v4279_v48  ;;  %v9303_v30 = vcombine.high %v4267_v34, %v4271_v58  ;;  %v4235_v22 = vld [vmem:[#allocation5 + $0x1290] sm:$0xff] }
 0x518   :  { %8379 = vmatprep.subr.bf16.mxu1 %v9225_v13  ;;  %v9312_v13 = vcombine.low %v4276_v51, %v4280_v6  ;;  %v9305_v61 = vcombine.high %v4268_v44, %v4272_v41  ;;  %v4239_v29 = vld [vmem:[#allocation5 + $0x12b0] sm:$0xff] }
 0x519   :  { %v9271_v39 = vcombine.high %v4235_v22, %v4239_v29  ;;  %v4227_v51 = vld [vmem:[#allocation5 + $0x1250] sm:$0xff] }
 0x51a   :  { %8175 = vmatpush1.bf16.msra.mxu0 %v9222_v11  ;;  %v4260_v11 = vld [vmem:[#allocation5 + $0x1358] sm:$0xff]  ;;  %v4231_v6 = vld [vmem:[#allocation5 + $0x1270] sm:$0xff] }
 0x51b   :  { %8380 = vmatpush1.bf16.msra.mxu1 %v9224_v59  ;;  %8176 = vmatprep.subr.bf16.mxu0 %v9215_v2  ;;  %v4264_v59 = vld [vmem:[#allocation5 + $0x1378] sm:$0xff]  ;;  %v9302_v2 = vcombine.low %v4267_v34, %v4271_v58  ;;  %v9270_v34 = vcombine.low %v4235_v22, %v4239_v29 }
 0x51c   :  { %8381 = vmatprep.subr.bf16.mxu1 %v9217_v25  ;;  %v9304_v25 = vcombine.low %v4268_v44, %v4272_v41  ;;  %v9297_v46 = vcombine.high %v4260_v11, %v4264_v59  ;;  %v9263_v44 = vcombine.high %v4227_v51, %v4231_v6 }
 0x51e   :  { %8177 = vmatpush1.bf16.msra.mxu0 %v9214_v16  ;;  %v4252_v16 = vld [vmem:[#allocation5 + $0x1318] sm:$0xff] }
 0x51f   :  { %8382 = vmatpush1.bf16.msra.mxu1 %v9216_v0  ;;  %8178 = vmatprep.subr.bf16.mxu0 %v9207_v12  ;;  %v4256_v0 = vld [vmem:[#allocation5 + $0x1338] sm:$0xff]  ;;  %v9294_v12 = vcombine.low %v4259_v24, %v4263_v17  ;;  %v10807_v17 = vld [vmem:[#allocation7] sm:$0xff] }
 0x520   :  { %8383 = vmatprep.subr.bf16.mxu1 %v9209_v43  ;;  %v9296_v43 = vcombine.low %v4260_v11, %v4264_v59  ;;  %v9289_v42 = vcombine.high %v4252_v16, %v4256_v0  ;;  %v4224_v24 = vld [vmem:[#allocation5 + $0x1238] sm:$0xff]  ;;  %v9262_v59 = vcombine.low %v4227_v51, %v4231_v6 }
 0x522   :  { %8179 = vmatpush1.bf16.msra.mxu0 %v9206_v20  ;;  %v4244_v20 = vld [vmem:[#allocation5 + $0x12d8] sm:$0xff] }
 0x523   :  { %8384 = vmatpush1.bf16.msra.mxu1 %v9208_v21  ;;  %8180 = vmatprep.subr.bf16.mxu0 %v9199_v1  ;;  %v4248_v21 = vld [vmem:[#allocation5 + $0x12f8] sm:$0xff]  ;;  %v9286_v1 = vcombine.low %v4251_v18, %v4255_v35 }
 0x524   :  { %8385 = vmatprep.subr.bf16.mxu1 %v9201_v37  ;;  %v9288_v37 = vcombine.low %v4252_v16, %v4256_v0  ;;  %v9281_v27 = vcombine.high %v4244_v20, %v4248_v21  ;;  %v3828_v18 = vld [vmem:[#allocation5 + $0x5d8] sm:$0xff] }
 0x525   :  { %v3832_v35 = vld [vmem:[#allocation5 + $0x5f8] sm:$0xff] }
 0x526   :  { %8181 = vmatpush1.bf16.msra.mxu0 %v9198_v36  ;;  %v4236_v36 = vld [vmem:[#allocation5 + $0x1298] sm:$0xff] }
 0x527   :  { %8386 = vmatpush1.bf16.msra.mxu1 %v9200_v14  ;;  %8182 = vmatprep.subr.bf16.mxu0 %v9191_v4  ;;  %v4240_v14 = vld [vmem:[#allocation5 + $0x12b8] sm:$0xff]  ;;  %v9278_v4 = vcombine.low %v4243_v38, %v4247_v32 }
 0x528   :  { %8387 = vmatprep.subr.bf16.mxu1 %v9193_v55  ;;  %v9280_v55 = vcombine.low %v4244_v20, %v4248_v21  ;;  %v9273_v48 = vcombine.high %v4236_v36, %v4240_v14  ;;  %v9272_v58 = vcombine.low %v4236_v36, %v4240_v14  ;;  %v3820_v38 = vld [vmem:[#allocation5 + $0x598] sm:$0xff]  ;;  %v8864_v21 = vcombine.low %v3828_v18, %v3832_v35 }
 0x529   :  { %v3824_v32 = vld [vmem:[#allocation5 + $0x5b8] sm:$0xff] }
 0x52a   :  { %8183 = vmatpush1.bf16.msra.mxu0 %v9190_v63  ;;  %v4228_v63 = vld [vmem:[#allocation5 + $0x1258] sm:$0xff] }
 0x52b   :  { %8388 = vmatpush1.bf16.msra.mxu1 %v9192_v26  ;;  %8184 = vmatprep.subr.bf16.mxu0 %v9311_v33  ;;  %v4232_v26 = vld [vmem:[#allocation5 + $0x1278] sm:$0xff] }
 0x52c   :  { %8389 = vmatprep.subr.bf16.mxu1 %v9313_v45  ;;  %v10891_v33 = vld [vmem:[#allocation12_spill] sm:$0xff] }
 0x52d   :  { %v4293_v45 = vsub.s32 2, %v10891_v33  ;;  %v4297_v41 = vsub.s32 3, %v10891_v33 }
 0x52e   :  { %8185 = vmatpush2.bf16.msra.mxu0 %v9310_v62  ;;  %v9265_v62 = vcombine.high %v4228_v63, %v4232_v26 }
 0x52f   :  { %8390 = vmatpush2.bf16.msra.mxu1 %v9312_v13  ;;  %8186 = vmatprep.subr.bf16.mxu0 %v9303_v30  ;;  %v4219_v13 = vld [vmem:[#allocation5 + $0x1210] sm:$0xff]  ;;  %v4294_v11 = vrot.slane %v10807_v17, %v4293_v45  ;;  %v3796_v45 = vld [vmem:[#allocation5 + $0x4d8] sm:$0xff] }
 0x530   :  { %8391 = vmatprep.subr.bf16.mxu1 %v9305_v61  ;;  %v4223_v30 = vld [vmem:[#allocation5 + $0x1230] sm:$0xff]  ;;  %v4220_v61 = vld [vmem:[#allocation5 + $0x1218] sm:$0xff] }
 0x531   :  { %v7834_v16 = vadd.f32 %v10761_v49, %v4294_v11  ;;  %v9254_v0 = vcombine.low %v4219_v13, %v4223_v30  ;;  %v8857_v49 = vcombine.high %v3820_v38, %v3824_v32  ;;  %v3780_v11 = vld [vmem:[#allocation5 + $0x458] sm:$0xff] }
 0x532   :  { %8187 = vmatpush2.bf16.msra.mxu0 %v9302_v2  ;;  %v9264_v2 = vcombine.low %v4228_v63, %v4232_v26 }
 0x533   :  { %8392 = vmatpush2.bf16.msra.mxu1 %v9304_v25  ;;  %8188 = vmatprep.subr.bf16.mxu0 %v9295_v54  ;;  %v9255_v25 = vcombine.high %v4219_v13, %v4223_v30  ;;  %v4298_v54 = vrot.slane %v10807_v17, %v4297_v41  ;;  %v3792_v13 = vld [vmem:[#allocation5 + $0x4b8] sm:$0xff] }
 0x534   :  { %8393 = vmatprep.subr.bf16.mxu1 %v9297_v46  ;;  %v9257_v46 = vcombine.high %v4220_v61, %v4224_v24 }
 0x536   :  { %8189 = vmatpush2.bf16.msra.mxu0 %v9294_v12  ;;  %v9256_v12 = vcombine.low %v4220_v61, %v4224_v24 }
 0x537   :  { %8394 = vmatpush2.bf16.msra.mxu1 %v9296_v43  ;;  %8190 = vmatprep.subr.bf16.mxu0 %v9287_v23  ;;  %v8865_v43 = vcombine.high %v3828_v18, %v3832_v35  ;;  %v7836_v23 = vadd.f32 %v10767_v57, %v4298_v54  ;;  %v3896_v18 = vld [vmem:[#allocation5 + $0x7f8] sm:$0xff] }
 0x538   :  { %8395 = vmatprep.subr.bf16.mxu1 %v9289_v42  ;;  %v7875_v42 = vadd.f32 %v10793_v3, %v7834_v16 }
 0x539   :  { %v7877_v20 = vadd.f32 %v10800_v50, %v7836_v23  ;;  %v8856_v50 = vcombine.low %v3820_v38, %v3824_v32  ;;  %v3880_v38 = vld [vmem:[#allocation5 + $0x778] sm:$0xff] }
 0x53a   :  { %8191 = vmatpush2.bf16.msra.mxu0 %v9286_v1  ;;  %v7916_v1 = vadd.f32 %v10769_v40, %v7875_v42  ;;  %v3876_v42 = vld [vmem:[#allocation5 + $0x758] sm:$0xff] }
 0x53b   :  { %8396 = vmatpush2.bf16.msra.mxu1 %v9288_v37  ;;  %8192 = vmatprep.subr.bf16.mxu0 %v9279_v10  ;;  %v3812_v37 = vld [vmem:[#allocation5 + $0x558] sm:$0xff]  ;;  %v7918_v3 = vadd.f32 %v10774_v15, %v7877_v20  ;;  %v8913_v20 = vcombine.high %v3876_v42, %v3880_v38 }
 0x53c   :  { %8397 = vmatprep.subr.bf16.mxu1 %v9281_v27  ;;  %v3816_v10 = vld [vmem:[#allocation5 + $0x578] sm:$0xff] }
 0x53d   :  { %v8849_v36 = vcombine.high %v3812_v37, %v3816_v10  ;;  %v8848_v6 = vcombine.low %v3812_v37, %v3816_v10  ;;  %v3860_v10 = vld [vmem:[#allocation5 + $0x6d8] sm:$0xff] }
 0x53e   :  { %8193 = vmatpush2.bf16.msra.mxu0 %v9278_v4  ;;  %v3804_v4 = vld [vmem:[#allocation5 + $0x518] sm:$0xff] }
 0x53f   :  { %8398 = vmatpush2.bf16.msra.mxu1 %v9280_v55  ;;  %8194 = vmatprep.subr.bf16.mxu0 %v9271_v39  ;;  %v3808_v55 = vld [vmem:[#allocation5 + $0x538] sm:$0xff] }
 0x540   :  { %8399 = vmatprep.subr.bf16.mxu1 %v9273_v48  ;;  %v8841_v63 = vcombine.high %v3804_v4, %v3808_v55 }
 0x542   :  { %8195 = vmatpush2.bf16.msra.mxu0 %v9270_v34  ;;  %v3800_v34 = vld [vmem:[#allocation5 + $0x4f8] sm:$0xff] }
 0x543   :  { %8400 = vmatpush2.bf16.msra.mxu1 %v9272_v58  ;;  %8196 = vmatprep.subr.bf16.mxu0 %v9263_v44  ;;  %v10892_v58 = vld [vmem:[#allocation13_spill] sm:$0xff]  ;;  %v8832_v61 = vcombine.low %v3796_v45, %v3800_v34 }
 0x544   :  { %8401 = vmatprep.subr.bf16.mxu1 %v9265_v62  ;;  %v8430_v44 = vrot.slane %v8422_v8, %v10892_v58  ;;  %v3788_v62 = vld [vmem:[#allocation5 + $0x498] sm:$0xff] }
 0x545   :  { %v8825_v24 = vcombine.high %v3788_v62, %v3792_v13  ;;  %v3776_v8 = vld [vmem:[#allocation5 + $0x438] sm:$0xff] }
 0x546   :  { %8197 = vmatpush2.bf16.msra.mxu0 %v9262_v59  ;;  %v3784_v59 = vld [vmem:[#allocation5 + $0x478] sm:$0xff]  ;;  %v8809_v54 = vcombine.high %v3772_v5, %v3776_v8  ;;  %v8808_v35 = vcombine.low %v3772_v5, %v3776_v8 }
 0x547   :  { %8402 = vmatpush2.bf16.msra.mxu1 %v9264_v2  ;;  %8198 = vmatprep.subr.bf16.mxu0 %v9255_v25  ;;  %v8824_v2 = vcombine.low %v3788_v62, %v3792_v13  ;;  %v8817_v56 = vcombine.high %v3780_v11, %v3784_v59  ;;  %v8816_v25 = vcombine.low %v3780_v11, %v3784_v59  ;;  %v4072_v62 = vld [vmem:[#allocation5 + $0xd78] sm:$0xff] }
 0x548   :  { %8403 = vmatprep.subr.bf16.mxu1 %v9257_v46  ;;  %v3892_v46 = vld [vmem:[#allocation5 + $0x7d8] sm:$0xff] }
 0x549   :  { %v8929_v16 = vcombine.high %v3892_v46, %v3896_v18 }
 0x54a   :  { %8199 = vmatpush2.bf16.msra.mxu0 %v9254_v0  ;;  %v3884_v0 = vld [vmem:[#allocation5 + $0x798] sm:$0xff] }
 0x54b   :  { %8404 = vmatpush2.bf16.msra.mxu1 %v9256_v12  ;;  %8250 = vmatprep.subr.bf16.mxu0 %v8865_v43  ;;  %v3888_v12 = vld [vmem:[#allocation5 + $0x7b8] sm:$0xff]  ;;  %v8928_v43 = vcombine.low %v3892_v46, %v3896_v18 }
 0x54c   :  { %v8921_v23 = vcombine.high %v3884_v0, %v3888_v12  ;;  %v8920_v32 = vcombine.low %v3884_v0, %v3888_v12  ;;  %v4052_v18 = vld [vmem:[#allocation5 + $0xcd8] sm:$0xff] }
 0x54d   :  { %v7956_v27 = vpop.f32.mrf.mxu0  ;;  %8201 = vmatmul.mubr.bf16.vlgmr.msra.gmra.mxu0 %v10744_v9  ;;  %v4044_v0 = vld [vmem:[#allocation5 + $0xc98] sm:$0xff] }
 0x54e   :  { %v7957_v57 = vadd.f32 %v7956_v27, %v7916_v1  ;;  %v10817_v22 = vpop.f32.mrf.mxu1  ;;  %8406 = vmatmul.mubr.bf16.vlgmr.msra.gmra.mxu1 %v10744_v9  ;;  %8251 = vmatpush1.bf16.msra.mxu0 %v8864_v21  ;;  %v3868_v21 = vld [vmem:[#allocation5 + $0x718] sm:$0xff]  ;;  %v8912_v1 = vcombine.low %v3876_v42, %v3880_v38 }
 0x54f   :  { %8282 = vmatprep.mubr.bf16.mxu0 %v10888_v28  ;;  %v7958_v29 = vpop.f32.mrf.mxu0  ;;  %8252 = vmatprep.subr.bf16.mxu0 %v8857_v49  ;;  %v3872_v49 = vld [vmem:[#allocation5 + $0x738] sm:$0xff] }
 0x550   :  { %v7959_v40 = vadd.f32 %v7958_v29, %v7918_v3  ;;  %v10822_v14 = vpop.f32.mrf.mxu1  ;;  %v7998_v48 = vadd.f32 %v10778_v31, %v7957_v57  ;;  %v8840_v31 = vcombine.low %v3804_v4, %v3808_v55  ;;  %v8905_v37 = vcombine.high %v3868_v21, %v3872_v49  ;;  %v3864_v27 = vld [vmem:[#allocation5 + $0x6f8] sm:$0xff] }
 0x551   :  { %v7960_v39 = vpop.f32.mrf.mxu0  ;;  %v8904_v57 = vcombine.low %v3868_v21, %v3872_v49  ;;  %v8897_v3 = vcombine.high %v3860_v10, %v3864_v27  ;;  %v3856_v29 = vld [vmem:[#allocation5 + $0x6b8] sm:$0xff] }
 0x552   :  { %v8000_v51 = vadd.f32 %v10785_v60, %v7959_v40  ;;  %v8165_v9 = vpop.f32.mrf.mxu1  ;;  %8253 = vmatpush1.bf16.msra.mxu0 %v8856_v50  ;;  %v8833_v60 = vcombine.high %v3796_v45, %v3800_v34  ;;  %v3852_v50 = vld [vmem:[#allocation5 + $0x698] sm:$0xff] }
 0x553   :  { %v7961_v15 = vpop.f32.mrf.mxu0  ;;  %8254 = vmatprep.subr.bf16.mxu0 %v8849_v36  ;;  %v8896_v36 = vcombine.low %v3860_v10, %v3864_v27  ;;  %v8889_v40 = vcombine.high %v3852_v50, %v3856_v29  ;;  %v3844_v4 = vld [vmem:[#allocation5 + $0x658] sm:$0xff]  ;;  %v8888_v39 = vcombine.low %v3852_v50, %v3856_v29 }
 0x554   :  { %v8423_v28 = vcombine.low %v7998_v48, %v8000_v51  ;;  %v8166_v26 = vpop.f32.mrf.mxu1  ;;  %v3848_v55 = vld [vmem:[#allocation5 + $0x678] sm:$0xff] }
 0x555   :  { %v8881_v48 = vcombine.high %v3844_v4, %v3848_v55  ;;  %v3836_v51 = vld [vmem:[#allocation5 + $0x618] sm:$0xff] }
 0x556   :  { %v8437_v41 = vrot.slane %v8423_v28, %v10892_v58  ;;  %8255 = vmatpush1.bf16.msra.mxu0 %v8848_v6  ;;  %v3840_v9 = vld [vmem:[#allocation5 + $0x638] sm:$0xff]  ;;  %v8880_v6 = vcombine.low %v3844_v4, %v3848_v55 }
 0x557   :  { %8256 = vmatprep.subr.bf16.mxu0 %v8841_v63  ;;  %v8873_v15 = vcombine.high %v3836_v51, %v3840_v9  ;;  %v4084_v63 = vld [vmem:[#allocation5 + $0xdd8] sm:$0xff]  ;;  %v8872_v26 = vcombine.low %v3836_v51, %v3840_v9 }
 0x558   :  { %v8438_v30 = vcombine.low %v8430_v44, %v8437_v41  ;;  %v4088_v28 = vld [vmem:[#allocation5 + $0xdf8] sm:$0xff] }
 0x559   :  { %v9121_v45 = vcombine.high %v4084_v63, %v4088_v28  ;;  %v4076_v34 = vld [vmem:[#allocation5 + $0xd98] sm:$0xff]  ;;  %v9120_v41 = vcombine.low %v4084_v63, %v4088_v28 }
 0x55a   :  { %8257 = vmatpush1.bf16.msra.mxu0 %v8840_v31  ;;  %8458 = vst [vmem:[#allocation8] sm:$0xff] %v8438_v30  ;;  %v4080_v44 = vld [vmem:[#allocation5 + $0xdb8] sm:$0xff] }
 0x55b   :  { %8258 = vmatprep.subr.bf16.mxu0 %v8833_v60  ;;  %v9113_v31 = vcombine.high %v4076_v34, %v4080_v44  ;;  %v4068_v60 = vld [vmem:[#allocation5 + $0xd58] sm:$0xff] }
 0x55c   :  { %v9105_v11 = vcombine.high %v4068_v60, %v4072_v62  ;;  %v4048_v12 = vld [vmem:[#allocation5 + $0xcb8] sm:$0xff] }
 0x55d   :  { %v4036_v42 = vld [vmem:[#allocation5 + $0xc58] sm:$0xff] }
 0x55e   :  { %8259 = vmatpush1.bf16.msra.mxu0 %v8832_v61  ;;  %v9112_v61 = vcombine.low %v4076_v34, %v4080_v44  ;;  %v4040_v38 = vld [vmem:[#allocation5 + $0xc78] sm:$0xff] }
 0x55f   :  { %8260 = vmatprep.subr.bf16.mxu0 %v8825_v24  ;;  %v4028_v21 = vld [vmem:[#allocation5 + $0xc18] sm:$0xff] }
 0x560   :  { %v4032_v49 = vld [vmem:[#allocation5 + $0xc38] sm:$0xff] }
 0x561   :  { %v4148_v10 = vld [vmem:[#allocation5 + $0xfd8] sm:$0xff] }
 0x562   :  { %8261 = vmatpush1.bf16.msra.mxu0 %v8824_v2  ;;  %v4060_v2 = vld [vmem:[#allocation5 + $0xd18] sm:$0xff] }
 0x563   :  { %8262 = vmatprep.subr.bf16.mxu0 %v8817_v56  ;;  %v4064_v56 = vld [vmem:[#allocation5 + $0xd38] sm:$0xff] }
 0x564   :  { %v4152_v27 = vld [vmem:[#allocation5 + $0xff8] sm:$0xff] }
 0x565   :  { %v4140_v50 = vld [vmem:[#allocation5 + $0xf98] sm:$0xff] }
 0x566   :  { %8263 = vmatpush1.bf16.msra.mxu0 %v8816_v25  ;;  %v9104_v25 = vcombine.low %v4068_v60, %v4072_v62  ;;  %v4144_v29 = vld [vmem:[#allocation5 + $0xfb8] sm:$0xff] }
 0x567   :  { %8264 = vmatprep.subr.bf16.mxu0 %v8809_v54  ;;  %v4132_v4 = vld [vmem:[#allocation5 + $0xf58] sm:$0xff] }
 0x568   :  { %v4136_v55 = vld [vmem:[#allocation5 + $0xf78] sm:$0xff] }
 0x569   :  { %v4124_v51 = vld [vmem:[#allocation5 + $0xf18] sm:$0xff] }
 0x56a   :  { %8265 = vmatpush1.bf16.msra.mxu0 %v8808_v35  ;;  %v4056_v35 = vld [vmem:[#allocation5 + $0xcf8] sm:$0xff] }
 0x56b   :  { %8266 = vmatprep.subr.bf16.mxu0 %v8929_v16  ;;  %v9089_v16 = vcombine.high %v4052_v18, %v4056_v35  ;;  %v4128_v9 = vld [vmem:[#allocation5 + $0xf38] sm:$0xff] }
 0x56c   :  { %v4116_v63 = vld [vmem:[#allocation5 + $0xed8] sm:$0xff] }
 0x56d   :  { %v4120_v28 = vld [vmem:[#allocation5 + $0xef8] sm:$0xff] }
 0x56e   :  { %8267 = vmatpush2.bf16.msra.mxu0 %v8928_v43  ;;  %v9088_v43 = vcombine.low %v4052_v18, %v4056_v35  ;;  %v4108_v34 = vld [vmem:[#allocation5 + $0xe98] sm:$0xff] }
 0x56f   :  { %8268 = vmatprep.subr.bf16.mxu0 %v8921_v23  ;;  %v9081_v23 = vcombine.high %v4044_v0, %v4048_v12  ;;  %v4112_v44 = vld [vmem:[#allocation5 + $0xeb8] sm:$0xff] }
 0x570   :  { %v4100_v60 = vld [vmem:[#allocation5 + $0xe58] sm:$0xff] }
 0x571   :  { %v4104_v62 = vld [vmem:[#allocation5 + $0xe78] sm:$0xff] }
 0x572   :  { %8269 = vmatpush2.bf16.msra.mxu0 %v8920_v32  ;;  %v9080_v32 = vcombine.low %v4044_v0, %v4048_v12 }
 0x573   :  { %8270 = vmatprep.subr.bf16.mxu0 %v8913_v20  ;;  %v9073_v20 = vcombine.high %v4036_v42, %v4040_v38 }
 0x576   :  { %8271 = vmatpush2.bf16.msra.mxu0 %v8912_v1  ;;  %v9072_v1 = vcombine.low %v4036_v42, %v4040_v38 }
 0x577   :  { %8272 = vmatprep.subr.bf16.mxu0 %v8905_v37  ;;  %v9065_v37 = vcombine.high %v4028_v21, %v4032_v49 }
 0x57a   :  { %8273 = vmatpush2.bf16.msra.mxu0 %v8904_v57  ;;  %v9064_v57 = vcombine.low %v4028_v21, %v4032_v49 }
 0x57b   :  { %8274 = vmatprep.subr.bf16.mxu0 %v8897_v3  ;;  %v9185_v3 = vcombine.high %v4148_v10, %v4152_v27 }
 0x57e   :  { %8275 = vmatpush2.bf16.msra.mxu0 %v8896_v36  ;;  %v9184_v36 = vcombine.low %v4148_v10, %v4152_v27 }
 0x57f   :  { %8276 = vmatprep.subr.bf16.mxu0 %v8889_v40  ;;  %v9177_v40 = vcombine.high %v4140_v50, %v4144_v29 }
 0x582   :  { %8277 = vmatpush2.bf16.msra.mxu0 %v8888_v39  ;;  %v9176_v39 = vcombine.low %v4140_v50, %v4144_v29 }
 0x583   :  { %8278 = vmatprep.subr.bf16.mxu0 %v8881_v48  ;;  %v9169_v48 = vcombine.high %v4132_v4, %v4136_v55 }
 0x586   :  { %8279 = vmatpush2.bf16.msra.mxu0 %v8880_v6  ;;  %v9168_v6 = vcombine.low %v4132_v4, %v4136_v55 }
 0x587   :  { %8280 = vmatprep.subr.bf16.mxu0 %v8873_v15  ;;  %v9161_v15 = vcombine.high %v4124_v51, %v4128_v9 }
 0x58a   :  { %8281 = vmatpush2.bf16.msra.mxu0 %v8872_v26  ;;  %v9160_v26 = vcombine.low %v4124_v51, %v4128_v9 }
 0x58b   :  { %8332 = vmatprep.subr.bf16.mxu0 %v9121_v45  ;;  %v9153_v45 = vcombine.high %v4116_v63, %v4120_v28 }
 0x58d   :  { %v10831_v13 = vpop.f32.mrf.mxu0  ;;  %8283 = vmatmul.mubr.bf16.vlgmr.msra.gmra.mxu0 %v10889_v47  ;;  %v9097_v47 = vcombine.high %v4060_v2, %v4064_v56 }
 0x58e   :  { %v10834_v30 = vpop.f32.mrf.mxu1  ;;  %8333 = vmatpush1.bf16.msra.mxu0 %v9120_v41  ;;  %8364 = vmatprep.mubr.bf16.mxu0 %v10521_v52  ;;  %v9096_v52 = vcombine.low %v4060_v2, %v4064_v56  ;;  %v9152_v41 = vcombine.low %v4116_v63, %v4120_v28  ;;  %v4301_v2 = vsub.s32 4, %v10891_v33  ;;  %v4092_v56 = vld [vmem:[#allocation5 + $0xe18] sm:$0xff] }
 0x58f   :  { %v10837_v24 = vpop.f32.mrf.mxu0  ;;  %8334 = vmatprep.subr.bf16.mxu0 %v9113_v31  ;;  %v9145_v31 = vcombine.high %v4108_v34, %v4112_v44 }
 0x590   :  { %v10839_v59 = vpop.f32.mrf.mxu1 }
 0x591   :  { %v8042_v5 = vpop.f32.mrf.mxu0 }
 0x592   :  { %v8247_v8 = vpop.f32.mrf.mxu1  ;;  %8335 = vmatpush1.bf16.msra.mxu0 %v9112_v61  ;;  %v9144_v61 = vcombine.low %v4108_v34, %v4112_v44  ;;  %v4096_v5 = vld [vmem:[#allocation5 + $0xe38] sm:$0xff] }
 0x593   :  { %v8043_v54 = vpop.f32.mrf.mxu0  ;;  %8336 = vmatprep.subr.bf16.mxu0 %v9105_v11  ;;  %v9137_v11 = vcombine.high %v4100_v60, %v4104_v62  ;;  %v4305_v8 = vsub.s32 5, %v10891_v33  ;;  %v9128_v18 = vcombine.low %v4092_v56, %v4096_v5 }
 0x594   :  { %v8248_v46 = vpop.f32.mrf.mxu1  ;;  %v9129_v54 = vcombine.high %v4092_v56, %v4096_v5 }
 0x595   :  { %v4306_v46 = vrot.slane %v10807_v17, %v4305_v8 }
 0x596   :  { %8337 = vmatpush1.bf16.msra.mxu0 %v9104_v25  ;;  %v9136_v25 = vcombine.low %v4100_v60, %v4104_v62 }
 0x597   :  { %8338 = vmatprep.subr.bf16.mxu0 %v9097_v47  ;;  %v4302_v47 = vrot.slane %v10807_v17, %v4301_v2 }
 0x599   :  { %v8039_v35 = vadd.f32 %v10831_v13, %v4302_v47 }
 0x59a   :  { %8339 = vmatpush1.bf16.msra.mxu0 %v9096_v52  ;;  %v8041_v52 = vadd.f32 %v10837_v24, %v4306_v46 }
 0x59b   :  { %8340 = vmatprep.subr.bf16.mxu0 %v9089_v16  ;;  %v8080_v16 = vadd.f32 %v10795_v7, %v8039_v35 }
 0x59e   :  { %8341 = vmatpush1.bf16.msra.mxu0 %v9088_v43 }
 0x59f   :  { %8342 = vmatprep.subr.bf16.mxu0 %v9081_v23  ;;  %v8082_v23 = vadd.f32 %v10802_v19, %v8041_v52 }
 0x5a2   :  { %8343 = vmatpush1.bf16.msra.mxu0 %v9080_v32 }
 0x5a3   :  { %8344 = vmatprep.subr.bf16.mxu0 %v9073_v20 }
 0x5a6   :  { %8345 = vmatpush1.bf16.msra.mxu0 %v9072_v1 }
 0x5a7   :  { %8346 = vmatprep.subr.bf16.mxu0 %v9065_v37 }
 0x5aa   :  { %8347 = vmatpush1.bf16.msra.mxu0 %v9064_v57 }
 0x5ab   :  { %8348 = vmatprep.subr.bf16.mxu0 %v9185_v3 }
 0x5ae   :  { %8349 = vmatpush2.bf16.msra.mxu0 %v9184_v36 }
 0x5af   :  { %8350 = vmatprep.subr.bf16.mxu0 %v9177_v40 }
 0x5b2   :  { %8351 = vmatpush2.bf16.msra.mxu0 %v9176_v39 }
 0x5b3   :  { %8352 = vmatprep.subr.bf16.mxu0 %v9169_v48  ;;  %v4309_v48 = vsub.s32 6, %v10891_v33 }
 0x5b5   :  { %v4310_v51 = vrot.slane %v10807_v17, %v4309_v48 }
 0x5b6   :  { %8353 = vmatpush2.bf16.msra.mxu0 %v9168_v6 }
 0x5b7   :  { %8354 = vmatprep.subr.bf16.mxu0 %v9161_v15  ;;  %v8244_v9 = vadd.f32 %v10834_v30, %v4310_v51 }
 0x5ba   :  { %8355 = vmatpush2.bf16.msra.mxu0 %v9160_v26 }
 0x5bb   :  { %8356 = vmatprep.subr.bf16.mxu0 %v9153_v45 }
 0x5be   :  { %8357 = vmatpush2.bf16.msra.mxu0 %v9152_v41 }
 0x5bf   :  { %8358 = vmatprep.subr.bf16.mxu0 %v9145_v31 }
 0x5c2   :  { %8359 = vmatpush2.bf16.msra.mxu0 %v9144_v61 }
 0x5c3   :  { %8360 = vmatprep.subr.bf16.mxu0 %v9137_v11 }
 0x5c6   :  { %8361 = vmatpush2.bf16.msra.mxu0 %v9136_v25 }
 0x5c7   :  { %8362 = vmatprep.subr.bf16.mxu0 %v9129_v54 }
 0x5ca   :  { %8363 = vmatpush2.bf16.msra.mxu0 %v9128_v18 }
 0x5cd   :  { %v8120_v0 = vpop.f32.mrf.mxu0  ;;  %8365 = vmatmul.mubr.bf16.vlgmr.msra.gmra.mxu0 %v10558_v53 }
 0x5ce   :  { %v8121_v12 = vadd.f32 %v8120_v0, %v8080_v16  ;;  %v8325_v43 = vpop.f32.mrf.mxu1 }
 0x5cf   :  { %v8122_v42 = vpop.f32.mrf.mxu0 }
 0x5d0   :  { %v8123_v38 = vadd.f32 %v8122_v42, %v8082_v23  ;;  %v8327_v32 = vpop.f32.mrf.mxu1  ;;  %v8162_v13 = vadd.f32 %v10817_v22, %v8121_v12  ;;  %v4313_v22 = vsub.s32 7, %v10891_v33 }
 0x5d1   :  { %v8124_v20 = vpop.f32.mrf.mxu0 }
 0x5d2   :  { %v8329_v21 = vpop.f32.mrf.mxu1  ;;  %v8164_v7 = vadd.f32 %v10822_v14, %v8123_v38  ;;  %v4314_v14 = vrot.slane %v10807_v17, %v4313_v22 }
 0x5d3   :  { %v8125_v49 = vpop.f32.mrf.mxu0 }
 0x5d4   :  { %v8330_v1 = vpop.f32.mrf.mxu1  ;;  %v8246_v6 = vadd.f32 %v10839_v59, %v4314_v14 }
 0x60d   :  { %v8202_v24 = vpop.f32.mrf.mxu0 }
 0x60e   :  { %v8203_v37 = vadd.f32 %v8202_v24, %v8162_v13  ;;  %v8407_v10 = vpop.f32.mrf.mxu1 }
 0x60f   :  { %v8204_v27 = vpop.f32.mrf.mxu0 }
 0x610   :  { %v8205_v53 = vadd.f32 %v8204_v27, %v8164_v7  ;;  %v8409_v57 = vpop.f32.mrf.mxu1 }
 0x611   :  { %v8206_v3 = vpop.f32.mrf.mxu0 }
 0x612   :  { %v8439_v50 = vcombine.low %v8203_v37, %v8205_v53  ;;  %v8411_v19 = vpop.f32.mrf.mxu1 }
 0x613   :  { %v8207_v29 = vpop.f32.mrf.mxu0 }
 0x614   :  { %v8412_v36 = vpop.f32.mrf.mxu1  ;;  %v8447_v17 = vrot.slane %v8439_v50, %v10892_v58 }
 0x64d   :  { %v8284_v40 = vpop.f32.mrf.mxu0 }
 0x64e   :  { %v8285_v15 = vadd.f32 %v8284_v40, %v8244_v9 }
 0x64f   :  { %v8286_v4 = vpop.f32.mrf.mxu0 }
 0x650   :  { %v8287_v63 = vadd.f32 %v8286_v4, %v8246_v6  ;;  %v8326_v28 = vadd.f32 %v8325_v43, %v8285_v15 }
 0x651   :  { %v8288_v55 = vpop.f32.mrf.mxu0 }
 0x652   :  { %v8328_v34 = vadd.f32 %v8327_v32, %v8287_v63 }
 0x653   :  { %v8289_v39 = vpop.f32.mrf.mxu0 }
 0x68d   :  { %v8366_v26 = vpop.f32.mrf.mxu0 }
 0x68e   :  { %v8367_v45 = vadd.f32 %v8366_v26, %v8326_v28 }
 0x68f   :  { %v8368_v44 = vpop.f32.mrf.mxu0 }
 0x690   :  { %v8369_v41 = vadd.f32 %v8368_v44, %v8328_v34  ;;  %v8408_v60 = vadd.f32 %v8407_v10, %v8367_v45 }
 0x691   :  { %v8370_v31 = vpop.f32.mrf.mxu0 }
 0x692   :  { %v8410_v62 = vadd.f32 %v8409_v57, %v8369_v41 }
 0x693   :  { %v8371_v33 = vpop.f32.mrf.mxu0 }
 0x694   :  { %v8440_v61 = vcombine.low %v8408_v60, %v8410_v62 }
 0x696   :  { %v8454_v30 = vrot.slane %v8440_v61, %v10892_v58 }
 0x698   :  { %v8455_v59 = vcombine.low %v8447_v17, %v8454_v30 }
 0x69a   :  { %8459 = vst [vmem:[#allocation8 + $0x8] sm:$0xff] %v8455_v59 }
 0x69b   :  { %9485 = shalt.err (!%p9482_p5)
}
 0x69c   :  { %8469 = dma.vmem_to_hbm [thread:$0]  %s8467_s7, 256, %s10867_s4, [#allocation4]  }
 0x69d   :  { %9498 = dma.done.wait [#allocation4], 256  }
 0x69e   :  { %9499 = vsyncadd [#allocation4], 4294967040 }
 0x69f   :  { %8473 = vsyncpa [#allocation3], 1 }
 0x6a0   :  { %8474 = vsyncpa [#allocation6], 1 }
 0x6a1   :  { %8475 = vsyncpa [#allocation4], 1 }

</bundles_post_ra>
